<compile_context>
chip_gen: v6e
topology: v6e:2x2x1
jax: 0.10.0
libtpu: 0.0.40
codegen_flags: <defaults>
</compile_context>

<pallas_src>
import functools

import jax
import jax.numpy as jnp
from jax import lax
from jax.experimental import pallas as pl
from jax.experimental.pallas import tpu as pltpu


# ----------------------------------------------------------------------------
# Kernel
# ----------------------------------------------------------------------------
def _lstm_kernel(x2d_ref, wih0_ref, b0_ref, wrec_ref, b1_ref, wfc_ref, bfc_ref,
                 out_ref, *, T, Bp):
    Hp = wrec_ref.shape[0] // 2          # padded hidden size (128)

    def cell(z, c_prev):
        # z: (Bp, 4*Hp) pre-activations, gate order [i | f | o | g].
        sig = jax.nn.sigmoid(z[:, :3 * Hp])          # i, f, o in one slab
        g = jnp.tanh(z[:, 3 * Hp:])
        i = sig[:, :Hp]
        f = sig[:, Hp:2 * Hp]
        o = sig[:, 2 * Hp:]
        c_new = f * c_prev + i * g
        h_new = o * jnp.tanh(c_new)
        return h_new, c_new

    # ---- layer-0 input projection for all T steps (bias folded) -------------
    z0 = (jnp.dot(x2d_ref[...], wih0_ref[...],
                  preferred_element_type=jnp.float32)
          + b0_ref[...])                              # (T*Bp, 4*Hp)

    # Loop-invariant operands, hoisted (including the b1 broadcast).
    wrec = wrec_ref[...]                              # (2*Hp, 8*Hp)
    b1 = jnp.broadcast_to(b1_ref[...], (Bp, 4 * Hp))

    zeros = jnp.zeros((Bp, Hp), jnp.float32)          # PyTorch default h0=c0=0

    # ---- wave 0: layer-0 step 0 (h0 = 0, recurrent term vanishes) -----------
    h0, c0 = cell(z0[0:Bp, :], zeros)
    h1, c1 = zeros, zeros

    # ---- waves 1..T-1: layer-0 step k + layer-1 step k-1, ONE fused matmul --
    # [h0 | h1] @ [[whh0, wih1],[0, whh1]] = [h0@whh0 | h0@wih1 + h1@whh1]
    for k in range(1, T):                             # static unroll (T small)
        lhs = jnp.concatenate([h0, h1], axis=1)       # (Bp, 2*Hp)
        zz = jnp.dot(lhs, wrec,
                     preferred_element_type=jnp.float32)   # (Bp, 8*Hp)
        z_l0 = zz[:, :4 * Hp] + z0[k * Bp:(k + 1) * Bp, :]  # 8-aligned slice
        z_l1 = zz[:, 4 * Hp:] + b1
        h0, c0 = cell(z_l0, c0)
        h1, c1 = cell(z_l1, c1)

    # ---- final wave: layer-1 step T-1 only -----------------------------------
    lhs = jnp.concatenate([h0, h1], axis=1)
    z_l1 = jnp.dot(lhs, wrec[:, 4 * Hp:],
                   preferred_element_type=jnp.float32) + b1
    h1, c1 = cell(z_l1, c1)

    # ---- fc on the last top-layer hidden state -------------------------------
    # wfc is lane-padded to 128 output columns (only column 0 is real), so the
    # store is one full unmasked (8,128) vst; the wrapper slices [:B, :1].
    out_ref[...] = (jnp.dot(h1, wfc_ref[...],
                            preferred_element_type=jnp.float32)
                    + bfc_ref[...])


# ----------------------------------------------------------------------------
# Wrapper
# ----------------------------------------------------------------------------
@jax.jit
def stock_lstm_forward(x, params):
    """x: (B, T, I) float32 (batch_first, as in PyTorch). Returns (B, 1)."""
    B, T, I = x.shape
    Bp = max(8, ((B + 7) // 8) * 8)          # pad batch to a full sublane tile
    lane = params["wfc"].shape[1]

    # time-major, batch-padded, flattened -> one batched layer-0 projection
    xp = jnp.zeros((T, Bp, I), jnp.float32).at[:, :B, :].set(
        jnp.transpose(x, (1, 0, 2)))
    x2d = xp.reshape(T * Bp, I)

    vmem = pl.BlockSpec(memory_space=pltpu.MemorySpace.VMEM)
    args = (x2d, params["wih0"], params["b0"], params["wrec"], params["b1"],
            params["wfc"], params["bfc"])

    out = pl.pallas_call(
        functools.partial(_lstm_kernel, T=T, Bp=Bp),
        out_shape=jax.ShapeDtypeStruct((Bp, lane), jnp.float32),
        in_specs=[vmem] * len(args),
        out_specs=vmem,
    )(*args)
    return out[:B, :1]


# ----------------------------------------------------------------------------
# Parameters: PyTorch-style raw weights + packing into the fused kernel layout
# ----------------------------------------------------------------------------
def init_raw_params(key, input_size, hidden_size):
    """PyTorch nn.LSTM / nn.Linear layouts: w_ih (4H,in), w_hh (4H,H),
    biases (4H,), gate order [i, f, g, o]; fc_w (1,H), fc_b (1,)."""
    H = hidden_size
    std = 1.0 / (H ** 0.5)

    def unif(k, shape):
        return jax.random.uniform(k, shape, jnp.float32, -std, std)

    ks = jax.random.split(key, 10)
    return {
        "w_ih_l0": unif(ks[0], (4 * H, input_size)),
        "w_hh_l0": unif(ks[1], (4 * H, H)),
        "b_ih_l0": unif(ks[2], (4 * H,)),
        "b_hh_l0": unif(ks[3], (4 * H,)),
        "w_ih_l1": unif(ks[4], (4 * H, H)),
        "w_hh_l1": unif(ks[5], (4 * H, H)),
        "b_ih_l1": unif(ks[6], (4 * H,)),
        "b_hh_l1": unif(ks[7], (4 * H,)),
        "fc_w":    unif(ks[8], (1, H)),
        "fc_b":    unif(ks[9], (1,)),
    }


def pack_params(raw, input_size, hidden_size, lane=128):
    """Restack PyTorch-layout weights into the fused / padded kernel layout.

    Per layer: gates reordered [i,f,g,o] -> [i,f,o,g], each gate zero-padded
    to Hp=128 lanes, concatenated along the output dim -> (in_pad, 4*Hp);
    b_ih + b_hh folded into one (1, 4*Hp) row.  The two recurrent operands
    of the wavefront matmul are stacked into one block matrix
        wrec = [[whh0, wih1], [0, whh1]]  of shape (2*Hp, 8*Hp).
    Padded rows / bias lanes / fc rows are zero so padded lanes stay inert.
    """
    H = hidden_size
    Hp = ((H + lane - 1) // lane) * lane
    order = (0, 1, 3, 2)   # PyTorch [i, f, g, o] -> kernel [i, f, o, g]

    def fuse_w(w, in_pad):
        in_dim = w.shape[1]
        out = jnp.zeros((in_pad, 4 * Hp), jnp.float32)
        for slot, gate in enumerate(order):
            blk = w[gate * H:(gate + 1) * H, :].T          # (in_dim, H)
            out = out.at[:in_dim, slot * Hp:slot * Hp + H].set(blk)
        return out

    def fuse_b(b_ih, b_hh):
        b = b_ih + b_hh
        out = jnp.zeros((1, 4 * Hp), jnp.float32)
        for slot, gate in enumerate(order):
            out = out.at[0, slot * Hp:slot * Hp + H].set(b[gate * H:(gate + 1) * H])
        return out

    wih0 = fuse_w(raw["w_ih_l0"], input_size)   # (I,  4*Hp)
    whh0 = fuse_w(raw["w_hh_l0"], Hp)           # (Hp, 4*Hp)
    wih1 = fuse_w(raw["w_ih_l1"], Hp)           # (Hp, 4*Hp)
    whh1 = fuse_w(raw["w_hh_l1"], Hp)           # (Hp, 4*Hp)

    wrec = jnp.zeros((2 * Hp, 8 * Hp), jnp.float32)
    wrec = wrec.at[:Hp, :4 * Hp].set(whh0)
    wrec = wrec.at[:Hp, 4 * Hp:].set(wih1)
    wrec = wrec.at[Hp:, 4 * Hp:].set(whh1)

    wfc = jnp.zeros((Hp, lane), jnp.float32).at[:H, 0].set(raw["fc_w"][0])
    bfc = jnp.zeros((1, lane), jnp.float32).at[0, 0].set(raw["fc_b"][0])

    return {
        "wih0": wih0,
        "b0":   fuse_b(raw["b_ih_l0"], raw["b_hh_l0"]),
        "wrec": wrec,
        "b1":   fuse_b(raw["b_ih_l1"], raw["b_hh_l1"]),
        "wfc":  wfc,
        "bfc":  bfc,
    }


# ----------------------------------------------------------------------------
# Pure-JAX reference with PyTorch semantics (for self-check)
# ----------------------------------------------------------------------------
def _ref_lstm_layer(x_seq, w_ih, w_hh, b_ih, b_hh):
    H = w_hh.shape[1]
    hi = lax.Precision.HIGHEST

    def step(carry, xt):
        h, c = carry
        z = (jnp.dot(xt, w_ih.T, precision=hi)
             + jnp.dot(h, w_hh.T, precision=hi) + b_ih + b_hh)
        i = jax.nn.sigmoid(z[:, 0 * H:1 * H])
        f = jax.nn.sigmoid(z[:, 1 * H:2 * H])
        g = jnp.tanh(z[:, 2 * H:3 * H])
        o = jax.nn.sigmoid(z[:, 3 * H:4 * H])
        c = f * c + i * g
        h = o * jnp.tanh(c)
        return (h, c), h

    B = x_seq.shape[1]
    h0 = jnp.zeros((B, H), jnp.float32)
    c0 = jnp.zeros((B, H), jnp.float32)
    _, hs = lax.scan(step, (h0, c0), x_seq)
    return hs                                  # (T, B, H)


def reference_forward(x, raw):
    xT = jnp.transpose(x, (1, 0, 2))           # (T, B, I)
    h0_seq = _ref_lstm_layer(xT, raw["w_ih_l0"], raw["w_hh_l0"],
                             raw["b_ih_l0"], raw["b_hh_l0"])
    h1_seq = _ref_lstm_layer(h0_seq, raw["w_ih_l1"], raw["w_hh_l1"],
                             raw["b_ih_l1"], raw["b_hh_l1"])
    last = h1_seq[-1]                          # (B, H)
    return jnp.dot(last, raw["fc_w"].T,
                   precision=lax.Precision.HIGHEST) + raw["fc_b"]


# ----------------------------------------------------------------------------
if __name__ == "__main__":
    INPUT_SIZE, HIDDEN_SIZE = 5, 100
    BATCH, SEQ = 2, 8

    key = jax.random.PRNGKey(0)
    kx, kp = jax.random.split(key)
    x = jax.random.normal(kx, (BATCH, SEQ, INPUT_SIZE), jnp.float32)

    raw = init_raw_params(kp, INPUT_SIZE, HIDDEN_SIZE)
    params = pack_params(raw, INPUT_SIZE, HIDDEN_SIZE)

    out = stock_lstm_forward(x, params)
    jax.block_until_ready(out)

    ref = reference_forward(x, raw)
    assert out.shape == (BATCH, 1), out.shape
    assert jnp.allclose(out, ref, atol=3e-4, rtol=3e-3), (out, ref)

    print("KERNEL_OK")
</pallas_src>

<mosaic_0001>
module attributes {stable_mosaic.version = 11 : i64} {
  func.func @_lstm_kernel(%arg0: memref<64x5xf32, #tpu.memory_space<vmem>>, %arg1: memref<5x512xf32, #tpu.memory_space<vmem>>, %arg2: memref<1x512xf32, #tpu.memory_space<vmem>>, %arg3: memref<256x1024xf32, #tpu.memory_space<vmem>>, %arg4: memref<1x512xf32, #tpu.memory_space<vmem>>, %arg5: memref<128x128xf32, #tpu.memory_space<vmem>>, %arg6: memref<1x128xf32, #tpu.memory_space<vmem>>, %arg7: memref<8x128xf32, #tpu.memory_space<vmem>>) attributes {dimension_semantics = [], scalar_prefetch = 0 : i64, scratch_operands = 0 : i64, tpu.core_type = #tpu.core_type<tc>} {
    %c0 = arith.constant 0 : index
    %c0_0 = arith.constant 0 : index
    %0 = vector.load %arg0[%c0, %c0_0] : memref<64x5xf32, #tpu.memory_space<vmem>>, vector<64x5xf32>
    %c0_1 = arith.constant 0 : index
    %c0_2 = arith.constant 0 : index
    %1 = vector.load %arg1[%c0_1, %c0_2] : memref<5x512xf32, #tpu.memory_space<vmem>>, vector<5x512xf32>
    %cst = arith.constant dense<0.000000e+00> : vector<64x512xf32>
    %2 = tpu.matmul %0, %1, %cst {dimension_numbers = #tpu.dot_dimension_numbers<[1], [0], [0], [1], [0, 0, 1, 1], [], []>} : vector<64x5xf32>, vector<5x512xf32>, vector<64x512xf32> -> vector<64x512xf32>
    %c0_3 = arith.constant 0 : index
    %c0_4 = arith.constant 0 : index
    %3 = vector.load %arg2[%c0_3, %c0_4] : memref<1x512xf32, #tpu.memory_space<vmem>>, vector<1x512xf32>
    %4 = vector.broadcast %3 : vector<1x512xf32> to vector<64x512xf32>
    %5 = arith.addf %2, %4 : vector<64x512xf32>
    %c0_5 = arith.constant 0 : index
    %c0_6 = arith.constant 0 : index
    %6 = vector.load %arg3[%c0_5, %c0_6] : memref<256x1024xf32, #tpu.memory_space<vmem>>, vector<256x1024xf32>
    %c0_7 = arith.constant 0 : index
    %c0_8 = arith.constant 0 : index
    %7 = vector.load %arg4[%c0_7, %c0_8] : memref<1x512xf32, #tpu.memory_space<vmem>>, vector<1x512xf32>
    %8 = vector.shape_cast %7 : vector<1x512xf32> to vector<1x512xf32>
    %9 = vector.broadcast %8 : vector<1x512xf32> to vector<8x512xf32>
    %cst_9 = arith.constant 0.000000e+00 : f32
    %10 = vector.broadcast %cst_9 : f32 to vector<8x128xf32>
    %11 = vector.extract_strided_slice %5 {offsets = [0, 0], sizes = [8, 512], strides = [1, 1]} : vector<64x512xf32> to vector<8x512xf32>
    %12 = vector.extract_strided_slice %11 {offsets = [0, 0], sizes = [8, 384], strides = [1, 1]} : vector<8x512xf32> to vector<8x384xf32>
    %13 = arith.negf %12 : vector<8x384xf32>
    %14 = math.exp %13 : vector<8x384xf32>
    %cst_10 = arith.constant 1.000000e+00 : f32
    %15 = vector.broadcast %cst_10 : f32 to vector<8x384xf32>
    %16 = arith.addf %15, %14 : vector<8x384xf32>
    %17 = arith.divf %15, %16 : vector<8x384xf32>
    %18 = vector.extract_strided_slice %11 {offsets = [0, 384], sizes = [8, 128], strides = [1, 1]} : vector<8x512xf32> to vector<8x128xf32>
    %19 = math.tanh %18 : vector<8x128xf32>
    %20 = vector.extract_strided_slice %17 {offsets = [0, 0], sizes = [8, 128], strides = [1, 1]} : vector<8x384xf32> to vector<8x128xf32>
    %21 = vector.extract_strided_slice %17 {offsets = [0, 128], sizes = [8, 128], strides = [1, 1]} : vector<8x384xf32> to vector<8x128xf32>
    %22 = vector.extract_strided_slice %17 {offsets = [0, 256], sizes = [8, 128], strides = [1, 1]} : vector<8x384xf32> to vector<8x128xf32>
    %23 = arith.mulf %21, %10 : vector<8x128xf32>
    %24 = arith.mulf %20, %19 : vector<8x128xf32>
    %25 = arith.addf %23, %24 : vector<8x128xf32>
    %26 = math.tanh %25 : vector<8x128xf32>
    %27 = arith.mulf %22, %26 : vector<8x128xf32>
    %28 = tpu.concatenate %27, %10 in 1 : vector<8x128xf32>, vector<8x128xf32> -> vector<8x256xf32>
    %cst_11 = arith.constant dense<0.000000e+00> : vector<8x1024xf32>
    %29 = tpu.matmul %28, %6, %cst_11 {dimension_numbers = #tpu.dot_dimension_numbers<[1], [0], [0], [1], [0, 0, 1, 1], [], []>} : vector<8x256xf32>, vector<256x1024xf32>, vector<8x1024xf32> -> vector<8x1024xf32>
    %30 = vector.extract_strided_slice %29 {offsets = [0, 0], sizes = [8, 512], strides = [1, 1]} : vector<8x1024xf32> to vector<8x512xf32>
    %31 = vector.extract_strided_slice %5 {offsets = [8, 0], sizes = [8, 512], strides = [1, 1]} : vector<64x512xf32> to vector<8x512xf32>
    %32 = arith.addf %30, %31 : vector<8x512xf32>
    %33 = vector.extract_strided_slice %29 {offsets = [0, 512], sizes = [8, 512], strides = [1, 1]} : vector<8x1024xf32> to vector<8x512xf32>
    %34 = arith.addf %33, %9 : vector<8x512xf32>
    %35 = vector.extract_strided_slice %32 {offsets = [0, 0], sizes = [8, 384], strides = [1, 1]} : vector<8x512xf32> to vector<8x384xf32>
    %36 = arith.negf %35 : vector<8x384xf32>
    %37 = math.exp %36 : vector<8x384xf32>
    %cst_12 = arith.constant 1.000000e+00 : f32
    %38 = vector.broadcast %cst_12 : f32 to vector<8x384xf32>
    %39 = arith.addf %38, %37 : vector<8x384xf32>
    %40 = arith.divf %38, %39 : vector<8x384xf32>
    %41 = vector.extract_strided_slice %32 {offsets = [0, 384], sizes = [8, 128], strides = [1, 1]} : vector<8x512xf32> to vector<8x128xf32>
    %42 = math.tanh %41 : vector<8x128xf32>
    %43 = vector.extract_strided_slice %40 {offsets = [0, 0], sizes = [8, 128], strides = [1, 1]} : vector<8x384xf32> to vector<8x128xf32>
    %44 = vector.extract_strided_slice %40 {offsets = [0, 128], sizes = [8, 128], strides = [1, 1]} : vector<8x384xf32> to vector<8x128xf32>
    %45 = vector.extract_strided_slice %40 {offsets = [0, 256], sizes = [8, 128], strides = [1, 1]} : vector<8x384xf32> to vector<8x128xf32>
    %46 = arith.mulf %44, %25 : vector<8x128xf32>
    %47 = arith.mulf %43, %42 : vector<8x128xf32>
    %48 = arith.addf %46, %47 : vector<8x128xf32>
    %49 = math.tanh %48 : vector<8x128xf32>
    %50 = arith.mulf %45, %49 : vector<8x128xf32>
    %51 = vector.extract_strided_slice %34 {offsets = [0, 0], sizes = [8, 384], strides = [1, 1]} : vector<8x512xf32> to vector<8x384xf32>
    %52 = arith.negf %51 : vector<8x384xf32>
    %53 = math.exp %52 : vector<8x384xf32>
    %cst_13 = arith.constant 1.000000e+00 : f32
    %54 = vector.broadcast %cst_13 : f32 to vector<8x384xf32>
    %55 = arith.addf %54, %53 : vector<8x384xf32>
    %56 = arith.divf %54, %55 : vector<8x384xf32>
    %57 = vector.extract_strided_slice %34 {offsets = [0, 384], sizes = [8, 128], strides = [1, 1]} : vector<8x512xf32> to vector<8x128xf32>
    %58 = math.tanh %57 : vector<8x128xf32>
    %59 = vector.extract_strided_slice %56 {offsets = [0, 0], sizes = [8, 128], strides = [1, 1]} : vector<8x384xf32> to vector<8x128xf32>
    %60 = vector.extract_strided_slice %56 {offsets = [0, 128], sizes = [8, 128], strides = [1, 1]} : vector<8x384xf32> to vector<8x128xf32>
    %61 = vector.extract_strided_slice %56 {offsets = [0, 256], sizes = [8, 128], strides = [1, 1]} : vector<8x384xf32> to vector<8x128xf32>
    %62 = arith.mulf %60, %10 : vector<8x128xf32>
    %63 = arith.mulf %59, %58 : vector<8x128xf32>
    %64 = arith.addf %62, %63 : vector<8x128xf32>
    %65 = math.tanh %64 : vector<8x128xf32>
    %66 = arith.mulf %61, %65 : vector<8x128xf32>
    %67 = tpu.concatenate %50, %66 in 1 : vector<8x128xf32>, vector<8x128xf32> -> vector<8x256xf32>
    %cst_14 = arith.constant dense<0.000000e+00> : vector<8x1024xf32>
    %68 = tpu.matmul %67, %6, %cst_14 {dimension_numbers = #tpu.dot_dimension_numbers<[1], [0], [0], [1], [0, 0, 1, 1], [], []>} : vector<8x256xf32>, vector<256x1024xf32>, vector<8x1024xf32> -> vector<8x1024xf32>
    %69 = vector.extract_strided_slice %68 {offsets = [0, 0], sizes = [8, 512], strides = [1, 1]} : vector<8x1024xf32> to vector<8x512xf32>
    %70 = vector.extract_strided_slice %5 {offsets = [16, 0], sizes = [8, 512], strides = [1, 1]} : vector<64x512xf32> to vector<8x512xf32>
    %71 = arith.addf %69, %70 : vector<8x512xf32>
    %72 = vector.extract_strided_slice %68 {offsets = [0, 512], sizes = [8, 512], strides = [1, 1]} : vector<8x1024xf32> to vector<8x512xf32>
    %73 = arith.addf %72, %9 : vector<8x512xf32>
    %74 = vector.extract_strided_slice %71 {offsets = [0, 0], sizes = [8, 384], strides = [1, 1]} : vector<8x512xf32> to vector<8x384xf32>
    %75 = arith.negf %74 : vector<8x384xf32>
    %76 = math.exp %75 : vector<8x384xf32>
    %cst_15 = arith.constant 1.000000e+00 : f32
    %77 = vector.broadcast %cst_15 : f32 to vector<8x384xf32>
    %78 = arith.addf %77, %76 : vector<8x384xf32>
    %79 = arith.divf %77, %78 : vector<8x384xf32>
    %80 = vector.extract_strided_slice %71 {offsets = [0, 384], sizes = [8, 128], strides = [1, 1]} : vector<8x512xf32> to vector<8x128xf32>
    %81 = math.tanh %80 : vector<8x128xf32>
    %82 = vector.extract_strided_slice %79 {offsets = [0, 0], sizes = [8, 128], strides = [1, 1]} : vector<8x384xf32> to vector<8x128xf32>
    %83 = vector.extract_strided_slice %79 {offsets = [0, 128], sizes = [8, 128], strides = [1, 1]} : vector<8x384xf32> to vector<8x128xf32>
    %84 = vector.extract_strided_slice %79 {offsets = [0, 256], sizes = [8, 128], strides = [1, 1]} : vector<8x384xf32> to vector<8x128xf32>
    %85 = arith.mulf %83, %48 : vector<8x128xf32>
    %86 = arith.mulf %82, %81 : vector<8x128xf32>
    %87 = arith.addf %85, %86 : vector<8x128xf32>
    %88 = math.tanh %87 : vector<8x128xf32>
    %89 = arith.mulf %84, %88 : vector<8x128xf32>
    %90 = vector.extract_strided_slice %73 {offsets = [0, 0], sizes = [8, 384], strides = [1, 1]} : vector<8x512xf32> to vector<8x384xf32>
    %91 = arith.negf %90 : vector<8x384xf32>
    %92 = math.exp %91 : vector<8x384xf32>
    %cst_16 = arith.constant 1.000000e+00 : f32
    %93 = vector.broadcast %cst_16 : f32 to vector<8x384xf32>
    %94 = arith.addf %93, %92 : vector<8x384xf32>
    %95 = arith.divf %93, %94 : vector<8x384xf32>
    %96 = vector.extract_strided_slice %73 {offsets = [0, 384], sizes = [8, 128], strides = [1, 1]} : vector<8x512xf32> to vector<8x128xf32>
    %97 = math.tanh %96 : vector<8x128xf32>
    %98 = vector.extract_strided_slice %95 {offsets = [0, 0], sizes = [8, 128], strides = [1, 1]} : vector<8x384xf32> to vector<8x128xf32>
    %99 = vector.extract_strided_slice %95 {offsets = [0, 128], sizes = [8, 128], strides = [1, 1]} : vector<8x384xf32> to vector<8x128xf32>
    %100 = vector.extract_strided_slice %95 {offsets = [0, 256], sizes = [8, 128], strides = [1, 1]} : vector<8x384xf32> to vector<8x128xf32>
    %101 = arith.mulf %99, %64 : vector<8x128xf32>
    %102 = arith.mulf %98, %97 : vector<8x128xf32>
    %103 = arith.addf %101, %102 : vector<8x128xf32>
    %104 = math.tanh %103 : vector<8x128xf32>
    %105 = arith.mulf %100, %104 : vector<8x128xf32>
    %106 = tpu.concatenate %89, %105 in 1 : vector<8x128xf32>, vector<8x128xf32> -> vector<8x256xf32>
    %cst_17 = arith.constant dense<0.000000e+00> : vector<8x1024xf32>
    %107 = tpu.matmul %106, %6, %cst_17 {dimension_numbers = #tpu.dot_dimension_numbers<[1], [0], [0], [1], [0, 0, 1, 1], [], []>} : vector<8x256xf32>, vector<256x1024xf32>, vector<8x1024xf32> -> vector<8x1024xf32>
    %108 = vector.extract_strided_slice %107 {offsets = [0, 0], sizes = [8, 512], strides = [1, 1]} : vector<8x1024xf32> to vector<8x512xf32>
    %109 = vector.extract_strided_slice %5 {offsets = [24, 0], sizes = [8, 512], strides = [1, 1]} : vector<64x512xf32> to vector<8x512xf32>
    %110 = arith.addf %108, %109 : vector<8x512xf32>
    %111 = vector.extract_strided_slice %107 {offsets = [0, 512], sizes = [8, 512], strides = [1, 1]} : vector<8x1024xf32> to vector<8x512xf32>
    %112 = arith.addf %111, %9 : vector<8x512xf32>
    %113 = vector.extract_strided_slice %110 {offsets = [0, 0], sizes = [8, 384], strides = [1, 1]} : vector<8x512xf32> to vector<8x384xf32>
    %114 = arith.negf %113 : vector<8x384xf32>
    %115 = math.exp %114 : vector<8x384xf32>
    %cst_18 = arith.constant 1.000000e+00 : f32
    %116 = vector.broadcast %cst_18 : f32 to vector<8x384xf32>
    %117 = arith.addf %116, %115 : vector<8x384xf32>
    %118 = arith.divf %116, %117 : vector<8x384xf32>
    %119 = vector.extract_strided_slice %110 {offsets = [0, 384], sizes = [8, 128], strides = [1, 1]} : vector<8x512xf32> to vector<8x128xf32>
    %120 = math.tanh %119 : vector<8x128xf32>
    %121 = vector.extract_strided_slice %118 {offsets = [0, 0], sizes = [8, 128], strides = [1, 1]} : vector<8x384xf32> to vector<8x128xf32>
    %122 = vector.extract_strided_slice %118 {offsets = [0, 128], sizes = [8, 128], strides = [1, 1]} : vector<8x384xf32> to vector<8x128xf32>
    %123 = vector.extract_strided_slice %118 {offsets = [0, 256], sizes = [8, 128], strides = [1, 1]} : vector<8x384xf32> to vector<8x128xf32>
    %124 = arith.mulf %122, %87 : vector<8x128xf32>
    %125 = arith.mulf %121, %120 : vector<8x128xf32>
    %126 = arith.addf %124, %125 : vector<8x128xf32>
    %127 = math.tanh %126 : vector<8x128xf32>
    %128 = arith.mulf %123, %127 : vector<8x128xf32>
    %129 = vector.extract_strided_slice %112 {offsets = [0, 0], sizes = [8, 384], strides = [1, 1]} : vector<8x512xf32> to vector<8x384xf32>
    %130 = arith.negf %129 : vector<8x384xf32>
    %131 = math.exp %130 : vector<8x384xf32>
    %cst_19 = arith.constant 1.000000e+00 : f32
    %132 = vector.broadcast %cst_19 : f32 to vector<8x384xf32>
    %133 = arith.addf %132, %131 : vector<8x384xf32>
    %134 = arith.divf %132, %133 : vector<8x384xf32>
    %135 = vector.extract_strided_slice %112 {offsets = [0, 384], sizes = [8, 128], strides = [1, 1]} : vector<8x512xf32> to vector<8x128xf32>
    %136 = math.tanh %135 : vector<8x128xf32>
    %137 = vector.extract_strided_slice %134 {offsets = [0, 0], sizes = [8, 128], strides = [1, 1]} : vector<8x384xf32> to vector<8x128xf32>
    %138 = vector.extract_strided_slice %134 {offsets = [0, 128], sizes = [8, 128], strides = [1, 1]} : vector<8x384xf32> to vector<8x128xf32>
    %139 = vector.extract_strided_slice %134 {offsets = [0, 256], sizes = [8, 128], strides = [1, 1]} : vector<8x384xf32> to vector<8x128xf32>
    %140 = arith.mulf %138, %103 : vector<8x128xf32>
    %141 = arith.mulf %137, %136 : vector<8x128xf32>
    %142 = arith.addf %140, %141 : vector<8x128xf32>
    %143 = math.tanh %142 : vector<8x128xf32>
    %144 = arith.mulf %139, %143 : vector<8x128xf32>
    %145 = tpu.concatenate %128, %144 in 1 : vector<8x128xf32>, vector<8x128xf32> -> vector<8x256xf32>
    %cst_20 = arith.constant dense<0.000000e+00> : vector<8x1024xf32>
    %146 = tpu.matmul %145, %6, %cst_20 {dimension_numbers = #tpu.dot_dimension_numbers<[1], [0], [0], [1], [0, 0, 1, 1], [], []>} : vector<8x256xf32>, vector<256x1024xf32>, vector<8x1024xf32> -> vector<8x1024xf32>
    %147 = vector.extract_strided_slice %146 {offsets = [0, 0], sizes = [8, 512], strides = [1, 1]} : vector<8x1024xf32> to vector<8x512xf32>
    %148 = vector.extract_strided_slice %5 {offsets = [32, 0], sizes = [8, 512], strides = [1, 1]} : vector<64x512xf32> to vector<8x512xf32>
    %149 = arith.addf %147, %148 : vector<8x512xf32>
    %150 = vector.extract_strided_slice %146 {offsets = [0, 512], sizes = [8, 512], strides = [1, 1]} : vector<8x1024xf32> to vector<8x512xf32>
    %151 = arith.addf %150, %9 : vector<8x512xf32>
    %152 = vector.extract_strided_slice %149 {offsets = [0, 0], sizes = [8, 384], strides = [1, 1]} : vector<8x512xf32> to vector<8x384xf32>
    %153 = arith.negf %152 : vector<8x384xf32>
    %154 = math.exp %153 : vector<8x384xf32>
    %cst_21 = arith.constant 1.000000e+00 : f32
    %155 = vector.broadcast %cst_21 : f32 to vector<8x384xf32>
    %156 = arith.addf %155, %154 : vector<8x384xf32>
    %157 = arith.divf %155, %156 : vector<8x384xf32>
    %158 = vector.extract_strided_slice %149 {offsets = [0, 384], sizes = [8, 128], strides = [1, 1]} : vector<8x512xf32> to vector<8x128xf32>
    %159 = math.tanh %158 : vector<8x128xf32>
    %160 = vector.extract_strided_slice %157 {offsets = [0, 0], sizes = [8, 128], strides = [1, 1]} : vector<8x384xf32> to vector<8x128xf32>
    %161 = vector.extract_strided_slice %157 {offsets = [0, 128], sizes = [8, 128], strides = [1, 1]} : vector<8x384xf32> to vector<8x128xf32>
    %162 = vector.extract_strided_slice %157 {offsets = [0, 256], sizes = [8, 128], strides = [1, 1]} : vector<8x384xf32> to vector<8x128xf32>
    %163 = arith.mulf %161, %126 : vector<8x128xf32>
    %164 = arith.mulf %160, %159 : vector<8x128xf32>
    %165 = arith.addf %163, %164 : vector<8x128xf32>
    %166 = math.tanh %165 : vector<8x128xf32>
    %167 = arith.mulf %162, %166 : vector<8x128xf32>
    %168 = vector.extract_strided_slice %151 {offsets = [0, 0], sizes = [8, 384], strides = [1, 1]} : vector<8x512xf32> to vector<8x384xf32>
    %169 = arith.negf %168 : vector<8x384xf32>
    %170 = math.exp %169 : vector<8x384xf32>
    %cst_22 = arith.constant 1.000000e+00 : f32
    %171 = vector.broadcast %cst_22 : f32 to vector<8x384xf32>
    %172 = arith.addf %171, %170 : vector<8x384xf32>
    %173 = arith.divf %171, %172 : vector<8x384xf32>
    %174 = vector.extract_strided_slice %151 {offsets = [0, 384], sizes = [8, 128], strides = [1, 1]} : vector<8x512xf32> to vector<8x128xf32>
    %175 = math.tanh %174 : vector<8x128xf32>
    %176 = vector.extract_strided_slice %173 {offsets = [0, 0], sizes = [8, 128], strides = [1, 1]} : vector<8x384xf32> to vector<8x128xf32>
    %177 = vector.extract_strided_slice %173 {offsets = [0, 128], sizes = [8, 128], strides = [1, 1]} : vector<8x384xf32> to vector<8x128xf32>
    %178 = vector.extract_strided_slice %173 {offsets = [0, 256], sizes = [8, 128], strides = [1, 1]} : vector<8x384xf32> to vector<8x128xf32>
    %179 = arith.mulf %177, %142 : vector<8x128xf32>
    %180 = arith.mulf %176, %175 : vector<8x128xf32>
    %181 = arith.addf %179, %180 : vector<8x128xf32>
    %182 = math.tanh %181 : vector<8x128xf32>
    %183 = arith.mulf %178, %182 : vector<8x128xf32>
    %184 = tpu.concatenate %167, %183 in 1 : vector<8x128xf32>, vector<8x128xf32> -> vector<8x256xf32>
    %cst_23 = arith.constant dense<0.000000e+00> : vector<8x1024xf32>
    %185 = tpu.matmul %184, %6, %cst_23 {dimension_numbers = #tpu.dot_dimension_numbers<[1], [0], [0], [1], [0, 0, 1, 1], [], []>} : vector<8x256xf32>, vector<256x1024xf32>, vector<8x1024xf32> -> vector<8x1024xf32>
    %186 = vector.extract_strided_slice %185 {offsets = [0, 0], sizes = [8, 512], strides = [1, 1]} : vector<8x1024xf32> to vector<8x512xf32>
    %187 = vector.extract_strided_slice %5 {offsets = [40, 0], sizes = [8, 512], strides = [1, 1]} : vector<64x512xf32> to vector<8x512xf32>
    %188 = arith.addf %186, %187 : vector<8x512xf32>
    %189 = vector.extract_strided_slice %185 {offsets = [0, 512], sizes = [8, 512], strides = [1, 1]} : vector<8x1024xf32> to vector<8x512xf32>
    %190 = arith.addf %189, %9 : vector<8x512xf32>
    %191 = vector.extract_strided_slice %188 {offsets = [0, 0], sizes = [8, 384], strides = [1, 1]} : vector<8x512xf32> to vector<8x384xf32>
    %192 = arith.negf %191 : vector<8x384xf32>
    %193 = math.exp %192 : vector<8x384xf32>
    %cst_24 = arith.constant 1.000000e+00 : f32
    %194 = vector.broadcast %cst_24 : f32 to vector<8x384xf32>
    %195 = arith.addf %194, %193 : vector<8x384xf32>
    %196 = arith.divf %194, %195 : vector<8x384xf32>
    %197 = vector.extract_strided_slice %188 {offsets = [0, 384], sizes = [8, 128], strides = [1, 1]} : vector<8x512xf32> to vector<8x128xf32>
    %198 = math.tanh %197 : vector<8x128xf32>
    %199 = vector.extract_strided_slice %196 {offsets = [0, 0], sizes = [8, 128], strides = [1, 1]} : vector<8x384xf32> to vector<8x128xf32>
    %200 = vector.extract_strided_slice %196 {offsets = [0, 128], sizes = [8, 128], strides = [1, 1]} : vector<8x384xf32> to vector<8x128xf32>
    %201 = vector.extract_strided_slice %196 {offsets = [0, 256], sizes = [8, 128], strides = [1, 1]} : vector<8x384xf32> to vector<8x128xf32>
    %202 = arith.mulf %200, %165 : vector<8x128xf32>
    %203 = arith.mulf %199, %198 : vector<8x128xf32>
    %204 = arith.addf %202, %203 : vector<8x128xf32>
    %205 = math.tanh %204 : vector<8x128xf32>
    %206 = arith.mulf %201, %205 : vector<8x128xf32>
    %207 = vector.extract_strided_slice %190 {offsets = [0, 0], sizes = [8, 384], strides = [1, 1]} : vector<8x512xf32> to vector<8x384xf32>
    %208 = arith.negf %207 : vector<8x384xf32>
    %209 = math.exp %208 : vector<8x384xf32>
    %cst_25 = arith.constant 1.000000e+00 : f32
    %210 = vector.broadcast %cst_25 : f32 to vector<8x384xf32>
    %211 = arith.addf %210, %209 : vector<8x384xf32>
    %212 = arith.divf %210, %211 : vector<8x384xf32>
    %213 = vector.extract_strided_slice %190 {offsets = [0, 384], sizes = [8, 128], strides = [1, 1]} : vector<8x512xf32> to vector<8x128xf32>
    %214 = math.tanh %213 : vector<8x128xf32>
    %215 = vector.extract_strided_slice %212 {offsets = [0, 0], sizes = [8, 128], strides = [1, 1]} : vector<8x384xf32> to vector<8x128xf32>
    %216 = vector.extract_strided_slice %212 {offsets = [0, 128], sizes = [8, 128], strides = [1, 1]} : vector<8x384xf32> to vector<8x128xf32>
    %217 = vector.extract_strided_slice %212 {offsets = [0, 256], sizes = [8, 128], strides = [1, 1]} : vector<8x384xf32> to vector<8x128xf32>
    %218 = arith.mulf %216, %181 : vector<8x128xf32>
    %219 = arith.mulf %215, %214 : vector<8x128xf32>
    %220 = arith.addf %218, %219 : vector<8x128xf32>
    %221 = math.tanh %220 : vector<8x128xf32>
    %222 = arith.mulf %217, %221 : vector<8x128xf32>
    %223 = tpu.concatenate %206, %222 in 1 : vector<8x128xf32>, vector<8x128xf32> -> vector<8x256xf32>
    %cst_26 = arith.constant dense<0.000000e+00> : vector<8x1024xf32>
    %224 = tpu.matmul %223, %6, %cst_26 {dimension_numbers = #tpu.dot_dimension_numbers<[1], [0], [0], [1], [0, 0, 1, 1], [], []>} : vector<8x256xf32>, vector<256x1024xf32>, vector<8x1024xf32> -> vector<8x1024xf32>
    %225 = vector.extract_strided_slice %224 {offsets = [0, 0], sizes = [8, 512], strides = [1, 1]} : vector<8x1024xf32> to vector<8x512xf32>
    %226 = vector.extract_strided_slice %5 {offsets = [48, 0], sizes = [8, 512], strides = [1, 1]} : vector<64x512xf32> to vector<8x512xf32>
    %227 = arith.addf %225, %226 : vector<8x512xf32>
    %228 = vector.extract_strided_slice %224 {offsets = [0, 512], sizes = [8, 512], strides = [1, 1]} : vector<8x1024xf32> to vector<8x512xf32>
    %229 = arith.addf %228, %9 : vector<8x512xf32>
    %230 = vector.extract_strided_slice %227 {offsets = [0, 0], sizes = [8, 384], strides = [1, 1]} : vector<8x512xf32> to vector<8x384xf32>
    %231 = arith.negf %230 : vector<8x384xf32>
    %232 = math.exp %231 : vector<8x384xf32>
    %cst_27 = arith.constant 1.000000e+00 : f32
    %233 = vector.broadcast %cst_27 : f32 to vector<8x384xf32>
    %234 = arith.addf %233, %232 : vector<8x384xf32>
    %235 = arith.divf %233, %234 : vector<8x384xf32>
    %236 = vector.extract_strided_slice %227 {offsets = [0, 384], sizes = [8, 128], strides = [1, 1]} : vector<8x512xf32> to vector<8x128xf32>
    %237 = math.tanh %236 : vector<8x128xf32>
    %238 = vector.extract_strided_slice %235 {offsets = [0, 0], sizes = [8, 128], strides = [1, 1]} : vector<8x384xf32> to vector<8x128xf32>
    %239 = vector.extract_strided_slice %235 {offsets = [0, 128], sizes = [8, 128], strides = [1, 1]} : vector<8x384xf32> to vector<8x128xf32>
    %240 = vector.extract_strided_slice %235 {offsets = [0, 256], sizes = [8, 128], strides = [1, 1]} : vector<8x384xf32> to vector<8x128xf32>
    %241 = arith.mulf %239, %204 : vector<8x128xf32>
    %242 = arith.mulf %238, %237 : vector<8x128xf32>
    %243 = arith.addf %241, %242 : vector<8x128xf32>
    %244 = math.tanh %243 : vector<8x128xf32>
    %245 = arith.mulf %240, %244 : vector<8x128xf32>
    %246 = vector.extract_strided_slice %229 {offsets = [0, 0], sizes = [8, 384], strides = [1, 1]} : vector<8x512xf32> to vector<8x384xf32>
    %247 = arith.negf %246 : vector<8x384xf32>
    %248 = math.exp %247 : vector<8x384xf32>
    %cst_28 = arith.constant 1.000000e+00 : f32
    %249 = vector.broadcast %cst_28 : f32 to vector<8x384xf32>
    %250 = arith.addf %249, %248 : vector<8x384xf32>
    %251 = arith.divf %249, %250 : vector<8x384xf32>
    %252 = vector.extract_strided_slice %229 {offsets = [0, 384], sizes = [8, 128], strides = [1, 1]} : vector<8x512xf32> to vector<8x128xf32>
    %253 = math.tanh %252 : vector<8x128xf32>
    %254 = vector.extract_strided_slice %251 {offsets = [0, 0], sizes = [8, 128], strides = [1, 1]} : vector<8x384xf32> to vector<8x128xf32>
    %255 = vector.extract_strided_slice %251 {offsets = [0, 128], sizes = [8, 128], strides = [1, 1]} : vector<8x384xf32> to vector<8x128xf32>
    %256 = vector.extract_strided_slice %251 {offsets = [0, 256], sizes = [8, 128], strides = [1, 1]} : vector<8x384xf32> to vector<8x128xf32>
    %257 = arith.mulf %255, %220 : vector<8x128xf32>
    %258 = arith.mulf %254, %253 : vector<8x128xf32>
    %259 = arith.addf %257, %258 : vector<8x128xf32>
    %260 = math.tanh %259 : vector<8x128xf32>
    %261 = arith.mulf %256, %260 : vector<8x128xf32>
    %262 = tpu.concatenate %245, %261 in 1 : vector<8x128xf32>, vector<8x128xf32> -> vector<8x256xf32>
    %cst_29 = arith.constant dense<0.000000e+00> : vector<8x1024xf32>
    %263 = tpu.matmul %262, %6, %cst_29 {dimension_numbers = #tpu.dot_dimension_numbers<[1], [0], [0], [1], [0, 0, 1, 1], [], []>} : vector<8x256xf32>, vector<256x1024xf32>, vector<8x1024xf32> -> vector<8x1024xf32>
    %264 = vector.extract_strided_slice %263 {offsets = [0, 0], sizes = [8, 512], strides = [1, 1]} : vector<8x1024xf32> to vector<8x512xf32>
    %265 = vector.extract_strided_slice %5 {offsets = [56, 0], sizes = [8, 512], strides = [1, 1]} : vector<64x512xf32> to vector<8x512xf32>
    %266 = arith.addf %264, %265 : vector<8x512xf32>
    %267 = vector.extract_strided_slice %263 {offsets = [0, 512], sizes = [8, 512], strides = [1, 1]} : vector<8x1024xf32> to vector<8x512xf32>
    %268 = arith.addf %267, %9 : vector<8x512xf32>
    %269 = vector.extract_strided_slice %266 {offsets = [0, 0], sizes = [8, 384], strides = [1, 1]} : vector<8x512xf32> to vector<8x384xf32>
    %270 = arith.negf %269 : vector<8x384xf32>
    %271 = math.exp %270 : vector<8x384xf32>
    %cst_30 = arith.constant 1.000000e+00 : f32
    %272 = vector.broadcast %cst_30 : f32 to vector<8x384xf32>
    %273 = arith.addf %272, %271 : vector<8x384xf32>
    %274 = arith.divf %272, %273 : vector<8x384xf32>
    %275 = vector.extract_strided_slice %266 {offsets = [0, 384], sizes = [8, 128], strides = [1, 1]} : vector<8x512xf32> to vector<8x128xf32>
    %276 = math.tanh %275 : vector<8x128xf32>
    %277 = vector.extract_strided_slice %274 {offsets = [0, 0], sizes = [8, 128], strides = [1, 1]} : vector<8x384xf32> to vector<8x128xf32>
    %278 = vector.extract_strided_slice %274 {offsets = [0, 128], sizes = [8, 128], strides = [1, 1]} : vector<8x384xf32> to vector<8x128xf32>
    %279 = vector.extract_strided_slice %274 {offsets = [0, 256], sizes = [8, 128], strides = [1, 1]} : vector<8x384xf32> to vector<8x128xf32>
    %280 = arith.mulf %278, %243 : vector<8x128xf32>
    %281 = arith.mulf %277, %276 : vector<8x128xf32>
    %282 = arith.addf %280, %281 : vector<8x128xf32>
    %283 = math.tanh %282 : vector<8x128xf32>
    %284 = arith.mulf %279, %283 : vector<8x128xf32>
    %285 = vector.extract_strided_slice %268 {offsets = [0, 0], sizes = [8, 384], strides = [1, 1]} : vector<8x512xf32> to vector<8x384xf32>
    %286 = arith.negf %285 : vector<8x384xf32>
    %287 = math.exp %286 : vector<8x384xf32>
    %cst_31 = arith.constant 1.000000e+00 : f32
    %288 = vector.broadcast %cst_31 : f32 to vector<8x384xf32>
    %289 = arith.addf %288, %287 : vector<8x384xf32>
    %290 = arith.divf %288, %289 : vector<8x384xf32>
    %291 = vector.extract_strided_slice %268 {offsets = [0, 384], sizes = [8, 128], strides = [1, 1]} : vector<8x512xf32> to vector<8x128xf32>
    %292 = math.tanh %291 : vector<8x128xf32>
    %293 = vector.extract_strided_slice %290 {offsets = [0, 0], sizes = [8, 128], strides = [1, 1]} : vector<8x384xf32> to vector<8x128xf32>
    %294 = vector.extract_strided_slice %290 {offsets = [0, 128], sizes = [8, 128], strides = [1, 1]} : vector<8x384xf32> to vector<8x128xf32>
    %295 = vector.extract_strided_slice %290 {offsets = [0, 256], sizes = [8, 128], strides = [1, 1]} : vector<8x384xf32> to vector<8x128xf32>
    %296 = arith.mulf %294, %259 : vector<8x128xf32>
    %297 = arith.mulf %293, %292 : vector<8x128xf32>
    %298 = arith.addf %296, %297 : vector<8x128xf32>
    %299 = math.tanh %298 : vector<8x128xf32>
    %300 = arith.mulf %295, %299 : vector<8x128xf32>
    %301 = tpu.concatenate %284, %300 in 1 : vector<8x128xf32>, vector<8x128xf32> -> vector<8x256xf32>
    %302 = vector.extract_strided_slice %6 {offsets = [0, 512], sizes = [256, 512], strides = [1, 1]} : vector<256x1024xf32> to vector<256x512xf32>
    %cst_32 = arith.constant dense<0.000000e+00> : vector<8x512xf32>
    %303 = tpu.matmul %301, %302, %cst_32 {dimension_numbers = #tpu.dot_dimension_numbers<[1], [0], [0], [1], [0, 0, 1, 1], [], []>} : vector<8x256xf32>, vector<256x512xf32>, vector<8x512xf32> -> vector<8x512xf32>
    %304 = arith.addf %303, %9 : vector<8x512xf32>
    %305 = vector.extract_strided_slice %304 {offsets = [0, 0], sizes = [8, 384], strides = [1, 1]} : vector<8x512xf32> to vector<8x384xf32>
    %306 = arith.negf %305 : vector<8x384xf32>
    %307 = math.exp %306 : vector<8x384xf32>
    %cst_33 = arith.constant 1.000000e+00 : f32
    %308 = vector.broadcast %cst_33 : f32 to vector<8x384xf32>
    %309 = arith.addf %308, %307 : vector<8x384xf32>
    %310 = arith.divf %308, %309 : vector<8x384xf32>
    %311 = vector.extract_strided_slice %304 {offsets = [0, 384], sizes = [8, 128], strides = [1, 1]} : vector<8x512xf32> to vector<8x128xf32>
    %312 = math.tanh %311 : vector<8x128xf32>
    %313 = vector.extract_strided_slice %310 {offsets = [0, 0], sizes = [8, 128], strides = [1, 1]} : vector<8x384xf32> to vector<8x128xf32>
    %314 = vector.extract_strided_slice %310 {offsets = [0, 128], sizes = [8, 128], strides = [1, 1]} : vector<8x384xf32> to vector<8x128xf32>
    %315 = vector.extract_strided_slice %310 {offsets = [0, 256], sizes = [8, 128], strides = [1, 1]} : vector<8x384xf32> to vector<8x128xf32>
    %316 = arith.mulf %314, %298 : vector<8x128xf32>
    %317 = arith.mulf %313, %312 : vector<8x128xf32>
    %318 = arith.addf %316, %317 : vector<8x128xf32>
    %319 = math.tanh %318 : vector<8x128xf32>
    %320 = arith.mulf %315, %319 : vector<8x128xf32>
    %c0_34 = arith.constant 0 : index
    %c0_35 = arith.constant 0 : index
    %321 = vector.load %arg5[%c0_34, %c0_35] : memref<128x128xf32, #tpu.memory_space<vmem>>, vector<128x128xf32>
    %cst_36 = arith.constant dense<0.000000e+00> : vector<8x128xf32>
    %322 = tpu.matmul %320, %321, %cst_36 {dimension_numbers = #tpu.dot_dimension_numbers<[1], [0], [0], [1], [0, 0, 1, 1], [], []>} : vector<8x128xf32>, vector<128x128xf32>, vector<8x128xf32> -> vector<8x128xf32>
    %c0_37 = arith.constant 0 : index
    %c0_38 = arith.constant 0 : index
    %323 = vector.load %arg6[%c0_37, %c0_38] : memref<1x128xf32, #tpu.memory_space<vmem>>, vector<1x128xf32>
    %324 = vector.broadcast %323 : vector<1x128xf32> to vector<8x128xf32>
    %325 = arith.addf %322, %324 : vector<8x128xf32>
    %c0_39 = arith.constant 0 : index
    %c0_40 = arith.constant 0 : index
    %326 = vector.load %arg7[%c0_39, %c0_40] : memref<8x128xf32, #tpu.memory_space<vmem>>, vector<8x128xf32>
    tpu.vector_store %arg7[%c0_39, %c0_40], %325 {strides = array<i32>} : memref<8x128xf32, #tpu.memory_space<vmem>>, vector<8x128xf32>,
    return
  }
}

</mosaic_0001>

<bundles_post_ra>
// kernel: stock_lstm_forward.1
= control target key start
LH: loop header
LB: loop body
LE: loop exit
PB: predicated region body
PF: predicated region fallthrough
CT: control target
= control target key end

     0   :  { %12 = vsyncpa [#allocation3], 0  ;;  %s8508_s0 = inlined_call_operand.vmem [shape: f32[64,5], index: 0, kind: input, shape index: {}]   ;;  %s8509_s1 = inlined_call_operand.vmem [shape: f32[5,512], index: 1, kind: input, shape index: {}]   ;;  %s8510_s2 = inlined_call_operand.vmem [shape: f32[1,512], index: 2, kind: input, shape index: {}]   ;;  %s8511_s3 = inlined_call_operand.hbm [shape: f32[256,1024], index: 3, kind: input, shape index: {}]   ;;  %s8512_s4 = inlined_call_operand.vmem [shape: f32[1,512], index: 4, kind: input, shape index: {}]   ;;  %s8513_s5 = inlined_call_operand.hbm [shape: f32[128,128], index: 5, kind: input, shape index: {}]   ;;  %s8514_s6 = inlined_call_operand.vmem [shape: f32[1,128], index: 6, kind: input, shape index: {}]   ;;  %s8515_s7 = inlined_call_operand.vmem [shape: f32[8,128], index: 7, kind: output, shape index: {}]  }
   0x1   :  { %13 = vsyncpa [#allocation5], 0  ;;  %s4497_s24 = smov [#allocation2]  }
   0x2   :  { %s25_s25 = sshll.u32 %s4497_s24, 4  ;;  %s26_s25 = int_to_ptr.vmem [resolvable:$true] %s25_s25 }
   0x3   :  { %s4461_s26 = scalar_lea.vmem %s26_s25, 32768  ;;  %p4466_p1 = scmp.lt.s32.totalorder %s26_s25, %s26_s25 }
   0x4   :  { %p4462_p0 = scmp.ne.s32.totalorder %s26_s25, %s4461_s26  ;;  %p4467_p2 = scmp.lt.s32.totalorder %s4461_s26, %s4461_s26 }
   0x6   :  { %p4468_p3 = por %p4467_p2, %p4466_p1 }
   0x8   :  { %p4469_p4 = pnand %p4468_p3, %p4462_p0 }
   0xa   :  { %4472 = shalt.err (!%p4469_p4)
}
   0xb   :  { %s4498_s27 = smov 1024   ;;  %s4499_s28 = smov 64  }
   0xc   :  { %31 = dma.hbm_to_vmem [thread:$0]  %s8511_s3, 32768, %s26_s25, [#allocation3], %s4498_s27, %s4498_s27, %s4499_s28  }
   0xd   :  { %s4500_s8 = smov [#allocation4]  }
   0xe   :  { %s39_s9 = sshll.u32 %s4500_s8, 4  ;;  %s40_s9 = int_to_ptr.vmem [resolvable:$true] %s39_s9 }
   0xf   :  { %s4481_s10 = scalar_lea.vmem %s40_s9, 2048  ;;  %p4486_p6 = scmp.lt.s32.totalorder %s40_s9, %s40_s9 }
  0x10   :  { %p4482_p5 = scmp.ne.s32.totalorder %s40_s9, %s4481_s10  ;;  %p4487_p7 = scmp.lt.s32.totalorder %s4481_s10, %s4481_s10 }
  0x12   :  { %p4488_p8 = por %p4487_p7, %p4486_p6 }
  0x14   :  { %p4489_p9 = pnand %p4488_p8, %p4482_p5 }
  0x16   :  { %4492 = shalt.err (!%p4489_p9)
}
  0x17   :  { %s4501_s11 = smov 128   ;;  %s4502_s12 = smov 8  }
  0x18   :  { %45 = dma.hbm_to_vmem [thread:$0]  %s8513_s5, 2048, %s40_s9, [#allocation5], %s4501_s11, %s4501_s11, %s4502_s12  }
  0x19   :  { %4493 = dma.done.wait [#allocation3], 32768  }
  0x1a   :  { %4494 = vsyncadd [#allocation3], 4294934528 }
  0x1b   :  { %4495 = dma.done.wait [#allocation5], 2048  }
  0x1c   :  { %4496 = vsyncadd [#allocation5], 4294965248  ;;  %v8519_v0 = vmov 0.0   ;;  %vm113_vm0 = vcmask 1044480   ;;  %v63_v1 = vld [vmem:[%s8509_s1 + $0x8] sm:$0x1f] }
  0x1d   :  { %190 = vmatprep.mubr.f32.mxu0 %v8519_v0  ;;  %303 = vmatprep.mubr.f32.mxu1 %v8519_v0  ;;  %v62_v2 = vld [vmem:[%s8509_s1] sm:$0x1f]  ;;  %vm88_vm1 = vcmask 39936   ;;  %v65_v4 = vld [vmem:[%s8509_s1 + $0x18] sm:$0x1f]  ;;  %v473_v6 = vld [vmem:[#allocation2 + $0x3c8] sm:$0xff] }
  0x1e   :  { %v54_v3 = vld [vmem:[%s8508_s0] sm:$0xff]  ;;  %3300 = vmatprep.subr.msk.mxu0 %vm113_vm0, %v63_v1  ;;  %v64_v5 = vld [vmem:[%s8509_s1 + $0x10] sm:$0x1f]  ;;  %3310 = vmatprep.subr.msk.mxu1 %vm113_vm0, %v65_v4  ;;  %v475_v7 = vld [vmem:[#allocation2 + $0x3d8] sm:$0xff]  ;;  %vm4504_vm2 = vmmov 0  }
  0x1f   :  { %3301 = vmatpush1.msk.msra.mxu0 %vm113_vm0, %v62_v2  ;;  %v472_v8 = vld [vmem:[#allocation2 + $0x3c0] sm:$0xff]  ;;  %3311 = vmatpush1.msk.msra.mxu1 %vm113_vm0, %v64_v5  ;;  %v474_v9 = vld [vmem:[#allocation2 + $0x3d0] sm:$0xff]  ;;  %v465_v10 = vld [vmem:[#allocation2 + $0x388] sm:$0xff] }
  0x20   :  { %3302 = vmatmul.mubr.msk.f32.vlgmr.msra.gmra.mxu0 %vm88_vm1, %v54_v3  ;;  %3312 = vmatmul.mubr.msk.f32.vlgmr.msra.gmra.mxu1 %vm88_vm1, %v54_v3  ;;  %v467_v11 = vld [vmem:[#allocation2 + $0x398] sm:$0xff]  ;;  %v464_v12 = vld [vmem:[#allocation2 + $0x380] sm:$0xff]  ;;  %v466_v13 = vld [vmem:[#allocation2 + $0x390] sm:$0xff] }
  0x21   :  { %654 = vmatprep.subr.mxu0 %v473_v6  ;;  %725 = vmatprep.subr.mxu1 %v475_v7  ;;  %v457_v14 = vld [vmem:[#allocation2 + $0x348] sm:$0xff]  ;;  %v459_v15 = vld [vmem:[#allocation2 + $0x358] sm:$0xff]  ;;  %v456_v16 = vld [vmem:[#allocation2 + $0x340] sm:$0xff] }
  0x22   :  { %655 = vmatpush1.msra.mxu0 %v472_v8  ;;  %726 = vmatpush1.msra.mxu1 %v474_v9  ;;  %v458_v17 = vld [vmem:[#allocation2 + $0x350] sm:$0xff]  ;;  %v449_v18 = vld [vmem:[#allocation2 + $0x308] sm:$0xff]  ;;  %v451_v19 = vld [vmem:[#allocation2 + $0x318] sm:$0xff] }
  0x23   :  { %656 = vmatprep.subr.mxu0 %v465_v10  ;;  %727 = vmatprep.subr.mxu1 %v467_v11  ;;  %v448_v20 = vld [vmem:[#allocation2 + $0x300] sm:$0xff]  ;;  %v450_v21 = vld [vmem:[#allocation2 + $0x310] sm:$0xff]  ;;  %v441_v22 = vld [vmem:[#allocation2 + $0x2c8] sm:$0xff] }
  0x24   :  { %657 = vmatpush1.msra.mxu0 %v464_v12  ;;  %728 = vmatpush1.msra.mxu1 %v466_v13  ;;  %v443_v23 = vld [vmem:[#allocation2 + $0x2d8] sm:$0xff]  ;;  %v440_v24 = vld [vmem:[#allocation2 + $0x2c0] sm:$0xff]  ;;  %v442_v25 = vld [vmem:[#allocation2 + $0x2d0] sm:$0xff] }
  0x25   :  { %658 = vmatprep.subr.mxu0 %v457_v14  ;;  %729 = vmatprep.subr.mxu1 %v459_v15  ;;  %v433_v26 = vld [vmem:[#allocation2 + $0x288] sm:$0xff]  ;;  %v435_v27 = vld [vmem:[#allocation2 + $0x298] sm:$0xff]  ;;  %v432_v28 = vld [vmem:[#allocation2 + $0x280] sm:$0xff] }
  0x26   :  { %659 = vmatpush1.msra.mxu0 %v456_v16  ;;  %730 = vmatpush1.msra.mxu1 %v458_v17  ;;  %v434_v29 = vld [vmem:[#allocation2 + $0x290] sm:$0xff]  ;;  %v425_v30 = vld [vmem:[#allocation2 + $0x248] sm:$0xff]  ;;  %v427_v31 = vld [vmem:[#allocation2 + $0x258] sm:$0xff] }
  0x27   :  { %660 = vmatprep.subr.mxu0 %v449_v18  ;;  %731 = vmatprep.subr.mxu1 %v451_v19  ;;  %v424_v32 = vld [vmem:[#allocation2 + $0x240] sm:$0xff]  ;;  %v426_v33 = vld [vmem:[#allocation2 + $0x250] sm:$0xff]  ;;  %v417_v34 = vld [vmem:[#allocation2 + $0x208] sm:$0xff] }
  0x28   :  { %661 = vmatpush1.msra.mxu0 %v448_v20  ;;  %732 = vmatpush1.msra.mxu1 %v450_v21  ;;  %v419_v35 = vld [vmem:[#allocation2 + $0x218] sm:$0xff]  ;;  %v416_v36 = vld [vmem:[#allocation2 + $0x200] sm:$0xff]  ;;  %v418_v37 = vld [vmem:[#allocation2 + $0x210] sm:$0xff] }
  0x29   :  { %196 = vmatprep.mubr.f32.mxu0 %v8519_v0  ;;  %309 = vmatprep.mubr.f32.mxu1 %v8519_v0  ;;  %v409_v38 = vld [vmem:[#allocation2 + $0x1c8] sm:$0xff]  ;;  %v411_v39 = vld [vmem:[#allocation2 + $0x1d8] sm:$0xff]  ;;  %v408_v40 = vld [vmem:[#allocation2 + $0x1c0] sm:$0xff] }
  0x2a   :  { %662 = vmatprep.subr.mxu0 %v441_v22  ;;  %733 = vmatprep.subr.mxu1 %v443_v23  ;;  %v410_v41 = vld [vmem:[#allocation2 + $0x1d0] sm:$0xff]  ;;  %v401_v42 = vld [vmem:[#allocation2 + $0x188] sm:$0xff]  ;;  %v403_v43 = vld [vmem:[#allocation2 + $0x198] sm:$0xff] }
  0x2b   :  { %663 = vmatpush1.msra.mxu0 %v440_v24  ;;  %734 = vmatpush1.msra.mxu1 %v442_v25  ;;  %v400_v44 = vld [vmem:[#allocation2 + $0x180] sm:$0xff]  ;;  %v402_v45 = vld [vmem:[#allocation2 + $0x190] sm:$0xff]  ;;  %v393_v46 = vld [vmem:[#allocation2 + $0x148] sm:$0xff] }
  0x2c   :  { %664 = vmatprep.subr.mxu0 %v433_v26  ;;  %735 = vmatprep.subr.mxu1 %v435_v27  ;;  %v395_v47 = vld [vmem:[#allocation2 + $0x158] sm:$0xff]  ;;  %v392_v48 = vld [vmem:[#allocation2 + $0x140] sm:$0xff]  ;;  %v394_v49 = vld [vmem:[#allocation2 + $0x150] sm:$0xff] }
  0x2d   :  { %665 = vmatpush1.msra.mxu0 %v432_v28  ;;  %736 = vmatpush1.msra.mxu1 %v434_v29  ;;  %v385_v50 = vld [vmem:[#allocation2 + $0x108] sm:$0xff]  ;;  %v387_v51 = vld [vmem:[#allocation2 + $0x118] sm:$0xff]  ;;  %v384_v52 = vld [vmem:[#allocation2 + $0x100] sm:$0xff] }
  0x2e   :  { %666 = vmatprep.subr.mxu0 %v425_v30  ;;  %737 = vmatprep.subr.mxu1 %v427_v31  ;;  %v386_v53 = vld [vmem:[#allocation2 + $0x110] sm:$0xff]  ;;  %v377_v54 = vld [vmem:[#allocation2 + $0xc8] sm:$0xff]  ;;  %v379_v55 = vld [vmem:[#allocation2 + $0xd8] sm:$0xff] }
  0x2f   :  { %667 = vmatpush1.msra.mxu0 %v424_v32  ;;  %738 = vmatpush1.msra.mxu1 %v426_v33  ;;  %v376_v56 = vld [vmem:[#allocation2 + $0xc0] sm:$0xff]  ;;  %v378_v57 = vld [vmem:[#allocation2 + $0xd0] sm:$0xff]  ;;  %v369_v58 = vld [vmem:[#allocation2 + $0x88] sm:$0xff] }
  0x30   :  { %668 = vmatprep.subr.mxu0 %v417_v34  ;;  %739 = vmatprep.subr.mxu1 %v419_v35  ;;  %v371_v59 = vld [vmem:[#allocation2 + $0x98] sm:$0xff]  ;;  %v368_v60 = vld [vmem:[#allocation2 + $0x80] sm:$0xff]  ;;  %v370_v61 = vld [vmem:[#allocation2 + $0x90] sm:$0xff] }
  0x31   :  { %669 = vmatpush1.msra.mxu0 %v416_v36  ;;  %740 = vmatpush1.msra.mxu1 %v418_v37  ;;  %v361_v62 = vld [vmem:[#allocation2 + $0x48] sm:$0xff]  ;;  %v363_v63 = vld [vmem:[#allocation2 + $0x58] sm:$0xff]  ;;  %v360_v1 = vld [vmem:[#allocation2 + $0x40] sm:$0xff] }
  0x32   :  { %670 = vmatprep.subr.mxu0 %v409_v38  ;;  %741 = vmatprep.subr.mxu1 %v411_v39  ;;  %v362_v2 = vld [vmem:[#allocation2 + $0x50] sm:$0xff]  ;;  %v353_v3 = vld [vmem:[#allocation2 + $0x8] sm:$0xff]  ;;  %v355_v4 = vld [vmem:[#allocation2 + $0x18] sm:$0xff] }
  0x33   :  { %671 = vmatpush1.msra.mxu0 %v408_v40  ;;  %742 = vmatpush1.msra.mxu1 %v410_v41  ;;  %v352_v5 = vld [vmem:[#allocation2] sm:$0xff]  ;;  %v354_v6 = vld [vmem:[#allocation2 + $0x10] sm:$0xff]  ;;  %v601_v7 = vld [vmem:[#allocation2 + $0x7c8] sm:$0xff] }
  0x34   :  { %672 = vmatprep.subr.mxu0 %v401_v42  ;;  %743 = vmatprep.subr.mxu1 %v403_v43  ;;  %v603_v8 = vld [vmem:[#allocation2 + $0x7d8] sm:$0xff]  ;;  %v600_v9 = vld [vmem:[#allocation2 + $0x7c0] sm:$0xff]  ;;  %v602_v10 = vld [vmem:[#allocation2 + $0x7d0] sm:$0xff] }
  0x35   :  { %673 = vmatpush1.msra.mxu0 %v400_v44  ;;  %744 = vmatpush1.msra.mxu1 %v402_v45  ;;  %v593_v11 = vld [vmem:[#allocation2 + $0x788] sm:$0xff]  ;;  %v595_v12 = vld [vmem:[#allocation2 + $0x798] sm:$0xff]  ;;  %v592_v14 = vld [vmem:[#allocation2 + $0x780] sm:$0xff] }
  0x36   :  { %674 = vmatprep.subr.mxu0 %v393_v46  ;;  %745 = vmatprep.subr.mxu1 %v395_v47  ;;  %v55_v13 = vld [vmem:[%s8508_s0 + $0x8] sm:$0xff]  ;;  %v594_v15 = vld [vmem:[#allocation2 + $0x790] sm:$0xff]  ;;  %v587_v17 = vld [vmem:[#allocation2 + $0x758] sm:$0xff] }
  0x37   :  { %675 = vmatpush1.msra.mxu0 %v392_v48  ;;  %746 = vmatpush1.msra.mxu1 %v394_v49  ;;  %v585_v16 = vld [vmem:[#allocation2 + $0x748] sm:$0xff]  ;;  %v584_v18 = vld [vmem:[#allocation2 + $0x740] sm:$0xff]  ;;  %v586_v19 = vld [vmem:[#allocation2 + $0x750] sm:$0xff] }
  0x38   :  { %676 = vmatprep.subr.mxu0 %v385_v50  ;;  %747 = vmatprep.subr.mxu1 %v387_v51  ;;  %v577_v20 = vld [vmem:[#allocation2 + $0x708] sm:$0xff]  ;;  %v579_v21 = vld [vmem:[#allocation2 + $0x718] sm:$0xff]  ;;  %v56_v22 = vld [vmem:[%s8508_s0 + $0x10] sm:$0xff] }
  0x39   :  { %677 = vmatpush1.msra.mxu0 %v384_v52  ;;  %748 = vmatpush1.msra.mxu1 %v386_v53  ;;  %v576_v23 = vld [vmem:[#allocation2 + $0x700] sm:$0xff]  ;;  %v578_v24 = vld [vmem:[#allocation2 + $0x710] sm:$0xff]  ;;  %v569_v25 = vld [vmem:[#allocation2 + $0x6c8] sm:$0xff] }
  0x3a   :  { %678 = vmatprep.subr.mxu0 %v377_v54  ;;  %749 = vmatprep.subr.mxu1 %v379_v55  ;;  %v571_v26 = vld [vmem:[#allocation2 + $0x6d8] sm:$0xff]  ;;  %v568_v27 = vld [vmem:[#allocation2 + $0x6c0] sm:$0xff]  ;;  %v570_v28 = vld [vmem:[#allocation2 + $0x6d0] sm:$0xff] }
  0x3b   :  { %679 = vmatpush1.msra.mxu0 %v376_v56  ;;  %750 = vmatpush1.msra.mxu1 %v378_v57  ;;  %v4583_v29 = vld [vmem:[#allocation2 + $0x688] sm:$0xff]  ;;  %v4586_v30 = vld [vmem:[#allocation2 + $0x698] sm:$0xff]  ;;  %v4591_v32 = vld [vmem:[#allocation2 + $0x680] sm:$0xff] }
  0x3c   :  { %680 = vmatprep.subr.mxu0 %v369_v58  ;;  %751 = vmatprep.subr.mxu1 %v371_v59  ;;  %v57_v31 = vld [vmem:[%s8508_s0 + $0x18] sm:$0xff]  ;;  %v4593_v33 = vld [vmem:[#allocation2 + $0x690] sm:$0xff]  ;;  %v4597_v34 = vld [vmem:[#allocation2 + $0x648] sm:$0xff] }
  0x3d   :  { %681 = vmatpush1.msra.mxu0 %v368_v60  ;;  %752 = vmatpush1.msra.mxu1 %v370_v61  ;;  %v4601_v35 = vld [vmem:[#allocation2 + $0x658] sm:$0xff]  ;;  %v4605_v36 = vld [vmem:[#allocation2 + $0x640] sm:$0xff]  ;;  %v4607_v37 = vld [vmem:[#allocation2 + $0x650] sm:$0xff] }
  0x3e   :  { %682 = vmatprep.subr.mxu0 %v361_v62  ;;  %753 = vmatprep.subr.mxu1 %v363_v63  ;;  %v4611_v38 = vld [vmem:[#allocation2 + $0x608] sm:$0xff]  ;;  %v4615_v39 = vld [vmem:[#allocation2 + $0x618] sm:$0xff]  ;;  %v58_v40 = vld [vmem:[%s8508_s0 + $0x20] sm:$0xff] }
  0x3f   :  { %683 = vmatpush1.msra.mxu0 %v360_v1  ;;  %754 = vmatpush1.msra.mxu1 %v362_v2  ;;  %v4622_v41 = vld [vmem:[#allocation2 + $0x600] sm:$0xff]  ;;  %v4624_v42 = vld [vmem:[#allocation2 + $0x610] sm:$0xff]  ;;  %v4628_v43 = vld [vmem:[#allocation2 + $0x5c8] sm:$0xff] }
  0x40   :  { %684 = vmatprep.subr.mxu0 %v353_v3  ;;  %755 = vmatprep.subr.mxu1 %v355_v4  ;;  %v4632_v44 = vld [vmem:[#allocation2 + $0x5d8] sm:$0xff]  ;;  %v4636_v45 = vld [vmem:[#allocation2 + $0x5c0] sm:$0xff]  ;;  %v4638_v46 = vld [vmem:[#allocation2 + $0x5d0] sm:$0xff] }
  0x41   :  { %685 = vmatpush1.msra.mxu0 %v352_v5  ;;  %756 = vmatpush1.msra.mxu1 %v354_v6  ;;  %v4642_v47 = vld [vmem:[#allocation2 + $0x588] sm:$0xff]  ;;  %v4646_v48 = vld [vmem:[#allocation2 + $0x598] sm:$0xff]  ;;  %v4653_v50 = vld [vmem:[#allocation2 + $0x580] sm:$0xff] }
  0x42   :  { %686 = vmatprep.subr.mxu0 %v601_v7  ;;  %757 = vmatprep.subr.mxu1 %v603_v8  ;;  %v59_v49 = vld [vmem:[%s8508_s0 + $0x28] sm:$0xff]  ;;  %v4655_v51 = vld [vmem:[#allocation2 + $0x590] sm:$0xff]  ;;  %v4663_v53 = vld [vmem:[#allocation2 + $0x558] sm:$0xff] }
  0x43   :  { %687 = vmatpush2.msra.mxu0 %v600_v9  ;;  %758 = vmatpush2.msra.mxu1 %v602_v10  ;;  %v4659_v52 = vld [vmem:[#allocation2 + $0x548] sm:$0xff]  ;;  %v4667_v54 = vld [vmem:[#allocation2 + $0x540] sm:$0xff]  ;;  %v4669_v55 = vld [vmem:[#allocation2 + $0x550] sm:$0xff] }
  0x44   :  { %688 = vmatprep.subr.mxu0 %v593_v11  ;;  %759 = vmatprep.subr.mxu1 %v595_v12  ;;  %v4673_v56 = vld [vmem:[#allocation2 + $0x508] sm:$0xff]  ;;  %v4677_v57 = vld [vmem:[#allocation2 + $0x518] sm:$0xff]  ;;  %v60_v58 = vld [vmem:[%s8508_s0 + $0x30] sm:$0xff] }
  0x45   :  { %3303 = vmatmul.mubr.msk.f32.gmra.mxu0 %vm88_vm1, %v55_v13  ;;  %760 = vmatpush2.msra.mxu1 %v594_v15  ;;  %v4684_v59 = vld [vmem:[#allocation2 + $0x500] sm:$0xff]  ;;  %v4686_v60 = vld [vmem:[#allocation2 + $0x510] sm:$0xff]  ;;  %v4690_v61 = vld [vmem:[#allocation2 + $0x4c8] sm:$0xff] }
  0x46   :  { %689 = vmatpush2.msra.mxu0 %v592_v14  ;;  %761 = vmatprep.subr.mxu1 %v587_v17  ;;  %v4694_v62 = vld [vmem:[#allocation2 + $0x4d8] sm:$0xff]  ;;  %v4698_v63 = vld [vmem:[#allocation2 + $0x4c0] sm:$0xff]  ;;  %v4700_v1 = vld [vmem:[#allocation2 + $0x4d0] sm:$0xff]  ;;  %v68_v17 = vlaneseq }
  0x47   :  { %690 = vmatprep.subr.mxu0 %v585_v16  ;;  %3313 = vmatmul.mubr.msk.f32.gmra.mxu1 %vm88_vm1, %v55_v13  ;;  %v4704_v2 = vld [vmem:[#allocation2 + $0x488] sm:$0xff]  ;;  %v4708_v3 = vld [vmem:[#allocation2 + $0x498] sm:$0xff]  ;;  %v4715_v5 = vld [vmem:[#allocation2 + $0x480] sm:$0xff] }
  0x48   :  { %691 = vmatpush2.msra.mxu0 %v584_v18  ;;  %762 = vmatpush2.msra.mxu1 %v586_v19  ;;  %v61_v4 = vld [vmem:[%s8508_s0 + $0x38] sm:$0xff]  ;;  %v4717_v6 = vld [vmem:[#allocation2 + $0x490] sm:$0xff]  ;;  %v4721_v7 = vld [vmem:[#allocation2 + $0x448] sm:$0xff]  ;;  %v4759_v18 = vshrl.u32 %v68_v17, 7 }
  0x49   :  { %202 = vmatprep.mubr.f32.mxu0 %v8519_v0  ;;  %692 = vmatprep.subr.mxu0 %v577_v20  ;;  %v4725_v8 = vld [vmem:[#allocation2 + $0x458] sm:$0xff]  ;;  %v4729_v9 = vld [vmem:[#allocation2 + $0x440] sm:$0xff]  ;;  %v4731_v10 = vld [vmem:[#allocation2 + $0x450] sm:$0xff] }
  0x4a   :  { %763 = vmatprep.subr.mxu1 %v579_v21  ;;  %3304 = vmatmul.mubr.msk.f32.gmra.mxu0 %vm88_vm1, %v56_v22  ;;  %v4735_v11 = vld [vmem:[#allocation2 + $0x408] sm:$0xff]  ;;  %v4737_v12 = vld [vmem:[#allocation2 + $0x418] sm:$0xff]  ;;  %v4741_v13 = vld [vmem:[#allocation2 + $0x400] sm:$0xff]  ;;  %9207 = vst [vmem:[#allocation8_spill] sm:$0xff] %v4759_v18  ;;  %v8518_v19 = vsub.s32 0, %v4759_v18  ;;  %v8516_v21 = vsub.s32 1, %v4759_v18 }
  0x4b   :  { %693 = vmatpush2.msra.mxu0 %v576_v23  ;;  %764 = vmatpush2.msra.mxu1 %v578_v24  ;;  %v4743_v14 = vld [vmem:[#allocation2 + $0x410] sm:$0xff]  ;;  %v4749_v15 = vld [vmem:[#allocation2 + $0x3e8] sm:$0xff]  ;;  %v4751_v16 = vld [vmem:[#allocation2 + $0x3f8] sm:$0xff] }
  0x4c   :  { %315 = vmatprep.mubr.f32.mxu1 %v8519_v0  ;;  %694 = vmatprep.subr.mxu0 %v569_v25  ;;  %v66_v20 = vld [vmem:[%s8510_s2] sm:$0xf] }
  0x4d   :  { %765 = vmatprep.subr.mxu1 %v571_v26  ;;  %3314 = vmatmul.mubr.msk.f32.gmra.mxu1 %vm88_vm1, %v56_v22  ;;  %v4768_v22 = vrot.slane %v66_v20, %v8518_v19  ;;  %v4772_v23 = vrot.slane %v66_v20, %v8516_v21 }
  0x4e   :  { %695 = vmatpush2.msra.mxu0 %v568_v27  ;;  %766 = vmatpush2.msra.mxu1 %v570_v28 }
  0x4f   :  { %208 = vmatprep.mubr.f32.mxu0 %v8519_v0  ;;  %696 = vmatprep.subr.mxu0 %v4583_v29  ;;  %9208 = vst [vmem:[#allocation9_spill] sm:$0xff] %v4768_v22  ;;  %9209 = vst [vmem:[#allocation10_spill] sm:$0xff] %v4772_v23 }
  0x50   :  { %767 = vmatprep.subr.mxu1 %v4586_v30  ;;  %3305 = vmatmul.mubr.msk.f32.gmra.mxu0 %vm88_vm1, %v57_v31 }
  0x51   :  { %697 = vmatpush2.msra.mxu0 %v4591_v32  ;;  %768 = vmatpush2.msra.mxu1 %v4593_v33 }
  0x52   :  { %321 = vmatprep.mubr.f32.mxu1 %v8519_v0  ;;  %698 = vmatprep.subr.mxu0 %v4597_v34 }
  0x53   :  { %769 = vmatprep.subr.mxu1 %v4601_v35  ;;  %3315 = vmatmul.mubr.msk.f32.gmra.mxu1 %vm88_vm1, %v57_v31  ;;  %v8517_v31 = vsub.s32 2, %v4759_v18 }
  0x54   :  { %699 = vmatpush2.msra.mxu0 %v4605_v36  ;;  %770 = vmatpush2.msra.mxu1 %v4607_v37 }
  0x55   :  { %214 = vmatprep.mubr.f32.mxu0 %v8519_v0  ;;  %700 = vmatprep.subr.mxu0 %v4611_v38 }
  0x56   :  { %771 = vmatprep.subr.mxu1 %v4615_v39  ;;  %3306 = vmatmul.mubr.msk.f32.gmra.mxu0 %vm88_vm1, %v58_v40 }
  0x57   :  { %701 = vmatpush2.msra.mxu0 %v4622_v41  ;;  %772 = vmatpush2.msra.mxu1 %v4624_v42 }
  0x58   :  { %327 = vmatprep.mubr.f32.mxu1 %v8519_v0  ;;  %702 = vmatprep.subr.mxu0 %v4628_v43 }
  0x59   :  { %773 = vmatprep.subr.mxu1 %v4632_v44  ;;  %3316 = vmatmul.mubr.msk.f32.gmra.mxu1 %vm88_vm1, %v58_v40 }
  0x5a   :  { %703 = vmatpush2.msra.mxu0 %v4636_v45  ;;  %774 = vmatpush2.msra.mxu1 %v4638_v46 }
  0x5b   :  { %220 = vmatprep.mubr.f32.mxu0 %v8519_v0  ;;  %704 = vmatprep.subr.mxu0 %v4642_v47 }
  0x5c   :  { %775 = vmatprep.subr.mxu1 %v4646_v48  ;;  %3307 = vmatmul.mubr.msk.f32.gmra.mxu0 %vm88_vm1, %v59_v49 }
  0x5d   :  { %705 = vmatpush2.msra.mxu0 %v4653_v50  ;;  %776 = vmatpush2.msra.mxu1 %v4655_v51 }
  0x5e   :  { %333 = vmatprep.mubr.f32.mxu1 %v8519_v0  ;;  %706 = vmatprep.subr.mxu0 %v4659_v52 }
  0x5f   :  { %777 = vmatprep.subr.mxu1 %v4663_v53  ;;  %3317 = vmatmul.mubr.msk.f32.gmra.mxu1 %vm88_vm1, %v59_v49  ;;  %v4779_v49 = vrot.slane %v66_v20, %v8517_v31 }
  0x60   :  { %707 = vmatpush2.msra.mxu0 %v4667_v54  ;;  %778 = vmatpush2.msra.mxu1 %v4669_v55 }
  0x61   :  { %226 = vmatprep.mubr.f32.mxu0 %v8519_v0  ;;  %708 = vmatprep.subr.mxu0 %v4673_v56  ;;  %9210 = vst [vmem:[#allocation11_spill] sm:$0xff] %v4779_v49 }
  0x62   :  { %779 = vmatprep.subr.mxu1 %v4677_v57  ;;  %3308 = vmatmul.mubr.msk.f32.gmra.mxu0 %vm88_vm1, %v60_v58 }
  0x63   :  { %709 = vmatpush2.msra.mxu0 %v4684_v59  ;;  %780 = vmatpush2.msra.mxu1 %v4686_v60 }
  0x64   :  { %339 = vmatprep.mubr.f32.mxu1 %v8519_v0  ;;  %710 = vmatprep.subr.mxu0 %v4690_v61 }
  0x65   :  { %781 = vmatprep.subr.mxu1 %v4694_v62  ;;  %3318 = vmatmul.mubr.msk.f32.gmra.mxu1 %vm88_vm1, %v60_v58  ;;  %v8527_v58 = vsub.s32 3, %v4759_v18 }
  0x66   :  { %711 = vmatpush2.msra.mxu0 %v4698_v63  ;;  %782 = vmatpush2.msra.mxu1 %v4700_v1 }
  0x67   :  { %232 = vmatprep.mubr.f32.mxu0 %v8519_v0  ;;  %712 = vmatprep.subr.mxu0 %v4704_v2 }
  0x68   :  { %783 = vmatprep.subr.mxu1 %v4708_v3  ;;  %3309 = vmatmul.mubr.msk.f32.gmra.mxu0 %vm88_vm1, %v61_v4 }
  0x69   :  { %713 = vmatpush2.msra.mxu0 %v4715_v5  ;;  %784 = vmatpush2.msra.mxu1 %v4717_v6 }
  0x6a   :  { %345 = vmatprep.mubr.f32.mxu1 %v8519_v0  ;;  %714 = vmatprep.subr.mxu0 %v4721_v7 }
  0x6b   :  { %785 = vmatprep.subr.mxu1 %v4725_v8  ;;  %3319 = vmatmul.mubr.msk.f32.gmra.mxu1 %vm88_vm1, %v61_v4 }
  0x6c   :  { %715 = vmatpush2.msra.mxu0 %v4729_v9  ;;  %786 = vmatpush2.msra.mxu1 %v4731_v10 }
  0x6d   :  { %716 = vmatprep.subr.mxu0 %v4735_v11  ;;  %787 = vmatprep.subr.mxu1 %v4737_v12 }
  0x6e   :  { %717 = vmatpush2.msra.mxu0 %v4741_v13  ;;  %788 = vmatpush2.msra.mxu1 %v4743_v14 }
  0x6f   :  { %718 = vmatprep.mubr.f32.mxu0 %v8519_v0  ;;  %789 = vmatprep.mubr.f32.mxu1 %v8519_v0 }
  0x70   :  { %796 = vmatprep.subr.mxu0 %v4749_v15  ;;  %867 = vmatprep.subr.mxu1 %v4751_v16 }
  0xe0   :  { %v192_v24 = vpop.f32.mrf.mxu0  ;;  %v305_v4 = vpop.f32.mrf.mxu1 }
  0xe1   :  { %v193_v25 = vadd.f32 %v192_v24, %v4768_v22  ;;  %v306_v17 = vadd.f32 %v305_v4, %v4779_v49  ;;  %v4785_v24 = vrot.slane %v66_v20, %v8527_v58 }
  0xe2   :  { %v194_v26 = vpop.f32.mrf.mxu0 }
  0xe3   :  { %v3320_v27 = vmul.f32 -1.442695, %v193_v25  ;;  %v195_v28 = vadd.f32 %v194_v26, %v4772_v23  ;;  %9211 = vst [vmem:[#allocation12_spill] sm:$0xff] %v4785_v24  ;;  %v307_v25 = vpop.f32.mrf.mxu1  ;;  %v3322_v26 = vmul.f32 -1.442695, %v306_v17 }
  0xe4   :  { %v308_v21 = vadd.f32 %v307_v25, %v4785_v24 }
  0xe5   :  { %3429 = vpow2.f32 %v3320_v27  ;;  %v3321_v40 = vmul.f32 -1.442695, %v195_v28 }
  0xe7   :  { %3431 = vpow2.f32 %v3321_v40 }
  0xe8   :  { %3433 = vpow2.f32 %v3322_v26 }
  0xe9   :  { %3435 = vtanh.f32 %v308_v21  ;;  %v4793_v21 = vld [vmem:[#allocation2 + $0x3e0] sm:$0xff] }
  0xf2   :  { %v3430_v27 = vpop.eup %3429 }
  0xf3   :  { %v639_v28 = vadd.f32 1.0, %v3430_v27  ;;  %v4795_v27 = vld [vmem:[#allocation2 + $0x3f0] sm:$0xff] }
  0xf4   :  { %v3432_v40 = vpop.eup %3431 }
  0xf5   :  { %3437 = vrcp.f32 %v639_v28  ;;  %v640_v31 = vadd.f32 1.0, %v3432_v40  ;;  %v3434_v19 = vpop.eup %3433  ;;  %v4799_v28 = vld [vmem:[#allocation2 + $0x3b8] sm:$0xff]  ;;  %v4817_v40 = vld [vmem:[#allocation2 + $0x370] sm:$0xff] }
  0xf6   :  { %v3436_v0 = vpop.eup %3435  ;;  %v641_v49 = vadd.f32 1.0, %v3434_v19  ;;  %9212 = vst [vmem:[#allocation13_spill] sm:$0xff] %v4799_v28  ;;  %v4809_v19 = vld [vmem:[#allocation2 + $0x368] sm:$0xff]  ;;  %9218 = vst [vmem:[#allocation19_spill] sm:$0xff] %v4817_v40 }
  0xf7   :  { %3439 = vrcp.f32 %v640_v31  ;;  %v4797_v31 = vld [vmem:[#allocation2 + $0x3a8] sm:$0xff]  ;;  %9215 = vst [vmem:[#allocation16_spill] sm:$0xff] %v4809_v19 }
  0xf8   :  { %3441 = vrcp.f32 %v641_v49  ;;  %v4815_v49 = vld [vmem:[#allocation2 + $0x360] sm:$0xff] }
  0xf9   :  { %9217 = vst [vmem:[#allocation18_spill] sm:$0xff] %v4815_v49 }
 0x102   :  { %v3438_v22 = vpop.eup %3437 }
 0x103   :  { %v650_v20 = vmul.f32 %v3438_v22, %v3436_v0  ;;  %v4803_v0 = vld [vmem:[#allocation2 + $0x3a0] sm:$0xff]  ;;  %v4811_v22 = vld [vmem:[#allocation2 + $0x378] sm:$0xff] }
 0x104   :  { %v3440_v4 = vpop.eup %3439  ;;  %9213 = vst [vmem:[#allocation14_spill] sm:$0xff] %v4803_v0  ;;  %9216 = vst [vmem:[#allocation17_spill] sm:$0xff] %v4811_v22 }
 0x105   :  { %v649_v18 = vmul.f32 0.0, %v3440_v4  ;;  %v3442_v17 = vpop.eup %3441  ;;  %v4821_v4 = vld [vmem:[#allocation2 + $0x328] sm:$0xff] }
 0x106   :  { %9219 = vst [vmem:[#allocation20_spill] sm:$0xff] %v4821_v4 }
 0x107   :  { %v4788_v58 = vadd.f32 %v650_v20, %v649_v18  ;;  %v4805_v18 = vld [vmem:[#allocation2 + $0x3b0] sm:$0xff]  ;;  %v4823_v20 = vld [vmem:[#allocation2 + $0x338] sm:$0xff] }
 0x108   :  { %9214 = vst [vmem:[#allocation15_spill] sm:$0xff] %v4805_v18  ;;  %9220 = vst [vmem:[#allocation21_spill] sm:$0xff] %v4823_v20 }
 0x109   :  { %3443 = vtanh.f32 %v4788_v58 }
 0x116   :  { %v3444_v25 = vpop.eup %3443 }
 0x117   :  { %v4791_v26 = vmul.f32 %v3444_v25, %v3442_v17  ;;  %v4827_v17 = vld [vmem:[#allocation2 + $0x320] sm:$0xff]  ;;  %v4829_v25 = vld [vmem:[#allocation2 + $0x330] sm:$0xff] }
 0x118   :  { %9221 = vst [vmem:[#allocation22_spill] sm:$0xff] %v4827_v17  ;;  %9222 = vst [vmem:[#allocation23_spill] sm:$0xff] %v4829_v25 }
 0x119   :  { %719 = vmatmul.mubr.f32.vlgmr.msra.gmra.mxu0 %v4791_v26  ;;  %790 = vmatmul.mubr.f32.vlgmr.msra.gmra.mxu1 %v4791_v26 }
 0x11a   :  { %797 = vmatpush1.msra.mxu0 %v4793_v21  ;;  %868 = vmatpush1.msra.mxu1 %v4795_v27 }
 0x11b   :  { %798 = vmatprep.subr.mxu0 %v4797_v31  ;;  %869 = vmatprep.subr.mxu1 %v4799_v28  ;;  %v4833_v28 = vld [vmem:[#allocation2 + $0x2e8] sm:$0xff] }
 0x11c   :  { %799 = vmatpush1.msra.mxu0 %v4803_v0  ;;  %870 = vmatpush1.msra.mxu1 %v4805_v18  ;;  %9223 = vst [vmem:[#allocation24_spill] sm:$0xff] %v4833_v28  ;;  %v4835_v0 = vld [vmem:[#allocation2 + $0x2f8] sm:$0xff]  ;;  %v4839_v18 = vld [vmem:[#allocation2 + $0x2e0] sm:$0xff] }
 0x11d   :  { %800 = vmatprep.subr.mxu0 %v4809_v19  ;;  %871 = vmatprep.subr.mxu1 %v4811_v22  ;;  %9224 = vst [vmem:[#allocation25_spill] sm:$0xff] %v4835_v0  ;;  %9225 = vst [vmem:[#allocation26_spill] sm:$0xff] %v4839_v18  ;;  %v4841_v19 = vld [vmem:[#allocation2 + $0x2f0] sm:$0xff]  ;;  %v4845_v22 = vld [vmem:[#allocation2 + $0x2a8] sm:$0xff] }
 0x11e   :  { %801 = vmatpush1.msra.mxu0 %v4815_v49  ;;  %872 = vmatpush1.msra.mxu1 %v4817_v40  ;;  %9226 = vst [vmem:[#allocation27_spill] sm:$0xff] %v4841_v19  ;;  %9227 = vst [vmem:[#allocation28_spill] sm:$0xff] %v4845_v22  ;;  %v4847_v49 = vld [vmem:[#allocation2 + $0x2b8] sm:$0xff]  ;;  %v4851_v40 = vld [vmem:[#allocation2 + $0x2a0] sm:$0xff] }
 0x11f   :  { %802 = vmatprep.subr.mxu0 %v4821_v4  ;;  %873 = vmatprep.subr.mxu1 %v4823_v20  ;;  %9228 = vst [vmem:[#allocation29_spill] sm:$0xff] %v4847_v49  ;;  %9229 = vst [vmem:[#allocation30_spill] sm:$0xff] %v4851_v40  ;;  %v4853_v4 = vld [vmem:[#allocation2 + $0x2b0] sm:$0xff]  ;;  %v4857_v20 = vld [vmem:[#allocation2 + $0x268] sm:$0xff] }
 0x120   :  { %803 = vmatpush1.msra.mxu0 %v4827_v17  ;;  %874 = vmatpush1.msra.mxu1 %v4829_v25  ;;  %9230 = vst [vmem:[#allocation31_spill] sm:$0xff] %v4853_v4  ;;  %9231 = vst [vmem:[#allocation32_spill] sm:$0xff] %v4857_v20  ;;  %v4859_v17 = vld [vmem:[#allocation2 + $0x278] sm:$0xff]  ;;  %v4863_v25 = vld [vmem:[#allocation2 + $0x260] sm:$0xff] }
 0x121   :  { %804 = vmatprep.subr.mxu0 %v4833_v28  ;;  %875 = vmatprep.subr.mxu1 %v4835_v0  ;;  %9232 = vst [vmem:[#allocation33_spill] sm:$0xff] %v4859_v17  ;;  %9233 = vst [vmem:[#allocation34_spill] sm:$0xff] %v4863_v25  ;;  %v4865_v28 = vld [vmem:[#allocation2 + $0x270] sm:$0xff]  ;;  %v4869_v0 = vld [vmem:[#allocation2 + $0x228] sm:$0xff] }
 0x122   :  { %805 = vmatpush1.msra.mxu0 %v4839_v18  ;;  %876 = vmatpush1.msra.mxu1 %v4841_v19  ;;  %9234 = vst [vmem:[#allocation35_spill] sm:$0xff] %v4865_v28  ;;  %9235 = vst [vmem:[#allocation36_spill] sm:$0xff] %v4869_v0  ;;  %v4871_v18 = vld [vmem:[#allocation2 + $0x238] sm:$0xff]  ;;  %v4875_v19 = vld [vmem:[#allocation2 + $0x220] sm:$0xff] }
 0x123   :  { %806 = vmatprep.subr.mxu0 %v4845_v22  ;;  %877 = vmatprep.subr.mxu1 %v4847_v49  ;;  %9236 = vst [vmem:[#allocation37_spill] sm:$0xff] %v4871_v18  ;;  %9237 = vst [vmem:[#allocation38_spill] sm:$0xff] %v4875_v19  ;;  %v4877_v22 = vld [vmem:[#allocation2 + $0x230] sm:$0xff]  ;;  %v4881_v49 = vld [vmem:[#allocation2 + $0x1e8] sm:$0xff] }
 0x124   :  { %807 = vmatpush1.msra.mxu0 %v4851_v40  ;;  %878 = vmatpush1.msra.mxu1 %v4853_v4  ;;  %9238 = vst [vmem:[#allocation39_spill] sm:$0xff] %v4877_v22  ;;  %9239 = vst [vmem:[#allocation40_spill] sm:$0xff] %v4881_v49  ;;  %v4883_v40 = vld [vmem:[#allocation2 + $0x1f8] sm:$0xff]  ;;  %v4887_v4 = vld [vmem:[#allocation2 + $0x1e0] sm:$0xff] }
 0x125   :  { %808 = vmatprep.subr.mxu0 %v4857_v20  ;;  %879 = vmatprep.subr.mxu1 %v4859_v17  ;;  %9240 = vst [vmem:[#allocation41_spill] sm:$0xff] %v4883_v40  ;;  %9241 = vst [vmem:[#allocation42_spill] sm:$0xff] %v4887_v4  ;;  %v4889_v20 = vld [vmem:[#allocation2 + $0x1f0] sm:$0xff]  ;;  %v4893_v17 = vld [vmem:[#allocation2 + $0x1a8] sm:$0xff] }
 0x126   :  { %809 = vmatpush1.msra.mxu0 %v4863_v25  ;;  %880 = vmatpush1.msra.mxu1 %v4865_v28  ;;  %9242 = vst [vmem:[#allocation43_spill] sm:$0xff] %v4889_v20  ;;  %9243 = vst [vmem:[#allocation44_spill] sm:$0xff] %v4893_v17  ;;  %v4895_v25 = vld [vmem:[#allocation2 + $0x1b8] sm:$0xff]  ;;  %v4899_v28 = vld [vmem:[#allocation2 + $0x1a0] sm:$0xff] }
 0x127   :  { %810 = vmatprep.subr.mxu0 %v4869_v0  ;;  %881 = vmatprep.subr.mxu1 %v4871_v18  ;;  %9244 = vst [vmem:[#allocation45_spill] sm:$0xff] %v4895_v25  ;;  %9245 = vst [vmem:[#allocation46_spill] sm:$0xff] %v4899_v28  ;;  %v4901_v0 = vld [vmem:[#allocation2 + $0x1b0] sm:$0xff]  ;;  %v4905_v18 = vld [vmem:[#allocation2 + $0x168] sm:$0xff] }
 0x128   :  { %811 = vmatpush1.msra.mxu0 %v4875_v19  ;;  %882 = vmatpush1.msra.mxu1 %v4877_v22  ;;  %9246 = vst [vmem:[#allocation47_spill] sm:$0xff] %v4901_v0  ;;  %9247 = vst [vmem:[#allocation48_spill] sm:$0xff] %v4905_v18  ;;  %v4907_v19 = vld [vmem:[#allocation2 + $0x178] sm:$0xff]  ;;  %v4911_v22 = vld [vmem:[#allocation2 + $0x160] sm:$0xff] }
 0x129   :  { %812 = vmatprep.subr.mxu0 %v4881_v49  ;;  %883 = vmatprep.subr.mxu1 %v4883_v40  ;;  %9248 = vst [vmem:[#allocation49_spill] sm:$0xff] %v4907_v19  ;;  %9249 = vst [vmem:[#allocation50_spill] sm:$0xff] %v4911_v22  ;;  %v4913_v49 = vld [vmem:[#allocation2 + $0x170] sm:$0xff]  ;;  %v4917_v40 = vld [vmem:[#allocation2 + $0x128] sm:$0xff] }
 0x12a   :  { %813 = vmatpush1.msra.mxu0 %v4887_v4  ;;  %884 = vmatpush1.msra.mxu1 %v4889_v20  ;;  %9250 = vst [vmem:[#allocation51_spill] sm:$0xff] %v4913_v49  ;;  %9251 = vst [vmem:[#allocation52_spill] sm:$0xff] %v4917_v40  ;;  %v4919_v4 = vld [vmem:[#allocation2 + $0x138] sm:$0xff]  ;;  %v4923_v20 = vld [vmem:[#allocation2 + $0x120] sm:$0xff] }
 0x12b   :  { %814 = vmatprep.subr.mxu0 %v4893_v17  ;;  %885 = vmatprep.subr.mxu1 %v4895_v25  ;;  %9252 = vst [vmem:[#allocation53_spill] sm:$0xff] %v4919_v4  ;;  %9253 = vst [vmem:[#allocation54_spill] sm:$0xff] %v4923_v20  ;;  %v4925_v17 = vld [vmem:[#allocation2 + $0x130] sm:$0xff]  ;;  %v4929_v25 = vld [vmem:[#allocation2 + $0xe8] sm:$0xff] }
 0x12c   :  { %815 = vmatpush1.msra.mxu0 %v4899_v28  ;;  %886 = vmatpush1.msra.mxu1 %v4901_v0  ;;  %9254 = vst [vmem:[#allocation55_spill] sm:$0xff] %v4925_v17  ;;  %9255 = vst [vmem:[#allocation56_spill] sm:$0xff] %v4929_v25  ;;  %v4931_v28 = vld [vmem:[#allocation2 + $0xf8] sm:$0xff]  ;;  %v4935_v0 = vld [vmem:[#allocation2 + $0xe0] sm:$0xff] }
 0x12d   :  { %816 = vmatprep.subr.mxu0 %v4905_v18  ;;  %887 = vmatprep.subr.mxu1 %v4907_v19  ;;  %9256 = vst [vmem:[#allocation57_spill] sm:$0xff] %v4931_v28  ;;  %9257 = vst [vmem:[#allocation58_spill] sm:$0xff] %v4935_v0  ;;  %v4937_v18 = vld [vmem:[#allocation2 + $0xf0] sm:$0xff]  ;;  %v4941_v19 = vld [vmem:[#allocation2 + $0xa8] sm:$0xff] }
 0x12e   :  { %817 = vmatpush1.msra.mxu0 %v4911_v22  ;;  %888 = vmatpush1.msra.mxu1 %v4913_v49  ;;  %9258 = vst [vmem:[#allocation59_spill] sm:$0xff] %v4937_v18  ;;  %9259 = vst [vmem:[#allocation60_spill] sm:$0xff] %v4941_v19  ;;  %v4943_v22 = vld [vmem:[#allocation2 + $0xb8] sm:$0xff]  ;;  %v4947_v49 = vld [vmem:[#allocation2 + $0xa0] sm:$0xff] }
 0x12f   :  { %818 = vmatprep.subr.mxu0 %v4917_v40  ;;  %889 = vmatprep.subr.mxu1 %v4919_v4  ;;  %9260 = vst [vmem:[#allocation61_spill] sm:$0xff] %v4943_v22  ;;  %9261 = vst [vmem:[#allocation62_spill] sm:$0xff] %v4947_v49  ;;  %v4949_v40 = vld [vmem:[#allocation2 + $0xb0] sm:$0xff]  ;;  %v4953_v4 = vld [vmem:[#allocation2 + $0x68] sm:$0xff] }
 0x130   :  { %819 = vmatpush1.msra.mxu0 %v4923_v20  ;;  %890 = vmatpush1.msra.mxu1 %v4925_v17  ;;  %9262 = vst [vmem:[#allocation63_spill] sm:$0xff] %v4949_v40  ;;  %9263 = vst [vmem:[#allocation64_spill] sm:$0xff] %v4953_v4  ;;  %v4955_v20 = vld [vmem:[#allocation2 + $0x78] sm:$0xff]  ;;  %v4959_v17 = vld [vmem:[#allocation2 + $0x60] sm:$0xff] }
 0x131   :  { %820 = vmatprep.subr.mxu0 %v4929_v25  ;;  %891 = vmatprep.subr.mxu1 %v4931_v28  ;;  %9264 = vst [vmem:[#allocation65_spill] sm:$0xff] %v4955_v20  ;;  %9265 = vst [vmem:[#allocation66_spill] sm:$0xff] %v4959_v17  ;;  %v4961_v25 = vld [vmem:[#allocation2 + $0x70] sm:$0xff]  ;;  %v4965_v28 = vld [vmem:[#allocation2 + $0x28] sm:$0xff] }
 0x132   :  { %821 = vmatpush1.msra.mxu0 %v4935_v0  ;;  %892 = vmatpush1.msra.mxu1 %v4937_v18  ;;  %9266 = vst [vmem:[#allocation67_spill] sm:$0xff] %v4961_v25  ;;  %9267 = vst [vmem:[#allocation68_spill] sm:$0xff] %v4965_v28  ;;  %v4967_v0 = vld [vmem:[#allocation2 + $0x38] sm:$0xff]  ;;  %v4971_v18 = vld [vmem:[#allocation2 + $0x20] sm:$0xff] }
 0x133   :  { %822 = vmatprep.subr.mxu0 %v4941_v19  ;;  %893 = vmatprep.subr.mxu1 %v4943_v22  ;;  %9268 = vst [vmem:[#allocation69_spill] sm:$0xff] %v4967_v0  ;;  %9269 = vst [vmem:[#allocation70_spill] sm:$0xff] %v4971_v18  ;;  %v4973_v19 = vld [vmem:[#allocation2 + $0x30] sm:$0xff]  ;;  %v4977_v22 = vld [vmem:[#allocation2 + $0x7e8] sm:$0xff] }
 0x134   :  { %823 = vmatpush1.msra.mxu0 %v4947_v49  ;;  %894 = vmatpush1.msra.mxu1 %v4949_v40  ;;  %9270 = vst [vmem:[#allocation71_spill] sm:$0xff] %v4973_v19  ;;  %9271 = vst [vmem:[#allocation72_spill] sm:$0xff] %v4977_v22  ;;  %v4979_v49 = vld [vmem:[#allocation2 + $0x7f8] sm:$0xff]  ;;  %v4983_v40 = vld [vmem:[#allocation2 + $0x7e0] sm:$0xff] }
 0x135   :  { %824 = vmatprep.subr.mxu0 %v4953_v4  ;;  %895 = vmatprep.subr.mxu1 %v4955_v20  ;;  %9272 = vst [vmem:[#allocation73_spill] sm:$0xff] %v4979_v49  ;;  %9273 = vst [vmem:[#allocation74_spill] sm:$0xff] %v4983_v40  ;;  %v4985_v4 = vld [vmem:[#allocation2 + $0x7f0] sm:$0xff]  ;;  %v4989_v20 = vld [vmem:[#allocation2 + $0x7a8] sm:$0xff] }
 0x136   :  { %825 = vmatpush1.msra.mxu0 %v4959_v17  ;;  %896 = vmatpush1.msra.mxu1 %v4961_v25  ;;  %9274 = vst [vmem:[#allocation75_spill] sm:$0xff] %v4985_v4  ;;  %9275 = vst [vmem:[#allocation76_spill] sm:$0xff] %v4989_v20  ;;  %v4991_v17 = vld [vmem:[#allocation2 + $0x7b8] sm:$0xff]  ;;  %v4995_v25 = vld [vmem:[#allocation2 + $0x7a0] sm:$0xff] }
 0x137   :  { %826 = vmatprep.subr.mxu0 %v4965_v28  ;;  %897 = vmatprep.subr.mxu1 %v4967_v0  ;;  %9276 = vst [vmem:[#allocation77_spill] sm:$0xff] %v4991_v17  ;;  %9277 = vst [vmem:[#allocation78_spill] sm:$0xff] %v4995_v25  ;;  %v4997_v28 = vld [vmem:[#allocation2 + $0x7b0] sm:$0xff]  ;;  %v5001_v0 = vld [vmem:[#allocation2 + $0x768] sm:$0xff] }
 0x138   :  { %827 = vmatpush1.msra.mxu0 %v4971_v18  ;;  %898 = vmatpush1.msra.mxu1 %v4973_v19  ;;  %9278 = vst [vmem:[#allocation79_spill] sm:$0xff] %v4997_v28  ;;  %9279 = vst [vmem:[#allocation80_spill] sm:$0xff] %v5001_v0  ;;  %v5003_v18 = vld [vmem:[#allocation2 + $0x778] sm:$0xff]  ;;  %v5007_v19 = vld [vmem:[#allocation2 + $0x760] sm:$0xff] }
 0x139   :  { %828 = vmatprep.subr.mxu0 %v4977_v22  ;;  %899 = vmatprep.subr.mxu1 %v4979_v49  ;;  %9280 = vst [vmem:[#allocation81_spill] sm:$0xff] %v5003_v18  ;;  %9281 = vst [vmem:[#allocation82_spill] sm:$0xff] %v5007_v19  ;;  %v5009_v22 = vld [vmem:[#allocation2 + $0x770] sm:$0xff]  ;;  %v5013_v49 = vld [vmem:[#allocation2 + $0x728] sm:$0xff] }
 0x13a   :  { %829 = vmatpush2.msra.mxu0 %v4983_v40  ;;  %900 = vmatpush2.msra.mxu1 %v4985_v4  ;;  %9282 = vst [vmem:[#allocation83_spill] sm:$0xff] %v5009_v22  ;;  %9283 = vst [vmem:[#allocation84_spill] sm:$0xff] %v5013_v49  ;;  %v5015_v40 = vld [vmem:[#allocation2 + $0x738] sm:$0xff]  ;;  %v5019_v4 = vld [vmem:[#allocation2 + $0x720] sm:$0xff] }
 0x13b   :  { %830 = vmatprep.subr.mxu0 %v4989_v20  ;;  %901 = vmatprep.subr.mxu1 %v4991_v17  ;;  %9284 = vst [vmem:[#allocation85_spill] sm:$0xff] %v5015_v40  ;;  %9285 = vst [vmem:[#allocation86_spill] sm:$0xff] %v5019_v4  ;;  %v5021_v20 = vld [vmem:[#allocation2 + $0x730] sm:$0xff]  ;;  %v5025_v17 = vld [vmem:[#allocation2 + $0x6e8] sm:$0xff] }
 0x13c   :  { %831 = vmatpush2.msra.mxu0 %v4995_v25  ;;  %902 = vmatpush2.msra.mxu1 %v4997_v28  ;;  %9286 = vst [vmem:[#allocation87_spill] sm:$0xff] %v5021_v20  ;;  %9287 = vst [vmem:[#allocation88_spill] sm:$0xff] %v5025_v17  ;;  %v5027_v25 = vld [vmem:[#allocation2 + $0x6f8] sm:$0xff]  ;;  %v5031_v28 = vld [vmem:[#allocation2 + $0x6e0] sm:$0xff] }
 0x13d   :  { %832 = vmatprep.subr.mxu0 %v5001_v0  ;;  %903 = vmatprep.subr.mxu1 %v5003_v18  ;;  %9288 = vst [vmem:[#allocation89_spill] sm:$0xff] %v5027_v25  ;;  %9289 = vst [vmem:[#allocation90_spill] sm:$0xff] %v5031_v28  ;;  %v5033_v0 = vld [vmem:[#allocation2 + $0x6f0] sm:$0xff]  ;;  %v5037_v18 = vld [vmem:[#allocation2 + $0x6a8] sm:$0xff] }
 0x13e   :  { %833 = vmatpush2.msra.mxu0 %v5007_v19  ;;  %904 = vmatpush2.msra.mxu1 %v5009_v22  ;;  %9290 = vst [vmem:[#allocation91_spill] sm:$0xff] %v5033_v0  ;;  %9291 = vst [vmem:[#allocation92_spill] sm:$0xff] %v5037_v18  ;;  %v5039_v19 = vld [vmem:[#allocation2 + $0x6b8] sm:$0xff]  ;;  %v5043_v22 = vld [vmem:[#allocation2 + $0x6a0] sm:$0xff] }
 0x13f   :  { %834 = vmatprep.subr.mxu0 %v5013_v49  ;;  %905 = vmatprep.subr.mxu1 %v5015_v40  ;;  %9292 = vst [vmem:[#allocation93_spill] sm:$0xff] %v5039_v19  ;;  %9293 = vst [vmem:[#allocation94_spill] sm:$0xff] %v5043_v22  ;;  %v5045_v49 = vld [vmem:[#allocation2 + $0x6b0] sm:$0xff]  ;;  %v5049_v40 = vld [vmem:[#allocation2 + $0x668] sm:$0xff] }
 0x140   :  { %835 = vmatpush2.msra.mxu0 %v5019_v4  ;;  %906 = vmatpush2.msra.mxu1 %v5021_v20  ;;  %9294 = vst [vmem:[#allocation95_spill] sm:$0xff] %v5045_v49  ;;  %9295 = vst [vmem:[#allocation96_spill] sm:$0xff] %v5049_v40  ;;  %v5051_v4 = vld [vmem:[#allocation2 + $0x678] sm:$0xff]  ;;  %v5055_v20 = vld [vmem:[#allocation2 + $0x660] sm:$0xff] }
 0x141   :  { %836 = vmatprep.subr.mxu0 %v5025_v17  ;;  %907 = vmatprep.subr.mxu1 %v5027_v25  ;;  %9296 = vst [vmem:[#allocation97_spill] sm:$0xff] %v5051_v4  ;;  %9297 = vst [vmem:[#allocation98_spill] sm:$0xff] %v5055_v20  ;;  %v5057_v17 = vld [vmem:[#allocation2 + $0x670] sm:$0xff]  ;;  %v5061_v25 = vld [vmem:[#allocation2 + $0x628] sm:$0xff] }
 0x142   :  { %837 = vmatpush2.msra.mxu0 %v5031_v28  ;;  %908 = vmatpush2.msra.mxu1 %v5033_v0  ;;  %9298 = vst [vmem:[#allocation99_spill] sm:$0xff] %v5057_v17  ;;  %9299 = vst [vmem:[#allocation100_spill] sm:$0xff] %v5061_v25  ;;  %v5063_v28 = vld [vmem:[#allocation2 + $0x638] sm:$0xff]  ;;  %v5067_v0 = vld [vmem:[#allocation2 + $0x620] sm:$0xff] }
 0x143   :  { %838 = vmatprep.subr.mxu0 %v5037_v18  ;;  %909 = vmatprep.subr.mxu1 %v5039_v19  ;;  %9300 = vst [vmem:[#allocation101_spill] sm:$0xff] %v5063_v28  ;;  %9301 = vst [vmem:[#allocation102_spill] sm:$0xff] %v5067_v0  ;;  %v5069_v18 = vld [vmem:[#allocation2 + $0x630] sm:$0xff]  ;;  %v5073_v19 = vld [vmem:[#allocation2 + $0x5e8] sm:$0xff] }
 0x144   :  { %839 = vmatpush2.msra.mxu0 %v5043_v22  ;;  %910 = vmatpush2.msra.mxu1 %v5045_v49  ;;  %9302 = vst [vmem:[#allocation103_spill] sm:$0xff] %v5069_v18  ;;  %9303 = vst [vmem:[#allocation104_spill] sm:$0xff] %v5073_v19  ;;  %v5075_v22 = vld [vmem:[#allocation2 + $0x5f8] sm:$0xff]  ;;  %v5079_v49 = vld [vmem:[#allocation2 + $0x5e0] sm:$0xff] }
 0x145   :  { %840 = vmatprep.subr.mxu0 %v5049_v40  ;;  %911 = vmatprep.subr.mxu1 %v5051_v4  ;;  %9304 = vst [vmem:[#allocation105_spill] sm:$0xff] %v5075_v22  ;;  %9305 = vst [vmem:[#allocation106_spill] sm:$0xff] %v5079_v49  ;;  %v5081_v40 = vld [vmem:[#allocation2 + $0x5f0] sm:$0xff]  ;;  %v5085_v4 = vld [vmem:[#allocation2 + $0x5a8] sm:$0xff] }
 0x146   :  { %841 = vmatpush2.msra.mxu0 %v5055_v20  ;;  %912 = vmatpush2.msra.mxu1 %v5057_v17  ;;  %9306 = vst [vmem:[#allocation107_spill] sm:$0xff] %v5081_v40  ;;  %9307 = vst [vmem:[#allocation108_spill] sm:$0xff] %v5085_v4  ;;  %v5087_v20 = vld [vmem:[#allocation2 + $0x5b8] sm:$0xff]  ;;  %v5091_v17 = vld [vmem:[#allocation2 + $0x5a0] sm:$0xff] }
 0x147   :  { %842 = vmatprep.subr.mxu0 %v5061_v25  ;;  %913 = vmatprep.subr.mxu1 %v5063_v28  ;;  %9308 = vst [vmem:[#allocation109_spill] sm:$0xff] %v5087_v20  ;;  %9309 = vst [vmem:[#allocation110_spill] sm:$0xff] %v5091_v17  ;;  %v5093_v25 = vld [vmem:[#allocation2 + $0x5b0] sm:$0xff]  ;;  %v5097_v28 = vld [vmem:[#allocation2 + $0x568] sm:$0xff] }
 0x148   :  { %843 = vmatpush2.msra.mxu0 %v5067_v0  ;;  %914 = vmatpush2.msra.mxu1 %v5069_v18  ;;  %9310 = vst [vmem:[#allocation111_spill] sm:$0xff] %v5093_v25  ;;  %9311 = vst [vmem:[#allocation112_spill] sm:$0xff] %v5097_v28  ;;  %v5099_v0 = vld [vmem:[#allocation2 + $0x578] sm:$0xff]  ;;  %v5103_v18 = vld [vmem:[#allocation2 + $0x560] sm:$0xff] }
 0x149   :  { %844 = vmatprep.subr.mxu0 %v5073_v19  ;;  %915 = vmatprep.subr.mxu1 %v5075_v22  ;;  %9312 = vst [vmem:[#allocation113_spill] sm:$0xff] %v5099_v0  ;;  %9313 = vst [vmem:[#allocation114_spill] sm:$0xff] %v5103_v18  ;;  %v5105_v19 = vld [vmem:[#allocation2 + $0x570] sm:$0xff]  ;;  %v5109_v22 = vld [vmem:[#allocation2 + $0x528] sm:$0xff] }
 0x14a   :  { %845 = vmatpush2.msra.mxu0 %v5079_v49  ;;  %916 = vmatpush2.msra.mxu1 %v5081_v40  ;;  %9314 = vst [vmem:[#allocation115_spill] sm:$0xff] %v5105_v19  ;;  %9315 = vst [vmem:[#allocation116_spill] sm:$0xff] %v5109_v22  ;;  %v5111_v49 = vld [vmem:[#allocation2 + $0x538] sm:$0xff]  ;;  %v5115_v40 = vld [vmem:[#allocation2 + $0x520] sm:$0xff] }
 0x14b   :  { %846 = vmatprep.subr.mxu0 %v5085_v4  ;;  %917 = vmatprep.subr.mxu1 %v5087_v20  ;;  %9316 = vst [vmem:[#allocation117_spill] sm:$0xff] %v5111_v49  ;;  %9317 = vst [vmem:[#allocation118_spill] sm:$0xff] %v5115_v40  ;;  %v5117_v4 = vld [vmem:[#allocation2 + $0x530] sm:$0xff]  ;;  %v5121_v20 = vld [vmem:[#allocation2 + $0x4e8] sm:$0xff] }
 0x14c   :  { %847 = vmatpush2.msra.mxu0 %v5091_v17  ;;  %918 = vmatpush2.msra.mxu1 %v5093_v25  ;;  %9318 = vst [vmem:[#allocation119_spill] sm:$0xff] %v5117_v4  ;;  %9319 = vst [vmem:[#allocation120_spill] sm:$0xff] %v5121_v20  ;;  %v5123_v17 = vld [vmem:[#allocation2 + $0x4f8] sm:$0xff]  ;;  %v5127_v25 = vld [vmem:[#allocation2 + $0x4e0] sm:$0xff] }
 0x14d   :  { %848 = vmatprep.subr.mxu0 %v5097_v28  ;;  %919 = vmatprep.subr.mxu1 %v5099_v0  ;;  %9320 = vst [vmem:[#allocation121_spill] sm:$0xff] %v5123_v17  ;;  %9321 = vst [vmem:[#allocation122_spill] sm:$0xff] %v5127_v25  ;;  %v5129_v28 = vld [vmem:[#allocation2 + $0x4f0] sm:$0xff]  ;;  %v5133_v0 = vld [vmem:[#allocation2 + $0x4a8] sm:$0xff] }
 0x14e   :  { %849 = vmatpush2.msra.mxu0 %v5103_v18  ;;  %920 = vmatpush2.msra.mxu1 %v5105_v19  ;;  %9322 = vst [vmem:[#allocation123_spill] sm:$0xff] %v5129_v28  ;;  %v5135_v18 = vld [vmem:[#allocation2 + $0x4b8] sm:$0xff]  ;;  %v5139_v19 = vld [vmem:[#allocation2 + $0x4a0] sm:$0xff] }
 0x14f   :  { %850 = vmatprep.subr.mxu0 %v5109_v22  ;;  %921 = vmatprep.subr.mxu1 %v5111_v49  ;;  %9323 = vst [vmem:[#allocation124_spill] sm:$0xff] %v5135_v18  ;;  %v5141_v22 = vld [vmem:[#allocation2 + $0x4b0] sm:$0xff]  ;;  %v5145_v49 = vld [vmem:[#allocation2 + $0x468] sm:$0xff] }
 0x150   :  { %851 = vmatpush2.msra.mxu0 %v5115_v40  ;;  %922 = vmatpush2.msra.mxu1 %v5117_v4  ;;  %9324 = vst [vmem:[#allocation125_spill] sm:$0xff] %v5141_v22  ;;  %v5147_v40 = vld [vmem:[#allocation2 + $0x478] sm:$0xff]  ;;  %v5151_v4 = vld [vmem:[#allocation2 + $0x460] sm:$0xff] }
 0x151   :  { %852 = vmatprep.subr.mxu0 %v5121_v20  ;;  %923 = vmatprep.subr.mxu1 %v5123_v17  ;;  %9325 = vst [vmem:[#allocation126_spill] sm:$0xff] %v5151_v4  ;;  %v5153_v20 = vld [vmem:[#allocation2 + $0x470] sm:$0xff]  ;;  %v5157_v17 = vld [vmem:[#allocation2 + $0x428] sm:$0xff] }
 0x152   :  { %853 = vmatpush2.msra.mxu0 %v5127_v25  ;;  %924 = vmatpush2.msra.mxu1 %v5129_v28  ;;  %9326 = vst [vmem:[#allocation127_spill] sm:$0xff] %v5153_v20  ;;  %v5159_v25 = vld [vmem:[#allocation2 + $0x438] sm:$0xff]  ;;  %v5163_v28 = vld [vmem:[#allocation2 + $0x420] sm:$0xff] }
 0x153   :  { %854 = vmatprep.subr.mxu0 %v5133_v0  ;;  %925 = vmatprep.subr.mxu1 %v5135_v18  ;;  %9327 = vst [vmem:[#allocation128_spill] sm:$0xff] %v5159_v25  ;;  %9328 = vst [vmem:[#allocation129_spill] sm:$0xff] %v5163_v28  ;;  %v5167_v18 = vld [vmem:[#allocation2 + $0x430] sm:$0xff] }
 0x154   :  { %855 = vmatpush2.msra.mxu0 %v5139_v19  ;;  %926 = vmatpush2.msra.mxu1 %v5141_v22  ;;  %v9329_v22 = vmov 0.0  }
 0x155   :  { %856 = vmatprep.subr.mxu0 %v5145_v49  ;;  %927 = vmatprep.subr.mxu1 %v5147_v40 }
 0x156   :  { %857 = vmatpush2.msra.mxu0 %v5151_v4  ;;  %928 = vmatpush2.msra.mxu1 %v5153_v20  ;;  %v5177_v4 = vld [vmem:[#allocation2 + $0x3c8] sm:$0xff]  ;;  %v5180_v20 = vld [vmem:[#allocation2 + $0x3d8] sm:$0xff] }
 0x157   :  { %858 = vmatprep.subr.mxu0 %v5157_v17  ;;  %929 = vmatprep.subr.mxu1 %v5159_v25  ;;  %9330 = vst [vmem:[#allocation130_spill] sm:$0xff] %v5177_v4  ;;  %9331 = vst [vmem:[#allocation131_spill] sm:$0xff] %v5180_v20  ;;  %v5183_v25 = vld [vmem:[#allocation2 + $0x3c0] sm:$0xff] }
 0x158   :  { %859 = vmatpush2.msra.mxu0 %v5163_v28  ;;  %860 = vmatprep.mubr.f32.mxu0 %v9329_v22  ;;  %9332 = vst [vmem:[#allocation132_spill] sm:$0xff] %v5183_v25  ;;  %v5186_v28 = vld [vmem:[#allocation2 + $0x3d0] sm:$0xff] }
 0x159   :  { %930 = vmatpush2.msra.mxu1 %v5167_v18  ;;  %931 = vmatprep.mubr.f32.mxu1 %v9329_v22  ;;  %9333 = vst [vmem:[#allocation133_spill] sm:$0xff] %v5186_v28  ;;  %v5189_v22 = vld [vmem:[#allocation2 + $0x388] sm:$0xff] }
 0x15a   :  { %861 = vmatmul.mubr.f32.vlgmr.msra.gmra.mxu0 %v4791_v26  ;;  %932 = vmatmul.mubr.f32.vlgmr.msra.gmra.mxu1 %v4791_v26  ;;  %9334 = vst [vmem:[#allocation134_spill] sm:$0xff] %v5189_v22  ;;  %v5192_v26 = vld [vmem:[#allocation2 + $0x398] sm:$0xff] }
 0x15b   :  { %994 = vmatprep.subr.mxu0 %v5177_v4  ;;  %1065 = vmatprep.subr.mxu1 %v5180_v20  ;;  %9335 = vst [vmem:[#allocation135_spill] sm:$0xff] %v5192_v26  ;;  %v5195_v4 = vld [vmem:[#allocation2 + $0x380] sm:$0xff]  ;;  %v5198_v20 = vld [vmem:[#allocation2 + $0x390] sm:$0xff] }
 0x15c   :  { %995 = vmatpush1.msra.mxu0 %v5183_v25  ;;  %1066 = vmatpush1.msra.mxu1 %v5186_v28  ;;  %9336 = vst [vmem:[#allocation136_spill] sm:$0xff] %v5195_v4  ;;  %9337 = vst [vmem:[#allocation137_spill] sm:$0xff] %v5198_v20  ;;  %v5201_v25 = vld [vmem:[#allocation2 + $0x348] sm:$0xff]  ;;  %v5204_v28 = vld [vmem:[#allocation2 + $0x358] sm:$0xff] }
 0x15d   :  { %996 = vmatprep.subr.mxu0 %v5189_v22  ;;  %1067 = vmatprep.subr.mxu1 %v5192_v26  ;;  %9338 = vst [vmem:[#allocation138_spill] sm:$0xff] %v5201_v25  ;;  %9339 = vst [vmem:[#allocation139_spill] sm:$0xff] %v5204_v28  ;;  %v5207_v22 = vld [vmem:[#allocation2 + $0x340] sm:$0xff]  ;;  %v5210_v26 = vld [vmem:[#allocation2 + $0x350] sm:$0xff] }
 0x15e   :  { %997 = vmatpush1.msra.mxu0 %v5195_v4  ;;  %1068 = vmatpush1.msra.mxu1 %v5198_v20  ;;  %9340 = vst [vmem:[#allocation140_spill] sm:$0xff] %v5207_v22  ;;  %9341 = vst [vmem:[#allocation141_spill] sm:$0xff] %v5210_v26  ;;  %v5213_v4 = vld [vmem:[#allocation2 + $0x308] sm:$0xff]  ;;  %v5216_v20 = vld [vmem:[#allocation2 + $0x318] sm:$0xff] }
 0x15f   :  { %998 = vmatprep.subr.mxu0 %v5201_v25  ;;  %1069 = vmatprep.subr.mxu1 %v5204_v28  ;;  %9342 = vst [vmem:[#allocation142_spill] sm:$0xff] %v5213_v4  ;;  %9343 = vst [vmem:[#allocation143_spill] sm:$0xff] %v5216_v20  ;;  %v5219_v25 = vld [vmem:[#allocation2 + $0x300] sm:$0xff]  ;;  %v5222_v28 = vld [vmem:[#allocation2 + $0x310] sm:$0xff] }
 0x160   :  { %999 = vmatpush1.msra.mxu0 %v5207_v22  ;;  %1070 = vmatpush1.msra.mxu1 %v5210_v26  ;;  %9344 = vst [vmem:[#allocation144_spill] sm:$0xff] %v5219_v25  ;;  %9345 = vst [vmem:[#allocation145_spill] sm:$0xff] %v5222_v28  ;;  %v5225_v22 = vld [vmem:[#allocation2 + $0x2c8] sm:$0xff]  ;;  %v5228_v26 = vld [vmem:[#allocation2 + $0x2d8] sm:$0xff] }
 0x161   :  { %1000 = vmatprep.subr.mxu0 %v5213_v4  ;;  %1071 = vmatprep.subr.mxu1 %v5216_v20  ;;  %9346 = vst [vmem:[#allocation146_spill] sm:$0xff] %v5225_v22  ;;  %9347 = vst [vmem:[#allocation147_spill] sm:$0xff] %v5228_v26  ;;  %v5231_v4 = vld [vmem:[#allocation2 + $0x2c0] sm:$0xff]  ;;  %v5234_v20 = vld [vmem:[#allocation2 + $0x2d0] sm:$0xff] }
 0x162   :  { %1001 = vmatpush1.msra.mxu0 %v5219_v25  ;;  %1072 = vmatpush1.msra.mxu1 %v5222_v28  ;;  %9348 = vst [vmem:[#allocation148_spill] sm:$0xff] %v5231_v4  ;;  %9349 = vst [vmem:[#allocation149_spill] sm:$0xff] %v5234_v20  ;;  %v5237_v25 = vld [vmem:[#allocation2 + $0x288] sm:$0xff]  ;;  %v5240_v28 = vld [vmem:[#allocation2 + $0x298] sm:$0xff] }
 0x163   :  { %1002 = vmatprep.subr.mxu0 %v5225_v22  ;;  %1073 = vmatprep.subr.mxu1 %v5228_v26  ;;  %9350 = vst [vmem:[#allocation150_spill] sm:$0xff] %v5237_v25  ;;  %9351 = vst [vmem:[#allocation151_spill] sm:$0xff] %v5240_v28  ;;  %v5243_v22 = vld [vmem:[#allocation2 + $0x280] sm:$0xff]  ;;  %v5246_v26 = vld [vmem:[#allocation2 + $0x290] sm:$0xff] }
 0x164   :  { %1003 = vmatpush1.msra.mxu0 %v5231_v4  ;;  %1074 = vmatpush1.msra.mxu1 %v5234_v20  ;;  %9352 = vst [vmem:[#allocation152_spill] sm:$0xff] %v5243_v22  ;;  %9353 = vst [vmem:[#allocation153_spill] sm:$0xff] %v5246_v26  ;;  %v5249_v4 = vld [vmem:[#allocation2 + $0x248] sm:$0xff]  ;;  %v5252_v20 = vld [vmem:[#allocation2 + $0x258] sm:$0xff] }
 0x165   :  { %1004 = vmatprep.subr.mxu0 %v5237_v25  ;;  %1075 = vmatprep.subr.mxu1 %v5240_v28  ;;  %9354 = vst [vmem:[#allocation154_spill] sm:$0xff] %v5249_v4  ;;  %9355 = vst [vmem:[#allocation155_spill] sm:$0xff] %v5252_v20  ;;  %v5255_v25 = vld [vmem:[#allocation2 + $0x240] sm:$0xff]  ;;  %v5258_v28 = vld [vmem:[#allocation2 + $0x250] sm:$0xff] }
 0x166   :  { %1005 = vmatpush1.msra.mxu0 %v5243_v22  ;;  %1076 = vmatpush1.msra.mxu1 %v5246_v26  ;;  %9356 = vst [vmem:[#allocation156_spill] sm:$0xff] %v5255_v25  ;;  %9357 = vst [vmem:[#allocation157_spill] sm:$0xff] %v5258_v28  ;;  %v5261_v22 = vld [vmem:[#allocation2 + $0x208] sm:$0xff]  ;;  %v5264_v26 = vld [vmem:[#allocation2 + $0x218] sm:$0xff] }
 0x167   :  { %1006 = vmatprep.subr.mxu0 %v5249_v4  ;;  %1077 = vmatprep.subr.mxu1 %v5252_v20  ;;  %9358 = vst [vmem:[#allocation158_spill] sm:$0xff] %v5261_v22  ;;  %9359 = vst [vmem:[#allocation159_spill] sm:$0xff] %v5264_v26  ;;  %v5267_v4 = vld [vmem:[#allocation2 + $0x200] sm:$0xff]  ;;  %v5270_v20 = vld [vmem:[#allocation2 + $0x210] sm:$0xff] }
 0x168   :  { %1007 = vmatpush1.msra.mxu0 %v5255_v25  ;;  %1078 = vmatpush1.msra.mxu1 %v5258_v28  ;;  %9360 = vst [vmem:[#allocation160_spill] sm:$0xff] %v5267_v4  ;;  %9361 = vst [vmem:[#allocation161_spill] sm:$0xff] %v5270_v20  ;;  %v5273_v25 = vld [vmem:[#allocation2 + $0x1c8] sm:$0xff]  ;;  %v5276_v28 = vld [vmem:[#allocation2 + $0x1d8] sm:$0xff] }
 0x169   :  { %1008 = vmatprep.subr.mxu0 %v5261_v22  ;;  %1079 = vmatprep.subr.mxu1 %v5264_v26  ;;  %9362 = vst [vmem:[#allocation162_spill] sm:$0xff] %v5273_v25  ;;  %9363 = vst [vmem:[#allocation163_spill] sm:$0xff] %v5276_v28  ;;  %v5279_v22 = vld [vmem:[#allocation2 + $0x1c0] sm:$0xff]  ;;  %v5282_v26 = vld [vmem:[#allocation2 + $0x1d0] sm:$0xff] }
 0x16a   :  { %1009 = vmatpush1.msra.mxu0 %v5267_v4  ;;  %1080 = vmatpush1.msra.mxu1 %v5270_v20  ;;  %9364 = vst [vmem:[#allocation164_spill] sm:$0xff] %v5279_v22  ;;  %9365 = vst [vmem:[#allocation165_spill] sm:$0xff] %v5282_v26  ;;  %v5285_v4 = vld [vmem:[#allocation2 + $0x188] sm:$0xff]  ;;  %v5288_v20 = vld [vmem:[#allocation2 + $0x198] sm:$0xff] }
 0x16b   :  { %1010 = vmatprep.subr.mxu0 %v5273_v25  ;;  %1081 = vmatprep.subr.mxu1 %v5276_v28  ;;  %9366 = vst [vmem:[#allocation166_spill] sm:$0xff] %v5285_v4  ;;  %9367 = vst [vmem:[#allocation167_spill] sm:$0xff] %v5288_v20  ;;  %v5291_v25 = vld [vmem:[#allocation2 + $0x180] sm:$0xff]  ;;  %v5294_v28 = vld [vmem:[#allocation2 + $0x190] sm:$0xff] }
 0x16c   :  { %1011 = vmatpush1.msra.mxu0 %v5279_v22  ;;  %1082 = vmatpush1.msra.mxu1 %v5282_v26  ;;  %9368 = vst [vmem:[#allocation168_spill] sm:$0xff] %v5291_v25  ;;  %9369 = vst [vmem:[#allocation169_spill] sm:$0xff] %v5294_v28  ;;  %v5297_v22 = vld [vmem:[#allocation2 + $0x148] sm:$0xff]  ;;  %v5300_v26 = vld [vmem:[#allocation2 + $0x158] sm:$0xff] }
 0x16d   :  { %1012 = vmatprep.subr.mxu0 %v5285_v4  ;;  %1083 = vmatprep.subr.mxu1 %v5288_v20  ;;  %9370 = vst [vmem:[#allocation170_spill] sm:$0xff] %v5297_v22  ;;  %9371 = vst [vmem:[#allocation171_spill] sm:$0xff] %v5300_v26  ;;  %v5303_v4 = vld [vmem:[#allocation2 + $0x140] sm:$0xff]  ;;  %v5306_v20 = vld [vmem:[#allocation2 + $0x150] sm:$0xff] }
 0x16e   :  { %1013 = vmatpush1.msra.mxu0 %v5291_v25  ;;  %1084 = vmatpush1.msra.mxu1 %v5294_v28  ;;  %9372 = vst [vmem:[#allocation172_spill] sm:$0xff] %v5303_v4  ;;  %9373 = vst [vmem:[#allocation173_spill] sm:$0xff] %v5306_v20  ;;  %v5309_v25 = vld [vmem:[#allocation2 + $0x108] sm:$0xff]  ;;  %v5312_v28 = vld [vmem:[#allocation2 + $0x118] sm:$0xff] }
 0x16f   :  { %1014 = vmatprep.subr.mxu0 %v5297_v22  ;;  %1085 = vmatprep.subr.mxu1 %v5300_v26  ;;  %9374 = vst [vmem:[#allocation174_spill] sm:$0xff] %v5309_v25  ;;  %9375 = vst [vmem:[#allocation175_spill] sm:$0xff] %v5312_v28  ;;  %v5315_v22 = vld [vmem:[#allocation2 + $0x100] sm:$0xff]  ;;  %v5318_v26 = vld [vmem:[#allocation2 + $0x110] sm:$0xff] }
 0x170   :  { %1015 = vmatpush1.msra.mxu0 %v5303_v4  ;;  %1086 = vmatpush1.msra.mxu1 %v5306_v20  ;;  %9376 = vst [vmem:[#allocation176_spill] sm:$0xff] %v5315_v22  ;;  %9377 = vst [vmem:[#allocation177_spill] sm:$0xff] %v5318_v26  ;;  %v5321_v4 = vld [vmem:[#allocation2 + $0xc8] sm:$0xff]  ;;  %v5324_v20 = vld [vmem:[#allocation2 + $0xd8] sm:$0xff] }
 0x171   :  { %1016 = vmatprep.subr.mxu0 %v5309_v25  ;;  %1087 = vmatprep.subr.mxu1 %v5312_v28  ;;  %9378 = vst [vmem:[#allocation178_spill] sm:$0xff] %v5321_v4  ;;  %9379 = vst [vmem:[#allocation179_spill] sm:$0xff] %v5324_v20  ;;  %v5327_v25 = vld [vmem:[#allocation2 + $0xc0] sm:$0xff]  ;;  %v5330_v28 = vld [vmem:[#allocation2 + $0xd0] sm:$0xff] }
 0x172   :  { %1017 = vmatpush1.msra.mxu0 %v5315_v22  ;;  %1088 = vmatpush1.msra.mxu1 %v5318_v26  ;;  %9380 = vst [vmem:[#allocation180_spill] sm:$0xff] %v5327_v25  ;;  %9381 = vst [vmem:[#allocation181_spill] sm:$0xff] %v5330_v28  ;;  %v5333_v22 = vld [vmem:[#allocation2 + $0x88] sm:$0xff]  ;;  %v5336_v26 = vld [vmem:[#allocation2 + $0x98] sm:$0xff] }
 0x173   :  { %1018 = vmatprep.subr.mxu0 %v5321_v4  ;;  %1089 = vmatprep.subr.mxu1 %v5324_v20  ;;  %9382 = vst [vmem:[#allocation182_spill] sm:$0xff] %v5333_v22  ;;  %9383 = vst [vmem:[#allocation183_spill] sm:$0xff] %v5336_v26  ;;  %v5339_v4 = vld [vmem:[#allocation2 + $0x80] sm:$0xff]  ;;  %v5342_v20 = vld [vmem:[#allocation2 + $0x90] sm:$0xff] }
 0x174   :  { %1019 = vmatpush1.msra.mxu0 %v5327_v25  ;;  %1090 = vmatpush1.msra.mxu1 %v5330_v28  ;;  %9384 = vst [vmem:[#allocation184_spill] sm:$0xff] %v5339_v4  ;;  %9385 = vst [vmem:[#allocation185_spill] sm:$0xff] %v5342_v20  ;;  %v5345_v25 = vld [vmem:[#allocation2 + $0x48] sm:$0xff]  ;;  %v5348_v28 = vld [vmem:[#allocation2 + $0x58] sm:$0xff] }
 0x175   :  { %1020 = vmatprep.subr.mxu0 %v5333_v22  ;;  %1091 = vmatprep.subr.mxu1 %v5336_v26  ;;  %9386 = vst [vmem:[#allocation186_spill] sm:$0xff] %v5345_v25  ;;  %9387 = vst [vmem:[#allocation187_spill] sm:$0xff] %v5348_v28  ;;  %v5351_v22 = vld [vmem:[#allocation2 + $0x40] sm:$0xff]  ;;  %v5354_v26 = vld [vmem:[#allocation2 + $0x50] sm:$0xff] }
 0x176   :  { %1021 = vmatpush1.msra.mxu0 %v5339_v4  ;;  %1092 = vmatpush1.msra.mxu1 %v5342_v20  ;;  %9388 = vst [vmem:[#allocation188_spill] sm:$0xff] %v5351_v22  ;;  %9389 = vst [vmem:[#allocation189_spill] sm:$0xff] %v5354_v26  ;;  %v5357_v4 = vld [vmem:[#allocation2 + $0x8] sm:$0xff]  ;;  %v5360_v20 = vld [vmem:[#allocation2 + $0x18] sm:$0xff] }
 0x177   :  { %1022 = vmatprep.subr.mxu0 %v5345_v25  ;;  %1093 = vmatprep.subr.mxu1 %v5348_v28  ;;  %9390 = vst [vmem:[#allocation190_spill] sm:$0xff] %v5357_v4  ;;  %9391 = vst [vmem:[#allocation191_spill] sm:$0xff] %v5360_v20  ;;  %v5363_v25 = vld [vmem:[#allocation2] sm:$0xff]  ;;  %v5366_v28 = vld [vmem:[#allocation2 + $0x10] sm:$0xff] }
 0x178   :  { %1023 = vmatpush1.msra.mxu0 %v5351_v22  ;;  %1094 = vmatpush1.msra.mxu1 %v5354_v26  ;;  %9392 = vst [vmem:[#allocation192_spill] sm:$0xff] %v5363_v25  ;;  %9393 = vst [vmem:[#allocation193_spill] sm:$0xff] %v5366_v28  ;;  %v5369_v22 = vld [vmem:[#allocation2 + $0x7c8] sm:$0xff]  ;;  %v5372_v26 = vld [vmem:[#allocation2 + $0x7d8] sm:$0xff] }
 0x179   :  { %1024 = vmatprep.subr.mxu0 %v5357_v4  ;;  %1095 = vmatprep.subr.mxu1 %v5360_v20  ;;  %9394 = vst [vmem:[#allocation194_spill] sm:$0xff] %v5369_v22  ;;  %9395 = vst [vmem:[#allocation195_spill] sm:$0xff] %v5372_v26  ;;  %v5375_v4 = vld [vmem:[#allocation2 + $0x7c0] sm:$0xff]  ;;  %v5378_v20 = vld [vmem:[#allocation2 + $0x7d0] sm:$0xff] }
 0x17a   :  { %1025 = vmatpush1.msra.mxu0 %v5363_v25  ;;  %1096 = vmatpush1.msra.mxu1 %v5366_v28  ;;  %9396 = vst [vmem:[#allocation196_spill] sm:$0xff] %v5375_v4  ;;  %9397 = vst [vmem:[#allocation197_spill] sm:$0xff] %v5378_v20  ;;  %v5381_v25 = vld [vmem:[#allocation2 + $0x788] sm:$0xff]  ;;  %v5384_v28 = vld [vmem:[#allocation2 + $0x798] sm:$0xff] }
 0x17b   :  { %1026 = vmatprep.subr.mxu0 %v5369_v22  ;;  %1097 = vmatprep.subr.mxu1 %v5372_v26  ;;  %9398 = vst [vmem:[#allocation198_spill] sm:$0xff] %v5381_v25  ;;  %9399 = vst [vmem:[#allocation199_spill] sm:$0xff] %v5384_v28  ;;  %v5387_v22 = vld [vmem:[#allocation2 + $0x780] sm:$0xff]  ;;  %v5390_v26 = vld [vmem:[#allocation2 + $0x790] sm:$0xff] }
 0x17c   :  { %1027 = vmatpush2.msra.mxu0 %v5375_v4  ;;  %1098 = vmatpush2.msra.mxu1 %v5378_v20  ;;  %9400 = vst [vmem:[#allocation200_spill] sm:$0xff] %v5387_v22  ;;  %9401 = vst [vmem:[#allocation201_spill] sm:$0xff] %v5390_v26  ;;  %v5393_v4 = vld [vmem:[#allocation2 + $0x748] sm:$0xff]  ;;  %v5396_v20 = vld [vmem:[#allocation2 + $0x758] sm:$0xff] }
 0x17d   :  { %1028 = vmatprep.subr.mxu0 %v5381_v25  ;;  %1099 = vmatprep.subr.mxu1 %v5384_v28  ;;  %9402 = vst [vmem:[#allocation202_spill] sm:$0xff] %v5393_v4  ;;  %9403 = vst [vmem:[#allocation203_spill] sm:$0xff] %v5396_v20  ;;  %v5399_v25 = vld [vmem:[#allocation2 + $0x740] sm:$0xff]  ;;  %v5402_v28 = vld [vmem:[#allocation2 + $0x750] sm:$0xff] }
 0x17e   :  { %1029 = vmatpush2.msra.mxu0 %v5387_v22  ;;  %1100 = vmatpush2.msra.mxu1 %v5390_v26  ;;  %9404 = vst [vmem:[#allocation204_spill] sm:$0xff] %v5399_v25  ;;  %9405 = vst [vmem:[#allocation205_spill] sm:$0xff] %v5402_v28  ;;  %v5405_v22 = vld [vmem:[#allocation2 + $0x708] sm:$0xff]  ;;  %v5408_v26 = vld [vmem:[#allocation2 + $0x718] sm:$0xff] }
 0x17f   :  { %1030 = vmatprep.subr.mxu0 %v5393_v4  ;;  %1101 = vmatprep.subr.mxu1 %v5396_v20  ;;  %9406 = vst [vmem:[#allocation206_spill] sm:$0xff] %v5405_v22  ;;  %9407 = vst [vmem:[#allocation207_spill] sm:$0xff] %v5408_v26  ;;  %v5411_v4 = vld [vmem:[#allocation2 + $0x700] sm:$0xff]  ;;  %v5414_v20 = vld [vmem:[#allocation2 + $0x710] sm:$0xff] }
 0x180   :  { %1031 = vmatpush2.msra.mxu0 %v5399_v25  ;;  %1102 = vmatpush2.msra.mxu1 %v5402_v28  ;;  %v5417_v25 = vld [vmem:[#allocation2 + $0x6c8] sm:$0xff]  ;;  %v5420_v28 = vld [vmem:[#allocation2 + $0x6d8] sm:$0xff] }
 0x181   :  { %1032 = vmatprep.subr.mxu0 %v5405_v22  ;;  %1103 = vmatprep.subr.mxu1 %v5408_v26  ;;  %v5423_v22 = vld [vmem:[#allocation2 + $0x6c0] sm:$0xff]  ;;  %v5426_v26 = vld [vmem:[#allocation2 + $0x6d0] sm:$0xff] }
 0x182   :  { %1033 = vmatpush2.msra.mxu0 %v5411_v4  ;;  %1104 = vmatpush2.msra.mxu1 %v5414_v20 }
 0x183   :  { %1034 = vmatprep.subr.mxu0 %v5417_v25  ;;  %1105 = vmatprep.subr.mxu1 %v5420_v28 }
 0x184   :  { %1035 = vmatpush2.msra.mxu0 %v5423_v22  ;;  %1106 = vmatpush2.msra.mxu1 %v5426_v26 }
 0x185   :  { %1036 = vmatprep.subr.mxu0 %v4583_v29  ;;  %1107 = vmatprep.subr.mxu1 %v4586_v30  ;;  %v198_v29 = vpop.f32.mrf.mxu0 }
 0x186   :  { %1037 = vmatpush2.msra.mxu0 %v4591_v32  ;;  %1108 = vmatpush2.msra.mxu1 %v4593_v33 }
 0x187   :  { %1038 = vmatprep.subr.mxu0 %v4597_v34  ;;  %1109 = vmatprep.subr.mxu1 %v4601_v35  ;;  %v200_v30 = vpop.f32.mrf.mxu0 }
 0x188   :  { %1039 = vmatpush2.msra.mxu0 %v4605_v36  ;;  %1110 = vmatpush2.msra.mxu1 %v4607_v37  ;;  %v311_v36 = vpop.f32.mrf.mxu1 }
 0x189   :  { %1040 = vmatprep.subr.mxu0 %v4611_v38  ;;  %1111 = vmatprep.subr.mxu1 %v4615_v39  ;;  %v5475_v32 = vpop.f32.mrf.mxu0 }
 0x18a   :  { %1041 = vmatpush2.msra.mxu0 %v4622_v41  ;;  %1112 = vmatpush2.msra.mxu1 %v4624_v42  ;;  %v313_v38 = vpop.f32.mrf.mxu1 }
 0x18b   :  { %1042 = vmatprep.subr.mxu0 %v4628_v43  ;;  %1113 = vmatprep.subr.mxu1 %v4632_v44  ;;  %v5477_v33 = vpop.f32.mrf.mxu0 }
 0x18c   :  { %1043 = vmatpush2.msra.mxu0 %v4636_v45  ;;  %1114 = vmatpush2.msra.mxu1 %v4638_v46  ;;  %v5487_v41 = vpop.f32.mrf.mxu1 }
 0x18d   :  { %1044 = vmatprep.subr.mxu0 %v4642_v47  ;;  %1115 = vmatprep.subr.mxu1 %v4646_v48  ;;  %v5479_v34 = vpop.f32.mrf.mxu0 }
 0x18e   :  { %1045 = vmatpush2.msra.mxu0 %v4653_v50  ;;  %1116 = vmatpush2.msra.mxu1 %v4655_v51  ;;  %9408 = vst [vmem:[#allocation208_spill] sm:$0xff] %v5479_v34  ;;  %v5491_v43 = vpop.f32.mrf.mxu1 }
 0x18f   :  { %1046 = vmatprep.subr.mxu0 %v4659_v52  ;;  %1117 = vmatprep.subr.mxu1 %v4663_v53  ;;  %v5481_v35 = vpop.f32.mrf.mxu0 }
 0x190   :  { %1047 = vmatpush2.msra.mxu0 %v4667_v54  ;;  %1118 = vmatpush2.msra.mxu1 %v4669_v55  ;;  %9409 = vst [vmem:[#allocation209_spill] sm:$0xff] %v5481_v35  ;;  %v5495_v45 = vpop.f32.mrf.mxu1  ;;  %v207_v35 = vadd.f32 %v5477_v33, %v4772_v23 }
 0x191   :  { %1048 = vmatprep.subr.mxu0 %v4673_v56  ;;  %1119 = vmatprep.subr.mxu1 %v4677_v57  ;;  %v5483_v37 = vpop.f32.mrf.mxu0  ;;  %9414 = vst [vmem:[#allocation214_spill] sm:$0xff] %v5495_v45 }
 0x192   :  { %1049 = vmatpush2.msra.mxu0 %v4684_v59  ;;  %1120 = vmatpush2.msra.mxu1 %v4686_v60  ;;  %9410 = vst [vmem:[#allocation210_spill] sm:$0xff] %v5483_v37  ;;  %v5499_v47 = vpop.f32.mrf.mxu1  ;;  %v201_v59 = vadd.f32 %v200_v30, %v4772_v23  ;;  %v9424_v60 = vld [vmem:[#allocation9_spill] sm:$0xff]  ;;  %v5908_v37 = vld [vmem:[#allocation2 + $0x3f8] sm:$0xff] }
 0x193   :  { %1050 = vmatprep.subr.mxu0 %v4690_v61  ;;  %1121 = vmatprep.subr.mxu1 %v4694_v62  ;;  %v5485_v39 = vpop.f32.mrf.mxu0  ;;  %9416 = vst [vmem:[#allocation216_spill] sm:$0xff] %v5499_v47  ;;  %v199_v61 = vadd.f32 %v198_v29, %v9424_v60  ;;  %v205_v45 = vadd.f32 %v5475_v32, %v9424_v60 }
 0x194   :  { %1051 = vmatpush2.msra.mxu0 %v4698_v63  ;;  %1122 = vmatpush2.msra.mxu1 %v4700_v1  ;;  %9411 = vst [vmem:[#allocation211_spill] sm:$0xff] %v5485_v39  ;;  %v5503_v50 = vpop.f32.mrf.mxu1  ;;  %v5905_v39 = vld [vmem:[#allocation2 + $0x3e8] sm:$0xff] }
 0x195   :  { %1052 = vmatprep.subr.mxu0 %v4704_v2  ;;  %1123 = vmatprep.subr.mxu1 %v4708_v3  ;;  %v5489_v42 = vpop.f32.mrf.mxu0  ;;  %9418 = vst [vmem:[#allocation218_spill] sm:$0xff] %v5503_v50  ;;  %v5899_v50 = vld [vmem:[#allocation2 + $0x400] sm:$0xff] }
 0x196   :  { %1053 = vmatpush2.msra.mxu0 %v4715_v5  ;;  %1124 = vmatpush2.msra.mxu1 %v4717_v6  ;;  %9412 = vst [vmem:[#allocation212_spill] sm:$0xff] %v5489_v42  ;;  %v5507_v52 = vpop.f32.mrf.mxu1  ;;  %v608_v6 = vld [vmem:[%s8512_s4] sm:$0xf]  ;;  %v5896_v42 = vld [vmem:[#allocation2 + $0x418] sm:$0xff] }
 0x197   :  { %1054 = vmatprep.subr.mxu0 %v4721_v7  ;;  %1125 = vmatprep.subr.mxu1 %v4725_v8  ;;  %v5493_v44 = vpop.f32.mrf.mxu0  ;;  %9420 = vst [vmem:[#allocation220_spill] sm:$0xff] %v5507_v52  ;;  %v9428_v8 = vld [vmem:[#allocation8_spill] sm:$0xff]  ;;  %v5902_v52 = vld [vmem:[#allocation2 + $0x410] sm:$0xff] }
 0x198   :  { %1055 = vmatpush2.msra.mxu0 %v4729_v9  ;;  %1126 = vmatpush2.msra.mxu1 %v4731_v10  ;;  %9413 = vst [vmem:[#allocation213_spill] sm:$0xff] %v5493_v44  ;;  %v5511_v54 = vpop.f32.mrf.mxu1  ;;  %v9429_v9 = vsub.s32 0, %v9428_v8  ;;  %v5893_v44 = vld [vmem:[#allocation2 + $0x408] sm:$0xff] }
 0x199   :  { %1056 = vmatprep.subr.mxu0 %v4735_v11  ;;  %1127 = vmatprep.subr.mxu1 %v4737_v12  ;;  %v5497_v46 = vpop.f32.mrf.mxu0  ;;  %9422 = vst [vmem:[#allocation222_spill] sm:$0xff] %v5511_v54  ;;  %v9432_v12 = vsub.s32 1, %v9428_v8  ;;  %v5887_v54 = vld [vmem:[#allocation2 + $0x440] sm:$0xff] }
 0x19a   :  { %1057 = vmatpush2.msra.mxu0 %v4741_v13  ;;  %1128 = vmatpush2.msra.mxu1 %v4743_v14  ;;  %9415 = vst [vmem:[#allocation215_spill] sm:$0xff] %v5497_v46  ;;  %v5513_v56 = vpop.f32.mrf.mxu1  ;;  %v5528_v10 = vrot.slane %v608_v6, %v9429_v9  ;;  %v5884_v46 = vld [vmem:[#allocation2 + $0x458] sm:$0xff] }
 0x19b   :  { %1136 = vmatprep.subr.mxu0 %v4749_v15  ;;  %1207 = vmatprep.subr.mxu1 %v4751_v16  ;;  %v5501_v48 = vpop.f32.mrf.mxu0  ;;  %9423 = vst [vmem:[#allocation223_spill] sm:$0xff] %v5513_v56  ;;  %v5534_v13 = vrot.slane %v608_v6, %v9432_v12  ;;  %v5890_v56 = vld [vmem:[#allocation2 + $0x450] sm:$0xff] }
 0x19c   :  { %9417 = vst [vmem:[#allocation217_spill] sm:$0xff] %v5501_v48  ;;  %v5517_v62 = vpop.f32.mrf.mxu1  ;;  %9430 = vst [vmem:[#allocation8_spill] sm:$0xff] %v5528_v10  ;;  %v5881_v48 = vld [vmem:[#allocation2 + $0x448] sm:$0xff] }
 0x19d   :  { %v5505_v51 = vpop.f32.mrf.mxu0  ;;  %9425 = vst [vmem:[#allocation224_spill] sm:$0xff] %v5517_v62  ;;  %9433 = vst [vmem:[#allocation228_spill] sm:$0xff] %v5534_v13  ;;  %v5875_v62 = vld [vmem:[#allocation2 + $0x480] sm:$0xff] }
 0x19e   :  { %9419 = vst [vmem:[#allocation219_spill] sm:$0xff] %v5505_v51  ;;  %v5519_v2 = vpop.f32.mrf.mxu1 }
 0x19f   :  { %v5509_v53 = vpop.f32.mrf.mxu0  ;;  %9426 = vst [vmem:[#allocation225_spill] sm:$0xff] %v5519_v2  ;;  %v5878_v2 = vld [vmem:[#allocation2 + $0x490] sm:$0xff] }
 0x1a0   :  { %9421 = vst [vmem:[#allocation221_spill] sm:$0xff] %v5509_v53  ;;  %v5524_v7 = vpop.f32.mrf.mxu1 }
 0x1a1   :  { %9427 = vst [vmem:[#allocation226_spill] sm:$0xff] %v5524_v7 }
 0x1a2   :  { %v5530_v11 = vpop.f32.mrf.mxu1 }
 0x1a3   :  { %9431 = vst [vmem:[#allocation227_spill] sm:$0xff] %v5530_v11 }
 0x1d9   :  { %v720_v55 = vpop.f32.mrf.mxu0  ;;  %v791_v29 = vpop.f32.mrf.mxu1 }
 0x1da   :  { %v938_v1 = vadd.f32 %v720_v55, %v199_v61 }
 0x1db   :  { %v722_v57 = vpop.f32.mrf.mxu0 }
 0x1dc   :  { %v939_v63 = vadd.f32 %v722_v57, %v201_v59  ;;  %v3323_v5 = vmul.f32 -1.442695, %v938_v1  ;;  %v793_v59 = vpop.f32.mrf.mxu1 }
 0x1de   :  { %v3324_v3 = vmul.f32 -1.442695, %v939_v63  ;;  %v9434_v63 = vld [vmem:[#allocation11_spill] sm:$0xff] }
 0x1df   :  { %v312_v1 = vadd.f32 %v311_v36, %v9434_v63 }
 0x1e0   :  { %3445 = vpow2.f32 %v3324_v3  ;;  %v9435_v3 = vsub.s32 2, %v9428_v8 }
 0x1e1   :  { %3447 = vpow2.f32 %v3323_v5  ;;  %v940_v11 = vadd.f32 %v791_v29, %v312_v1 }
 0x1e2   :  { %v5541_v5 = vrot.slane %v608_v6, %v9435_v3 }
 0x1e4   :  { %9436 = vst [vmem:[#allocation229_spill] sm:$0xff] %v5541_v5 }
 0x1ed   :  { %v3446_v61 = vpop.eup %3445 }
 0x1ee   :  { %v3448_v12 = vpop.eup %3447 }
 0x21a   :  { %v862_v14 = vpop.f32.mrf.mxu0  ;;  %v933_v9 = vpop.f32.mrf.mxu1 }
 0x21b   :  { %v942_v15 = vadd.f32 %v862_v14, %v5528_v10  ;;  %v956_v14 = vadd.f32 1.0, %v3446_v61  ;;  %v944_v7 = vadd.f32 %v933_v9, %v5541_v5 }
 0x21c   :  { %v864_v16 = vpop.f32.mrf.mxu0  ;;  %v935_v53 = vpop.f32.mrf.mxu1 }
 0x21d   :  { %v3326_v30 = vmul.f32 -1.442695, %v942_v15  ;;  %v943_v55 = vadd.f32 %v864_v16, %v5534_v13  ;;  %v314_v15 = vadd.f32 %v313_v38, %v4785_v24  ;;  %v955_v16 = vadd.f32 1.0, %v3448_v12 }
 0x21e   :  { %v3328_v51 = vmul.f32 -1.442695, %v944_v7 }
 0x21f   :  { %3449 = vpow2.f32 %v3326_v30  ;;  %v3327_v57 = vmul.f32 -1.442695, %v943_v55  ;;  %v3325_v30 = vmul.f32 -1.442695, %v940_v11  ;;  %v9437_v55 = vsub.s32 3, %v9428_v8 }
 0x220   :  { %v941_v36 = vadd.f32 %v793_v59, %v314_v15 }
 0x221   :  { %3451 = vpow2.f32 %v3327_v57  ;;  %v5547_v57 = vrot.slane %v608_v6, %v9437_v55 }
 0x222   :  { %3453 = vrcp.f32 %v956_v14 }
 0x223   :  { %9438 = vst [vmem:[#allocation230_spill] sm:$0xff] %v5547_v57  ;;  %3455 = vrcp.f32 %v955_v16  ;;  %v945_v29 = vadd.f32 %v935_v53, %v5547_v57 }
 0x224   :  { %3457 = vpow2.f32 %v3325_v30 }
 0x225   :  { %3459 = vtanh.f32 %v941_v36 }
 0x226   :  { %3461 = vpow2.f32 %v3328_v51 }
 0x22c   :  { %v3450_v3 = vpop.eup %3449 }
 0x22d   :  { %v979_v61 = vadd.f32 1.0, %v3450_v3 }
 0x22e   :  { %v3452_v1 = vpop.eup %3451 }
 0x22f   :  { %3463 = vrcp.f32 %v979_v61  ;;  %v980_v38 = vadd.f32 1.0, %v3452_v1  ;;  %v3454_v8 = vpop.eup %3453 }
 0x230   :  { %3465 = vtanh.f32 %v945_v29  ;;  %v3456_v6 = vpop.eup %3455  ;;  %v965_v59 = vmul.f32 %v3454_v8, %v4788_v58 }
 0x231   :  { %3467 = vrcp.f32 %v980_v38  ;;  %v3458_v11 = vpop.eup %3457 }
 0x232   :  { %v3460_v9 = vpop.eup %3459  ;;  %v957_v36 = vadd.f32 1.0, %v3458_v11  ;;  %v9440_v11 = vld [vmem:[#allocation14_spill] sm:$0xff] }
 0x233   :  { %v3462_v7 = vpop.eup %3461  ;;  %v966_v12 = vmul.f32 %v3460_v9, %v3456_v6  ;;  %v9439_v6 = vld [vmem:[#allocation13_spill] sm:$0xff]  ;;  %v9442_v9 = vld [vmem:[#allocation16_spill] sm:$0xff]  ;;  %9635 = vst [vmem:[#allocation14_spill] sm:$0xff] %v5884_v46 }
 0x234   :  { %v981_v30 = vadd.f32 1.0, %v3462_v7  ;;  %v9443_v7 = vld [vmem:[#allocation17_spill] sm:$0xff]  ;;  %9634 = vst [vmem:[#allocation13_spill] sm:$0xff] %v5881_v48  ;;  %9637 = vst [vmem:[#allocation16_spill] sm:$0xff] %v5890_v56 }
 0x235   :  { %v5551_v16 = vadd.f32 %v966_v12, %v965_v59  ;;  %v9441_v59 = vld [vmem:[#allocation15_spill] sm:$0xff]  ;;  %v9444_v12 = vld [vmem:[#allocation18_spill] sm:$0xff]  ;;  %9638 = vst [vmem:[#allocation17_spill] sm:$0xff] %v5893_v44 }
 0x236   :  { %9636 = vst [vmem:[#allocation15_spill] sm:$0xff] %v5887_v54  ;;  %9639 = vst [vmem:[#allocation18_spill] sm:$0xff] %v5896_v42 }
 0x237   :  { %3469 = vtanh.f32 %v5551_v16 }
 0x238   :  { %3471 = vrcp.f32 %v981_v30  ;;  %v9451_v30 = vld [vmem:[#allocation25_spill] sm:$0xff] }
 0x23c   :  { %v3464_v14 = vpop.eup %3463 }
 0x23d   :  { %v3466_v15 = vpop.eup %3465 }
 0x23e   :  { %v3468_v53 = vpop.eup %3467  ;;  %v990_v51 = vmul.f32 %v3466_v15, %v3464_v14  ;;  %v9445_v14 = vld [vmem:[#allocation19_spill] sm:$0xff] }
 0x23f   :  { %v989_v55 = vmul.f32 0.0, %v3468_v53  ;;  %v9449_v15 = vld [vmem:[#allocation23_spill] sm:$0xff]  ;;  %v9450_v53 = vld [vmem:[#allocation24_spill] sm:$0xff]  ;;  %9640 = vst [vmem:[#allocation19_spill] sm:$0xff] %v5899_v50 }
 0x241   :  { %v5554_v3 = vadd.f32 %v990_v51, %v989_v55  ;;  %v9452_v55 = vld [vmem:[#allocation26_spill] sm:$0xff]  ;;  %v9453_v51 = vld [vmem:[#allocation27_spill] sm:$0xff] }
 0x243   :  { %3473 = vtanh.f32 %v5554_v3 }
 0x244   :  { %3475 = vrcp.f32 %v957_v36  ;;  %v3470_v58 = vpop.eup %3469  ;;  %v9454_v36 = vld [vmem:[#allocation28_spill] sm:$0xff] }
 0x245   :  { %v3472_v29 = vpop.eup %3471 }
 0x250   :  { %v3474_v61 = vpop.eup %3473 }
 0x251   :  { %v3476_v1 = vpop.eup %3475  ;;  %v993_v38 = vmul.f32 %v3474_v61, %v3472_v29  ;;  %v9456_v29 = vld [vmem:[#allocation30_spill] sm:$0xff]  ;;  %v9457_v61 = vld [vmem:[#allocation31_spill] sm:$0xff] }
 0x252   :  { %v5557_v8 = vmul.f32 %v3476_v1, %v3470_v58  ;;  %v9455_v58 = vld [vmem:[#allocation29_spill] sm:$0xff]  ;;  %v9458_v1 = vld [vmem:[#allocation32_spill] sm:$0xff] }
 0x253   :  { %1058 = vmatprep.mubr.f32.mxu0 %v993_v38  ;;  %1129 = vmatprep.mubr.f32.mxu1 %v993_v38 }
 0x254   :  { %1059 = vmatmul.mubr.f32.vlgmr.msra.gmra.mxu0 %v5557_v8  ;;  %1130 = vmatmul.mubr.f32.vlgmr.msra.gmra.mxu1 %v5557_v8 }
 0x255   :  { %1137 = vmatpush1.msra.mxu0 %v4793_v21  ;;  %1208 = vmatpush1.msra.mxu1 %v4795_v27  ;;  %v9446_v21 = vld [vmem:[#allocation20_spill] sm:$0xff]  ;;  %v9447_v27 = vld [vmem:[#allocation21_spill] sm:$0xff] }
 0x256   :  { %1138 = vmatprep.subr.mxu0 %v4797_v31  ;;  %1200 = vmatprep.mubr.f32.mxu0 %v993_v38  ;;  %v9448_v31 = vld [vmem:[#allocation22_spill] sm:$0xff]  ;;  %9641 = vst [vmem:[#allocation20_spill] sm:$0xff] %v5902_v52  ;;  %9642 = vst [vmem:[#allocation21_spill] sm:$0xff] %v5905_v39 }
 0x257   :  { %1209 = vmatprep.subr.mxu1 %v9439_v6  ;;  %1271 = vmatprep.mubr.f32.mxu1 %v993_v38  ;;  %v9459_v38 = vld [vmem:[#allocation33_spill] sm:$0xff]  ;;  %v9460_v6 = vld [vmem:[#allocation34_spill] sm:$0xff]  ;;  %9643 = vst [vmem:[#allocation22_spill] sm:$0xff] %v5908_v37 }
 0x258   :  { %1139 = vmatpush1.msra.mxu0 %v9440_v11  ;;  %1210 = vmatpush1.msra.mxu1 %v9441_v59  ;;  %v9461_v11 = vld [vmem:[#allocation35_spill] sm:$0xff]  ;;  %v9462_v59 = vld [vmem:[#allocation36_spill] sm:$0xff] }
 0x259   :  { %1140 = vmatprep.subr.mxu0 %v9442_v9  ;;  %1211 = vmatprep.subr.mxu1 %v9443_v7  ;;  %v9463_v9 = vld [vmem:[#allocation37_spill] sm:$0xff]  ;;  %v9464_v7 = vld [vmem:[#allocation38_spill] sm:$0xff] }
 0x25a   :  { %1141 = vmatpush1.msra.mxu0 %v9444_v12  ;;  %1212 = vmatpush1.msra.mxu1 %v9445_v14  ;;  %v9465_v12 = vld [vmem:[#allocation39_spill] sm:$0xff]  ;;  %v9466_v14 = vld [vmem:[#allocation40_spill] sm:$0xff] }
 0x25b   :  { %1142 = vmatprep.subr.mxu0 %v9446_v21  ;;  %1213 = vmatprep.subr.mxu1 %v9447_v27  ;;  %v9467_v21 = vld [vmem:[#allocation41_spill] sm:$0xff]  ;;  %v9468_v27 = vld [vmem:[#allocation42_spill] sm:$0xff] }
 0x25c   :  { %1143 = vmatpush1.msra.mxu0 %v9448_v31  ;;  %1214 = vmatpush1.msra.mxu1 %v9449_v15  ;;  %v9469_v31 = vld [vmem:[#allocation43_spill] sm:$0xff]  ;;  %v9470_v15 = vld [vmem:[#allocation44_spill] sm:$0xff] }
 0x25d   :  { %1144 = vmatprep.subr.mxu0 %v9450_v53  ;;  %1215 = vmatprep.subr.mxu1 %v9451_v30  ;;  %v9471_v53 = vld [vmem:[#allocation45_spill] sm:$0xff]  ;;  %v9472_v30 = vld [vmem:[#allocation46_spill] sm:$0xff] }
 0x25e   :  { %1145 = vmatpush1.msra.mxu0 %v9452_v55  ;;  %1216 = vmatpush1.msra.mxu1 %v9453_v51  ;;  %v9473_v55 = vld [vmem:[#allocation47_spill] sm:$0xff]  ;;  %v9474_v51 = vld [vmem:[#allocation48_spill] sm:$0xff] }
 0x25f   :  { %1146 = vmatprep.subr.mxu0 %v9454_v36  ;;  %1217 = vmatprep.subr.mxu1 %v9455_v58  ;;  %v9475_v36 = vld [vmem:[#allocation49_spill] sm:$0xff]  ;;  %v9476_v58 = vld [vmem:[#allocation50_spill] sm:$0xff] }
 0x260   :  { %1147 = vmatpush1.msra.mxu0 %v9456_v29  ;;  %1218 = vmatpush1.msra.mxu1 %v9457_v61  ;;  %v9477_v29 = vld [vmem:[#allocation51_spill] sm:$0xff]  ;;  %v9478_v61 = vld [vmem:[#allocation52_spill] sm:$0xff] }
 0x261   :  { %1148 = vmatprep.subr.mxu0 %v9458_v1  ;;  %1219 = vmatprep.subr.mxu1 %v9459_v38  ;;  %v9479_v1 = vld [vmem:[#allocation53_spill] sm:$0xff]  ;;  %v9480_v38 = vld [vmem:[#allocation54_spill] sm:$0xff] }
 0x262   :  { %1149 = vmatpush1.msra.mxu0 %v9460_v6  ;;  %1220 = vmatpush1.msra.mxu1 %v9461_v11  ;;  %v9481_v6 = vld [vmem:[#allocation55_spill] sm:$0xff]  ;;  %v9482_v11 = vld [vmem:[#allocation56_spill] sm:$0xff] }
 0x263   :  { %1150 = vmatprep.subr.mxu0 %v9462_v59  ;;  %1221 = vmatprep.subr.mxu1 %v9463_v9  ;;  %v9483_v59 = vld [vmem:[#allocation57_spill] sm:$0xff]  ;;  %v9484_v9 = vld [vmem:[#allocation58_spill] sm:$0xff] }
 0x264   :  { %1151 = vmatpush1.msra.mxu0 %v9464_v7  ;;  %1222 = vmatpush1.msra.mxu1 %v9465_v12  ;;  %v9485_v7 = vld [vmem:[#allocation59_spill] sm:$0xff]  ;;  %v9486_v12 = vld [vmem:[#allocation60_spill] sm:$0xff] }
 0x265   :  { %1152 = vmatprep.subr.mxu0 %v9466_v14  ;;  %1223 = vmatprep.subr.mxu1 %v9467_v21  ;;  %v9487_v14 = vld [vmem:[#allocation61_spill] sm:$0xff]  ;;  %v9488_v21 = vld [vmem:[#allocation62_spill] sm:$0xff] }
 0x266   :  { %1153 = vmatpush1.msra.mxu0 %v9468_v27  ;;  %1224 = vmatpush1.msra.mxu1 %v9469_v31  ;;  %v9489_v27 = vld [vmem:[#allocation63_spill] sm:$0xff]  ;;  %v9490_v31 = vld [vmem:[#allocation64_spill] sm:$0xff] }
 0x267   :  { %1154 = vmatprep.subr.mxu0 %v9470_v15  ;;  %1225 = vmatprep.subr.mxu1 %v9471_v53  ;;  %v9491_v15 = vld [vmem:[#allocation65_spill] sm:$0xff]  ;;  %v9492_v53 = vld [vmem:[#allocation66_spill] sm:$0xff] }
 0x268   :  { %1155 = vmatpush1.msra.mxu0 %v9472_v30  ;;  %1226 = vmatpush1.msra.mxu1 %v9473_v55  ;;  %v9493_v30 = vld [vmem:[#allocation67_spill] sm:$0xff]  ;;  %v9494_v55 = vld [vmem:[#allocation68_spill] sm:$0xff] }
 0x269   :  { %1156 = vmatprep.subr.mxu0 %v9474_v51  ;;  %1227 = vmatprep.subr.mxu1 %v9475_v36  ;;  %v9495_v51 = vld [vmem:[#allocation69_spill] sm:$0xff]  ;;  %v9496_v36 = vld [vmem:[#allocation70_spill] sm:$0xff] }
 0x26a   :  { %1157 = vmatpush1.msra.mxu0 %v9476_v58  ;;  %1228 = vmatpush1.msra.mxu1 %v9477_v29  ;;  %v9497_v58 = vld [vmem:[#allocation71_spill] sm:$0xff]  ;;  %v9498_v29 = vld [vmem:[#allocation72_spill] sm:$0xff] }
 0x26b   :  { %1158 = vmatprep.subr.mxu0 %v9478_v61  ;;  %1229 = vmatprep.subr.mxu1 %v9479_v1  ;;  %v9499_v61 = vld [vmem:[#allocation73_spill] sm:$0xff]  ;;  %v9500_v1 = vld [vmem:[#allocation74_spill] sm:$0xff] }
 0x26c   :  { %1159 = vmatpush1.msra.mxu0 %v9480_v38  ;;  %1230 = vmatpush1.msra.mxu1 %v9481_v6  ;;  %v9501_v38 = vld [vmem:[#allocation75_spill] sm:$0xff]  ;;  %v9502_v6 = vld [vmem:[#allocation76_spill] sm:$0xff] }
 0x26d   :  { %1160 = vmatprep.subr.mxu0 %v9482_v11  ;;  %1231 = vmatprep.subr.mxu1 %v9483_v59  ;;  %v9503_v11 = vld [vmem:[#allocation77_spill] sm:$0xff]  ;;  %v9504_v59 = vld [vmem:[#allocation78_spill] sm:$0xff] }
 0x26e   :  { %1161 = vmatpush1.msra.mxu0 %v9484_v9  ;;  %1232 = vmatpush1.msra.mxu1 %v9485_v7  ;;  %v9505_v9 = vld [vmem:[#allocation79_spill] sm:$0xff]  ;;  %v9506_v7 = vld [vmem:[#allocation80_spill] sm:$0xff] }
 0x26f   :  { %1162 = vmatprep.subr.mxu0 %v9486_v12  ;;  %1233 = vmatprep.subr.mxu1 %v9487_v14  ;;  %v9507_v12 = vld [vmem:[#allocation81_spill] sm:$0xff]  ;;  %v9508_v14 = vld [vmem:[#allocation82_spill] sm:$0xff] }
 0x270   :  { %1163 = vmatpush1.msra.mxu0 %v9488_v21  ;;  %1234 = vmatpush1.msra.mxu1 %v9489_v27  ;;  %v9509_v21 = vld [vmem:[#allocation83_spill] sm:$0xff]  ;;  %v9510_v27 = vld [vmem:[#allocation84_spill] sm:$0xff] }
 0x271   :  { %1164 = vmatprep.subr.mxu0 %v9490_v31  ;;  %1235 = vmatprep.subr.mxu1 %v9491_v15  ;;  %v9511_v31 = vld [vmem:[#allocation85_spill] sm:$0xff]  ;;  %v9512_v15 = vld [vmem:[#allocation86_spill] sm:$0xff] }
 0x272   :  { %1165 = vmatpush1.msra.mxu0 %v9492_v53  ;;  %1236 = vmatpush1.msra.mxu1 %v9493_v30  ;;  %v9513_v53 = vld [vmem:[#allocation87_spill] sm:$0xff]  ;;  %v9514_v30 = vld [vmem:[#allocation88_spill] sm:$0xff] }
 0x273   :  { %1166 = vmatprep.subr.mxu0 %v9494_v55  ;;  %1237 = vmatprep.subr.mxu1 %v9495_v51  ;;  %v9515_v55 = vld [vmem:[#allocation89_spill] sm:$0xff]  ;;  %v9516_v51 = vld [vmem:[#allocation90_spill] sm:$0xff] }
 0x274   :  { %1167 = vmatpush1.msra.mxu0 %v9496_v36  ;;  %1238 = vmatpush1.msra.mxu1 %v9497_v58  ;;  %v9517_v36 = vld [vmem:[#allocation91_spill] sm:$0xff]  ;;  %v9518_v58 = vld [vmem:[#allocation92_spill] sm:$0xff] }
 0x275   :  { %1168 = vmatprep.subr.mxu0 %v9498_v29  ;;  %1239 = vmatprep.subr.mxu1 %v9499_v61  ;;  %v9519_v29 = vld [vmem:[#allocation93_spill] sm:$0xff]  ;;  %v9520_v61 = vld [vmem:[#allocation94_spill] sm:$0xff] }
 0x276   :  { %1169 = vmatpush2.msra.mxu0 %v9500_v1  ;;  %1240 = vmatpush2.msra.mxu1 %v9501_v38  ;;  %v9521_v1 = vld [vmem:[#allocation95_spill] sm:$0xff]  ;;  %v9522_v38 = vld [vmem:[#allocation96_spill] sm:$0xff] }
 0x277   :  { %1170 = vmatprep.subr.mxu0 %v9502_v6  ;;  %1241 = vmatprep.subr.mxu1 %v9503_v11  ;;  %v9523_v6 = vld [vmem:[#allocation97_spill] sm:$0xff]  ;;  %v9524_v11 = vld [vmem:[#allocation98_spill] sm:$0xff] }
 0x278   :  { %1171 = vmatpush2.msra.mxu0 %v9504_v59  ;;  %1242 = vmatpush2.msra.mxu1 %v9505_v9  ;;  %v9525_v59 = vld [vmem:[#allocation99_spill] sm:$0xff]  ;;  %v9526_v9 = vld [vmem:[#allocation100_spill] sm:$0xff] }
 0x279   :  { %1172 = vmatprep.subr.mxu0 %v9506_v7  ;;  %1243 = vmatprep.subr.mxu1 %v9507_v12  ;;  %v9527_v7 = vld [vmem:[#allocation101_spill] sm:$0xff]  ;;  %v9528_v12 = vld [vmem:[#allocation102_spill] sm:$0xff] }
 0x27a   :  { %1173 = vmatpush2.msra.mxu0 %v9508_v14  ;;  %1244 = vmatpush2.msra.mxu1 %v9509_v21  ;;  %v9529_v14 = vld [vmem:[#allocation103_spill] sm:$0xff]  ;;  %v9530_v21 = vld [vmem:[#allocation104_spill] sm:$0xff] }
 0x27b   :  { %1174 = vmatprep.subr.mxu0 %v9510_v27  ;;  %1245 = vmatprep.subr.mxu1 %v9511_v31  ;;  %v9531_v27 = vld [vmem:[#allocation105_spill] sm:$0xff]  ;;  %v9532_v31 = vld [vmem:[#allocation106_spill] sm:$0xff] }
 0x27c   :  { %1175 = vmatpush2.msra.mxu0 %v9512_v15  ;;  %1246 = vmatpush2.msra.mxu1 %v9513_v53  ;;  %v9533_v15 = vld [vmem:[#allocation107_spill] sm:$0xff]  ;;  %v9534_v53 = vld [vmem:[#allocation108_spill] sm:$0xff] }
 0x27d   :  { %1176 = vmatprep.subr.mxu0 %v9514_v30  ;;  %1247 = vmatprep.subr.mxu1 %v9515_v55  ;;  %v9535_v30 = vld [vmem:[#allocation109_spill] sm:$0xff]  ;;  %v9536_v55 = vld [vmem:[#allocation110_spill] sm:$0xff] }
 0x27e   :  { %1177 = vmatpush2.msra.mxu0 %v9516_v51  ;;  %1248 = vmatpush2.msra.mxu1 %v9517_v36  ;;  %v9537_v51 = vld [vmem:[#allocation111_spill] sm:$0xff]  ;;  %v9538_v36 = vld [vmem:[#allocation112_spill] sm:$0xff] }
 0x27f   :  { %1178 = vmatprep.subr.mxu0 %v9518_v58  ;;  %1249 = vmatprep.subr.mxu1 %v9519_v29  ;;  %v9539_v58 = vld [vmem:[#allocation113_spill] sm:$0xff]  ;;  %v9540_v29 = vld [vmem:[#allocation114_spill] sm:$0xff] }
 0x280   :  { %1179 = vmatpush2.msra.mxu0 %v9520_v61  ;;  %1250 = vmatpush2.msra.mxu1 %v9521_v1  ;;  %v9541_v61 = vld [vmem:[#allocation115_spill] sm:$0xff]  ;;  %v9542_v1 = vld [vmem:[#allocation116_spill] sm:$0xff] }
 0x281   :  { %1180 = vmatprep.subr.mxu0 %v9522_v38  ;;  %1251 = vmatprep.subr.mxu1 %v9523_v6  ;;  %v9543_v38 = vld [vmem:[#allocation117_spill] sm:$0xff]  ;;  %v9544_v6 = vld [vmem:[#allocation118_spill] sm:$0xff] }
 0x282   :  { %1181 = vmatpush2.msra.mxu0 %v9524_v11  ;;  %1252 = vmatpush2.msra.mxu1 %v9525_v59  ;;  %v9545_v11 = vld [vmem:[#allocation119_spill] sm:$0xff]  ;;  %v9546_v59 = vld [vmem:[#allocation120_spill] sm:$0xff] }
 0x283   :  { %1182 = vmatprep.subr.mxu0 %v9526_v9  ;;  %1253 = vmatprep.subr.mxu1 %v9527_v7  ;;  %v9547_v9 = vld [vmem:[#allocation121_spill] sm:$0xff]  ;;  %v9548_v7 = vld [vmem:[#allocation122_spill] sm:$0xff] }
 0x284   :  { %1183 = vmatpush2.msra.mxu0 %v9528_v12  ;;  %1254 = vmatpush2.msra.mxu1 %v9529_v14  ;;  %v9549_v12 = vld [vmem:[#allocation123_spill] sm:$0xff]  ;;  %v9550_v14 = vld [vmem:[#allocation124_spill] sm:$0xff] }
 0x285   :  { %1184 = vmatprep.subr.mxu0 %v9530_v21  ;;  %1255 = vmatprep.subr.mxu1 %v9531_v27  ;;  %v9551_v21 = vld [vmem:[#allocation125_spill] sm:$0xff]  ;;  %v9552_v27 = vld [vmem:[#allocation126_spill] sm:$0xff] }
 0x286   :  { %1185 = vmatpush2.msra.mxu0 %v9532_v31  ;;  %1256 = vmatpush2.msra.mxu1 %v9533_v15  ;;  %v9553_v31 = vld [vmem:[#allocation127_spill] sm:$0xff]  ;;  %v9554_v15 = vld [vmem:[#allocation128_spill] sm:$0xff] }
 0x287   :  { %1186 = vmatprep.subr.mxu0 %v9534_v53  ;;  %1257 = vmatprep.subr.mxu1 %v9535_v30  ;;  %v9555_v53 = vld [vmem:[#allocation129_spill] sm:$0xff]  ;;  %v9560_v30 = vld [vmem:[#allocation134_spill] sm:$0xff] }
 0x288   :  { %1187 = vmatpush2.msra.mxu0 %v9536_v55  ;;  %1258 = vmatpush2.msra.mxu1 %v9537_v51  ;;  %v9562_v55 = vld [vmem:[#allocation136_spill] sm:$0xff]  ;;  %v9563_v51 = vld [vmem:[#allocation137_spill] sm:$0xff] }
 0x289   :  { %1188 = vmatprep.subr.mxu0 %v9538_v36  ;;  %1259 = vmatprep.subr.mxu1 %v9539_v58  ;;  %v9565_v36 = vld [vmem:[#allocation139_spill] sm:$0xff]  ;;  %v9567_v58 = vld [vmem:[#allocation141_spill] sm:$0xff] }
 0x28a   :  { %1189 = vmatpush2.msra.mxu0 %v9540_v29  ;;  %1260 = vmatpush2.msra.mxu1 %v9541_v61  ;;  %v9568_v29 = vld [vmem:[#allocation142_spill] sm:$0xff]  ;;  %v9569_v61 = vld [vmem:[#allocation143_spill] sm:$0xff] }
 0x28b   :  { %1190 = vmatprep.subr.mxu0 %v9542_v1  ;;  %1261 = vmatprep.subr.mxu1 %v9543_v38  ;;  %v9570_v1 = vld [vmem:[#allocation144_spill] sm:$0xff]  ;;  %v9571_v38 = vld [vmem:[#allocation145_spill] sm:$0xff] }
 0x28c   :  { %1191 = vmatpush2.msra.mxu0 %v9544_v6  ;;  %1262 = vmatpush2.msra.mxu1 %v9545_v11  ;;  %v9572_v6 = vld [vmem:[#allocation146_spill] sm:$0xff]  ;;  %v9573_v11 = vld [vmem:[#allocation147_spill] sm:$0xff] }
 0x28d   :  { %1192 = vmatprep.subr.mxu0 %v9546_v59  ;;  %1263 = vmatprep.subr.mxu1 %v9547_v9  ;;  %v9574_v59 = vld [vmem:[#allocation148_spill] sm:$0xff]  ;;  %v9575_v9 = vld [vmem:[#allocation149_spill] sm:$0xff] }
 0x28e   :  { %1193 = vmatpush2.msra.mxu0 %v9548_v7  ;;  %1264 = vmatpush2.msra.mxu1 %v9549_v12  ;;  %v9576_v7 = vld [vmem:[#allocation150_spill] sm:$0xff]  ;;  %v9577_v12 = vld [vmem:[#allocation151_spill] sm:$0xff] }
 0x28f   :  { %1194 = vmatprep.subr.mxu0 %v5133_v0  ;;  %1265 = vmatprep.subr.mxu1 %v9550_v14  ;;  %v9556_v0 = vld [vmem:[#allocation130_spill] sm:$0xff]  ;;  %v9578_v14 = vld [vmem:[#allocation152_spill] sm:$0xff] }
 0x290   :  { %1195 = vmatpush2.msra.mxu0 %v5139_v19  ;;  %1266 = vmatpush2.msra.mxu1 %v9551_v21  ;;  %v9557_v19 = vld [vmem:[#allocation131_spill] sm:$0xff]  ;;  %v9579_v21 = vld [vmem:[#allocation153_spill] sm:$0xff] }
 0x291   :  { %1196 = vmatprep.subr.mxu0 %v5145_v49  ;;  %1267 = vmatprep.subr.mxu1 %v5147_v40  ;;  %v9558_v49 = vld [vmem:[#allocation132_spill] sm:$0xff]  ;;  %v9559_v40 = vld [vmem:[#allocation133_spill] sm:$0xff] }
 0x292   :  { %1197 = vmatpush2.msra.mxu0 %v9552_v27  ;;  %1268 = vmatpush2.msra.mxu1 %v9553_v31  ;;  %v9580_v27 = vld [vmem:[#allocation154_spill] sm:$0xff]  ;;  %v9581_v31 = vld [vmem:[#allocation155_spill] sm:$0xff] }
 0x293   :  { %1198 = vmatprep.subr.mxu0 %v5157_v17  ;;  %1269 = vmatprep.subr.mxu1 %v9554_v15  ;;  %v9561_v17 = vld [vmem:[#allocation135_spill] sm:$0xff]  ;;  %v9582_v15 = vld [vmem:[#allocation156_spill] sm:$0xff] }
 0x294   :  { %1199 = vmatpush2.msra.mxu0 %v9555_v53  ;;  %1270 = vmatpush2.msra.mxu1 %v5167_v18  ;;  %v9564_v18 = vld [vmem:[#allocation138_spill] sm:$0xff]  ;;  %v9583_v53 = vld [vmem:[#allocation157_spill] sm:$0xff] }
 0x295   :  { %1201 = vmatmul.mubr.f32.vlgmr.msra.gmra.mxu0 %v5557_v8  ;;  %1272 = vmatmul.mubr.f32.vlgmr.msra.gmra.mxu1 %v5557_v8  ;;  %v9566_v8 = vld [vmem:[#allocation140_spill] sm:$0xff] }
 0x296   :  { %1334 = vmatprep.subr.mxu0 %v9556_v0  ;;  %1405 = vmatprep.subr.mxu1 %v9557_v19  ;;  %v9584_v0 = vld [vmem:[#allocation158_spill] sm:$0xff]  ;;  %v9585_v19 = vld [vmem:[#allocation159_spill] sm:$0xff] }
 0x297   :  { %1335 = vmatpush1.msra.mxu0 %v9558_v49  ;;  %1406 = vmatpush1.msra.mxu1 %v9559_v40  ;;  %v9586_v49 = vld [vmem:[#allocation160_spill] sm:$0xff]  ;;  %v9587_v40 = vld [vmem:[#allocation161_spill] sm:$0xff] }
 0x298   :  { %1336 = vmatprep.subr.mxu0 %v9560_v30  ;;  %1407 = vmatprep.subr.mxu1 %v9561_v17  ;;  %v9588_v30 = vld [vmem:[#allocation162_spill] sm:$0xff]  ;;  %v9589_v17 = vld [vmem:[#allocation163_spill] sm:$0xff] }
 0x299   :  { %1337 = vmatpush1.msra.mxu0 %v9562_v55  ;;  %1408 = vmatpush1.msra.mxu1 %v9563_v51  ;;  %v9590_v55 = vld [vmem:[#allocation164_spill] sm:$0xff]  ;;  %v9591_v51 = vld [vmem:[#allocation165_spill] sm:$0xff] }
 0x29a   :  { %1338 = vmatprep.subr.mxu0 %v9564_v18  ;;  %1409 = vmatprep.subr.mxu1 %v9565_v36  ;;  %v9592_v18 = vld [vmem:[#allocation166_spill] sm:$0xff]  ;;  %v9593_v36 = vld [vmem:[#allocation167_spill] sm:$0xff] }
 0x29b   :  { %1339 = vmatpush1.msra.mxu0 %v9566_v8  ;;  %1410 = vmatpush1.msra.mxu1 %v9567_v58  ;;  %v9594_v8 = vld [vmem:[#allocation168_spill] sm:$0xff]  ;;  %v9595_v58 = vld [vmem:[#allocation169_spill] sm:$0xff] }
 0x29c   :  { %1340 = vmatprep.subr.mxu0 %v9568_v29  ;;  %1411 = vmatprep.subr.mxu1 %v9569_v61  ;;  %v9596_v29 = vld [vmem:[#allocation170_spill] sm:$0xff]  ;;  %v9597_v61 = vld [vmem:[#allocation171_spill] sm:$0xff] }
 0x29d   :  { %1341 = vmatpush1.msra.mxu0 %v9570_v1  ;;  %1412 = vmatpush1.msra.mxu1 %v9571_v38  ;;  %v9598_v1 = vld [vmem:[#allocation172_spill] sm:$0xff]  ;;  %v9599_v38 = vld [vmem:[#allocation173_spill] sm:$0xff] }
 0x29e   :  { %1342 = vmatprep.subr.mxu0 %v9572_v6  ;;  %1413 = vmatprep.subr.mxu1 %v9573_v11  ;;  %v9600_v6 = vld [vmem:[#allocation174_spill] sm:$0xff]  ;;  %v9601_v11 = vld [vmem:[#allocation175_spill] sm:$0xff] }
 0x29f   :  { %1343 = vmatpush1.msra.mxu0 %v9574_v59  ;;  %1414 = vmatpush1.msra.mxu1 %v9575_v9  ;;  %v9602_v59 = vld [vmem:[#allocation176_spill] sm:$0xff]  ;;  %v9603_v9 = vld [vmem:[#allocation177_spill] sm:$0xff] }
 0x2a0   :  { %1344 = vmatprep.subr.mxu0 %v9576_v7  ;;  %1415 = vmatprep.subr.mxu1 %v9577_v12  ;;  %v9604_v7 = vld [vmem:[#allocation178_spill] sm:$0xff]  ;;  %v9605_v12 = vld [vmem:[#allocation179_spill] sm:$0xff] }
 0x2a1   :  { %1345 = vmatpush1.msra.mxu0 %v9578_v14  ;;  %1416 = vmatpush1.msra.mxu1 %v9579_v21  ;;  %v9606_v14 = vld [vmem:[#allocation180_spill] sm:$0xff]  ;;  %v9607_v21 = vld [vmem:[#allocation181_spill] sm:$0xff] }
 0x2a2   :  { %1346 = vmatprep.subr.mxu0 %v9580_v27  ;;  %1417 = vmatprep.subr.mxu1 %v9581_v31  ;;  %v9608_v27 = vld [vmem:[#allocation182_spill] sm:$0xff]  ;;  %v9609_v31 = vld [vmem:[#allocation183_spill] sm:$0xff] }
 0x2a3   :  { %1347 = vmatpush1.msra.mxu0 %v9582_v15  ;;  %1418 = vmatpush1.msra.mxu1 %v9583_v53  ;;  %v9610_v15 = vld [vmem:[#allocation184_spill] sm:$0xff]  ;;  %v9611_v53 = vld [vmem:[#allocation185_spill] sm:$0xff] }
 0x2a4   :  { %1348 = vmatprep.subr.mxu0 %v9584_v0  ;;  %1419 = vmatprep.subr.mxu1 %v9585_v19  ;;  %v9612_v0 = vld [vmem:[#allocation186_spill] sm:$0xff]  ;;  %v9613_v19 = vld [vmem:[#allocation187_spill] sm:$0xff] }
 0x2a5   :  { %1349 = vmatpush1.msra.mxu0 %v9586_v49  ;;  %1420 = vmatpush1.msra.mxu1 %v9587_v40  ;;  %v9614_v49 = vld [vmem:[#allocation188_spill] sm:$0xff]  ;;  %v9615_v40 = vld [vmem:[#allocation189_spill] sm:$0xff] }
 0x2a6   :  { %1350 = vmatprep.subr.mxu0 %v9588_v30  ;;  %1421 = vmatprep.subr.mxu1 %v9589_v17  ;;  %v9616_v30 = vld [vmem:[#allocation190_spill] sm:$0xff]  ;;  %v9617_v17 = vld [vmem:[#allocation191_spill] sm:$0xff] }
 0x2a7   :  { %1351 = vmatpush1.msra.mxu0 %v9590_v55  ;;  %1422 = vmatpush1.msra.mxu1 %v9591_v51  ;;  %v9618_v55 = vld [vmem:[#allocation192_spill] sm:$0xff]  ;;  %v9619_v51 = vld [vmem:[#allocation193_spill] sm:$0xff] }
 0x2a8   :  { %1352 = vmatprep.subr.mxu0 %v9592_v18  ;;  %1423 = vmatprep.subr.mxu1 %v9593_v36  ;;  %v9620_v18 = vld [vmem:[#allocation194_spill] sm:$0xff]  ;;  %v9621_v36 = vld [vmem:[#allocation195_spill] sm:$0xff] }
 0x2a9   :  { %1353 = vmatpush1.msra.mxu0 %v9594_v8  ;;  %1424 = vmatpush1.msra.mxu1 %v9595_v58  ;;  %v9622_v8 = vld [vmem:[#allocation196_spill] sm:$0xff]  ;;  %v9623_v58 = vld [vmem:[#allocation197_spill] sm:$0xff] }
 0x2aa   :  { %1354 = vmatprep.subr.mxu0 %v9596_v29  ;;  %1425 = vmatprep.subr.mxu1 %v9597_v61  ;;  %v9624_v29 = vld [vmem:[#allocation198_spill] sm:$0xff]  ;;  %v9625_v61 = vld [vmem:[#allocation199_spill] sm:$0xff] }
 0x2ab   :  { %1355 = vmatpush1.msra.mxu0 %v9598_v1  ;;  %1426 = vmatpush1.msra.mxu1 %v9599_v38  ;;  %v9626_v1 = vld [vmem:[#allocation200_spill] sm:$0xff]  ;;  %v9627_v38 = vld [vmem:[#allocation201_spill] sm:$0xff] }
 0x2ac   :  { %1356 = vmatprep.subr.mxu0 %v9600_v6  ;;  %1427 = vmatprep.subr.mxu1 %v9601_v11  ;;  %v9628_v6 = vld [vmem:[#allocation202_spill] sm:$0xff]  ;;  %v9629_v11 = vld [vmem:[#allocation203_spill] sm:$0xff] }
 0x2ad   :  { %1357 = vmatpush1.msra.mxu0 %v9602_v59  ;;  %1428 = vmatpush1.msra.mxu1 %v9603_v9  ;;  %v9630_v59 = vld [vmem:[#allocation204_spill] sm:$0xff]  ;;  %v9631_v9 = vld [vmem:[#allocation205_spill] sm:$0xff] }
 0x2ae   :  { %1358 = vmatprep.subr.mxu0 %v9604_v7  ;;  %1429 = vmatprep.subr.mxu1 %v9605_v12  ;;  %v9632_v7 = vld [vmem:[#allocation206_spill] sm:$0xff]  ;;  %v9633_v12 = vld [vmem:[#allocation207_spill] sm:$0xff] }
 0x2af   :  { %1359 = vmatpush1.msra.mxu0 %v9606_v14  ;;  %1430 = vmatpush1.msra.mxu1 %v9607_v21  ;;  %v5773_v14 = vld [vmem:[#allocation2 + $0x688] sm:$0xff]  ;;  %v5776_v21 = vld [vmem:[#allocation2 + $0x698] sm:$0xff] }
 0x2b0   :  { %1360 = vmatprep.subr.mxu0 %v9608_v27  ;;  %1431 = vmatprep.subr.mxu1 %v9609_v31  ;;  %v5779_v27 = vld [vmem:[#allocation2 + $0x680] sm:$0xff]  ;;  %v5800_v31 = vld [vmem:[#allocation2 + $0x618] sm:$0xff] }
 0x2b1   :  { %1361 = vmatpush1.msra.mxu0 %v9610_v15  ;;  %1432 = vmatpush1.msra.mxu1 %v9611_v53  ;;  %v5803_v15 = vld [vmem:[#allocation2 + $0x600] sm:$0xff]  ;;  %v5806_v53 = vld [vmem:[#allocation2 + $0x610] sm:$0xff] }
 0x2b2   :  { %1362 = vmatprep.subr.mxu0 %v9612_v0  ;;  %1433 = vmatprep.subr.mxu1 %v9613_v19  ;;  %v5809_v0 = vld [vmem:[#allocation2 + $0x5c8] sm:$0xff]  ;;  %v5812_v19 = vld [vmem:[#allocation2 + $0x5d8] sm:$0xff] }
 0x2b3   :  { %1363 = vmatpush1.msra.mxu0 %v9614_v49  ;;  %1434 = vmatpush1.msra.mxu1 %v9615_v40  ;;  %v5815_v49 = vld [vmem:[#allocation2 + $0x5c0] sm:$0xff]  ;;  %v5818_v40 = vld [vmem:[#allocation2 + $0x5d0] sm:$0xff] }
 0x2b4   :  { %1364 = vmatprep.subr.mxu0 %v9616_v30  ;;  %1435 = vmatprep.subr.mxu1 %v9617_v17  ;;  %v5821_v30 = vld [vmem:[#allocation2 + $0x588] sm:$0xff]  ;;  %v5824_v17 = vld [vmem:[#allocation2 + $0x598] sm:$0xff] }
 0x2b5   :  { %1365 = vmatpush1.msra.mxu0 %v9618_v55  ;;  %1436 = vmatpush1.msra.mxu1 %v9619_v51  ;;  %v5827_v55 = vld [vmem:[#allocation2 + $0x580] sm:$0xff]  ;;  %v5830_v51 = vld [vmem:[#allocation2 + $0x590] sm:$0xff] }
 0x2b6   :  { %1366 = vmatprep.subr.mxu0 %v9620_v18  ;;  %1437 = vmatprep.subr.mxu1 %v9621_v36  ;;  %v5833_v18 = vld [vmem:[#allocation2 + $0x548] sm:$0xff]  ;;  %v5836_v36 = vld [vmem:[#allocation2 + $0x558] sm:$0xff] }
 0x2b7   :  { %1367 = vmatpush2.msra.mxu0 %v9622_v8  ;;  %1438 = vmatpush2.msra.mxu1 %v9623_v58  ;;  %v5839_v8 = vld [vmem:[#allocation2 + $0x540] sm:$0xff]  ;;  %v5842_v58 = vld [vmem:[#allocation2 + $0x550] sm:$0xff] }
 0x2b8   :  { %1368 = vmatprep.subr.mxu0 %v9624_v29  ;;  %1439 = vmatprep.subr.mxu1 %v9625_v61  ;;  %v5845_v29 = vld [vmem:[#allocation2 + $0x508] sm:$0xff]  ;;  %v5848_v61 = vld [vmem:[#allocation2 + $0x518] sm:$0xff] }
 0x2b9   :  { %1369 = vmatpush2.msra.mxu0 %v9626_v1  ;;  %1440 = vmatpush2.msra.mxu1 %v9627_v38  ;;  %v5851_v1 = vld [vmem:[#allocation2 + $0x500] sm:$0xff]  ;;  %v5854_v38 = vld [vmem:[#allocation2 + $0x510] sm:$0xff] }
 0x2ba   :  { %1370 = vmatprep.subr.mxu0 %v9628_v6  ;;  %1441 = vmatprep.subr.mxu1 %v9629_v11  ;;  %v5857_v6 = vld [vmem:[#allocation2 + $0x4c8] sm:$0xff]  ;;  %v5860_v11 = vld [vmem:[#allocation2 + $0x4d8] sm:$0xff] }
 0x2bb   :  { %1371 = vmatpush2.msra.mxu0 %v9630_v59  ;;  %1442 = vmatpush2.msra.mxu1 %v9631_v9  ;;  %v5863_v59 = vld [vmem:[#allocation2 + $0x4c0] sm:$0xff]  ;;  %v5866_v9 = vld [vmem:[#allocation2 + $0x4d0] sm:$0xff] }
 0x2bc   :  { %1372 = vmatprep.subr.mxu0 %v9632_v7  ;;  %1443 = vmatprep.subr.mxu1 %v9633_v12  ;;  %v5869_v7 = vld [vmem:[#allocation2 + $0x488] sm:$0xff]  ;;  %v5872_v12 = vld [vmem:[#allocation2 + $0x498] sm:$0xff] }
 0x2bd   :  { %1373 = vmatpush2.msra.mxu0 %v5411_v4  ;;  %1444 = vmatpush2.msra.mxu1 %v5414_v20  ;;  %v5782_v4 = vld [vmem:[#allocation2 + $0x690] sm:$0xff]  ;;  %v5791_v20 = vld [vmem:[#allocation2 + $0x640] sm:$0xff] }
 0x2be   :  { %1374 = vmatprep.subr.mxu0 %v5417_v25  ;;  %1445 = vmatprep.subr.mxu1 %v5420_v28  ;;  %v5785_v28 = vld [vmem:[#allocation2 + $0x648] sm:$0xff]  ;;  %v5794_v25 = vld [vmem:[#allocation2 + $0x650] sm:$0xff] }
 0x2bf   :  { %1375 = vmatpush2.msra.mxu0 %v5423_v22  ;;  %1446 = vmatpush2.msra.mxu1 %v5426_v26  ;;  %v5788_v22 = vld [vmem:[#allocation2 + $0x658] sm:$0xff]  ;;  %v5797_v26 = vld [vmem:[#allocation2 + $0x608] sm:$0xff] }
 0x2c0   :  { %1376 = vmatprep.subr.mxu0 %v5773_v14  ;;  %1447 = vmatprep.subr.mxu1 %v5776_v21 }
 0x2c1   :  { %1377 = vmatpush2.msra.mxu0 %v5779_v27  ;;  %1448 = vmatpush2.msra.mxu1 %v5782_v4 }
 0x2c2   :  { %1378 = vmatprep.subr.mxu0 %v5785_v28  ;;  %1449 = vmatprep.subr.mxu1 %v5788_v22 }
 0x2c3   :  { %1379 = vmatpush2.msra.mxu0 %v5791_v20  ;;  %1450 = vmatpush2.msra.mxu1 %v5794_v25 }
 0x2c4   :  { %1380 = vmatprep.subr.mxu0 %v5797_v26  ;;  %1451 = vmatprep.subr.mxu1 %v5800_v31 }
 0x2c5   :  { %1381 = vmatpush2.msra.mxu0 %v5803_v15  ;;  %1452 = vmatpush2.msra.mxu1 %v5806_v53 }
 0x2c6   :  { %1382 = vmatprep.subr.mxu0 %v5809_v0  ;;  %1453 = vmatprep.subr.mxu1 %v5812_v19 }
 0x2c7   :  { %1383 = vmatpush2.msra.mxu0 %v5815_v49  ;;  %1454 = vmatpush2.msra.mxu1 %v5818_v40 }
 0x2c8   :  { %1384 = vmatprep.subr.mxu0 %v5821_v30  ;;  %1455 = vmatprep.subr.mxu1 %v5824_v17 }
 0x2c9   :  { %1385 = vmatpush2.msra.mxu0 %v5827_v55  ;;  %1456 = vmatpush2.msra.mxu1 %v5830_v51 }
 0x2ca   :  { %1386 = vmatprep.subr.mxu0 %v5833_v18  ;;  %1457 = vmatprep.subr.mxu1 %v5836_v36 }
 0x2cb   :  { %1387 = vmatpush2.msra.mxu0 %v5839_v8  ;;  %1458 = vmatpush2.msra.mxu1 %v5842_v58 }
 0x2cc   :  { %1388 = vmatprep.subr.mxu0 %v5845_v29  ;;  %1459 = vmatprep.subr.mxu1 %v5848_v61 }
 0x2cd   :  { %1389 = vmatpush2.msra.mxu0 %v5851_v1  ;;  %1460 = vmatpush2.msra.mxu1 %v5854_v38 }
 0x2ce   :  { %1390 = vmatprep.subr.mxu0 %v5857_v6  ;;  %1461 = vmatprep.subr.mxu1 %v5860_v11 }
 0x2cf   :  { %1391 = vmatpush2.msra.mxu0 %v5863_v59  ;;  %1462 = vmatpush2.msra.mxu1 %v5866_v9 }
 0x2d0   :  { %1392 = vmatprep.subr.mxu0 %v5869_v7  ;;  %1463 = vmatprep.subr.mxu1 %v5872_v12 }
 0x2d1   :  { %1393 = vmatpush2.msra.mxu0 %v5875_v62  ;;  %1464 = vmatpush2.msra.mxu1 %v5878_v2 }
 0x2d2   :  { %1394 = vmatprep.subr.mxu0 %v5881_v48  ;;  %1465 = vmatprep.subr.mxu1 %v5884_v46 }
 0x2d3   :  { %1395 = vmatpush2.msra.mxu0 %v5887_v54  ;;  %1466 = vmatpush2.msra.mxu1 %v5890_v56  ;;  %v320_v54 = vadd.f32 %v5491_v43, %v4785_v24 }
 0x2d4   :  { %1396 = vmatprep.subr.mxu0 %v5893_v44  ;;  %1467 = vmatprep.subr.mxu1 %v5896_v42 }
 0x2d5   :  { %1397 = vmatpush2.msra.mxu0 %v5899_v50  ;;  %1468 = vmatpush2.msra.mxu1 %v5902_v52 }
 0x2d6   :  { %1476 = vmatprep.subr.mxu0 %v5905_v39  ;;  %1547 = vmatprep.subr.mxu1 %v5908_v37 }
 0x314   :  { %v1060_v47 = vpop.f32.mrf.mxu0  ;;  %v1131_v56 = vpop.f32.mrf.mxu1 }
 0x315   :  { %v1278_v34 = vadd.f32 %v1060_v47, %v205_v45 }
 0x316   :  { %v1062_v50 = vpop.f32.mrf.mxu0  ;;  %v1133_v39 = vpop.f32.mrf.mxu1 }
 0x317   :  { %v3329_v42 = vmul.f32 -1.442695, %v1278_v34  ;;  %v1279_v44 = vadd.f32 %v1062_v50, %v207_v35  ;;  %v1281_v37 = vadd.f32 %v1133_v39, %v320_v54 }
 0x319   :  { %3477 = vpow2.f32 %v3329_v42  ;;  %v3330_v52 = vmul.f32 -1.442695, %v1279_v44 }
 0x31b   :  { %3479 = vpow2.f32 %v3330_v52 }
 0x31c   :  { %3481 = vtanh.f32 %v1281_v37 }
 0x326   :  { %v3478_v46 = vpop.eup %3477 }
 0x327   :  { %v1295_v48 = vadd.f32 1.0, %v3478_v46 }
 0x328   :  { %v3480_v32 = vpop.eup %3479 }
 0x329   :  { %3483 = vrcp.f32 %v1295_v48  ;;  %v1296_v60 = vadd.f32 1.0, %v3480_v32  ;;  %v3482_v33 = vpop.eup %3481  ;;  %v318_v48 = vadd.f32 %v5487_v41, %v9434_v63 }
 0x32b   :  { %3485 = vrcp.f32 %v1296_v60  ;;  %v1280_v54 = vadd.f32 %v1131_v56, %v318_v48 }
 0x336   :  { %v3484_v45 = vpop.eup %3483 }
 0x337   :  { %v1306_v34 = vmul.f32 %v3484_v45, %v3482_v33 }
 0x338   :  { %v3486_v35 = vpop.eup %3485 }
 0x339   :  { %v1305_v42 = vmul.f32 %v3486_v35, %v5551_v16  ;;  %v3331_v16 = vmul.f32 -1.442695, %v1280_v54 }
 0x33b   :  { %v5918_v44 = vadd.f32 %v1306_v34, %v1305_v42 }
 0x355   :  { %v1202_v47 = vpop.f32.mrf.mxu0  ;;  %v1273_v52 = vpop.f32.mrf.mxu1 }
 0x356   :  { %v1282_v50 = vadd.f32 %v1202_v47, %v5528_v10  ;;  %v1284_v60 = vadd.f32 %v1273_v52, %v5541_v5 }
 0x357   :  { %v1204_v43 = vpop.f32.mrf.mxu0  ;;  %v1275_v32 = vpop.f32.mrf.mxu1 }
 0x358   :  { %v3332_v39 = vmul.f32 -1.442695, %v1282_v50  ;;  %v1283_v46 = vadd.f32 %v1204_v43, %v5534_v13  ;;  %v3334_v33 = vmul.f32 -1.442695, %v1284_v60  ;;  %v1285_v34 = vadd.f32 %v1275_v32, %v5547_v57 }
 0x35a   :  { %3487 = vpow2.f32 %v3332_v39  ;;  %v3333_v37 = vmul.f32 -1.442695, %v1283_v46 }
 0x35c   :  { %3489 = vpow2.f32 %v3333_v37 }
 0x35d   :  { %3491 = vpow2.f32 %v3331_v16 }
 0x35e   :  { %3493 = vpow2.f32 %v3334_v33 }
 0x367   :  { %v3488_v45 = vpop.eup %3487 }
 0x368   :  { %v1319_v35 = vadd.f32 1.0, %v3488_v45 }
 0x369   :  { %v3490_v42 = vpop.eup %3489 }
 0x36a   :  { %3495 = vrcp.f32 %v1319_v35  ;;  %v1320_v47 = vadd.f32 1.0, %v3490_v42  ;;  %v3492_v50 = vpop.eup %3491  ;;  %v5938_v35 = vld [vmem:[#allocation2 + $0x3f0] sm:$0xff]  ;;  %v5941_v42 = vld [vmem:[#allocation2 + $0x3a8] sm:$0xff] }
 0x36b   :  { %3497 = vtanh.f32 %v1285_v34  ;;  %v3494_v41 = vpop.eup %3493  ;;  %v1297_v52 = vadd.f32 1.0, %v3492_v50  ;;  %v5947_v50 = vld [vmem:[#allocation2 + $0x3a0] sm:$0xff] }
 0x36c   :  { %3499 = vrcp.f32 %v1320_v47  ;;  %v1321_v46 = vadd.f32 1.0, %v3494_v41  ;;  %v5944_v47 = vld [vmem:[#allocation2 + $0x3b8] sm:$0xff]  ;;  %v5950_v41 = vld [vmem:[#allocation2 + $0x3b0] sm:$0xff] }
 0x36d   :  { %3501 = vtanh.f32 %v5918_v44 }
 0x36e   :  { %3503 = vrcp.f32 %v1321_v46  ;;  %v5962_v46 = vld [vmem:[#allocation2 + $0x370] sm:$0xff] }
 0x377   :  { %v3496_v43 = vpop.eup %3495 }
 0x378   :  { %v3498_v56 = vpop.eup %3497 }
 0x379   :  { %v3500_v39 = vpop.eup %3499  ;;  %v1330_v48 = vmul.f32 %v3498_v56, %v3496_v43  ;;  %v5953_v43 = vld [vmem:[#allocation2 + $0x368] sm:$0xff]  ;;  %v5956_v56 = vld [vmem:[#allocation2 + $0x378] sm:$0xff] }
 0x37a   :  { %v1329_v37 = vmul.f32 %v3500_v39, %v5554_v3  ;;  %v3502_v60 = vpop.eup %3501  ;;  %v5935_v3 = vld [vmem:[#allocation2 + $0x3e0] sm:$0xff] }
 0x37b   :  { %v3504_v16 = vpop.eup %3503  ;;  %v5959_v39 = vld [vmem:[#allocation2 + $0x360] sm:$0xff] }
 0x37c   :  { %v5928_v54 = vadd.f32 %v1330_v48, %v1329_v37  ;;  %v5965_v37 = vld [vmem:[#allocation2 + $0x328] sm:$0xff]  ;;  %v5968_v48 = vld [vmem:[#allocation2 + $0x338] sm:$0xff] }
 0x37e   :  { %3505 = vtanh.f32 %v5928_v54 }
 0x37f   :  { %3507 = vrcp.f32 %v1297_v52  ;;  %v5971_v52 = vld [vmem:[#allocation2 + $0x320] sm:$0xff] }
 0x380   :  { %9644 = vst [vmem:[#allocation23_spill] sm:$0xff] %v5971_v52 }
 0x38b   :  { %v3506_v32 = vpop.eup %3505 }
 0x38c   :  { %v3508_v33 = vpop.eup %3507  ;;  %v1333_v45 = vmul.f32 %v3506_v32, %v3504_v16  ;;  %v5977_v16 = vld [vmem:[#allocation2 + $0x2e8] sm:$0xff]  ;;  %v5980_v32 = vld [vmem:[#allocation2 + $0x2f8] sm:$0xff] }
 0x38d   :  { %v5931_v34 = vmul.f32 %v3508_v33, %v3502_v60  ;;  %v5974_v60 = vld [vmem:[#allocation2 + $0x330] sm:$0xff]  ;;  %9646 = vst [vmem:[#allocation25_spill] sm:$0xff] %v5977_v16  ;;  %9647 = vst [vmem:[#allocation26_spill] sm:$0xff] %v5980_v32  ;;  %v5983_v33 = vld [vmem:[#allocation2 + $0x2e0] sm:$0xff] }
 0x38e   :  { %1398 = vmatprep.mubr.f32.mxu0 %v1333_v45  ;;  %1469 = vmatprep.mubr.f32.mxu1 %v1333_v45  ;;  %9645 = vst [vmem:[#allocation24_spill] sm:$0xff] %v5974_v60  ;;  %9648 = vst [vmem:[#allocation27_spill] sm:$0xff] %v5983_v33 }
 0x38f   :  { %1399 = vmatmul.mubr.f32.vlgmr.msra.gmra.mxu0 %v5931_v34  ;;  %1470 = vmatmul.mubr.f32.vlgmr.msra.gmra.mxu1 %v5931_v34 }
 0x390   :  { %1477 = vmatpush1.msra.mxu0 %v5935_v3  ;;  %1548 = vmatpush1.msra.mxu1 %v5938_v35 }
 0x391   :  { %1478 = vmatprep.subr.mxu0 %v5941_v42  ;;  %1540 = vmatprep.mubr.f32.mxu0 %v1333_v45 }
 0x392   :  { %1549 = vmatprep.subr.mxu1 %v5944_v47  ;;  %1611 = vmatprep.mubr.f32.mxu1 %v1333_v45  ;;  %v5986_v45 = vld [vmem:[#allocation2 + $0x2f0] sm:$0xff] }
 0x393   :  { %1479 = vmatpush1.msra.mxu0 %v5947_v50  ;;  %1550 = vmatpush1.msra.mxu1 %v5950_v41  ;;  %9649 = vst [vmem:[#allocation28_spill] sm:$0xff] %v5986_v45 }
 0x394   :  { %1480 = vmatprep.subr.mxu0 %v5953_v43  ;;  %1551 = vmatprep.subr.mxu1 %v5956_v56 }
 0x395   :  { %1481 = vmatpush1.msra.mxu0 %v5959_v39  ;;  %1552 = vmatpush1.msra.mxu1 %v5962_v46 }
 0x396   :  { %1482 = vmatprep.subr.mxu0 %v5965_v37  ;;  %1553 = vmatprep.subr.mxu1 %v5968_v48 }
 0x397   :  { %1483 = vmatpush1.msra.mxu0 %v5971_v52  ;;  %1554 = vmatpush1.msra.mxu1 %v5974_v60  ;;  %v5989_v52 = vld [vmem:[#allocation2 + $0x2a8] sm:$0xff]  ;;  %v5992_v60 = vld [vmem:[#allocation2 + $0x2b8] sm:$0xff] }
 0x398   :  { %1484 = vmatprep.subr.mxu0 %v5977_v16  ;;  %1555 = vmatprep.subr.mxu1 %v5980_v32  ;;  %9650 = vst [vmem:[#allocation29_spill] sm:$0xff] %v5989_v52  ;;  %9651 = vst [vmem:[#allocation30_spill] sm:$0xff] %v5992_v60  ;;  %v5995_v16 = vld [vmem:[#allocation2 + $0x2a0] sm:$0xff]  ;;  %v5998_v32 = vld [vmem:[#allocation2 + $0x2b0] sm:$0xff] }
 0x399   :  { %1485 = vmatpush1.msra.mxu0 %v5983_v33  ;;  %1556 = vmatpush1.msra.mxu1 %v5986_v45  ;;  %9652 = vst [vmem:[#allocation31_spill] sm:$0xff] %v5995_v16  ;;  %9653 = vst [vmem:[#allocation32_spill] sm:$0xff] %v5998_v32  ;;  %v6001_v33 = vld [vmem:[#allocation2 + $0x268] sm:$0xff]  ;;  %v6004_v45 = vld [vmem:[#allocation2 + $0x278] sm:$0xff] }
 0x39a   :  { %1486 = vmatprep.subr.mxu0 %v5989_v52  ;;  %1557 = vmatprep.subr.mxu1 %v5992_v60  ;;  %9654 = vst [vmem:[#allocation33_spill] sm:$0xff] %v6001_v33  ;;  %9655 = vst [vmem:[#allocation34_spill] sm:$0xff] %v6004_v45  ;;  %v6007_v52 = vld [vmem:[#allocation2 + $0x260] sm:$0xff]  ;;  %v6010_v60 = vld [vmem:[#allocation2 + $0x270] sm:$0xff] }
 0x39b   :  { %1487 = vmatpush1.msra.mxu0 %v5995_v16  ;;  %1558 = vmatpush1.msra.mxu1 %v5998_v32  ;;  %9656 = vst [vmem:[#allocation35_spill] sm:$0xff] %v6007_v52  ;;  %9657 = vst [vmem:[#allocation36_spill] sm:$0xff] %v6010_v60  ;;  %v6013_v16 = vld [vmem:[#allocation2 + $0x228] sm:$0xff]  ;;  %v6016_v32 = vld [vmem:[#allocation2 + $0x238] sm:$0xff] }
 0x39c   :  { %1488 = vmatprep.subr.mxu0 %v6001_v33  ;;  %1559 = vmatprep.subr.mxu1 %v6004_v45  ;;  %9658 = vst [vmem:[#allocation37_spill] sm:$0xff] %v6013_v16  ;;  %9659 = vst [vmem:[#allocation38_spill] sm:$0xff] %v6016_v32  ;;  %v6019_v33 = vld [vmem:[#allocation2 + $0x220] sm:$0xff]  ;;  %v6022_v45 = vld [vmem:[#allocation2 + $0x230] sm:$0xff] }
 0x39d   :  { %1489 = vmatpush1.msra.mxu0 %v6007_v52  ;;  %1560 = vmatpush1.msra.mxu1 %v6010_v60  ;;  %9660 = vst [vmem:[#allocation39_spill] sm:$0xff] %v6019_v33  ;;  %9661 = vst [vmem:[#allocation40_spill] sm:$0xff] %v6022_v45  ;;  %v6025_v52 = vld [vmem:[#allocation2 + $0x1e8] sm:$0xff]  ;;  %v6028_v60 = vld [vmem:[#allocation2 + $0x1f8] sm:$0xff] }
 0x39e   :  { %1490 = vmatprep.subr.mxu0 %v6013_v16  ;;  %1561 = vmatprep.subr.mxu1 %v6016_v32  ;;  %9662 = vst [vmem:[#allocation41_spill] sm:$0xff] %v6025_v52  ;;  %9663 = vst [vmem:[#allocation42_spill] sm:$0xff] %v6028_v60  ;;  %v6031_v16 = vld [vmem:[#allocation2 + $0x1e0] sm:$0xff]  ;;  %v6034_v32 = vld [vmem:[#allocation2 + $0x1f0] sm:$0xff] }
 0x39f   :  { %1491 = vmatpush1.msra.mxu0 %v6019_v33  ;;  %1562 = vmatpush1.msra.mxu1 %v6022_v45  ;;  %9664 = vst [vmem:[#allocation43_spill] sm:$0xff] %v6031_v16  ;;  %9665 = vst [vmem:[#allocation44_spill] sm:$0xff] %v6034_v32  ;;  %v6037_v33 = vld [vmem:[#allocation2 + $0x1a8] sm:$0xff]  ;;  %v6040_v45 = vld [vmem:[#allocation2 + $0x1b8] sm:$0xff] }
 0x3a0   :  { %1492 = vmatprep.subr.mxu0 %v6025_v52  ;;  %1563 = vmatprep.subr.mxu1 %v6028_v60  ;;  %9666 = vst [vmem:[#allocation45_spill] sm:$0xff] %v6037_v33  ;;  %9667 = vst [vmem:[#allocation46_spill] sm:$0xff] %v6040_v45  ;;  %v6043_v52 = vld [vmem:[#allocation2 + $0x1a0] sm:$0xff]  ;;  %v6046_v60 = vld [vmem:[#allocation2 + $0x1b0] sm:$0xff] }
 0x3a1   :  { %1493 = vmatpush1.msra.mxu0 %v6031_v16  ;;  %1564 = vmatpush1.msra.mxu1 %v6034_v32  ;;  %9668 = vst [vmem:[#allocation47_spill] sm:$0xff] %v6043_v52  ;;  %9669 = vst [vmem:[#allocation48_spill] sm:$0xff] %v6046_v60  ;;  %v6049_v16 = vld [vmem:[#allocation2 + $0x168] sm:$0xff]  ;;  %v6052_v32 = vld [vmem:[#allocation2 + $0x178] sm:$0xff] }
 0x3a2   :  { %1494 = vmatprep.subr.mxu0 %v6037_v33  ;;  %1565 = vmatprep.subr.mxu1 %v6040_v45  ;;  %9670 = vst [vmem:[#allocation49_spill] sm:$0xff] %v6049_v16  ;;  %9671 = vst [vmem:[#allocation50_spill] sm:$0xff] %v6052_v32  ;;  %v6055_v33 = vld [vmem:[#allocation2 + $0x160] sm:$0xff]  ;;  %v6058_v45 = vld [vmem:[#allocation2 + $0x170] sm:$0xff] }
 0x3a3   :  { %1495 = vmatpush1.msra.mxu0 %v6043_v52  ;;  %1566 = vmatpush1.msra.mxu1 %v6046_v60  ;;  %9672 = vst [vmem:[#allocation51_spill] sm:$0xff] %v6055_v33  ;;  %9673 = vst [vmem:[#allocation52_spill] sm:$0xff] %v6058_v45  ;;  %v6061_v52 = vld [vmem:[#allocation2 + $0x128] sm:$0xff]  ;;  %v6064_v60 = vld [vmem:[#allocation2 + $0x138] sm:$0xff] }
 0x3a4   :  { %1496 = vmatprep.subr.mxu0 %v6049_v16  ;;  %1567 = vmatprep.subr.mxu1 %v6052_v32  ;;  %9674 = vst [vmem:[#allocation53_spill] sm:$0xff] %v6061_v52  ;;  %9675 = vst [vmem:[#allocation54_spill] sm:$0xff] %v6064_v60  ;;  %v6067_v16 = vld [vmem:[#allocation2 + $0x120] sm:$0xff]  ;;  %v6070_v32 = vld [vmem:[#allocation2 + $0x130] sm:$0xff] }
 0x3a5   :  { %1497 = vmatpush1.msra.mxu0 %v6055_v33  ;;  %1568 = vmatpush1.msra.mxu1 %v6058_v45  ;;  %9676 = vst [vmem:[#allocation55_spill] sm:$0xff] %v6067_v16  ;;  %9677 = vst [vmem:[#allocation56_spill] sm:$0xff] %v6070_v32  ;;  %v6073_v33 = vld [vmem:[#allocation2 + $0xe8] sm:$0xff]  ;;  %v6076_v45 = vld [vmem:[#allocation2 + $0xf8] sm:$0xff] }
 0x3a6   :  { %1498 = vmatprep.subr.mxu0 %v6061_v52  ;;  %1569 = vmatprep.subr.mxu1 %v6064_v60  ;;  %9678 = vst [vmem:[#allocation57_spill] sm:$0xff] %v6073_v33  ;;  %9679 = vst [vmem:[#allocation58_spill] sm:$0xff] %v6076_v45  ;;  %v6079_v52 = vld [vmem:[#allocation2 + $0xe0] sm:$0xff]  ;;  %v6082_v60 = vld [vmem:[#allocation2 + $0xf0] sm:$0xff] }
 0x3a7   :  { %1499 = vmatpush1.msra.mxu0 %v6067_v16  ;;  %1570 = vmatpush1.msra.mxu1 %v6070_v32  ;;  %9680 = vst [vmem:[#allocation59_spill] sm:$0xff] %v6079_v52  ;;  %9681 = vst [vmem:[#allocation60_spill] sm:$0xff] %v6082_v60  ;;  %v6085_v16 = vld [vmem:[#allocation2 + $0xa8] sm:$0xff]  ;;  %v6088_v32 = vld [vmem:[#allocation2 + $0xb8] sm:$0xff] }
 0x3a8   :  { %1500 = vmatprep.subr.mxu0 %v6073_v33  ;;  %1571 = vmatprep.subr.mxu1 %v6076_v45  ;;  %9682 = vst [vmem:[#allocation61_spill] sm:$0xff] %v6085_v16  ;;  %9683 = vst [vmem:[#allocation62_spill] sm:$0xff] %v6088_v32  ;;  %v6091_v33 = vld [vmem:[#allocation2 + $0xa0] sm:$0xff]  ;;  %v6094_v45 = vld [vmem:[#allocation2 + $0xb0] sm:$0xff] }
 0x3a9   :  { %1501 = vmatpush1.msra.mxu0 %v6079_v52  ;;  %1572 = vmatpush1.msra.mxu1 %v6082_v60  ;;  %9684 = vst [vmem:[#allocation63_spill] sm:$0xff] %v6091_v33  ;;  %9685 = vst [vmem:[#allocation64_spill] sm:$0xff] %v6094_v45  ;;  %v6097_v52 = vld [vmem:[#allocation2 + $0x68] sm:$0xff]  ;;  %v6100_v60 = vld [vmem:[#allocation2 + $0x78] sm:$0xff] }
 0x3aa   :  { %1502 = vmatprep.subr.mxu0 %v6085_v16  ;;  %1573 = vmatprep.subr.mxu1 %v6088_v32  ;;  %9686 = vst [vmem:[#allocation65_spill] sm:$0xff] %v6097_v52  ;;  %9687 = vst [vmem:[#allocation66_spill] sm:$0xff] %v6100_v60  ;;  %v6103_v16 = vld [vmem:[#allocation2 + $0x60] sm:$0xff]  ;;  %v6106_v32 = vld [vmem:[#allocation2 + $0x70] sm:$0xff] }
 0x3ab   :  { %1503 = vmatpush1.msra.mxu0 %v6091_v33  ;;  %1574 = vmatpush1.msra.mxu1 %v6094_v45  ;;  %9688 = vst [vmem:[#allocation67_spill] sm:$0xff] %v6103_v16  ;;  %9689 = vst [vmem:[#allocation68_spill] sm:$0xff] %v6106_v32  ;;  %v6109_v33 = vld [vmem:[#allocation2 + $0x28] sm:$0xff]  ;;  %v6112_v45 = vld [vmem:[#allocation2 + $0x38] sm:$0xff] }
 0x3ac   :  { %1504 = vmatprep.subr.mxu0 %v6097_v52  ;;  %1575 = vmatprep.subr.mxu1 %v6100_v60  ;;  %9690 = vst [vmem:[#allocation69_spill] sm:$0xff] %v6109_v33  ;;  %9691 = vst [vmem:[#allocation70_spill] sm:$0xff] %v6112_v45  ;;  %v6115_v52 = vld [vmem:[#allocation2 + $0x20] sm:$0xff]  ;;  %v6118_v60 = vld [vmem:[#allocation2 + $0x30] sm:$0xff] }
 0x3ad   :  { %1505 = vmatpush1.msra.mxu0 %v6103_v16  ;;  %1576 = vmatpush1.msra.mxu1 %v6106_v32  ;;  %9692 = vst [vmem:[#allocation71_spill] sm:$0xff] %v6115_v52  ;;  %9693 = vst [vmem:[#allocation72_spill] sm:$0xff] %v6118_v60  ;;  %v6121_v16 = vld [vmem:[#allocation2 + $0x7e8] sm:$0xff]  ;;  %v6124_v32 = vld [vmem:[#allocation2 + $0x7f8] sm:$0xff] }
 0x3ae   :  { %1506 = vmatprep.subr.mxu0 %v6109_v33  ;;  %1577 = vmatprep.subr.mxu1 %v6112_v45  ;;  %9694 = vst [vmem:[#allocation73_spill] sm:$0xff] %v6121_v16  ;;  %9695 = vst [vmem:[#allocation74_spill] sm:$0xff] %v6124_v32  ;;  %v6127_v33 = vld [vmem:[#allocation2 + $0x7e0] sm:$0xff]  ;;  %v6130_v45 = vld [vmem:[#allocation2 + $0x7f0] sm:$0xff] }
 0x3af   :  { %1507 = vmatpush1.msra.mxu0 %v6115_v52  ;;  %1578 = vmatpush1.msra.mxu1 %v6118_v60  ;;  %9696 = vst [vmem:[#allocation75_spill] sm:$0xff] %v6127_v33  ;;  %9697 = vst [vmem:[#allocation76_spill] sm:$0xff] %v6130_v45  ;;  %v6133_v52 = vld [vmem:[#allocation2 + $0x7a8] sm:$0xff]  ;;  %v6136_v60 = vld [vmem:[#allocation2 + $0x7b8] sm:$0xff] }
 0x3b0   :  { %1508 = vmatprep.subr.mxu0 %v6121_v16  ;;  %1579 = vmatprep.subr.mxu1 %v6124_v32  ;;  %9698 = vst [vmem:[#allocation77_spill] sm:$0xff] %v6133_v52  ;;  %9699 = vst [vmem:[#allocation78_spill] sm:$0xff] %v6136_v60  ;;  %v6139_v16 = vld [vmem:[#allocation2 + $0x7a0] sm:$0xff]  ;;  %v6142_v32 = vld [vmem:[#allocation2 + $0x7b0] sm:$0xff] }
 0x3b1   :  { %1509 = vmatpush2.msra.mxu0 %v6127_v33  ;;  %1580 = vmatpush2.msra.mxu1 %v6130_v45  ;;  %9700 = vst [vmem:[#allocation79_spill] sm:$0xff] %v6139_v16  ;;  %9701 = vst [vmem:[#allocation80_spill] sm:$0xff] %v6142_v32  ;;  %v6145_v33 = vld [vmem:[#allocation2 + $0x768] sm:$0xff]  ;;  %v6148_v45 = vld [vmem:[#allocation2 + $0x778] sm:$0xff] }
 0x3b2   :  { %1510 = vmatprep.subr.mxu0 %v6133_v52  ;;  %1581 = vmatprep.subr.mxu1 %v6136_v60  ;;  %9702 = vst [vmem:[#allocation81_spill] sm:$0xff] %v6145_v33  ;;  %9703 = vst [vmem:[#allocation82_spill] sm:$0xff] %v6148_v45  ;;  %v6151_v52 = vld [vmem:[#allocation2 + $0x760] sm:$0xff]  ;;  %v6154_v60 = vld [vmem:[#allocation2 + $0x770] sm:$0xff] }
 0x3b3   :  { %1511 = vmatpush2.msra.mxu0 %v6139_v16  ;;  %1582 = vmatpush2.msra.mxu1 %v6142_v32  ;;  %9704 = vst [vmem:[#allocation83_spill] sm:$0xff] %v6151_v52  ;;  %9705 = vst [vmem:[#allocation84_spill] sm:$0xff] %v6154_v60  ;;  %v6157_v16 = vld [vmem:[#allocation2 + $0x728] sm:$0xff]  ;;  %v6160_v32 = vld [vmem:[#allocation2 + $0x738] sm:$0xff] }
 0x3b4   :  { %1512 = vmatprep.subr.mxu0 %v6145_v33  ;;  %1583 = vmatprep.subr.mxu1 %v6148_v45  ;;  %9706 = vst [vmem:[#allocation85_spill] sm:$0xff] %v6157_v16  ;;  %9707 = vst [vmem:[#allocation86_spill] sm:$0xff] %v6160_v32  ;;  %v6163_v33 = vld [vmem:[#allocation2 + $0x720] sm:$0xff]  ;;  %v6166_v45 = vld [vmem:[#allocation2 + $0x730] sm:$0xff] }
 0x3b5   :  { %1513 = vmatpush2.msra.mxu0 %v6151_v52  ;;  %1584 = vmatpush2.msra.mxu1 %v6154_v60  ;;  %9708 = vst [vmem:[#allocation87_spill] sm:$0xff] %v6163_v33  ;;  %9709 = vst [vmem:[#allocation88_spill] sm:$0xff] %v6166_v45  ;;  %v6169_v52 = vld [vmem:[#allocation2 + $0x6e8] sm:$0xff]  ;;  %v6172_v60 = vld [vmem:[#allocation2 + $0x6f8] sm:$0xff] }
 0x3b6   :  { %1514 = vmatprep.subr.mxu0 %v6157_v16  ;;  %1585 = vmatprep.subr.mxu1 %v6160_v32  ;;  %9710 = vst [vmem:[#allocation89_spill] sm:$0xff] %v6169_v52  ;;  %9711 = vst [vmem:[#allocation90_spill] sm:$0xff] %v6172_v60  ;;  %v6175_v16 = vld [vmem:[#allocation2 + $0x6e0] sm:$0xff]  ;;  %v6178_v32 = vld [vmem:[#allocation2 + $0x6f0] sm:$0xff] }
 0x3b7   :  { %1515 = vmatpush2.msra.mxu0 %v6163_v33  ;;  %1586 = vmatpush2.msra.mxu1 %v6166_v45  ;;  %9712 = vst [vmem:[#allocation91_spill] sm:$0xff] %v6175_v16  ;;  %9713 = vst [vmem:[#allocation92_spill] sm:$0xff] %v6178_v32  ;;  %v6181_v33 = vld [vmem:[#allocation2 + $0x6a8] sm:$0xff]  ;;  %v6184_v45 = vld [vmem:[#allocation2 + $0x6b8] sm:$0xff] }
 0x3b8   :  { %1516 = vmatprep.subr.mxu0 %v6169_v52  ;;  %1587 = vmatprep.subr.mxu1 %v6172_v60  ;;  %9714 = vst [vmem:[#allocation93_spill] sm:$0xff] %v6181_v33  ;;  %9715 = vst [vmem:[#allocation94_spill] sm:$0xff] %v6184_v45  ;;  %v6187_v52 = vld [vmem:[#allocation2 + $0x6a0] sm:$0xff]  ;;  %v6190_v60 = vld [vmem:[#allocation2 + $0x6b0] sm:$0xff] }
 0x3b9   :  { %1517 = vmatpush2.msra.mxu0 %v6175_v16  ;;  %1588 = vmatpush2.msra.mxu1 %v6178_v32  ;;  %9716 = vst [vmem:[#allocation95_spill] sm:$0xff] %v6187_v52  ;;  %9717 = vst [vmem:[#allocation96_spill] sm:$0xff] %v6190_v60  ;;  %v6193_v16 = vld [vmem:[#allocation2 + $0x668] sm:$0xff]  ;;  %v6196_v32 = vld [vmem:[#allocation2 + $0x678] sm:$0xff] }
 0x3ba   :  { %1518 = vmatprep.subr.mxu0 %v6181_v33  ;;  %1589 = vmatprep.subr.mxu1 %v6184_v45  ;;  %9718 = vst [vmem:[#allocation97_spill] sm:$0xff] %v6193_v16  ;;  %9719 = vst [vmem:[#allocation98_spill] sm:$0xff] %v6196_v32  ;;  %v6199_v33 = vld [vmem:[#allocation2 + $0x660] sm:$0xff]  ;;  %v6202_v45 = vld [vmem:[#allocation2 + $0x670] sm:$0xff] }
 0x3bb   :  { %1519 = vmatpush2.msra.mxu0 %v6187_v52  ;;  %1590 = vmatpush2.msra.mxu1 %v6190_v60  ;;  %9720 = vst [vmem:[#allocation99_spill] sm:$0xff] %v6199_v33  ;;  %9721 = vst [vmem:[#allocation100_spill] sm:$0xff] %v6202_v45  ;;  %v6205_v52 = vld [vmem:[#allocation2 + $0x628] sm:$0xff]  ;;  %v6208_v60 = vld [vmem:[#allocation2 + $0x638] sm:$0xff] }
 0x3bc   :  { %1520 = vmatprep.subr.mxu0 %v6193_v16  ;;  %1591 = vmatprep.subr.mxu1 %v6196_v32  ;;  %9722 = vst [vmem:[#allocation101_spill] sm:$0xff] %v6205_v52  ;;  %9723 = vst [vmem:[#allocation102_spill] sm:$0xff] %v6208_v60  ;;  %v6211_v16 = vld [vmem:[#allocation2 + $0x620] sm:$0xff]  ;;  %v6214_v32 = vld [vmem:[#allocation2 + $0x630] sm:$0xff] }
 0x3bd   :  { %1521 = vmatpush2.msra.mxu0 %v6199_v33  ;;  %1592 = vmatpush2.msra.mxu1 %v6202_v45  ;;  %9724 = vst [vmem:[#allocation103_spill] sm:$0xff] %v6211_v16  ;;  %9725 = vst [vmem:[#allocation104_spill] sm:$0xff] %v6214_v32  ;;  %v6217_v33 = vld [vmem:[#allocation2 + $0x5e8] sm:$0xff]  ;;  %v6220_v45 = vld [vmem:[#allocation2 + $0x5f8] sm:$0xff] }
 0x3be   :  { %1522 = vmatprep.subr.mxu0 %v6205_v52  ;;  %1593 = vmatprep.subr.mxu1 %v6208_v60  ;;  %9726 = vst [vmem:[#allocation105_spill] sm:$0xff] %v6217_v33  ;;  %9727 = vst [vmem:[#allocation106_spill] sm:$0xff] %v6220_v45  ;;  %v6223_v52 = vld [vmem:[#allocation2 + $0x5e0] sm:$0xff]  ;;  %v6226_v60 = vld [vmem:[#allocation2 + $0x5f0] sm:$0xff] }
 0x3bf   :  { %1523 = vmatpush2.msra.mxu0 %v6211_v16  ;;  %1594 = vmatpush2.msra.mxu1 %v6214_v32  ;;  %9728 = vst [vmem:[#allocation107_spill] sm:$0xff] %v6223_v52  ;;  %9729 = vst [vmem:[#allocation108_spill] sm:$0xff] %v6226_v60  ;;  %v6229_v16 = vld [vmem:[#allocation2 + $0x5a8] sm:$0xff]  ;;  %v6232_v32 = vld [vmem:[#allocation2 + $0x5b8] sm:$0xff] }
 0x3c0   :  { %1524 = vmatprep.subr.mxu0 %v6217_v33  ;;  %1595 = vmatprep.subr.mxu1 %v6220_v45  ;;  %9730 = vst [vmem:[#allocation109_spill] sm:$0xff] %v6229_v16  ;;  %9731 = vst [vmem:[#allocation110_spill] sm:$0xff] %v6232_v32  ;;  %v6235_v33 = vld [vmem:[#allocation2 + $0x5a0] sm:$0xff]  ;;  %v6238_v45 = vld [vmem:[#allocation2 + $0x5b0] sm:$0xff] }
 0x3c1   :  { %1525 = vmatpush2.msra.mxu0 %v6223_v52  ;;  %1596 = vmatpush2.msra.mxu1 %v6226_v60  ;;  %9732 = vst [vmem:[#allocation111_spill] sm:$0xff] %v6235_v33  ;;  %9733 = vst [vmem:[#allocation112_spill] sm:$0xff] %v6238_v45  ;;  %v6241_v52 = vld [vmem:[#allocation2 + $0x568] sm:$0xff]  ;;  %v6244_v60 = vld [vmem:[#allocation2 + $0x578] sm:$0xff] }
 0x3c2   :  { %1526 = vmatprep.subr.mxu0 %v6229_v16  ;;  %1597 = vmatprep.subr.mxu1 %v6232_v32  ;;  %9734 = vst [vmem:[#allocation113_spill] sm:$0xff] %v6241_v52  ;;  %9735 = vst [vmem:[#allocation114_spill] sm:$0xff] %v6244_v60  ;;  %v6247_v16 = vld [vmem:[#allocation2 + $0x560] sm:$0xff]  ;;  %v6250_v32 = vld [vmem:[#allocation2 + $0x570] sm:$0xff] }
 0x3c3   :  { %1527 = vmatpush2.msra.mxu0 %v6235_v33  ;;  %1598 = vmatpush2.msra.mxu1 %v6238_v45  ;;  %9736 = vst [vmem:[#allocation115_spill] sm:$0xff] %v6247_v16  ;;  %9737 = vst [vmem:[#allocation116_spill] sm:$0xff] %v6250_v32  ;;  %v6253_v33 = vld [vmem:[#allocation2 + $0x528] sm:$0xff]  ;;  %v6256_v45 = vld [vmem:[#allocation2 + $0x538] sm:$0xff] }
 0x3c4   :  { %1528 = vmatprep.subr.mxu0 %v6241_v52  ;;  %1599 = vmatprep.subr.mxu1 %v6244_v60  ;;  %9738 = vst [vmem:[#allocation117_spill] sm:$0xff] %v6253_v33  ;;  %9739 = vst [vmem:[#allocation118_spill] sm:$0xff] %v6256_v45  ;;  %v6259_v52 = vld [vmem:[#allocation2 + $0x520] sm:$0xff]  ;;  %v6262_v60 = vld [vmem:[#allocation2 + $0x530] sm:$0xff] }
 0x3c5   :  { %1529 = vmatpush2.msra.mxu0 %v6247_v16  ;;  %1600 = vmatpush2.msra.mxu1 %v6250_v32  ;;  %9740 = vst [vmem:[#allocation119_spill] sm:$0xff] %v6259_v52  ;;  %9741 = vst [vmem:[#allocation120_spill] sm:$0xff] %v6262_v60  ;;  %v6265_v16 = vld [vmem:[#allocation2 + $0x4e8] sm:$0xff]  ;;  %v6268_v32 = vld [vmem:[#allocation2 + $0x4f8] sm:$0xff] }
 0x3c6   :  { %1530 = vmatprep.subr.mxu0 %v6253_v33  ;;  %1601 = vmatprep.subr.mxu1 %v6256_v45  ;;  %9742 = vst [vmem:[#allocation121_spill] sm:$0xff] %v6265_v16  ;;  %9743 = vst [vmem:[#allocation122_spill] sm:$0xff] %v6268_v32  ;;  %v6271_v33 = vld [vmem:[#allocation2 + $0x4e0] sm:$0xff]  ;;  %v6274_v45 = vld [vmem:[#allocation2 + $0x4f0] sm:$0xff] }
 0x3c7   :  { %1531 = vmatpush2.msra.mxu0 %v6259_v52  ;;  %1602 = vmatpush2.msra.mxu1 %v6262_v60  ;;  %9744 = vst [vmem:[#allocation123_spill] sm:$0xff] %v6271_v33  ;;  %9745 = vst [vmem:[#allocation124_spill] sm:$0xff] %v6274_v45  ;;  %v6277_v52 = vld [vmem:[#allocation2 + $0x4a8] sm:$0xff]  ;;  %v6280_v60 = vld [vmem:[#allocation2 + $0x4b8] sm:$0xff] }
 0x3c8   :  { %1532 = vmatprep.subr.mxu0 %v6265_v16  ;;  %1603 = vmatprep.subr.mxu1 %v6268_v32  ;;  %9746 = vst [vmem:[#allocation125_spill] sm:$0xff] %v6277_v52  ;;  %9747 = vst [vmem:[#allocation126_spill] sm:$0xff] %v6280_v60  ;;  %v6283_v16 = vld [vmem:[#allocation2 + $0x4a0] sm:$0xff]  ;;  %v6286_v32 = vld [vmem:[#allocation2 + $0x4b0] sm:$0xff] }
 0x3c9   :  { %1533 = vmatpush2.msra.mxu0 %v6271_v33  ;;  %1604 = vmatpush2.msra.mxu1 %v6274_v45  ;;  %9748 = vst [vmem:[#allocation127_spill] sm:$0xff] %v6283_v16  ;;  %9749 = vst [vmem:[#allocation128_spill] sm:$0xff] %v6286_v32  ;;  %v6289_v33 = vld [vmem:[#allocation2 + $0x468] sm:$0xff]  ;;  %v6292_v45 = vld [vmem:[#allocation2 + $0x478] sm:$0xff] }
 0x3ca   :  { %1534 = vmatprep.subr.mxu0 %v6277_v52  ;;  %1605 = vmatprep.subr.mxu1 %v6280_v60  ;;  %9750 = vst [vmem:[#allocation129_spill] sm:$0xff] %v6289_v33  ;;  %9751 = vst [vmem:[#allocation130_spill] sm:$0xff] %v6292_v45  ;;  %v6295_v52 = vld [vmem:[#allocation2 + $0x460] sm:$0xff]  ;;  %v6298_v60 = vld [vmem:[#allocation2 + $0x470] sm:$0xff] }
 0x3cb   :  { %1535 = vmatpush2.msra.mxu0 %v6283_v16  ;;  %1606 = vmatpush2.msra.mxu1 %v6286_v32  ;;  %9752 = vst [vmem:[#allocation131_spill] sm:$0xff] %v6298_v60  ;;  %v6301_v16 = vld [vmem:[#allocation2 + $0x428] sm:$0xff]  ;;  %v6304_v32 = vld [vmem:[#allocation2 + $0x438] sm:$0xff] }
 0x3cc   :  { %1536 = vmatprep.subr.mxu0 %v6289_v33  ;;  %1607 = vmatprep.subr.mxu1 %v6292_v45  ;;  %9753 = vst [vmem:[#allocation132_spill] sm:$0xff] %v6301_v16  ;;  %9754 = vst [vmem:[#allocation133_spill] sm:$0xff] %v6304_v32  ;;  %v6307_v33 = vld [vmem:[#allocation2 + $0x420] sm:$0xff]  ;;  %v6310_v45 = vld [vmem:[#allocation2 + $0x430] sm:$0xff] }
 0x3cd   :  { %1537 = vmatpush2.msra.mxu0 %v6295_v52  ;;  %1608 = vmatpush2.msra.mxu1 %v6298_v60  ;;  %9755 = vst [vmem:[#allocation134_spill] sm:$0xff] %v6307_v33  ;;  %9756 = vst [vmem:[#allocation135_spill] sm:$0xff] %v6310_v45  ;;  %v6315_v60 = vld [vmem:[#allocation2 + $0x3c8] sm:$0xff] }
 0x3ce   :  { %1538 = vmatprep.subr.mxu0 %v6301_v16  ;;  %1609 = vmatprep.subr.mxu1 %v6304_v32  ;;  %9757 = vst [vmem:[#allocation136_spill] sm:$0xff] %v6315_v60  ;;  %v6318_v16 = vld [vmem:[#allocation2 + $0x3d8] sm:$0xff]  ;;  %v6321_v32 = vld [vmem:[#allocation2 + $0x3c0] sm:$0xff] }
 0x3cf   :  { %1539 = vmatpush2.msra.mxu0 %v6307_v33  ;;  %1610 = vmatpush2.msra.mxu1 %v6310_v45  ;;  %9758 = vst [vmem:[#allocation137_spill] sm:$0xff] %v6318_v16  ;;  %9759 = vst [vmem:[#allocation138_spill] sm:$0xff] %v6321_v32  ;;  %v6324_v33 = vld [vmem:[#allocation2 + $0x3d0] sm:$0xff]  ;;  %v6327_v45 = vld [vmem:[#allocation2 + $0x388] sm:$0xff] }
 0x3d0   :  { %1541 = vmatmul.mubr.f32.vlgmr.msra.gmra.mxu0 %v5931_v34  ;;  %1612 = vmatmul.mubr.f32.vlgmr.msra.gmra.mxu1 %v5931_v34  ;;  %9760 = vst [vmem:[#allocation139_spill] sm:$0xff] %v6324_v33  ;;  %9761 = vst [vmem:[#allocation140_spill] sm:$0xff] %v6327_v45  ;;  %v6330_v34 = vld [vmem:[#allocation2 + $0x398] sm:$0xff] }
 0x3d1   :  { %1674 = vmatprep.subr.mxu0 %v6315_v60  ;;  %1745 = vmatprep.subr.mxu1 %v6318_v16  ;;  %9762 = vst [vmem:[#allocation141_spill] sm:$0xff] %v6330_v34  ;;  %v6333_v60 = vld [vmem:[#allocation2 + $0x380] sm:$0xff]  ;;  %v6336_v16 = vld [vmem:[#allocation2 + $0x390] sm:$0xff] }
 0x3d2   :  { %1675 = vmatpush1.msra.mxu0 %v6321_v32  ;;  %1746 = vmatpush1.msra.mxu1 %v6324_v33  ;;  %9763 = vst [vmem:[#allocation142_spill] sm:$0xff] %v6333_v60  ;;  %9764 = vst [vmem:[#allocation143_spill] sm:$0xff] %v6336_v16  ;;  %v6339_v32 = vld [vmem:[#allocation2 + $0x348] sm:$0xff]  ;;  %v6342_v33 = vld [vmem:[#allocation2 + $0x358] sm:$0xff] }
 0x3d3   :  { %1676 = vmatprep.subr.mxu0 %v6327_v45  ;;  %1747 = vmatprep.subr.mxu1 %v6330_v34  ;;  %9765 = vst [vmem:[#allocation144_spill] sm:$0xff] %v6339_v32  ;;  %9766 = vst [vmem:[#allocation145_spill] sm:$0xff] %v6342_v33  ;;  %v6345_v45 = vld [vmem:[#allocation2 + $0x340] sm:$0xff]  ;;  %v6348_v34 = vld [vmem:[#allocation2 + $0x350] sm:$0xff] }
 0x3d4   :  { %1677 = vmatpush1.msra.mxu0 %v6333_v60  ;;  %1748 = vmatpush1.msra.mxu1 %v6336_v16  ;;  %9767 = vst [vmem:[#allocation146_spill] sm:$0xff] %v6345_v45  ;;  %9768 = vst [vmem:[#allocation147_spill] sm:$0xff] %v6348_v34  ;;  %v6351_v60 = vld [vmem:[#allocation2 + $0x308] sm:$0xff]  ;;  %v6354_v16 = vld [vmem:[#allocation2 + $0x318] sm:$0xff] }
 0x3d5   :  { %1678 = vmatprep.subr.mxu0 %v6339_v32  ;;  %1749 = vmatprep.subr.mxu1 %v6342_v33  ;;  %9769 = vst [vmem:[#allocation148_spill] sm:$0xff] %v6351_v60  ;;  %9770 = vst [vmem:[#allocation149_spill] sm:$0xff] %v6354_v16  ;;  %v6357_v32 = vld [vmem:[#allocation2 + $0x300] sm:$0xff]  ;;  %v6360_v33 = vld [vmem:[#allocation2 + $0x310] sm:$0xff] }
 0x3d6   :  { %1679 = vmatpush1.msra.mxu0 %v6345_v45  ;;  %1750 = vmatpush1.msra.mxu1 %v6348_v34  ;;  %9771 = vst [vmem:[#allocation150_spill] sm:$0xff] %v6357_v32  ;;  %9772 = vst [vmem:[#allocation151_spill] sm:$0xff] %v6360_v33  ;;  %v6363_v45 = vld [vmem:[#allocation2 + $0x2c8] sm:$0xff]  ;;  %v6366_v34 = vld [vmem:[#allocation2 + $0x2d8] sm:$0xff] }
 0x3d7   :  { %1680 = vmatprep.subr.mxu0 %v6351_v60  ;;  %1751 = vmatprep.subr.mxu1 %v6354_v16  ;;  %9773 = vst [vmem:[#allocation152_spill] sm:$0xff] %v6363_v45  ;;  %9774 = vst [vmem:[#allocation153_spill] sm:$0xff] %v6366_v34  ;;  %v6369_v60 = vld [vmem:[#allocation2 + $0x2c0] sm:$0xff]  ;;  %v6372_v16 = vld [vmem:[#allocation2 + $0x2d0] sm:$0xff] }
 0x3d8   :  { %1681 = vmatpush1.msra.mxu0 %v6357_v32  ;;  %1752 = vmatpush1.msra.mxu1 %v6360_v33  ;;  %9775 = vst [vmem:[#allocation154_spill] sm:$0xff] %v6369_v60  ;;  %9776 = vst [vmem:[#allocation155_spill] sm:$0xff] %v6372_v16  ;;  %v6375_v32 = vld [vmem:[#allocation2 + $0x288] sm:$0xff]  ;;  %v6378_v33 = vld [vmem:[#allocation2 + $0x298] sm:$0xff] }
 0x3d9   :  { %1682 = vmatprep.subr.mxu0 %v6363_v45  ;;  %1753 = vmatprep.subr.mxu1 %v6366_v34  ;;  %9777 = vst [vmem:[#allocation156_spill] sm:$0xff] %v6375_v32  ;;  %9778 = vst [vmem:[#allocation157_spill] sm:$0xff] %v6378_v33  ;;  %v6381_v45 = vld [vmem:[#allocation2 + $0x280] sm:$0xff]  ;;  %v6384_v34 = vld [vmem:[#allocation2 + $0x290] sm:$0xff] }
 0x3da   :  { %1683 = vmatpush1.msra.mxu0 %v6369_v60  ;;  %1754 = vmatpush1.msra.mxu1 %v6372_v16  ;;  %9779 = vst [vmem:[#allocation158_spill] sm:$0xff] %v6381_v45  ;;  %9780 = vst [vmem:[#allocation159_spill] sm:$0xff] %v6384_v34  ;;  %v6387_v60 = vld [vmem:[#allocation2 + $0x248] sm:$0xff]  ;;  %v6390_v16 = vld [vmem:[#allocation2 + $0x258] sm:$0xff] }
 0x3db   :  { %1684 = vmatprep.subr.mxu0 %v6375_v32  ;;  %1755 = vmatprep.subr.mxu1 %v6378_v33  ;;  %9781 = vst [vmem:[#allocation160_spill] sm:$0xff] %v6387_v60  ;;  %9782 = vst [vmem:[#allocation161_spill] sm:$0xff] %v6390_v16  ;;  %v6393_v32 = vld [vmem:[#allocation2 + $0x240] sm:$0xff]  ;;  %v6396_v33 = vld [vmem:[#allocation2 + $0x250] sm:$0xff] }
 0x3dc   :  { %1685 = vmatpush1.msra.mxu0 %v6381_v45  ;;  %1756 = vmatpush1.msra.mxu1 %v6384_v34  ;;  %9783 = vst [vmem:[#allocation162_spill] sm:$0xff] %v6393_v32  ;;  %9784 = vst [vmem:[#allocation163_spill] sm:$0xff] %v6396_v33  ;;  %v6399_v45 = vld [vmem:[#allocation2 + $0x208] sm:$0xff]  ;;  %v6402_v34 = vld [vmem:[#allocation2 + $0x218] sm:$0xff] }
 0x3dd   :  { %1686 = vmatprep.subr.mxu0 %v6387_v60  ;;  %1757 = vmatprep.subr.mxu1 %v6390_v16  ;;  %9785 = vst [vmem:[#allocation164_spill] sm:$0xff] %v6399_v45  ;;  %9786 = vst [vmem:[#allocation165_spill] sm:$0xff] %v6402_v34  ;;  %v6405_v60 = vld [vmem:[#allocation2 + $0x200] sm:$0xff]  ;;  %v6408_v16 = vld [vmem:[#allocation2 + $0x210] sm:$0xff] }
 0x3de   :  { %1687 = vmatpush1.msra.mxu0 %v6393_v32  ;;  %1758 = vmatpush1.msra.mxu1 %v6396_v33  ;;  %9787 = vst [vmem:[#allocation166_spill] sm:$0xff] %v6405_v60  ;;  %9788 = vst [vmem:[#allocation167_spill] sm:$0xff] %v6408_v16  ;;  %v6411_v32 = vld [vmem:[#allocation2 + $0x1c8] sm:$0xff]  ;;  %v6414_v33 = vld [vmem:[#allocation2 + $0x1d8] sm:$0xff] }
 0x3df   :  { %1688 = vmatprep.subr.mxu0 %v6399_v45  ;;  %1759 = vmatprep.subr.mxu1 %v6402_v34  ;;  %9789 = vst [vmem:[#allocation168_spill] sm:$0xff] %v6411_v32  ;;  %9790 = vst [vmem:[#allocation169_spill] sm:$0xff] %v6414_v33  ;;  %v6417_v45 = vld [vmem:[#allocation2 + $0x1c0] sm:$0xff]  ;;  %v6420_v34 = vld [vmem:[#allocation2 + $0x1d0] sm:$0xff] }
 0x3e0   :  { %1689 = vmatpush1.msra.mxu0 %v6405_v60  ;;  %1760 = vmatpush1.msra.mxu1 %v6408_v16  ;;  %9791 = vst [vmem:[#allocation170_spill] sm:$0xff] %v6417_v45  ;;  %9792 = vst [vmem:[#allocation171_spill] sm:$0xff] %v6420_v34  ;;  %v6423_v60 = vld [vmem:[#allocation2 + $0x188] sm:$0xff]  ;;  %v6426_v16 = vld [vmem:[#allocation2 + $0x198] sm:$0xff] }
 0x3e1   :  { %1690 = vmatprep.subr.mxu0 %v6411_v32  ;;  %1761 = vmatprep.subr.mxu1 %v6414_v33  ;;  %9793 = vst [vmem:[#allocation172_spill] sm:$0xff] %v6423_v60  ;;  %9794 = vst [vmem:[#allocation173_spill] sm:$0xff] %v6426_v16  ;;  %v6429_v32 = vld [vmem:[#allocation2 + $0x180] sm:$0xff]  ;;  %v6432_v33 = vld [vmem:[#allocation2 + $0x190] sm:$0xff] }
 0x3e2   :  { %1691 = vmatpush1.msra.mxu0 %v6417_v45  ;;  %1762 = vmatpush1.msra.mxu1 %v6420_v34  ;;  %9795 = vst [vmem:[#allocation174_spill] sm:$0xff] %v6429_v32  ;;  %9796 = vst [vmem:[#allocation175_spill] sm:$0xff] %v6432_v33  ;;  %v6435_v45 = vld [vmem:[#allocation2 + $0x148] sm:$0xff]  ;;  %v6438_v34 = vld [vmem:[#allocation2 + $0x158] sm:$0xff] }
 0x3e3   :  { %1692 = vmatprep.subr.mxu0 %v6423_v60  ;;  %1763 = vmatprep.subr.mxu1 %v6426_v16  ;;  %9797 = vst [vmem:[#allocation176_spill] sm:$0xff] %v6435_v45  ;;  %9798 = vst [vmem:[#allocation177_spill] sm:$0xff] %v6438_v34  ;;  %v6441_v60 = vld [vmem:[#allocation2 + $0x140] sm:$0xff]  ;;  %v6444_v16 = vld [vmem:[#allocation2 + $0x150] sm:$0xff] }
 0x3e4   :  { %1693 = vmatpush1.msra.mxu0 %v6429_v32  ;;  %1764 = vmatpush1.msra.mxu1 %v6432_v33  ;;  %9799 = vst [vmem:[#allocation178_spill] sm:$0xff] %v6441_v60  ;;  %9800 = vst [vmem:[#allocation179_spill] sm:$0xff] %v6444_v16  ;;  %v6447_v32 = vld [vmem:[#allocation2 + $0x108] sm:$0xff]  ;;  %v6450_v33 = vld [vmem:[#allocation2 + $0x118] sm:$0xff] }
 0x3e5   :  { %1694 = vmatprep.subr.mxu0 %v6435_v45  ;;  %1765 = vmatprep.subr.mxu1 %v6438_v34  ;;  %9801 = vst [vmem:[#allocation180_spill] sm:$0xff] %v6447_v32  ;;  %9802 = vst [vmem:[#allocation181_spill] sm:$0xff] %v6450_v33  ;;  %v6453_v45 = vld [vmem:[#allocation2 + $0x100] sm:$0xff]  ;;  %v6456_v34 = vld [vmem:[#allocation2 + $0x110] sm:$0xff] }
 0x3e6   :  { %1695 = vmatpush1.msra.mxu0 %v6441_v60  ;;  %1766 = vmatpush1.msra.mxu1 %v6444_v16  ;;  %9803 = vst [vmem:[#allocation182_spill] sm:$0xff] %v6453_v45  ;;  %9804 = vst [vmem:[#allocation183_spill] sm:$0xff] %v6456_v34  ;;  %v6459_v60 = vld [vmem:[#allocation2 + $0xc8] sm:$0xff]  ;;  %v6462_v16 = vld [vmem:[#allocation2 + $0xd8] sm:$0xff] }
 0x3e7   :  { %1696 = vmatprep.subr.mxu0 %v6447_v32  ;;  %1767 = vmatprep.subr.mxu1 %v6450_v33  ;;  %9805 = vst [vmem:[#allocation184_spill] sm:$0xff] %v6459_v60  ;;  %9806 = vst [vmem:[#allocation185_spill] sm:$0xff] %v6462_v16  ;;  %v6465_v32 = vld [vmem:[#allocation2 + $0xc0] sm:$0xff]  ;;  %v6468_v33 = vld [vmem:[#allocation2 + $0xd0] sm:$0xff] }
 0x3e8   :  { %1697 = vmatpush1.msra.mxu0 %v6453_v45  ;;  %1768 = vmatpush1.msra.mxu1 %v6456_v34  ;;  %9807 = vst [vmem:[#allocation186_spill] sm:$0xff] %v6465_v32  ;;  %9808 = vst [vmem:[#allocation187_spill] sm:$0xff] %v6468_v33  ;;  %v6471_v45 = vld [vmem:[#allocation2 + $0x88] sm:$0xff]  ;;  %v6474_v34 = vld [vmem:[#allocation2 + $0x98] sm:$0xff] }
 0x3e9   :  { %1698 = vmatprep.subr.mxu0 %v6459_v60  ;;  %1769 = vmatprep.subr.mxu1 %v6462_v16  ;;  %9809 = vst [vmem:[#allocation188_spill] sm:$0xff] %v6471_v45  ;;  %9810 = vst [vmem:[#allocation189_spill] sm:$0xff] %v6474_v34  ;;  %v6477_v60 = vld [vmem:[#allocation2 + $0x80] sm:$0xff]  ;;  %v6480_v16 = vld [vmem:[#allocation2 + $0x90] sm:$0xff] }
 0x3ea   :  { %1699 = vmatpush1.msra.mxu0 %v6465_v32  ;;  %1770 = vmatpush1.msra.mxu1 %v6468_v33  ;;  %9811 = vst [vmem:[#allocation190_spill] sm:$0xff] %v6477_v60  ;;  %9812 = vst [vmem:[#allocation191_spill] sm:$0xff] %v6480_v16  ;;  %v6483_v32 = vld [vmem:[#allocation2 + $0x48] sm:$0xff]  ;;  %v6486_v33 = vld [vmem:[#allocation2 + $0x58] sm:$0xff] }
 0x3eb   :  { %1700 = vmatprep.subr.mxu0 %v6471_v45  ;;  %1771 = vmatprep.subr.mxu1 %v6474_v34  ;;  %9813 = vst [vmem:[#allocation192_spill] sm:$0xff] %v6483_v32  ;;  %9814 = vst [vmem:[#allocation193_spill] sm:$0xff] %v6486_v33  ;;  %v6489_v45 = vld [vmem:[#allocation2 + $0x40] sm:$0xff]  ;;  %v6492_v34 = vld [vmem:[#allocation2 + $0x50] sm:$0xff] }
 0x3ec   :  { %1701 = vmatpush1.msra.mxu0 %v6477_v60  ;;  %1772 = vmatpush1.msra.mxu1 %v6480_v16  ;;  %9815 = vst [vmem:[#allocation194_spill] sm:$0xff] %v6489_v45  ;;  %9816 = vst [vmem:[#allocation195_spill] sm:$0xff] %v6492_v34  ;;  %v6495_v60 = vld [vmem:[#allocation2 + $0x8] sm:$0xff]  ;;  %v6498_v16 = vld [vmem:[#allocation2 + $0x18] sm:$0xff] }
 0x3ed   :  { %1702 = vmatprep.subr.mxu0 %v6483_v32  ;;  %1773 = vmatprep.subr.mxu1 %v6486_v33  ;;  %9817 = vst [vmem:[#allocation196_spill] sm:$0xff] %v6495_v60  ;;  %9818 = vst [vmem:[#allocation197_spill] sm:$0xff] %v6498_v16  ;;  %v6501_v32 = vld [vmem:[#allocation2] sm:$0xff]  ;;  %v6504_v33 = vld [vmem:[#allocation2 + $0x10] sm:$0xff] }
 0x3ee   :  { %1703 = vmatpush1.msra.mxu0 %v6489_v45  ;;  %1774 = vmatpush1.msra.mxu1 %v6492_v34  ;;  %9819 = vst [vmem:[#allocation198_spill] sm:$0xff] %v6501_v32  ;;  %9820 = vst [vmem:[#allocation199_spill] sm:$0xff] %v6504_v33  ;;  %v6507_v45 = vld [vmem:[#allocation2 + $0x7c8] sm:$0xff]  ;;  %v6510_v34 = vld [vmem:[#allocation2 + $0x7d8] sm:$0xff] }
 0x3ef   :  { %1704 = vmatprep.subr.mxu0 %v6495_v60  ;;  %1775 = vmatprep.subr.mxu1 %v6498_v16  ;;  %9821 = vst [vmem:[#allocation200_spill] sm:$0xff] %v6507_v45  ;;  %9822 = vst [vmem:[#allocation201_spill] sm:$0xff] %v6510_v34  ;;  %v6513_v60 = vld [vmem:[#allocation2 + $0x7c0] sm:$0xff]  ;;  %v6516_v16 = vld [vmem:[#allocation2 + $0x7d0] sm:$0xff] }
 0x3f0   :  { %1705 = vmatpush1.msra.mxu0 %v6501_v32  ;;  %1776 = vmatpush1.msra.mxu1 %v6504_v33  ;;  %9823 = vst [vmem:[#allocation202_spill] sm:$0xff] %v6513_v60  ;;  %9824 = vst [vmem:[#allocation203_spill] sm:$0xff] %v6516_v16  ;;  %v6519_v32 = vld [vmem:[#allocation2 + $0x788] sm:$0xff]  ;;  %v6522_v33 = vld [vmem:[#allocation2 + $0x798] sm:$0xff] }
 0x3f1   :  { %1706 = vmatprep.subr.mxu0 %v6507_v45  ;;  %1777 = vmatprep.subr.mxu1 %v6510_v34  ;;  %9825 = vst [vmem:[#allocation204_spill] sm:$0xff] %v6519_v32  ;;  %9826 = vst [vmem:[#allocation205_spill] sm:$0xff] %v6522_v33  ;;  %v6525_v45 = vld [vmem:[#allocation2 + $0x780] sm:$0xff]  ;;  %v6528_v34 = vld [vmem:[#allocation2 + $0x790] sm:$0xff] }
 0x3f2   :  { %1707 = vmatpush2.msra.mxu0 %v6513_v60  ;;  %1778 = vmatpush2.msra.mxu1 %v6516_v16  ;;  %9827 = vst [vmem:[#allocation206_spill] sm:$0xff] %v6525_v45  ;;  %9828 = vst [vmem:[#allocation207_spill] sm:$0xff] %v6528_v34  ;;  %v6531_v60 = vld [vmem:[#allocation2 + $0x748] sm:$0xff]  ;;  %v6534_v16 = vld [vmem:[#allocation2 + $0x758] sm:$0xff] }
 0x3f3   :  { %1708 = vmatprep.subr.mxu0 %v6519_v32  ;;  %1779 = vmatprep.subr.mxu1 %v6522_v33  ;;  %9829 = vst [vmem:[#allocation231_spill] sm:$0xff] %v6531_v60  ;;  %9830 = vst [vmem:[#allocation232_spill] sm:$0xff] %v6534_v16  ;;  %v6537_v32 = vld [vmem:[#allocation2 + $0x740] sm:$0xff]  ;;  %v6540_v33 = vld [vmem:[#allocation2 + $0x750] sm:$0xff] }
 0x3f4   :  { %1709 = vmatpush2.msra.mxu0 %v6525_v45  ;;  %1780 = vmatpush2.msra.mxu1 %v6528_v34  ;;  %9831 = vst [vmem:[#allocation233_spill] sm:$0xff] %v6537_v32  ;;  %9832 = vst [vmem:[#allocation234_spill] sm:$0xff] %v6540_v33  ;;  %v6543_v45 = vld [vmem:[#allocation2 + $0x708] sm:$0xff]  ;;  %v6546_v34 = vld [vmem:[#allocation2 + $0x718] sm:$0xff] }
 0x3f5   :  { %1710 = vmatprep.subr.mxu0 %v6531_v60  ;;  %1781 = vmatprep.subr.mxu1 %v6534_v16  ;;  %9833 = vst [vmem:[#allocation235_spill] sm:$0xff] %v6543_v45  ;;  %9834 = vst [vmem:[#allocation236_spill] sm:$0xff] %v6546_v34  ;;  %v6549_v60 = vld [vmem:[#allocation2 + $0x700] sm:$0xff]  ;;  %v6552_v16 = vld [vmem:[#allocation2 + $0x710] sm:$0xff] }
 0x3f6   :  { %1711 = vmatpush2.msra.mxu0 %v6537_v32  ;;  %1782 = vmatpush2.msra.mxu1 %v6540_v33  ;;  %v6555_v32 = vld [vmem:[#allocation2 + $0x6c8] sm:$0xff]  ;;  %v6558_v33 = vld [vmem:[#allocation2 + $0x6d8] sm:$0xff] }
 0x3f7   :  { %1712 = vmatprep.subr.mxu0 %v6543_v45  ;;  %1783 = vmatprep.subr.mxu1 %v6546_v34  ;;  %v6561_v45 = vld [vmem:[#allocation2 + $0x6c0] sm:$0xff]  ;;  %v6564_v34 = vld [vmem:[#allocation2 + $0x6d0] sm:$0xff] }
 0x3f8   :  { %1713 = vmatpush2.msra.mxu0 %v6549_v60  ;;  %1784 = vmatpush2.msra.mxu1 %v6552_v16 }
 0x3f9   :  { %1714 = vmatprep.subr.mxu0 %v6555_v32  ;;  %1785 = vmatprep.subr.mxu1 %v6558_v33 }
 0x3fa   :  { %1715 = vmatpush2.msra.mxu0 %v6561_v45  ;;  %1786 = vmatpush2.msra.mxu1 %v6564_v34 }
 0x3fb   :  { %1716 = vmatprep.subr.mxu0 %v5773_v14  ;;  %1787 = vmatprep.subr.mxu1 %v5776_v21  ;;  %v9835_v14 = vld [vmem:[#allocation13_spill] sm:$0xff]  ;;  %v9836_v21 = vld [vmem:[#allocation14_spill] sm:$0xff] }
 0x3fc   :  { %1717 = vmatpush2.msra.mxu0 %v5779_v27  ;;  %1788 = vmatpush2.msra.mxu1 %v5782_v4  ;;  %v9837_v27 = vld [vmem:[#allocation15_spill] sm:$0xff]  ;;  %v9838_v4 = vld [vmem:[#allocation16_spill] sm:$0xff] }
 0x3fd   :  { %1718 = vmatprep.subr.mxu0 %v5785_v28  ;;  %1789 = vmatprep.subr.mxu1 %v5788_v22  ;;  %v9839_v28 = vld [vmem:[#allocation17_spill] sm:$0xff]  ;;  %v9840_v22 = vld [vmem:[#allocation18_spill] sm:$0xff] }
 0x3fe   :  { %1719 = vmatpush2.msra.mxu0 %v5791_v20  ;;  %1790 = vmatpush2.msra.mxu1 %v5794_v25  ;;  %v9841_v20 = vld [vmem:[#allocation19_spill] sm:$0xff]  ;;  %v9842_v25 = vld [vmem:[#allocation20_spill] sm:$0xff] }
 0x3ff   :  { %1720 = vmatprep.subr.mxu0 %v5797_v26  ;;  %1791 = vmatprep.subr.mxu1 %v5800_v31  ;;  %v9843_v26 = vld [vmem:[#allocation21_spill] sm:$0xff]  ;;  %v9846_v31 = vld [vmem:[#allocation208_spill] sm:$0xff] }
 0x400   :  { %1721 = vmatpush2.msra.mxu0 %v5803_v15  ;;  %1792 = vmatpush2.msra.mxu1 %v5806_v53 }
 0x401   :  { %1722 = vmatprep.subr.mxu0 %v5809_v0  ;;  %1793 = vmatprep.subr.mxu1 %v5812_v19  ;;  %v9847_v0 = vld [vmem:[#allocation209_spill] sm:$0xff] }
 0x402   :  { %1723 = vmatpush2.msra.mxu0 %v5815_v49  ;;  %1794 = vmatpush2.msra.mxu1 %v5818_v40  ;;  %v213_v19 = vadd.f32 %v9847_v0, %v4772_v23 }
 0x403   :  { %1724 = vmatprep.subr.mxu0 %v5821_v30  ;;  %1795 = vmatprep.subr.mxu1 %v5824_v17 }
 0x404   :  { %1725 = vmatpush2.msra.mxu0 %v5827_v55  ;;  %1796 = vmatpush2.msra.mxu1 %v5830_v51 }
 0x405   :  { %1726 = vmatprep.subr.mxu0 %v5833_v18  ;;  %1797 = vmatprep.subr.mxu1 %v5836_v36  ;;  %v9848_v36 = vld [vmem:[#allocation216_spill] sm:$0xff] }
 0x406   :  { %1727 = vmatpush2.msra.mxu0 %v5839_v8  ;;  %1798 = vmatpush2.msra.mxu1 %v5842_v58  ;;  %v326_v8 = vadd.f32 %v9848_v36, %v4785_v24 }
 0x407   :  { %1728 = vmatprep.subr.mxu0 %v5845_v29  ;;  %1799 = vmatprep.subr.mxu1 %v5848_v61 }
 0x408   :  { %1729 = vmatpush2.msra.mxu0 %v5851_v1  ;;  %1800 = vmatpush2.msra.mxu1 %v5854_v38 }
 0x409   :  { %1730 = vmatprep.subr.mxu0 %v5857_v6  ;;  %1801 = vmatprep.subr.mxu1 %v5860_v11 }
 0x40a   :  { %1731 = vmatpush2.msra.mxu0 %v5863_v59  ;;  %1802 = vmatpush2.msra.mxu1 %v5866_v9 }
 0x40b   :  { %1732 = vmatprep.subr.mxu0 %v5869_v7  ;;  %1803 = vmatprep.subr.mxu1 %v5872_v12 }
 0x40c   :  { %1733 = vmatpush2.msra.mxu0 %v5875_v62  ;;  %1804 = vmatpush2.msra.mxu1 %v5878_v2  ;;  %v9844_v62 = vld [vmem:[#allocation22_spill] sm:$0xff]  ;;  %v9845_v2 = vld [vmem:[#allocation9_spill] sm:$0xff] }
 0x40d   :  { %1734 = vmatprep.subr.mxu0 %v9835_v14  ;;  %1805 = vmatprep.subr.mxu1 %v9836_v21  ;;  %v211_v15 = vadd.f32 %v9846_v31, %v9845_v2 }
 0x40e   :  { %1735 = vmatpush2.msra.mxu0 %v9837_v27  ;;  %1806 = vmatpush2.msra.mxu1 %v9838_v4 }
 0x40f   :  { %1736 = vmatprep.subr.mxu0 %v9839_v28  ;;  %1807 = vmatprep.subr.mxu1 %v9840_v22 }
 0x410   :  { %1737 = vmatpush2.msra.mxu0 %v9841_v20  ;;  %1808 = vmatpush2.msra.mxu1 %v9842_v25  ;;  %v9849_v20 = vld [vmem:[#allocation214_spill] sm:$0xff] }
 0x411   :  { %1816 = vmatprep.subr.mxu0 %v9843_v26  ;;  %1887 = vmatprep.subr.mxu1 %v9844_v62  ;;  %v324_v25 = vadd.f32 %v9849_v20, %v9434_v63  ;;  %v9869_v20 = vld [vmem:[#allocation42_spill] sm:$0xff] }
 0x44f   :  { %v1400_v53 = vpop.f32.mrf.mxu0  ;;  %v1471_v51 = vpop.f32.mrf.mxu1 }
 0x450   :  { %v1618_v49 = vadd.f32 %v1400_v53, %v211_v15  ;;  %v1620_v62 = vadd.f32 %v1471_v51, %v324_v25  ;;  %v9870_v25 = vld [vmem:[#allocation43_spill] sm:$0xff] }
 0x451   :  { %v1402_v40 = vpop.f32.mrf.mxu0  ;;  %v1473_v18 = vpop.f32.mrf.mxu1 }
 0x452   :  { %v3335_v30 = vmul.f32 -1.442695, %v1618_v49  ;;  %v1619_v17 = vadd.f32 %v1402_v40, %v213_v19  ;;  %v1621_v58 = vadd.f32 %v1473_v18, %v326_v8 }
 0x454   :  { %3509 = vpow2.f32 %v3335_v30  ;;  %v3336_v55 = vmul.f32 -1.442695, %v1619_v17 }
 0x456   :  { %3511 = vpow2.f32 %v3336_v55 }
 0x457   :  { %3513 = vtanh.f32 %v1621_v58 }
 0x461   :  { %v3510_v29 = vpop.eup %3509 }
 0x462   :  { %v1635_v61 = vadd.f32 1.0, %v3510_v29 }
 0x463   :  { %v3512_v1 = vpop.eup %3511 }
 0x464   :  { %3515 = vrcp.f32 %v1635_v61  ;;  %v1636_v38 = vadd.f32 1.0, %v3512_v1  ;;  %v3514_v6 = vpop.eup %3513 }
 0x466   :  { %3517 = vrcp.f32 %v1636_v38 }
 0x471   :  { %v3516_v11 = vpop.eup %3515 }
 0x472   :  { %v1646_v59 = vmul.f32 %v3516_v11, %v3514_v6 }
 0x473   :  { %v3518_v9 = vpop.eup %3517 }
 0x474   :  { %v1645_v7 = vmul.f32 %v3518_v9, %v5918_v44  ;;  %v3337_v44 = vmul.f32 -1.442695, %v1620_v62  ;;  %v9872_v62 = vld [vmem:[#allocation45_spill] sm:$0xff] }
 0x476   :  { %v6620_v12 = vadd.f32 %v1646_v59, %v1645_v7 }
 0x490   :  { %v1542_v14 = vpop.f32.mrf.mxu0  ;;  %v1613_v26 = vpop.f32.mrf.mxu1 }
 0x491   :  { %v1622_v21 = vadd.f32 %v1542_v14, %v5528_v10  ;;  %v1624_v31 = vadd.f32 %v1613_v26, %v5541_v5  ;;  %v9863_v14 = vld [vmem:[#allocation36_spill] sm:$0xff] }
 0x492   :  { %v1544_v27 = vpop.f32.mrf.mxu0  ;;  %v1615_v15 = vpop.f32.mrf.mxu1  ;;  %v9871_v26 = vld [vmem:[#allocation44_spill] sm:$0xff] }
 0x493   :  { %v3338_v4 = vmul.f32 -1.442695, %v1622_v21  ;;  %v1623_v28 = vadd.f32 %v1544_v27, %v5534_v13  ;;  %v3340_v53 = vmul.f32 -1.442695, %v1624_v31  ;;  %v1625_v19 = vadd.f32 %v1615_v15, %v5547_v57  ;;  %v9864_v21 = vld [vmem:[#allocation37_spill] sm:$0xff]  ;;  %v9865_v27 = vld [vmem:[#allocation38_spill] sm:$0xff] }
 0x494   :  { %v9873_v31 = vld [vmem:[#allocation46_spill] sm:$0xff]  ;;  %v9875_v15 = vld [vmem:[#allocation48_spill] sm:$0xff] }
 0x495   :  { %3519 = vpow2.f32 %v3338_v4  ;;  %v3339_v22 = vmul.f32 -1.442695, %v1623_v28  ;;  %v9866_v4 = vld [vmem:[#allocation39_spill] sm:$0xff]  ;;  %v9867_v28 = vld [vmem:[#allocation40_spill] sm:$0xff] }
 0x497   :  { %3521 = vpow2.f32 %v3339_v22  ;;  %v9868_v22 = vld [vmem:[#allocation41_spill] sm:$0xff] }
 0x498   :  { %3523 = vpow2.f32 %v3337_v44  ;;  %v9874_v44 = vld [vmem:[#allocation47_spill] sm:$0xff] }
 0x499   :  { %3525 = vpow2.f32 %v3340_v53  ;;  %v9876_v53 = vld [vmem:[#allocation49_spill] sm:$0xff] }
 0x4a2   :  { %v3520_v0 = vpop.eup %3519 }
 0x4a3   :  { %v1659_v49 = vadd.f32 1.0, %v3520_v0  ;;  %v9877_v0 = vld [vmem:[#allocation50_spill] sm:$0xff] }
 0x4a4   :  { %v3522_v40 = vpop.eup %3521 }
 0x4a5   :  { %3527 = vrcp.f32 %v1659_v49  ;;  %v1660_v30 = vadd.f32 1.0, %v3522_v40  ;;  %v3524_v17 = vpop.eup %3523  ;;  %v9879_v49 = vld [vmem:[#allocation52_spill] sm:$0xff]  ;;  %v9880_v40 = vld [vmem:[#allocation53_spill] sm:$0xff] }
 0x4a6   :  { %3529 = vtanh.f32 %v1625_v19  ;;  %v3526_v55 = vpop.eup %3525  ;;  %v1637_v61 = vadd.f32 1.0, %v3524_v17  ;;  %v9878_v19 = vld [vmem:[#allocation51_spill] sm:$0xff] }
 0x4a7   :  { %3531 = vrcp.f32 %v1660_v30  ;;  %v1661_v8 = vadd.f32 1.0, %v3526_v55  ;;  %v9881_v30 = vld [vmem:[#allocation54_spill] sm:$0xff]  ;;  %v9882_v17 = vld [vmem:[#allocation55_spill] sm:$0xff]  ;;  %v9883_v55 = vld [vmem:[#allocation56_spill] sm:$0xff] }
 0x4a8   :  { %3533 = vtanh.f32 %v6620_v12 }
 0x4a9   :  { %3535 = vrcp.f32 %v1661_v8  ;;  %v9887_v8 = vld [vmem:[#allocation60_spill] sm:$0xff] }
 0x4b2   :  { %v3528_v18 = vpop.eup %3527 }
 0x4b3   :  { %v3530_v51 = vpop.eup %3529 }
 0x4b4   :  { %v3532_v36 = vpop.eup %3531  ;;  %v1670_v29 = vmul.f32 %v3530_v51, %v3528_v18  ;;  %v9884_v18 = vld [vmem:[#allocation57_spill] sm:$0xff]  ;;  %v9885_v51 = vld [vmem:[#allocation58_spill] sm:$0xff] }
 0x4b5   :  { %v1669_v58 = vmul.f32 %v3532_v36, %v5928_v54  ;;  %v3534_v38 = vpop.eup %3533  ;;  %v9850_v54 = vld [vmem:[#allocation23_spill] sm:$0xff] }
 0x4b6   :  { %v3536_v6 = vpop.eup %3535  ;;  %v9886_v36 = vld [vmem:[#allocation59_spill] sm:$0xff] }
 0x4b7   :  { %v6630_v1 = vadd.f32 %v1670_v29, %v1669_v58  ;;  %v9888_v58 = vld [vmem:[#allocation61_spill] sm:$0xff]  ;;  %v9889_v29 = vld [vmem:[#allocation62_spill] sm:$0xff] }
 0x4b9   :  { %3537 = vtanh.f32 %v6630_v1 }
 0x4ba   :  { %3539 = vrcp.f32 %v1637_v61  ;;  %v9890_v61 = vld [vmem:[#allocation63_spill] sm:$0xff] }
 0x4c6   :  { %v3538_v11 = vpop.eup %3537 }
 0x4c7   :  { %v3540_v59 = vpop.eup %3539  ;;  %v1673_v9 = vmul.f32 %v3538_v11, %v3536_v6  ;;  %v9892_v6 = vld [vmem:[#allocation65_spill] sm:$0xff]  ;;  %v9893_v11 = vld [vmem:[#allocation66_spill] sm:$0xff] }
 0x4c8   :  { %v6633_v7 = vmul.f32 %v3540_v59, %v3534_v38  ;;  %v9891_v38 = vld [vmem:[#allocation64_spill] sm:$0xff]  ;;  %v9894_v59 = vld [vmem:[#allocation67_spill] sm:$0xff] }
 0x4c9   :  { %1738 = vmatprep.mubr.f32.mxu0 %v1673_v9  ;;  %1809 = vmatprep.mubr.f32.mxu1 %v1673_v9 }
 0x4ca   :  { %1739 = vmatmul.mubr.f32.vlgmr.msra.gmra.mxu0 %v6633_v7  ;;  %1810 = vmatmul.mubr.f32.vlgmr.msra.gmra.mxu1 %v6633_v7 }
 0x4cb   :  { %1817 = vmatpush1.msra.mxu0 %v5935_v3  ;;  %1888 = vmatpush1.msra.mxu1 %v5938_v35  ;;  %v9851_v3 = vld [vmem:[#allocation24_spill] sm:$0xff]  ;;  %v9852_v35 = vld [vmem:[#allocation25_spill] sm:$0xff] }
 0x4cc   :  { %1818 = vmatprep.subr.mxu0 %v5941_v42  ;;  %1880 = vmatprep.mubr.f32.mxu0 %v1673_v9  ;;  %v9853_v42 = vld [vmem:[#allocation26_spill] sm:$0xff] }
 0x4cd   :  { %1889 = vmatprep.subr.mxu1 %v5944_v47  ;;  %1951 = vmatprep.mubr.f32.mxu1 %v1673_v9  ;;  %v9854_v47 = vld [vmem:[#allocation27_spill] sm:$0xff]  ;;  %v9895_v9 = vld [vmem:[#allocation68_spill] sm:$0xff] }
 0x4ce   :  { %1819 = vmatpush1.msra.mxu0 %v5947_v50  ;;  %1890 = vmatpush1.msra.mxu1 %v5950_v41  ;;  %v9855_v50 = vld [vmem:[#allocation28_spill] sm:$0xff]  ;;  %v9856_v41 = vld [vmem:[#allocation29_spill] sm:$0xff] }
 0x4cf   :  { %1820 = vmatprep.subr.mxu0 %v5953_v43  ;;  %1891 = vmatprep.subr.mxu1 %v5956_v56  ;;  %v9857_v43 = vld [vmem:[#allocation30_spill] sm:$0xff]  ;;  %v9858_v56 = vld [vmem:[#allocation31_spill] sm:$0xff] }
 0x4d0   :  { %1821 = vmatpush1.msra.mxu0 %v5959_v39  ;;  %1892 = vmatpush1.msra.mxu1 %v5962_v46  ;;  %v9859_v39 = vld [vmem:[#allocation32_spill] sm:$0xff]  ;;  %v9860_v46 = vld [vmem:[#allocation33_spill] sm:$0xff] }
 0x4d1   :  { %1822 = vmatprep.subr.mxu0 %v5965_v37  ;;  %1893 = vmatprep.subr.mxu1 %v5968_v48  ;;  %v9861_v37 = vld [vmem:[#allocation34_spill] sm:$0xff]  ;;  %v9862_v48 = vld [vmem:[#allocation35_spill] sm:$0xff] }
 0x4d2   :  { %1823 = vmatpush1.msra.mxu0 %v9850_v54  ;;  %1894 = vmatpush1.msra.mxu1 %v9851_v3  ;;  %v9896_v54 = vld [vmem:[#allocation69_spill] sm:$0xff]  ;;  %v9897_v3 = vld [vmem:[#allocation70_spill] sm:$0xff] }
 0x4d3   :  { %1824 = vmatprep.subr.mxu0 %v9852_v35  ;;  %1895 = vmatprep.subr.mxu1 %v9853_v42  ;;  %v9898_v35 = vld [vmem:[#allocation71_spill] sm:$0xff]  ;;  %v9899_v42 = vld [vmem:[#allocation72_spill] sm:$0xff] }
 0x4d4   :  { %1825 = vmatpush1.msra.mxu0 %v9854_v47  ;;  %1896 = vmatpush1.msra.mxu1 %v9855_v50  ;;  %v9900_v47 = vld [vmem:[#allocation73_spill] sm:$0xff]  ;;  %v9901_v50 = vld [vmem:[#allocation74_spill] sm:$0xff] }
 0x4d5   :  { %1826 = vmatprep.subr.mxu0 %v9856_v41  ;;  %1897 = vmatprep.subr.mxu1 %v9857_v43  ;;  %v9902_v41 = vld [vmem:[#allocation75_spill] sm:$0xff]  ;;  %v9903_v43 = vld [vmem:[#allocation76_spill] sm:$0xff] }
 0x4d6   :  { %1827 = vmatpush1.msra.mxu0 %v9858_v56  ;;  %1898 = vmatpush1.msra.mxu1 %v9859_v39  ;;  %v9904_v56 = vld [vmem:[#allocation77_spill] sm:$0xff]  ;;  %v9905_v39 = vld [vmem:[#allocation78_spill] sm:$0xff] }
 0x4d7   :  { %1828 = vmatprep.subr.mxu0 %v9860_v46  ;;  %1899 = vmatprep.subr.mxu1 %v9861_v37  ;;  %v9906_v46 = vld [vmem:[#allocation79_spill] sm:$0xff]  ;;  %v9907_v37 = vld [vmem:[#allocation80_spill] sm:$0xff] }
 0x4d8   :  { %1829 = vmatpush1.msra.mxu0 %v9862_v48  ;;  %1900 = vmatpush1.msra.mxu1 %v9863_v14  ;;  %v9908_v48 = vld [vmem:[#allocation81_spill] sm:$0xff]  ;;  %v9909_v14 = vld [vmem:[#allocation82_spill] sm:$0xff] }
 0x4d9   :  { %1830 = vmatprep.subr.mxu0 %v9864_v21  ;;  %1901 = vmatprep.subr.mxu1 %v9865_v27  ;;  %v9910_v21 = vld [vmem:[#allocation83_spill] sm:$0xff]  ;;  %v9911_v27 = vld [vmem:[#allocation84_spill] sm:$0xff] }
 0x4da   :  { %1831 = vmatpush1.msra.mxu0 %v9866_v4  ;;  %1902 = vmatpush1.msra.mxu1 %v9867_v28  ;;  %v9912_v4 = vld [vmem:[#allocation85_spill] sm:$0xff]  ;;  %v9913_v28 = vld [vmem:[#allocation86_spill] sm:$0xff] }
 0x4db   :  { %1832 = vmatprep.subr.mxu0 %v9868_v22  ;;  %1903 = vmatprep.subr.mxu1 %v9869_v20  ;;  %v9914_v22 = vld [vmem:[#allocation87_spill] sm:$0xff]  ;;  %v9915_v20 = vld [vmem:[#allocation88_spill] sm:$0xff] }
 0x4dc   :  { %1833 = vmatpush1.msra.mxu0 %v9870_v25  ;;  %1904 = vmatpush1.msra.mxu1 %v9871_v26  ;;  %v9916_v25 = vld [vmem:[#allocation89_spill] sm:$0xff]  ;;  %v9917_v26 = vld [vmem:[#allocation90_spill] sm:$0xff] }
 0x4dd   :  { %1834 = vmatprep.subr.mxu0 %v9872_v62  ;;  %1905 = vmatprep.subr.mxu1 %v9873_v31  ;;  %v9918_v62 = vld [vmem:[#allocation91_spill] sm:$0xff]  ;;  %v9919_v31 = vld [vmem:[#allocation92_spill] sm:$0xff] }
 0x4de   :  { %1835 = vmatpush1.msra.mxu0 %v9874_v44  ;;  %1906 = vmatpush1.msra.mxu1 %v9875_v15  ;;  %v9920_v44 = vld [vmem:[#allocation93_spill] sm:$0xff]  ;;  %v9921_v15 = vld [vmem:[#allocation94_spill] sm:$0xff] }
 0x4df   :  { %1836 = vmatprep.subr.mxu0 %v9876_v53  ;;  %1907 = vmatprep.subr.mxu1 %v9877_v0  ;;  %v9922_v53 = vld [vmem:[#allocation95_spill] sm:$0xff]  ;;  %v9923_v0 = vld [vmem:[#allocation96_spill] sm:$0xff] }
 0x4e0   :  { %1837 = vmatpush1.msra.mxu0 %v9878_v19  ;;  %1908 = vmatpush1.msra.mxu1 %v9879_v49  ;;  %v9924_v19 = vld [vmem:[#allocation97_spill] sm:$0xff]  ;;  %v9925_v49 = vld [vmem:[#allocation98_spill] sm:$0xff] }
 0x4e1   :  { %1838 = vmatprep.subr.mxu0 %v9880_v40  ;;  %1909 = vmatprep.subr.mxu1 %v9881_v30  ;;  %v9926_v40 = vld [vmem:[#allocation99_spill] sm:$0xff]  ;;  %v9927_v30 = vld [vmem:[#allocation100_spill] sm:$0xff] }
 0x4e2   :  { %1839 = vmatpush1.msra.mxu0 %v9882_v17  ;;  %1910 = vmatpush1.msra.mxu1 %v9883_v55  ;;  %v9928_v17 = vld [vmem:[#allocation101_spill] sm:$0xff]  ;;  %v9929_v55 = vld [vmem:[#allocation102_spill] sm:$0xff] }
 0x4e3   :  { %1840 = vmatprep.subr.mxu0 %v9884_v18  ;;  %1911 = vmatprep.subr.mxu1 %v9885_v51  ;;  %v9930_v18 = vld [vmem:[#allocation103_spill] sm:$0xff]  ;;  %v9931_v51 = vld [vmem:[#allocation104_spill] sm:$0xff] }
 0x4e4   :  { %1841 = vmatpush1.msra.mxu0 %v9886_v36  ;;  %1912 = vmatpush1.msra.mxu1 %v9887_v8  ;;  %v9932_v36 = vld [vmem:[#allocation105_spill] sm:$0xff]  ;;  %v9933_v8 = vld [vmem:[#allocation106_spill] sm:$0xff] }
 0x4e5   :  { %1842 = vmatprep.subr.mxu0 %v9888_v58  ;;  %1913 = vmatprep.subr.mxu1 %v9889_v29  ;;  %v9934_v58 = vld [vmem:[#allocation107_spill] sm:$0xff]  ;;  %v9935_v29 = vld [vmem:[#allocation108_spill] sm:$0xff] }
 0x4e6   :  { %1843 = vmatpush1.msra.mxu0 %v9890_v61  ;;  %1914 = vmatpush1.msra.mxu1 %v9891_v38  ;;  %v9936_v61 = vld [vmem:[#allocation109_spill] sm:$0xff]  ;;  %v9937_v38 = vld [vmem:[#allocation110_spill] sm:$0xff] }
 0x4e7   :  { %1844 = vmatprep.subr.mxu0 %v9892_v6  ;;  %1915 = vmatprep.subr.mxu1 %v9893_v11  ;;  %v9938_v6 = vld [vmem:[#allocation111_spill] sm:$0xff]  ;;  %v9939_v11 = vld [vmem:[#allocation112_spill] sm:$0xff] }
 0x4e8   :  { %1845 = vmatpush1.msra.mxu0 %v9894_v59  ;;  %1916 = vmatpush1.msra.mxu1 %v9895_v9  ;;  %v9940_v59 = vld [vmem:[#allocation113_spill] sm:$0xff]  ;;  %v9941_v9 = vld [vmem:[#allocation114_spill] sm:$0xff] }
 0x4e9   :  { %1846 = vmatprep.subr.mxu0 %v9896_v54  ;;  %1917 = vmatprep.subr.mxu1 %v9897_v3  ;;  %v9942_v54 = vld [vmem:[#allocation115_spill] sm:$0xff]  ;;  %v9943_v3 = vld [vmem:[#allocation116_spill] sm:$0xff] }
 0x4ea   :  { %1847 = vmatpush1.msra.mxu0 %v9898_v35  ;;  %1918 = vmatpush1.msra.mxu1 %v9899_v42  ;;  %v9944_v35 = vld [vmem:[#allocation117_spill] sm:$0xff]  ;;  %v9945_v42 = vld [vmem:[#allocation118_spill] sm:$0xff] }
 0x4eb   :  { %1848 = vmatprep.subr.mxu0 %v9900_v47  ;;  %1919 = vmatprep.subr.mxu1 %v9901_v50  ;;  %v9946_v47 = vld [vmem:[#allocation119_spill] sm:$0xff]  ;;  %v9947_v50 = vld [vmem:[#allocation120_spill] sm:$0xff] }
 0x4ec   :  { %1849 = vmatpush2.msra.mxu0 %v9902_v41  ;;  %1920 = vmatpush2.msra.mxu1 %v9903_v43  ;;  %v9948_v41 = vld [vmem:[#allocation121_spill] sm:$0xff]  ;;  %v9949_v43 = vld [vmem:[#allocation122_spill] sm:$0xff] }
 0x4ed   :  { %1850 = vmatprep.subr.mxu0 %v9904_v56  ;;  %1921 = vmatprep.subr.mxu1 %v9905_v39  ;;  %v9950_v56 = vld [vmem:[#allocation123_spill] sm:$0xff]  ;;  %v9951_v39 = vld [vmem:[#allocation124_spill] sm:$0xff] }
 0x4ee   :  { %1851 = vmatpush2.msra.mxu0 %v9906_v46  ;;  %1922 = vmatpush2.msra.mxu1 %v9907_v37  ;;  %v9952_v46 = vld [vmem:[#allocation125_spill] sm:$0xff]  ;;  %v9953_v37 = vld [vmem:[#allocation126_spill] sm:$0xff] }
 0x4ef   :  { %1852 = vmatprep.subr.mxu0 %v9908_v48  ;;  %1923 = vmatprep.subr.mxu1 %v9909_v14  ;;  %v9954_v48 = vld [vmem:[#allocation127_spill] sm:$0xff]  ;;  %v9955_v14 = vld [vmem:[#allocation128_spill] sm:$0xff] }
 0x4f0   :  { %1853 = vmatpush2.msra.mxu0 %v9910_v21  ;;  %1924 = vmatpush2.msra.mxu1 %v9911_v27  ;;  %v9956_v21 = vld [vmem:[#allocation129_spill] sm:$0xff]  ;;  %v9957_v27 = vld [vmem:[#allocation130_spill] sm:$0xff] }
 0x4f1   :  { %1854 = vmatprep.subr.mxu0 %v9912_v4  ;;  %1925 = vmatprep.subr.mxu1 %v9913_v28  ;;  %v9958_v4 = vld [vmem:[#allocation131_spill] sm:$0xff]  ;;  %v9959_v28 = vld [vmem:[#allocation132_spill] sm:$0xff] }
 0x4f2   :  { %1855 = vmatpush2.msra.mxu0 %v9914_v22  ;;  %1926 = vmatpush2.msra.mxu1 %v9915_v20  ;;  %v9960_v22 = vld [vmem:[#allocation133_spill] sm:$0xff]  ;;  %v9961_v20 = vld [vmem:[#allocation134_spill] sm:$0xff] }
 0x4f3   :  { %1856 = vmatprep.subr.mxu0 %v9916_v25  ;;  %1927 = vmatprep.subr.mxu1 %v9917_v26  ;;  %v9962_v25 = vld [vmem:[#allocation135_spill] sm:$0xff]  ;;  %v9963_v26 = vld [vmem:[#allocation136_spill] sm:$0xff] }
 0x4f4   :  { %1857 = vmatpush2.msra.mxu0 %v9918_v62  ;;  %1928 = vmatpush2.msra.mxu1 %v9919_v31  ;;  %v9964_v62 = vld [vmem:[#allocation137_spill] sm:$0xff]  ;;  %v9965_v31 = vld [vmem:[#allocation138_spill] sm:$0xff] }
 0x4f5   :  { %1858 = vmatprep.subr.mxu0 %v9920_v44  ;;  %1929 = vmatprep.subr.mxu1 %v9921_v15  ;;  %v9967_v44 = vld [vmem:[#allocation140_spill] sm:$0xff]  ;;  %v9968_v15 = vld [vmem:[#allocation141_spill] sm:$0xff] }
 0x4f6   :  { %1859 = vmatpush2.msra.mxu0 %v9922_v53  ;;  %1930 = vmatpush2.msra.mxu1 %v9923_v0  ;;  %v9969_v53 = vld [vmem:[#allocation142_spill] sm:$0xff]  ;;  %v9970_v0 = vld [vmem:[#allocation143_spill] sm:$0xff] }
 0x4f7   :  { %1860 = vmatprep.subr.mxu0 %v9924_v19  ;;  %1931 = vmatprep.subr.mxu1 %v9925_v49  ;;  %v9971_v19 = vld [vmem:[#allocation144_spill] sm:$0xff]  ;;  %v9972_v49 = vld [vmem:[#allocation145_spill] sm:$0xff] }
 0x4f8   :  { %1861 = vmatpush2.msra.mxu0 %v9926_v40  ;;  %1932 = vmatpush2.msra.mxu1 %v9927_v30  ;;  %v9974_v40 = vld [vmem:[#allocation147_spill] sm:$0xff]  ;;  %v9975_v30 = vld [vmem:[#allocation148_spill] sm:$0xff] }
 0x4f9   :  { %1862 = vmatprep.subr.mxu0 %v9928_v17  ;;  %1933 = vmatprep.subr.mxu1 %v9929_v55  ;;  %v9976_v17 = vld [vmem:[#allocation149_spill] sm:$0xff]  ;;  %v9977_v55 = vld [vmem:[#allocation150_spill] sm:$0xff] }
 0x4fa   :  { %1863 = vmatpush2.msra.mxu0 %v9930_v18  ;;  %1934 = vmatpush2.msra.mxu1 %v9931_v51  ;;  %v9978_v18 = vld [vmem:[#allocation151_spill] sm:$0xff]  ;;  %v9979_v51 = vld [vmem:[#allocation152_spill] sm:$0xff] }
 0x4fb   :  { %1864 = vmatprep.subr.mxu0 %v9932_v36  ;;  %1935 = vmatprep.subr.mxu1 %v9933_v8  ;;  %v9980_v36 = vld [vmem:[#allocation153_spill] sm:$0xff]  ;;  %v9981_v8 = vld [vmem:[#allocation154_spill] sm:$0xff] }
 0x4fc   :  { %1865 = vmatpush2.msra.mxu0 %v9934_v58  ;;  %1936 = vmatpush2.msra.mxu1 %v9935_v29  ;;  %v9982_v58 = vld [vmem:[#allocation155_spill] sm:$0xff]  ;;  %v9983_v29 = vld [vmem:[#allocation156_spill] sm:$0xff] }
 0x4fd   :  { %1866 = vmatprep.subr.mxu0 %v9936_v61  ;;  %1937 = vmatprep.subr.mxu1 %v9937_v38  ;;  %v9984_v61 = vld [vmem:[#allocation157_spill] sm:$0xff]  ;;  %v9985_v38 = vld [vmem:[#allocation158_spill] sm:$0xff] }
 0x4fe   :  { %1867 = vmatpush2.msra.mxu0 %v9938_v6  ;;  %1938 = vmatpush2.msra.mxu1 %v9939_v11  ;;  %v9986_v6 = vld [vmem:[#allocation159_spill] sm:$0xff]  ;;  %v9987_v11 = vld [vmem:[#allocation160_spill] sm:$0xff] }
 0x4ff   :  { %1868 = vmatprep.subr.mxu0 %v9940_v59  ;;  %1939 = vmatprep.subr.mxu1 %v9941_v9  ;;  %v9988_v59 = vld [vmem:[#allocation161_spill] sm:$0xff]  ;;  %v9989_v9 = vld [vmem:[#allocation162_spill] sm:$0xff] }
 0x500   :  { %1869 = vmatpush2.msra.mxu0 %v9942_v54  ;;  %1940 = vmatpush2.msra.mxu1 %v9943_v3  ;;  %v9990_v54 = vld [vmem:[#allocation163_spill] sm:$0xff]  ;;  %v9991_v3 = vld [vmem:[#allocation164_spill] sm:$0xff] }
 0x501   :  { %1870 = vmatprep.subr.mxu0 %v9944_v35  ;;  %1941 = vmatprep.subr.mxu1 %v9945_v42  ;;  %v9992_v35 = vld [vmem:[#allocation165_spill] sm:$0xff]  ;;  %v9993_v42 = vld [vmem:[#allocation166_spill] sm:$0xff] }
 0x502   :  { %1871 = vmatpush2.msra.mxu0 %v9946_v47  ;;  %1942 = vmatpush2.msra.mxu1 %v9947_v50  ;;  %v9994_v47 = vld [vmem:[#allocation167_spill] sm:$0xff]  ;;  %v9995_v50 = vld [vmem:[#allocation168_spill] sm:$0xff] }
 0x503   :  { %1872 = vmatprep.subr.mxu0 %v9948_v41  ;;  %1943 = vmatprep.subr.mxu1 %v9949_v43  ;;  %v9996_v41 = vld [vmem:[#allocation169_spill] sm:$0xff]  ;;  %v9997_v43 = vld [vmem:[#allocation170_spill] sm:$0xff] }
 0x504   :  { %1873 = vmatpush2.msra.mxu0 %v9950_v56  ;;  %1944 = vmatpush2.msra.mxu1 %v9951_v39  ;;  %v9998_v56 = vld [vmem:[#allocation171_spill] sm:$0xff]  ;;  %v9999_v39 = vld [vmem:[#allocation172_spill] sm:$0xff] }
 0x505   :  { %1874 = vmatprep.subr.mxu0 %v9952_v46  ;;  %1945 = vmatprep.subr.mxu1 %v9953_v37  ;;  %v10000_v46 = vld [vmem:[#allocation173_spill] sm:$0xff]  ;;  %v10001_v37 = vld [vmem:[#allocation174_spill] sm:$0xff] }
 0x506   :  { %1875 = vmatpush2.msra.mxu0 %v9954_v48  ;;  %1946 = vmatpush2.msra.mxu1 %v9955_v14  ;;  %v10002_v48 = vld [vmem:[#allocation175_spill] sm:$0xff]  ;;  %v10003_v14 = vld [vmem:[#allocation176_spill] sm:$0xff] }
 0x507   :  { %1876 = vmatprep.subr.mxu0 %v9956_v21  ;;  %1947 = vmatprep.subr.mxu1 %v9957_v27  ;;  %v10004_v21 = vld [vmem:[#allocation177_spill] sm:$0xff]  ;;  %v10005_v27 = vld [vmem:[#allocation178_spill] sm:$0xff] }
 0x508   :  { %1877 = vmatpush2.msra.mxu0 %v6295_v52  ;;  %1948 = vmatpush2.msra.mxu1 %v9958_v4  ;;  %v9966_v52 = vld [vmem:[#allocation139_spill] sm:$0xff] }
 0x509   :  { %1878 = vmatprep.subr.mxu0 %v9959_v28  ;;  %1949 = vmatprep.subr.mxu1 %v9960_v22  ;;  %v10006_v4 = vld [vmem:[#allocation179_spill] sm:$0xff]  ;;  %v10007_v28 = vld [vmem:[#allocation180_spill] sm:$0xff]  ;;  %v10008_v22 = vld [vmem:[#allocation181_spill] sm:$0xff] }
 0x50a   :  { %1879 = vmatpush2.msra.mxu0 %v9961_v20  ;;  %1950 = vmatpush2.msra.mxu1 %v9962_v25  ;;  %v10009_v20 = vld [vmem:[#allocation182_spill] sm:$0xff]  ;;  %v10010_v25 = vld [vmem:[#allocation183_spill] sm:$0xff] }
 0x50b   :  { %1881 = vmatmul.mubr.f32.vlgmr.msra.gmra.mxu0 %v6633_v7  ;;  %1952 = vmatmul.mubr.f32.vlgmr.msra.gmra.mxu1 %v6633_v7  ;;  %v9973_v7 = vld [vmem:[#allocation146_spill] sm:$0xff] }
 0x50c   :  { %2014 = vmatprep.subr.mxu0 %v9963_v26  ;;  %2085 = vmatprep.subr.mxu1 %v9964_v62  ;;  %v10011_v26 = vld [vmem:[#allocation184_spill] sm:$0xff]  ;;  %v10012_v62 = vld [vmem:[#allocation185_spill] sm:$0xff] }
 0x50d   :  { %2015 = vmatpush1.msra.mxu0 %v9965_v31  ;;  %2086 = vmatpush1.msra.mxu1 %v9966_v52  ;;  %v10013_v31 = vld [vmem:[#allocation186_spill] sm:$0xff]  ;;  %v10014_v52 = vld [vmem:[#allocation187_spill] sm:$0xff] }
 0x50e   :  { %2016 = vmatprep.subr.mxu0 %v9967_v44  ;;  %2087 = vmatprep.subr.mxu1 %v9968_v15  ;;  %v10015_v44 = vld [vmem:[#allocation188_spill] sm:$0xff]  ;;  %v10016_v15 = vld [vmem:[#allocation189_spill] sm:$0xff] }
 0x50f   :  { %2017 = vmatpush1.msra.mxu0 %v9969_v53  ;;  %2088 = vmatpush1.msra.mxu1 %v9970_v0  ;;  %v10017_v53 = vld [vmem:[#allocation190_spill] sm:$0xff]  ;;  %v10018_v0 = vld [vmem:[#allocation191_spill] sm:$0xff] }
 0x510   :  { %2018 = vmatprep.subr.mxu0 %v9971_v19  ;;  %2089 = vmatprep.subr.mxu1 %v9972_v49  ;;  %v10019_v19 = vld [vmem:[#allocation192_spill] sm:$0xff]  ;;  %v10020_v49 = vld [vmem:[#allocation193_spill] sm:$0xff] }
 0x511   :  { %2019 = vmatpush1.msra.mxu0 %v9973_v7  ;;  %2090 = vmatpush1.msra.mxu1 %v9974_v40  ;;  %v10021_v7 = vld [vmem:[#allocation194_spill] sm:$0xff]  ;;  %v10022_v40 = vld [vmem:[#allocation195_spill] sm:$0xff] }
 0x512   :  { %2020 = vmatprep.subr.mxu0 %v9975_v30  ;;  %2091 = vmatprep.subr.mxu1 %v9976_v17  ;;  %v10023_v30 = vld [vmem:[#allocation196_spill] sm:$0xff]  ;;  %v10024_v17 = vld [vmem:[#allocation197_spill] sm:$0xff] }
 0x513   :  { %2021 = vmatpush1.msra.mxu0 %v9977_v55  ;;  %2092 = vmatpush1.msra.mxu1 %v9978_v18  ;;  %v10025_v55 = vld [vmem:[#allocation198_spill] sm:$0xff]  ;;  %v10026_v18 = vld [vmem:[#allocation199_spill] sm:$0xff] }
 0x514   :  { %2022 = vmatprep.subr.mxu0 %v9979_v51  ;;  %2093 = vmatprep.subr.mxu1 %v9980_v36  ;;  %v10027_v51 = vld [vmem:[#allocation200_spill] sm:$0xff]  ;;  %v10028_v36 = vld [vmem:[#allocation201_spill] sm:$0xff] }
 0x515   :  { %2023 = vmatpush1.msra.mxu0 %v9981_v8  ;;  %2094 = vmatpush1.msra.mxu1 %v9982_v58  ;;  %v10029_v8 = vld [vmem:[#allocation202_spill] sm:$0xff]  ;;  %v10030_v58 = vld [vmem:[#allocation203_spill] sm:$0xff] }
 0x516   :  { %2024 = vmatprep.subr.mxu0 %v9983_v29  ;;  %2095 = vmatprep.subr.mxu1 %v9984_v61  ;;  %v10031_v29 = vld [vmem:[#allocation204_spill] sm:$0xff]  ;;  %v10032_v61 = vld [vmem:[#allocation205_spill] sm:$0xff] }
 0x517   :  { %2025 = vmatpush1.msra.mxu0 %v9985_v38  ;;  %2096 = vmatpush1.msra.mxu1 %v9986_v6  ;;  %v10033_v38 = vld [vmem:[#allocation206_spill] sm:$0xff]  ;;  %v10034_v6 = vld [vmem:[#allocation207_spill] sm:$0xff] }
 0x518   :  { %2026 = vmatprep.subr.mxu0 %v9987_v11  ;;  %2097 = vmatprep.subr.mxu1 %v9988_v59  ;;  %v10035_v11 = vld [vmem:[#allocation231_spill] sm:$0xff]  ;;  %v10036_v59 = vld [vmem:[#allocation232_spill] sm:$0xff] }
 0x519   :  { %2027 = vmatpush1.msra.mxu0 %v9989_v9  ;;  %2098 = vmatpush1.msra.mxu1 %v9990_v54  ;;  %v10037_v9 = vld [vmem:[#allocation233_spill] sm:$0xff]  ;;  %v10038_v54 = vld [vmem:[#allocation234_spill] sm:$0xff] }
 0x51a   :  { %2028 = vmatprep.subr.mxu0 %v9991_v3  ;;  %2099 = vmatprep.subr.mxu1 %v9992_v35  ;;  %v10039_v3 = vld [vmem:[#allocation235_spill] sm:$0xff]  ;;  %v10040_v35 = vld [vmem:[#allocation236_spill] sm:$0xff] }
 0x51b   :  { %2029 = vmatpush1.msra.mxu0 %v9993_v42  ;;  %2100 = vmatpush1.msra.mxu1 %v9994_v47  ;;  %v6849_v42 = vld [vmem:[#allocation2 + $0x688] sm:$0xff]  ;;  %v6852_v47 = vld [vmem:[#allocation2 + $0x698] sm:$0xff] }
 0x51c   :  { %2030 = vmatprep.subr.mxu0 %v9995_v50  ;;  %2101 = vmatprep.subr.mxu1 %v9996_v41  ;;  %v6855_v50 = vld [vmem:[#allocation2 + $0x680] sm:$0xff]  ;;  %v6876_v41 = vld [vmem:[#allocation2 + $0x618] sm:$0xff] }
 0x51d   :  { %2031 = vmatpush1.msra.mxu0 %v9997_v43  ;;  %2102 = vmatpush1.msra.mxu1 %v9998_v56  ;;  %v6879_v43 = vld [vmem:[#allocation2 + $0x600] sm:$0xff]  ;;  %v6882_v56 = vld [vmem:[#allocation2 + $0x610] sm:$0xff] }
 0x51e   :  { %2032 = vmatprep.subr.mxu0 %v9999_v39  ;;  %2103 = vmatprep.subr.mxu1 %v10000_v46  ;;  %v6885_v39 = vld [vmem:[#allocation2 + $0x5c8] sm:$0xff]  ;;  %v6888_v46 = vld [vmem:[#allocation2 + $0x5d8] sm:$0xff] }
 0x51f   :  { %2033 = vmatpush1.msra.mxu0 %v10001_v37  ;;  %2104 = vmatpush1.msra.mxu1 %v10002_v48  ;;  %v6891_v37 = vld [vmem:[#allocation2 + $0x5c0] sm:$0xff]  ;;  %v6894_v48 = vld [vmem:[#allocation2 + $0x5d0] sm:$0xff] }
 0x520   :  { %2034 = vmatprep.subr.mxu0 %v10003_v14  ;;  %2105 = vmatprep.subr.mxu1 %v10004_v21  ;;  %v6897_v14 = vld [vmem:[#allocation2 + $0x588] sm:$0xff]  ;;  %v6900_v21 = vld [vmem:[#allocation2 + $0x598] sm:$0xff] }
 0x521   :  { %2035 = vmatpush1.msra.mxu0 %v10005_v27  ;;  %2106 = vmatpush1.msra.mxu1 %v10006_v4  ;;  %v6903_v27 = vld [vmem:[#allocation2 + $0x580] sm:$0xff]  ;;  %v6906_v4 = vld [vmem:[#allocation2 + $0x590] sm:$0xff] }
 0x522   :  { %2036 = vmatprep.subr.mxu0 %v10007_v28  ;;  %2107 = vmatprep.subr.mxu1 %v10008_v22  ;;  %v6909_v28 = vld [vmem:[#allocation2 + $0x548] sm:$0xff]  ;;  %v6912_v22 = vld [vmem:[#allocation2 + $0x558] sm:$0xff] }
 0x523   :  { %2037 = vmatpush1.msra.mxu0 %v10009_v20  ;;  %2108 = vmatpush1.msra.mxu1 %v10010_v25  ;;  %v6915_v20 = vld [vmem:[#allocation2 + $0x540] sm:$0xff]  ;;  %v6918_v25 = vld [vmem:[#allocation2 + $0x550] sm:$0xff] }
 0x524   :  { %2038 = vmatprep.subr.mxu0 %v10011_v26  ;;  %2109 = vmatprep.subr.mxu1 %v10012_v62  ;;  %v6921_v26 = vld [vmem:[#allocation2 + $0x508] sm:$0xff]  ;;  %v6924_v62 = vld [vmem:[#allocation2 + $0x518] sm:$0xff] }
 0x525   :  { %2039 = vmatpush1.msra.mxu0 %v10013_v31  ;;  %2110 = vmatpush1.msra.mxu1 %v10014_v52  ;;  %v6927_v31 = vld [vmem:[#allocation2 + $0x500] sm:$0xff]  ;;  %v6930_v52 = vld [vmem:[#allocation2 + $0x510] sm:$0xff] }
 0x526   :  { %2040 = vmatprep.subr.mxu0 %v10015_v44  ;;  %2111 = vmatprep.subr.mxu1 %v10016_v15  ;;  %v6933_v44 = vld [vmem:[#allocation2 + $0x4c8] sm:$0xff]  ;;  %v6936_v15 = vld [vmem:[#allocation2 + $0x4d8] sm:$0xff] }
 0x527   :  { %2041 = vmatpush1.msra.mxu0 %v10017_v53  ;;  %2112 = vmatpush1.msra.mxu1 %v10018_v0  ;;  %v6939_v53 = vld [vmem:[#allocation2 + $0x4c0] sm:$0xff]  ;;  %v6942_v0 = vld [vmem:[#allocation2 + $0x4d0] sm:$0xff] }
 0x528   :  { %2042 = vmatprep.subr.mxu0 %v10019_v19  ;;  %2113 = vmatprep.subr.mxu1 %v10020_v49  ;;  %v6945_v19 = vld [vmem:[#allocation2 + $0x488] sm:$0xff]  ;;  %v6948_v49 = vld [vmem:[#allocation2 + $0x498] sm:$0xff] }
 0x529   :  { %2043 = vmatpush1.msra.mxu0 %v10021_v7  ;;  %2114 = vmatpush1.msra.mxu1 %v10022_v40  ;;  %v6951_v7 = vld [vmem:[#allocation2 + $0x480] sm:$0xff]  ;;  %v6954_v40 = vld [vmem:[#allocation2 + $0x490] sm:$0xff] }
 0x52a   :  { %2044 = vmatprep.subr.mxu0 %v10023_v30  ;;  %2115 = vmatprep.subr.mxu1 %v10024_v17  ;;  %v6957_v30 = vld [vmem:[#allocation2 + $0x448] sm:$0xff]  ;;  %v6960_v17 = vld [vmem:[#allocation2 + $0x458] sm:$0xff] }
 0x52b   :  { %2045 = vmatpush1.msra.mxu0 %v10025_v55  ;;  %2116 = vmatpush1.msra.mxu1 %v10026_v18  ;;  %10041 = vst [vmem:[#allocation13_spill] sm:$0xff] %v6960_v17  ;;  %v6963_v55 = vld [vmem:[#allocation2 + $0x440] sm:$0xff]  ;;  %v6966_v18 = vld [vmem:[#allocation2 + $0x450] sm:$0xff] }
 0x52c   :  { %2046 = vmatprep.subr.mxu0 %v10027_v51  ;;  %2117 = vmatprep.subr.mxu1 %v10028_v36  ;;  %10042 = vst [vmem:[#allocation14_spill] sm:$0xff] %v6963_v55  ;;  %10043 = vst [vmem:[#allocation15_spill] sm:$0xff] %v6966_v18  ;;  %v6969_v51 = vld [vmem:[#allocation2 + $0x408] sm:$0xff]  ;;  %v6972_v36 = vld [vmem:[#allocation2 + $0x418] sm:$0xff] }
 0x52d   :  { %2047 = vmatpush2.msra.mxu0 %v10029_v8  ;;  %2118 = vmatpush2.msra.mxu1 %v10030_v58  ;;  %10044 = vst [vmem:[#allocation16_spill] sm:$0xff] %v6969_v51  ;;  %10045 = vst [vmem:[#allocation17_spill] sm:$0xff] %v6972_v36  ;;  %v6975_v8 = vld [vmem:[#allocation2 + $0x400] sm:$0xff]  ;;  %v6978_v58 = vld [vmem:[#allocation2 + $0x410] sm:$0xff] }
 0x52e   :  { %2048 = vmatprep.subr.mxu0 %v10031_v29  ;;  %2119 = vmatprep.subr.mxu1 %v10032_v61  ;;  %10046 = vst [vmem:[#allocation18_spill] sm:$0xff] %v6975_v8  ;;  %10047 = vst [vmem:[#allocation19_spill] sm:$0xff] %v6978_v58  ;;  %v6981_v29 = vld [vmem:[#allocation2 + $0x3e8] sm:$0xff]  ;;  %v6984_v61 = vld [vmem:[#allocation2 + $0x3f8] sm:$0xff] }
 0x52f   :  { %2049 = vmatpush2.msra.mxu0 %v10033_v38  ;;  %2120 = vmatpush2.msra.mxu1 %v10034_v6  ;;  %10048 = vst [vmem:[#allocation20_spill] sm:$0xff] %v6981_v29  ;;  %10049 = vst [vmem:[#allocation21_spill] sm:$0xff] %v6984_v61  ;;  %v10050_v38 = vld [vmem:[#allocation210_spill] sm:$0xff] }
 0x530   :  { %2050 = vmatprep.subr.mxu0 %v10035_v11  ;;  %2121 = vmatprep.subr.mxu1 %v10036_v59  ;;  %v217_v6 = vadd.f32 %v10050_v38, %v9845_v2  ;;  %v10051_v59 = vld [vmem:[#allocation211_spill] sm:$0xff] }
 0x531   :  { %2051 = vmatpush2.msra.mxu0 %v10037_v9  ;;  %2122 = vmatpush2.msra.mxu1 %v10038_v54  ;;  %v219_v9 = vadd.f32 %v10051_v59, %v4772_v23 }
 0x532   :  { %2052 = vmatprep.subr.mxu0 %v10039_v3  ;;  %2123 = vmatprep.subr.mxu1 %v10040_v35 }
 0x533   :  { %2053 = vmatpush2.msra.mxu0 %v6549_v60  ;;  %2124 = vmatpush2.msra.mxu1 %v6552_v16  ;;  %v6858_v60 = vld [vmem:[#allocation2 + $0x690] sm:$0xff]  ;;  %v6861_v16 = vld [vmem:[#allocation2 + $0x648] sm:$0xff] }
 0x534   :  { %2054 = vmatprep.subr.mxu0 %v6555_v32  ;;  %2125 = vmatprep.subr.mxu1 %v6558_v33  ;;  %v6864_v32 = vld [vmem:[#allocation2 + $0x658] sm:$0xff]  ;;  %v6867_v33 = vld [vmem:[#allocation2 + $0x640] sm:$0xff] }
 0x535   :  { %2055 = vmatpush2.msra.mxu0 %v6561_v45  ;;  %2126 = vmatpush2.msra.mxu1 %v6564_v34  ;;  %v6870_v45 = vld [vmem:[#allocation2 + $0x650] sm:$0xff]  ;;  %v6873_v34 = vld [vmem:[#allocation2 + $0x608] sm:$0xff] }
 0x536   :  { %2056 = vmatprep.subr.mxu0 %v6849_v42  ;;  %2127 = vmatprep.subr.mxu1 %v6852_v47 }
 0x537   :  { %2057 = vmatpush2.msra.mxu0 %v6855_v50  ;;  %2128 = vmatpush2.msra.mxu1 %v6858_v60 }
 0x538   :  { %2058 = vmatprep.subr.mxu0 %v6861_v16  ;;  %2129 = vmatprep.subr.mxu1 %v6864_v32 }
 0x539   :  { %2059 = vmatpush2.msra.mxu0 %v6867_v33  ;;  %2130 = vmatpush2.msra.mxu1 %v6870_v45 }
 0x53a   :  { %2060 = vmatprep.subr.mxu0 %v6873_v34  ;;  %2131 = vmatprep.subr.mxu1 %v6876_v41 }
 0x53b   :  { %2061 = vmatpush2.msra.mxu0 %v6879_v43  ;;  %2132 = vmatpush2.msra.mxu1 %v6882_v56 }
 0x53c   :  { %2062 = vmatprep.subr.mxu0 %v6885_v39  ;;  %2133 = vmatprep.subr.mxu1 %v6888_v46 }
 0x53d   :  { %2063 = vmatpush2.msra.mxu0 %v6891_v37  ;;  %2134 = vmatpush2.msra.mxu1 %v6894_v48 }
 0x53e   :  { %2064 = vmatprep.subr.mxu0 %v6897_v14  ;;  %2135 = vmatprep.subr.mxu1 %v6900_v21 }
 0x53f   :  { %2065 = vmatpush2.msra.mxu0 %v6903_v27  ;;  %2136 = vmatpush2.msra.mxu1 %v6906_v4 }
 0x540   :  { %2066 = vmatprep.subr.mxu0 %v6909_v28  ;;  %2137 = vmatprep.subr.mxu1 %v6912_v22 }
 0x541   :  { %2067 = vmatpush2.msra.mxu0 %v6915_v20  ;;  %2138 = vmatpush2.msra.mxu1 %v6918_v25 }
 0x542   :  { %2068 = vmatprep.subr.mxu0 %v6921_v26  ;;  %2139 = vmatprep.subr.mxu1 %v6924_v62 }
 0x543   :  { %2069 = vmatpush2.msra.mxu0 %v6927_v31  ;;  %2140 = vmatpush2.msra.mxu1 %v6930_v52 }
 0x544   :  { %2070 = vmatprep.subr.mxu0 %v6933_v44  ;;  %2141 = vmatprep.subr.mxu1 %v6936_v15 }
 0x545   :  { %2071 = vmatpush2.msra.mxu0 %v6939_v53  ;;  %2142 = vmatpush2.msra.mxu1 %v6942_v0 }
 0x546   :  { %2072 = vmatprep.subr.mxu0 %v6945_v19  ;;  %2143 = vmatprep.subr.mxu1 %v6948_v49 }
 0x547   :  { %2073 = vmatpush2.msra.mxu0 %v6951_v7  ;;  %2144 = vmatpush2.msra.mxu1 %v6954_v40 }
 0x548   :  { %2074 = vmatprep.subr.mxu0 %v6957_v30  ;;  %2145 = vmatprep.subr.mxu1 %v6960_v17 }
 0x549   :  { %2075 = vmatpush2.msra.mxu0 %v6963_v55  ;;  %2146 = vmatpush2.msra.mxu1 %v6966_v18 }
 0x54a   :  { %2076 = vmatprep.subr.mxu0 %v6969_v51  ;;  %2147 = vmatprep.subr.mxu1 %v6972_v36  ;;  %v10052_v51 = vld [vmem:[#allocation220_spill] sm:$0xff] }
 0x54b   :  { %2077 = vmatpush2.msra.mxu0 %v6975_v8  ;;  %2148 = vmatpush2.msra.mxu1 %v6978_v58  ;;  %v332_v18 = vadd.f32 %v10052_v51, %v4785_v24 }
 0x54c   :  { %2156 = vmatprep.subr.mxu0 %v6981_v29  ;;  %2227 = vmatprep.subr.mxu1 %v6984_v61 }
 0x58a   :  { %v1740_v11 = vpop.f32.mrf.mxu0  ;;  %v1811_v36 = vpop.f32.mrf.mxu1 }
 0x58b   :  { %v1958_v54 = vadd.f32 %v1740_v11, %v217_v6 }
 0x58c   :  { %v1742_v3 = vpop.f32.mrf.mxu0  ;;  %v1813_v29 = vpop.f32.mrf.mxu1 }
 0x58d   :  { %v3341_v35 = vmul.f32 -1.442695, %v1958_v54  ;;  %v1959_v8 = vadd.f32 %v1742_v3, %v219_v9  ;;  %v1961_v61 = vadd.f32 %v1813_v29, %v332_v18 }
 0x58f   :  { %3541 = vpow2.f32 %v3341_v35  ;;  %v3342_v58 = vmul.f32 -1.442695, %v1959_v8 }
 0x591   :  { %3543 = vpow2.f32 %v3342_v58 }
 0x592   :  { %3545 = vtanh.f32 %v1961_v61 }
 0x59c   :  { %v3542_v55 = vpop.eup %3541 }
 0x59d   :  { %v1975_v17 = vadd.f32 1.0, %v3542_v55 }
 0x59e   :  { %v3544_v38 = vpop.eup %3543 }
 0x59f   :  { %3547 = vrcp.f32 %v1975_v17  ;;  %v1976_v2 = vadd.f32 1.0, %v3544_v38  ;;  %v3546_v6 = vpop.eup %3545 }
 0x5a1   :  { %3549 = vrcp.f32 %v1976_v2  ;;  %v10053_v2 = vld [vmem:[#allocation218_spill] sm:$0xff] }
 0x5a2   :  { %v330_v17 = vadd.f32 %v10053_v2, %v9434_v63 }
 0x5a4   :  { %v1960_v35 = vadd.f32 %v1811_v36, %v330_v17 }
 0x5ac   :  { %v3548_v11 = vpop.eup %3547 }
 0x5ad   :  { %v1986_v59 = vmul.f32 %v3548_v11, %v3546_v6 }
 0x5ae   :  { %v3550_v9 = vpop.eup %3549 }
 0x5af   :  { %v1985_v8 = vmul.f32 %v3550_v9, %v6620_v12  ;;  %v3343_v12 = vmul.f32 -1.442695, %v1960_v35 }
 0x5b1   :  { %v6994_v58 = vadd.f32 %v1986_v59, %v1985_v8 }
 0x5cb   :  { %v1882_v54 = vpop.f32.mrf.mxu0  ;;  %v1953_v61 = vpop.f32.mrf.mxu1 }
 0x5cc   :  { %v1962_v3 = vadd.f32 %v1882_v54, %v5528_v10  ;;  %v1964_v38 = vadd.f32 %v1953_v61, %v5541_v5 }
 0x5cd   :  { %v1884_v51 = vpop.f32.mrf.mxu0  ;;  %v1955_v6 = vpop.f32.mrf.mxu1 }
 0x5ce   :  { %v3344_v18 = vmul.f32 -1.442695, %v1962_v3  ;;  %v1963_v55 = vadd.f32 %v1884_v51, %v5534_v13  ;;  %v3346_v11 = vmul.f32 -1.442695, %v1964_v38  ;;  %v1965_v9 = vadd.f32 %v1955_v6, %v5547_v57 }
 0x5d0   :  { %3551 = vpow2.f32 %v3344_v18  ;;  %v3345_v29 = vmul.f32 -1.442695, %v1963_v55 }
 0x5d2   :  { %3553 = vpow2.f32 %v3345_v29 }
 0x5d3   :  { %3555 = vpow2.f32 %v3343_v12 }
 0x5d4   :  { %3557 = vpow2.f32 %v3346_v11 }
 0x5dd   :  { %v3552_v59 = vpop.eup %3551 }
 0x5de   :  { %v1999_v8 = vadd.f32 1.0, %v3552_v59 }
 0x5df   :  { %v3554_v54 = vpop.eup %3553 }
 0x5e0   :  { %3559 = vrcp.f32 %v1999_v8  ;;  %v2000_v3 = vadd.f32 1.0, %v3554_v54  ;;  %v3556_v51 = vpop.eup %3555  ;;  %v7014_v54 = vld [vmem:[#allocation2 + $0x3f0] sm:$0xff] }
 0x5e1   :  { %3561 = vtanh.f32 %v1965_v9  ;;  %v3558_v18 = vpop.eup %3557  ;;  %v1977_v35 = vadd.f32 1.0, %v3556_v51  ;;  %v7020_v51 = vld [vmem:[#allocation2 + $0x3b8] sm:$0xff] }
 0x5e2   :  { %3563 = vrcp.f32 %v2000_v3  ;;  %v2001_v2 = vadd.f32 1.0, %v3558_v18  ;;  %v7017_v3 = vld [vmem:[#allocation2 + $0x3a8] sm:$0xff]  ;;  %v7023_v18 = vld [vmem:[#allocation2 + $0x3a0] sm:$0xff] }
 0x5e3   :  { %3565 = vtanh.f32 %v6994_v58 }
 0x5e4   :  { %3567 = vrcp.f32 %v2001_v2  ;;  %v7035_v2 = vld [vmem:[#allocation2 + $0x360] sm:$0xff] }
 0x5ed   :  { %v3560_v55 = vpop.eup %3559 }
 0x5ee   :  { %v3562_v36 = vpop.eup %3561 }
 0x5ef   :  { %v3564_v29 = vpop.eup %3563  ;;  %v2010_v61 = vmul.f32 %v3562_v36, %v3560_v55  ;;  %v7026_v55 = vld [vmem:[#allocation2 + $0x3b0] sm:$0xff]  ;;  %v7029_v36 = vld [vmem:[#allocation2 + $0x368] sm:$0xff] }
 0x5f0   :  { %v2009_v17 = vmul.f32 %v3564_v29, %v6630_v1  ;;  %v3566_v12 = vpop.eup %3565  ;;  %v7011_v1 = vld [vmem:[#allocation2 + $0x3e0] sm:$0xff]  ;;  %v7032_v29 = vld [vmem:[#allocation2 + $0x378] sm:$0xff] }
 0x5f1   :  { %v3568_v6 = vpop.eup %3567 }
 0x5f2   :  { %v7004_v38 = vadd.f32 %v2010_v61, %v2009_v17  ;;  %v7038_v17 = vld [vmem:[#allocation2 + $0x370] sm:$0xff]  ;;  %v7041_v61 = vld [vmem:[#allocation2 + $0x328] sm:$0xff] }
 0x5f4   :  { %3569 = vtanh.f32 %v7004_v38 }
 0x5f5   :  { %3571 = vrcp.f32 %v1977_v35  ;;  %v7044_v35 = vld [vmem:[#allocation2 + $0x338] sm:$0xff] }
 0x5f6   :  { %10054 = vst [vmem:[#allocation22_spill] sm:$0xff] %v7044_v35 }
 0x601   :  { %v3570_v11 = vpop.eup %3569 }
 0x602   :  { %v3572_v59 = vpop.eup %3571  ;;  %v2013_v9 = vmul.f32 %v3570_v11, %v3568_v6  ;;  %v7050_v6 = vld [vmem:[#allocation2 + $0x330] sm:$0xff]  ;;  %v7053_v11 = vld [vmem:[#allocation2 + $0x2e8] sm:$0xff] }
 0x603   :  { %v7007_v8 = vmul.f32 %v3572_v59, %v3566_v12  ;;  %v7047_v12 = vld [vmem:[#allocation2 + $0x320] sm:$0xff]  ;;  %10056 = vst [vmem:[#allocation209_spill] sm:$0xff] %v7050_v6  ;;  %10057 = vst [vmem:[#allocation216_spill] sm:$0xff] %v7053_v11  ;;  %v7056_v59 = vld [vmem:[#allocation2 + $0x2f8] sm:$0xff] }
 0x604   :  { %2078 = vmatprep.mubr.f32.mxu0 %v2013_v9  ;;  %2149 = vmatprep.mubr.f32.mxu1 %v2013_v9  ;;  %10055 = vst [vmem:[#allocation208_spill] sm:$0xff] %v7047_v12  ;;  %10058 = vst [vmem:[#allocation214_spill] sm:$0xff] %v7056_v59 }
 0x605   :  { %2079 = vmatmul.mubr.f32.vlgmr.msra.gmra.mxu0 %v7007_v8  ;;  %2150 = vmatmul.mubr.f32.vlgmr.msra.gmra.mxu1 %v7007_v8 }
 0x606   :  { %2157 = vmatpush1.msra.mxu0 %v7011_v1  ;;  %2228 = vmatpush1.msra.mxu1 %v7014_v54 }
 0x607   :  { %2158 = vmatprep.subr.mxu0 %v7017_v3  ;;  %2220 = vmatprep.mubr.f32.mxu0 %v2013_v9 }
 0x608   :  { %2229 = vmatprep.subr.mxu1 %v7020_v51  ;;  %2291 = vmatprep.mubr.f32.mxu1 %v2013_v9  ;;  %v7059_v9 = vld [vmem:[#allocation2 + $0x2e0] sm:$0xff] }
 0x609   :  { %2159 = vmatpush1.msra.mxu0 %v7023_v18  ;;  %2230 = vmatpush1.msra.mxu1 %v7026_v55  ;;  %10059 = vst [vmem:[#allocation23_spill] sm:$0xff] %v7059_v9 }
 0x60a   :  { %2160 = vmatprep.subr.mxu0 %v7029_v36  ;;  %2231 = vmatprep.subr.mxu1 %v7032_v29 }
 0x60b   :  { %2161 = vmatpush1.msra.mxu0 %v7035_v2  ;;  %2232 = vmatpush1.msra.mxu1 %v7038_v17 }
 0x60c   :  { %2162 = vmatprep.subr.mxu0 %v7041_v61  ;;  %2233 = vmatprep.subr.mxu1 %v7044_v35  ;;  %v7062_v35 = vld [vmem:[#allocation2 + $0x2f0] sm:$0xff] }
 0x60d   :  { %2163 = vmatpush1.msra.mxu0 %v7047_v12  ;;  %2234 = vmatpush1.msra.mxu1 %v7050_v6  ;;  %10060 = vst [vmem:[#allocation24_spill] sm:$0xff] %v7062_v35  ;;  %v7065_v12 = vld [vmem:[#allocation2 + $0x2a8] sm:$0xff]  ;;  %v7068_v6 = vld [vmem:[#allocation2 + $0x2b8] sm:$0xff] }
 0x60e   :  { %2164 = vmatprep.subr.mxu0 %v7053_v11  ;;  %2235 = vmatprep.subr.mxu1 %v7056_v59  ;;  %10061 = vst [vmem:[#allocation25_spill] sm:$0xff] %v7065_v12  ;;  %10062 = vst [vmem:[#allocation26_spill] sm:$0xff] %v7068_v6  ;;  %v7071_v11 = vld [vmem:[#allocation2 + $0x2a0] sm:$0xff]  ;;  %v7074_v59 = vld [vmem:[#allocation2 + $0x2b0] sm:$0xff] }
 0x60f   :  { %2165 = vmatpush1.msra.mxu0 %v7059_v9  ;;  %2236 = vmatpush1.msra.mxu1 %v7062_v35  ;;  %10063 = vst [vmem:[#allocation27_spill] sm:$0xff] %v7071_v11  ;;  %10064 = vst [vmem:[#allocation28_spill] sm:$0xff] %v7074_v59  ;;  %v7077_v9 = vld [vmem:[#allocation2 + $0x268] sm:$0xff]  ;;  %v7080_v35 = vld [vmem:[#allocation2 + $0x278] sm:$0xff] }
 0x610   :  { %2166 = vmatprep.subr.mxu0 %v7065_v12  ;;  %2237 = vmatprep.subr.mxu1 %v7068_v6  ;;  %10065 = vst [vmem:[#allocation29_spill] sm:$0xff] %v7077_v9  ;;  %10066 = vst [vmem:[#allocation30_spill] sm:$0xff] %v7080_v35  ;;  %v7083_v12 = vld [vmem:[#allocation2 + $0x260] sm:$0xff]  ;;  %v7086_v6 = vld [vmem:[#allocation2 + $0x270] sm:$0xff] }
 0x611   :  { %2167 = vmatpush1.msra.mxu0 %v7071_v11  ;;  %2238 = vmatpush1.msra.mxu1 %v7074_v59  ;;  %10067 = vst [vmem:[#allocation31_spill] sm:$0xff] %v7083_v12  ;;  %10068 = vst [vmem:[#allocation32_spill] sm:$0xff] %v7086_v6  ;;  %v7089_v11 = vld [vmem:[#allocation2 + $0x228] sm:$0xff]  ;;  %v7092_v59 = vld [vmem:[#allocation2 + $0x238] sm:$0xff] }
 0x612   :  { %2168 = vmatprep.subr.mxu0 %v7077_v9  ;;  %2239 = vmatprep.subr.mxu1 %v7080_v35  ;;  %10069 = vst [vmem:[#allocation33_spill] sm:$0xff] %v7089_v11  ;;  %10070 = vst [vmem:[#allocation34_spill] sm:$0xff] %v7092_v59  ;;  %v7095_v9 = vld [vmem:[#allocation2 + $0x220] sm:$0xff]  ;;  %v7098_v35 = vld [vmem:[#allocation2 + $0x230] sm:$0xff] }
 0x613   :  { %2169 = vmatpush1.msra.mxu0 %v7083_v12  ;;  %2240 = vmatpush1.msra.mxu1 %v7086_v6  ;;  %10071 = vst [vmem:[#allocation35_spill] sm:$0xff] %v7095_v9  ;;  %10072 = vst [vmem:[#allocation36_spill] sm:$0xff] %v7098_v35  ;;  %v7101_v12 = vld [vmem:[#allocation2 + $0x1e8] sm:$0xff]  ;;  %v7104_v6 = vld [vmem:[#allocation2 + $0x1f8] sm:$0xff] }
 0x614   :  { %2170 = vmatprep.subr.mxu0 %v7089_v11  ;;  %2241 = vmatprep.subr.mxu1 %v7092_v59  ;;  %10073 = vst [vmem:[#allocation37_spill] sm:$0xff] %v7101_v12  ;;  %10074 = vst [vmem:[#allocation38_spill] sm:$0xff] %v7104_v6  ;;  %v7107_v11 = vld [vmem:[#allocation2 + $0x1e0] sm:$0xff]  ;;  %v7110_v59 = vld [vmem:[#allocation2 + $0x1f0] sm:$0xff] }
 0x615   :  { %2171 = vmatpush1.msra.mxu0 %v7095_v9  ;;  %2242 = vmatpush1.msra.mxu1 %v7098_v35  ;;  %10075 = vst [vmem:[#allocation39_spill] sm:$0xff] %v7107_v11  ;;  %10076 = vst [vmem:[#allocation40_spill] sm:$0xff] %v7110_v59  ;;  %v7113_v9 = vld [vmem:[#allocation2 + $0x1a8] sm:$0xff]  ;;  %v7116_v35 = vld [vmem:[#allocation2 + $0x1b8] sm:$0xff] }
 0x616   :  { %2172 = vmatprep.subr.mxu0 %v7101_v12  ;;  %2243 = vmatprep.subr.mxu1 %v7104_v6  ;;  %10077 = vst [vmem:[#allocation41_spill] sm:$0xff] %v7113_v9  ;;  %10078 = vst [vmem:[#allocation42_spill] sm:$0xff] %v7116_v35  ;;  %v7119_v12 = vld [vmem:[#allocation2 + $0x1a0] sm:$0xff]  ;;  %v7122_v6 = vld [vmem:[#allocation2 + $0x1b0] sm:$0xff] }
 0x617   :  { %2173 = vmatpush1.msra.mxu0 %v7107_v11  ;;  %2244 = vmatpush1.msra.mxu1 %v7110_v59  ;;  %10079 = vst [vmem:[#allocation43_spill] sm:$0xff] %v7119_v12  ;;  %10080 = vst [vmem:[#allocation44_spill] sm:$0xff] %v7122_v6  ;;  %v7125_v11 = vld [vmem:[#allocation2 + $0x168] sm:$0xff]  ;;  %v7128_v59 = vld [vmem:[#allocation2 + $0x178] sm:$0xff] }
 0x618   :  { %2174 = vmatprep.subr.mxu0 %v7113_v9  ;;  %2245 = vmatprep.subr.mxu1 %v7116_v35  ;;  %10081 = vst [vmem:[#allocation45_spill] sm:$0xff] %v7125_v11  ;;  %10082 = vst [vmem:[#allocation46_spill] sm:$0xff] %v7128_v59  ;;  %v7131_v9 = vld [vmem:[#allocation2 + $0x160] sm:$0xff]  ;;  %v7134_v35 = vld [vmem:[#allocation2 + $0x170] sm:$0xff] }
 0x619   :  { %2175 = vmatpush1.msra.mxu0 %v7119_v12  ;;  %2246 = vmatpush1.msra.mxu1 %v7122_v6  ;;  %10083 = vst [vmem:[#allocation47_spill] sm:$0xff] %v7131_v9  ;;  %10084 = vst [vmem:[#allocation48_spill] sm:$0xff] %v7134_v35  ;;  %v7137_v12 = vld [vmem:[#allocation2 + $0x128] sm:$0xff]  ;;  %v7140_v6 = vld [vmem:[#allocation2 + $0x138] sm:$0xff] }
 0x61a   :  { %2176 = vmatprep.subr.mxu0 %v7125_v11  ;;  %2247 = vmatprep.subr.mxu1 %v7128_v59  ;;  %10085 = vst [vmem:[#allocation49_spill] sm:$0xff] %v7137_v12  ;;  %10086 = vst [vmem:[#allocation50_spill] sm:$0xff] %v7140_v6  ;;  %v7143_v11 = vld [vmem:[#allocation2 + $0x120] sm:$0xff]  ;;  %v7146_v59 = vld [vmem:[#allocation2 + $0x130] sm:$0xff] }
 0x61b   :  { %2177 = vmatpush1.msra.mxu0 %v7131_v9  ;;  %2248 = vmatpush1.msra.mxu1 %v7134_v35  ;;  %10087 = vst [vmem:[#allocation51_spill] sm:$0xff] %v7143_v11  ;;  %10088 = vst [vmem:[#allocation52_spill] sm:$0xff] %v7146_v59  ;;  %v7149_v9 = vld [vmem:[#allocation2 + $0xe8] sm:$0xff]  ;;  %v7152_v35 = vld [vmem:[#allocation2 + $0xf8] sm:$0xff] }
 0x61c   :  { %2178 = vmatprep.subr.mxu0 %v7137_v12  ;;  %2249 = vmatprep.subr.mxu1 %v7140_v6  ;;  %10089 = vst [vmem:[#allocation53_spill] sm:$0xff] %v7149_v9  ;;  %10090 = vst [vmem:[#allocation54_spill] sm:$0xff] %v7152_v35  ;;  %v7155_v12 = vld [vmem:[#allocation2 + $0xe0] sm:$0xff]  ;;  %v7158_v6 = vld [vmem:[#allocation2 + $0xf0] sm:$0xff] }
 0x61d   :  { %2179 = vmatpush1.msra.mxu0 %v7143_v11  ;;  %2250 = vmatpush1.msra.mxu1 %v7146_v59  ;;  %10091 = vst [vmem:[#allocation55_spill] sm:$0xff] %v7155_v12  ;;  %10092 = vst [vmem:[#allocation56_spill] sm:$0xff] %v7158_v6  ;;  %v7161_v11 = vld [vmem:[#allocation2 + $0xa8] sm:$0xff]  ;;  %v7164_v59 = vld [vmem:[#allocation2 + $0xb8] sm:$0xff] }
 0x61e   :  { %2180 = vmatprep.subr.mxu0 %v7149_v9  ;;  %2251 = vmatprep.subr.mxu1 %v7152_v35  ;;  %10093 = vst [vmem:[#allocation57_spill] sm:$0xff] %v7161_v11  ;;  %10094 = vst [vmem:[#allocation58_spill] sm:$0xff] %v7164_v59  ;;  %v7167_v9 = vld [vmem:[#allocation2 + $0xa0] sm:$0xff]  ;;  %v7170_v35 = vld [vmem:[#allocation2 + $0xb0] sm:$0xff] }
 0x61f   :  { %2181 = vmatpush1.msra.mxu0 %v7155_v12  ;;  %2252 = vmatpush1.msra.mxu1 %v7158_v6  ;;  %10095 = vst [vmem:[#allocation59_spill] sm:$0xff] %v7167_v9  ;;  %10096 = vst [vmem:[#allocation60_spill] sm:$0xff] %v7170_v35  ;;  %v7173_v12 = vld [vmem:[#allocation2 + $0x68] sm:$0xff]  ;;  %v7176_v6 = vld [vmem:[#allocation2 + $0x78] sm:$0xff] }
 0x620   :  { %2182 = vmatprep.subr.mxu0 %v7161_v11  ;;  %2253 = vmatprep.subr.mxu1 %v7164_v59  ;;  %10097 = vst [vmem:[#allocation61_spill] sm:$0xff] %v7173_v12  ;;  %10098 = vst [vmem:[#allocation62_spill] sm:$0xff] %v7176_v6  ;;  %v7179_v11 = vld [vmem:[#allocation2 + $0x60] sm:$0xff]  ;;  %v7182_v59 = vld [vmem:[#allocation2 + $0x70] sm:$0xff] }
 0x621   :  { %2183 = vmatpush1.msra.mxu0 %v7167_v9  ;;  %2254 = vmatpush1.msra.mxu1 %v7170_v35  ;;  %10099 = vst [vmem:[#allocation63_spill] sm:$0xff] %v7179_v11  ;;  %10100 = vst [vmem:[#allocation64_spill] sm:$0xff] %v7182_v59  ;;  %v7185_v9 = vld [vmem:[#allocation2 + $0x28] sm:$0xff]  ;;  %v7188_v35 = vld [vmem:[#allocation2 + $0x38] sm:$0xff] }
 0x622   :  { %2184 = vmatprep.subr.mxu0 %v7173_v12  ;;  %2255 = vmatprep.subr.mxu1 %v7176_v6  ;;  %10101 = vst [vmem:[#allocation65_spill] sm:$0xff] %v7185_v9  ;;  %10102 = vst [vmem:[#allocation66_spill] sm:$0xff] %v7188_v35  ;;  %v7191_v12 = vld [vmem:[#allocation2 + $0x20] sm:$0xff]  ;;  %v7194_v6 = vld [vmem:[#allocation2 + $0x30] sm:$0xff] }
 0x623   :  { %2185 = vmatpush1.msra.mxu0 %v7179_v11  ;;  %2256 = vmatpush1.msra.mxu1 %v7182_v59  ;;  %10103 = vst [vmem:[#allocation67_spill] sm:$0xff] %v7191_v12  ;;  %10104 = vst [vmem:[#allocation68_spill] sm:$0xff] %v7194_v6  ;;  %v7197_v11 = vld [vmem:[#allocation2 + $0x7e8] sm:$0xff]  ;;  %v7200_v59 = vld [vmem:[#allocation2 + $0x7f8] sm:$0xff] }
 0x624   :  { %2186 = vmatprep.subr.mxu0 %v7185_v9  ;;  %2257 = vmatprep.subr.mxu1 %v7188_v35  ;;  %10105 = vst [vmem:[#allocation69_spill] sm:$0xff] %v7197_v11  ;;  %10106 = vst [vmem:[#allocation70_spill] sm:$0xff] %v7200_v59  ;;  %v7203_v9 = vld [vmem:[#allocation2 + $0x7e0] sm:$0xff]  ;;  %v7206_v35 = vld [vmem:[#allocation2 + $0x7f0] sm:$0xff] }
 0x625   :  { %2187 = vmatpush1.msra.mxu0 %v7191_v12  ;;  %2258 = vmatpush1.msra.mxu1 %v7194_v6  ;;  %10107 = vst [vmem:[#allocation71_spill] sm:$0xff] %v7203_v9  ;;  %10108 = vst [vmem:[#allocation72_spill] sm:$0xff] %v7206_v35  ;;  %v7209_v12 = vld [vmem:[#allocation2 + $0x7a8] sm:$0xff]  ;;  %v7212_v6 = vld [vmem:[#allocation2 + $0x7b8] sm:$0xff] }
 0x626   :  { %2188 = vmatprep.subr.mxu0 %v7197_v11  ;;  %2259 = vmatprep.subr.mxu1 %v7200_v59  ;;  %10109 = vst [vmem:[#allocation73_spill] sm:$0xff] %v7209_v12  ;;  %10110 = vst [vmem:[#allocation74_spill] sm:$0xff] %v7212_v6  ;;  %v7215_v11 = vld [vmem:[#allocation2 + $0x7a0] sm:$0xff]  ;;  %v7218_v59 = vld [vmem:[#allocation2 + $0x7b0] sm:$0xff] }
 0x627   :  { %2189 = vmatpush2.msra.mxu0 %v7203_v9  ;;  %2260 = vmatpush2.msra.mxu1 %v7206_v35  ;;  %10111 = vst [vmem:[#allocation75_spill] sm:$0xff] %v7215_v11  ;;  %10112 = vst [vmem:[#allocation76_spill] sm:$0xff] %v7218_v59  ;;  %v7221_v9 = vld [vmem:[#allocation2 + $0x768] sm:$0xff]  ;;  %v7224_v35 = vld [vmem:[#allocation2 + $0x778] sm:$0xff] }
 0x628   :  { %2190 = vmatprep.subr.mxu0 %v7209_v12  ;;  %2261 = vmatprep.subr.mxu1 %v7212_v6  ;;  %10113 = vst [vmem:[#allocation77_spill] sm:$0xff] %v7221_v9  ;;  %10114 = vst [vmem:[#allocation78_spill] sm:$0xff] %v7224_v35  ;;  %v7227_v12 = vld [vmem:[#allocation2 + $0x760] sm:$0xff]  ;;  %v7230_v6 = vld [vmem:[#allocation2 + $0x770] sm:$0xff] }
 0x629   :  { %2191 = vmatpush2.msra.mxu0 %v7215_v11  ;;  %2262 = vmatpush2.msra.mxu1 %v7218_v59  ;;  %10115 = vst [vmem:[#allocation79_spill] sm:$0xff] %v7227_v12  ;;  %10116 = vst [vmem:[#allocation80_spill] sm:$0xff] %v7230_v6  ;;  %v7233_v11 = vld [vmem:[#allocation2 + $0x728] sm:$0xff]  ;;  %v7236_v59 = vld [vmem:[#allocation2 + $0x738] sm:$0xff] }
 0x62a   :  { %2192 = vmatprep.subr.mxu0 %v7221_v9  ;;  %2263 = vmatprep.subr.mxu1 %v7224_v35  ;;  %10117 = vst [vmem:[#allocation81_spill] sm:$0xff] %v7233_v11  ;;  %10118 = vst [vmem:[#allocation82_spill] sm:$0xff] %v7236_v59  ;;  %v7239_v9 = vld [vmem:[#allocation2 + $0x720] sm:$0xff]  ;;  %v7242_v35 = vld [vmem:[#allocation2 + $0x730] sm:$0xff] }
 0x62b   :  { %2193 = vmatpush2.msra.mxu0 %v7227_v12  ;;  %2264 = vmatpush2.msra.mxu1 %v7230_v6  ;;  %10119 = vst [vmem:[#allocation83_spill] sm:$0xff] %v7239_v9  ;;  %10120 = vst [vmem:[#allocation84_spill] sm:$0xff] %v7242_v35  ;;  %v7245_v12 = vld [vmem:[#allocation2 + $0x6e8] sm:$0xff]  ;;  %v7248_v6 = vld [vmem:[#allocation2 + $0x6f8] sm:$0xff] }
 0x62c   :  { %2194 = vmatprep.subr.mxu0 %v7233_v11  ;;  %2265 = vmatprep.subr.mxu1 %v7236_v59  ;;  %10121 = vst [vmem:[#allocation85_spill] sm:$0xff] %v7245_v12  ;;  %10122 = vst [vmem:[#allocation86_spill] sm:$0xff] %v7248_v6  ;;  %v7251_v11 = vld [vmem:[#allocation2 + $0x6e0] sm:$0xff]  ;;  %v7254_v59 = vld [vmem:[#allocation2 + $0x6f0] sm:$0xff] }
 0x62d   :  { %2195 = vmatpush2.msra.mxu0 %v7239_v9  ;;  %2266 = vmatpush2.msra.mxu1 %v7242_v35  ;;  %10123 = vst [vmem:[#allocation87_spill] sm:$0xff] %v7251_v11  ;;  %10124 = vst [vmem:[#allocation88_spill] sm:$0xff] %v7254_v59  ;;  %v7257_v9 = vld [vmem:[#allocation2 + $0x6a8] sm:$0xff]  ;;  %v7260_v35 = vld [vmem:[#allocation2 + $0x6b8] sm:$0xff] }
 0x62e   :  { %2196 = vmatprep.subr.mxu0 %v7245_v12  ;;  %2267 = vmatprep.subr.mxu1 %v7248_v6  ;;  %10125 = vst [vmem:[#allocation89_spill] sm:$0xff] %v7257_v9  ;;  %10126 = vst [vmem:[#allocation90_spill] sm:$0xff] %v7260_v35  ;;  %v7263_v12 = vld [vmem:[#allocation2 + $0x6a0] sm:$0xff]  ;;  %v7266_v6 = vld [vmem:[#allocation2 + $0x6b0] sm:$0xff] }
 0x62f   :  { %2197 = vmatpush2.msra.mxu0 %v7251_v11  ;;  %2268 = vmatpush2.msra.mxu1 %v7254_v59  ;;  %10127 = vst [vmem:[#allocation91_spill] sm:$0xff] %v7263_v12  ;;  %10128 = vst [vmem:[#allocation92_spill] sm:$0xff] %v7266_v6  ;;  %v7269_v11 = vld [vmem:[#allocation2 + $0x668] sm:$0xff]  ;;  %v7272_v59 = vld [vmem:[#allocation2 + $0x678] sm:$0xff] }
 0x630   :  { %2198 = vmatprep.subr.mxu0 %v7257_v9  ;;  %2269 = vmatprep.subr.mxu1 %v7260_v35  ;;  %10129 = vst [vmem:[#allocation93_spill] sm:$0xff] %v7269_v11  ;;  %10130 = vst [vmem:[#allocation94_spill] sm:$0xff] %v7272_v59  ;;  %v7275_v9 = vld [vmem:[#allocation2 + $0x660] sm:$0xff]  ;;  %v7278_v35 = vld [vmem:[#allocation2 + $0x670] sm:$0xff] }
 0x631   :  { %2199 = vmatpush2.msra.mxu0 %v7263_v12  ;;  %2270 = vmatpush2.msra.mxu1 %v7266_v6  ;;  %10131 = vst [vmem:[#allocation95_spill] sm:$0xff] %v7275_v9  ;;  %10132 = vst [vmem:[#allocation96_spill] sm:$0xff] %v7278_v35  ;;  %v7281_v12 = vld [vmem:[#allocation2 + $0x628] sm:$0xff]  ;;  %v7284_v6 = vld [vmem:[#allocation2 + $0x638] sm:$0xff] }
 0x632   :  { %2200 = vmatprep.subr.mxu0 %v7269_v11  ;;  %2271 = vmatprep.subr.mxu1 %v7272_v59  ;;  %10133 = vst [vmem:[#allocation97_spill] sm:$0xff] %v7281_v12  ;;  %10134 = vst [vmem:[#allocation98_spill] sm:$0xff] %v7284_v6  ;;  %v7287_v11 = vld [vmem:[#allocation2 + $0x620] sm:$0xff]  ;;  %v7290_v59 = vld [vmem:[#allocation2 + $0x630] sm:$0xff] }
 0x633   :  { %2201 = vmatpush2.msra.mxu0 %v7275_v9  ;;  %2272 = vmatpush2.msra.mxu1 %v7278_v35  ;;  %10135 = vst [vmem:[#allocation99_spill] sm:$0xff] %v7287_v11  ;;  %10136 = vst [vmem:[#allocation100_spill] sm:$0xff] %v7290_v59  ;;  %v7293_v9 = vld [vmem:[#allocation2 + $0x5e8] sm:$0xff]  ;;  %v7296_v35 = vld [vmem:[#allocation2 + $0x5f8] sm:$0xff] }
 0x634   :  { %2202 = vmatprep.subr.mxu0 %v7281_v12  ;;  %2273 = vmatprep.subr.mxu1 %v7284_v6  ;;  %10137 = vst [vmem:[#allocation101_spill] sm:$0xff] %v7293_v9  ;;  %10138 = vst [vmem:[#allocation102_spill] sm:$0xff] %v7296_v35  ;;  %v7299_v12 = vld [vmem:[#allocation2 + $0x5e0] sm:$0xff]  ;;  %v7302_v6 = vld [vmem:[#allocation2 + $0x5f0] sm:$0xff] }
 0x635   :  { %2203 = vmatpush2.msra.mxu0 %v7287_v11  ;;  %2274 = vmatpush2.msra.mxu1 %v7290_v59  ;;  %10139 = vst [vmem:[#allocation103_spill] sm:$0xff] %v7299_v12  ;;  %10140 = vst [vmem:[#allocation104_spill] sm:$0xff] %v7302_v6  ;;  %v7305_v11 = vld [vmem:[#allocation2 + $0x5a8] sm:$0xff]  ;;  %v7308_v59 = vld [vmem:[#allocation2 + $0x5b8] sm:$0xff] }
 0x636   :  { %2204 = vmatprep.subr.mxu0 %v7293_v9  ;;  %2275 = vmatprep.subr.mxu1 %v7296_v35  ;;  %10141 = vst [vmem:[#allocation105_spill] sm:$0xff] %v7305_v11  ;;  %10142 = vst [vmem:[#allocation106_spill] sm:$0xff] %v7308_v59  ;;  %v7311_v9 = vld [vmem:[#allocation2 + $0x5a0] sm:$0xff]  ;;  %v7314_v35 = vld [vmem:[#allocation2 + $0x5b0] sm:$0xff] }
 0x637   :  { %2205 = vmatpush2.msra.mxu0 %v7299_v12  ;;  %2276 = vmatpush2.msra.mxu1 %v7302_v6  ;;  %10143 = vst [vmem:[#allocation107_spill] sm:$0xff] %v7311_v9  ;;  %10144 = vst [vmem:[#allocation108_spill] sm:$0xff] %v7314_v35  ;;  %v7317_v12 = vld [vmem:[#allocation2 + $0x568] sm:$0xff]  ;;  %v7320_v6 = vld [vmem:[#allocation2 + $0x578] sm:$0xff] }
 0x638   :  { %2206 = vmatprep.subr.mxu0 %v7305_v11  ;;  %2277 = vmatprep.subr.mxu1 %v7308_v59  ;;  %10145 = vst [vmem:[#allocation109_spill] sm:$0xff] %v7317_v12  ;;  %10146 = vst [vmem:[#allocation110_spill] sm:$0xff] %v7320_v6  ;;  %v7323_v11 = vld [vmem:[#allocation2 + $0x560] sm:$0xff]  ;;  %v7326_v59 = vld [vmem:[#allocation2 + $0x570] sm:$0xff] }
 0x639   :  { %2207 = vmatpush2.msra.mxu0 %v7311_v9  ;;  %2278 = vmatpush2.msra.mxu1 %v7314_v35  ;;  %10147 = vst [vmem:[#allocation111_spill] sm:$0xff] %v7323_v11  ;;  %10148 = vst [vmem:[#allocation112_spill] sm:$0xff] %v7326_v59  ;;  %v7329_v9 = vld [vmem:[#allocation2 + $0x528] sm:$0xff]  ;;  %v7332_v35 = vld [vmem:[#allocation2 + $0x538] sm:$0xff] }
 0x63a   :  { %2208 = vmatprep.subr.mxu0 %v7317_v12  ;;  %2279 = vmatprep.subr.mxu1 %v7320_v6  ;;  %10149 = vst [vmem:[#allocation113_spill] sm:$0xff] %v7329_v9  ;;  %10150 = vst [vmem:[#allocation114_spill] sm:$0xff] %v7332_v35  ;;  %v7335_v12 = vld [vmem:[#allocation2 + $0x520] sm:$0xff]  ;;  %v7338_v6 = vld [vmem:[#allocation2 + $0x530] sm:$0xff] }
 0x63b   :  { %2209 = vmatpush2.msra.mxu0 %v7323_v11  ;;  %2280 = vmatpush2.msra.mxu1 %v7326_v59  ;;  %10151 = vst [vmem:[#allocation115_spill] sm:$0xff] %v7335_v12  ;;  %10152 = vst [vmem:[#allocation116_spill] sm:$0xff] %v7338_v6  ;;  %v7341_v11 = vld [vmem:[#allocation2 + $0x4e8] sm:$0xff]  ;;  %v7344_v59 = vld [vmem:[#allocation2 + $0x4f8] sm:$0xff] }
 0x63c   :  { %2210 = vmatprep.subr.mxu0 %v7329_v9  ;;  %2281 = vmatprep.subr.mxu1 %v7332_v35  ;;  %10153 = vst [vmem:[#allocation117_spill] sm:$0xff] %v7341_v11  ;;  %10154 = vst [vmem:[#allocation118_spill] sm:$0xff] %v7344_v59  ;;  %v7347_v9 = vld [vmem:[#allocation2 + $0x4e0] sm:$0xff]  ;;  %v7350_v35 = vld [vmem:[#allocation2 + $0x4f0] sm:$0xff] }
 0x63d   :  { %2211 = vmatpush2.msra.mxu0 %v7335_v12  ;;  %2282 = vmatpush2.msra.mxu1 %v7338_v6  ;;  %10155 = vst [vmem:[#allocation119_spill] sm:$0xff] %v7347_v9  ;;  %10156 = vst [vmem:[#allocation120_spill] sm:$0xff] %v7350_v35  ;;  %v7353_v12 = vld [vmem:[#allocation2 + $0x4a8] sm:$0xff]  ;;  %v7356_v6 = vld [vmem:[#allocation2 + $0x4b8] sm:$0xff] }
 0x63e   :  { %2212 = vmatprep.subr.mxu0 %v7341_v11  ;;  %2283 = vmatprep.subr.mxu1 %v7344_v59  ;;  %10157 = vst [vmem:[#allocation121_spill] sm:$0xff] %v7353_v12  ;;  %10158 = vst [vmem:[#allocation122_spill] sm:$0xff] %v7356_v6  ;;  %v7359_v11 = vld [vmem:[#allocation2 + $0x4a0] sm:$0xff]  ;;  %v7362_v59 = vld [vmem:[#allocation2 + $0x4b0] sm:$0xff] }
 0x63f   :  { %2213 = vmatpush2.msra.mxu0 %v7347_v9  ;;  %2284 = vmatpush2.msra.mxu1 %v7350_v35  ;;  %10159 = vst [vmem:[#allocation123_spill] sm:$0xff] %v7359_v11  ;;  %10160 = vst [vmem:[#allocation124_spill] sm:$0xff] %v7362_v59  ;;  %v7365_v9 = vld [vmem:[#allocation2 + $0x468] sm:$0xff]  ;;  %v7368_v35 = vld [vmem:[#allocation2 + $0x478] sm:$0xff] }
 0x640   :  { %2214 = vmatprep.subr.mxu0 %v7353_v12  ;;  %2285 = vmatprep.subr.mxu1 %v7356_v6  ;;  %10161 = vst [vmem:[#allocation125_spill] sm:$0xff] %v7365_v9  ;;  %10162 = vst [vmem:[#allocation126_spill] sm:$0xff] %v7368_v35  ;;  %v7371_v12 = vld [vmem:[#allocation2 + $0x460] sm:$0xff]  ;;  %v7374_v6 = vld [vmem:[#allocation2 + $0x470] sm:$0xff] }
 0x641   :  { %2215 = vmatpush2.msra.mxu0 %v7359_v11  ;;  %2286 = vmatpush2.msra.mxu1 %v7362_v59  ;;  %10163 = vst [vmem:[#allocation127_spill] sm:$0xff] %v7374_v6  ;;  %v7377_v11 = vld [vmem:[#allocation2 + $0x428] sm:$0xff]  ;;  %v7380_v59 = vld [vmem:[#allocation2 + $0x438] sm:$0xff] }
 0x642   :  { %2216 = vmatprep.subr.mxu0 %v7365_v9  ;;  %2287 = vmatprep.subr.mxu1 %v7368_v35  ;;  %10164 = vst [vmem:[#allocation128_spill] sm:$0xff] %v7377_v11  ;;  %10165 = vst [vmem:[#allocation129_spill] sm:$0xff] %v7380_v59  ;;  %v7383_v9 = vld [vmem:[#allocation2 + $0x420] sm:$0xff]  ;;  %v7386_v35 = vld [vmem:[#allocation2 + $0x430] sm:$0xff] }
 0x643   :  { %2217 = vmatpush2.msra.mxu0 %v7371_v12  ;;  %2288 = vmatpush2.msra.mxu1 %v7374_v6  ;;  %10166 = vst [vmem:[#allocation130_spill] sm:$0xff] %v7383_v9  ;;  %10167 = vst [vmem:[#allocation131_spill] sm:$0xff] %v7386_v35  ;;  %v7391_v6 = vld [vmem:[#allocation2 + $0x3c8] sm:$0xff] }
 0x644   :  { %2218 = vmatprep.subr.mxu0 %v7377_v11  ;;  %2289 = vmatprep.subr.mxu1 %v7380_v59  ;;  %10168 = vst [vmem:[#allocation132_spill] sm:$0xff] %v7391_v6  ;;  %v7394_v11 = vld [vmem:[#allocation2 + $0x3d8] sm:$0xff]  ;;  %v7397_v59 = vld [vmem:[#allocation2 + $0x3c0] sm:$0xff] }
 0x645   :  { %2219 = vmatpush2.msra.mxu0 %v7383_v9  ;;  %2290 = vmatpush2.msra.mxu1 %v7386_v35  ;;  %10169 = vst [vmem:[#allocation133_spill] sm:$0xff] %v7394_v11  ;;  %10170 = vst [vmem:[#allocation134_spill] sm:$0xff] %v7397_v59  ;;  %v7400_v9 = vld [vmem:[#allocation2 + $0x3d0] sm:$0xff]  ;;  %v7403_v35 = vld [vmem:[#allocation2 + $0x388] sm:$0xff] }
 0x646   :  { %2221 = vmatmul.mubr.f32.vlgmr.msra.gmra.mxu0 %v7007_v8  ;;  %2292 = vmatmul.mubr.f32.vlgmr.msra.gmra.mxu1 %v7007_v8  ;;  %10171 = vst [vmem:[#allocation135_spill] sm:$0xff] %v7400_v9  ;;  %10172 = vst [vmem:[#allocation136_spill] sm:$0xff] %v7403_v35  ;;  %v7406_v8 = vld [vmem:[#allocation2 + $0x398] sm:$0xff] }
 0x647   :  { %2354 = vmatprep.subr.mxu0 %v7391_v6  ;;  %2425 = vmatprep.subr.mxu1 %v7394_v11  ;;  %10173 = vst [vmem:[#allocation137_spill] sm:$0xff] %v7406_v8  ;;  %v7409_v6 = vld [vmem:[#allocation2 + $0x380] sm:$0xff]  ;;  %v7412_v11 = vld [vmem:[#allocation2 + $0x390] sm:$0xff] }
 0x648   :  { %2355 = vmatpush1.msra.mxu0 %v7397_v59  ;;  %2426 = vmatpush1.msra.mxu1 %v7400_v9  ;;  %10174 = vst [vmem:[#allocation138_spill] sm:$0xff] %v7409_v6  ;;  %10175 = vst [vmem:[#allocation139_spill] sm:$0xff] %v7412_v11  ;;  %v7415_v59 = vld [vmem:[#allocation2 + $0x348] sm:$0xff]  ;;  %v7418_v9 = vld [vmem:[#allocation2 + $0x358] sm:$0xff] }
 0x649   :  { %2356 = vmatprep.subr.mxu0 %v7403_v35  ;;  %2427 = vmatprep.subr.mxu1 %v7406_v8  ;;  %10176 = vst [vmem:[#allocation140_spill] sm:$0xff] %v7415_v59  ;;  %10177 = vst [vmem:[#allocation141_spill] sm:$0xff] %v7418_v9  ;;  %v7421_v35 = vld [vmem:[#allocation2 + $0x340] sm:$0xff]  ;;  %v7424_v8 = vld [vmem:[#allocation2 + $0x350] sm:$0xff] }
 0x64a   :  { %2357 = vmatpush1.msra.mxu0 %v7409_v6  ;;  %2428 = vmatpush1.msra.mxu1 %v7412_v11  ;;  %10178 = vst [vmem:[#allocation142_spill] sm:$0xff] %v7421_v35  ;;  %10179 = vst [vmem:[#allocation143_spill] sm:$0xff] %v7424_v8  ;;  %v7427_v6 = vld [vmem:[#allocation2 + $0x308] sm:$0xff]  ;;  %v7430_v11 = vld [vmem:[#allocation2 + $0x318] sm:$0xff] }
 0x64b   :  { %2358 = vmatprep.subr.mxu0 %v7415_v59  ;;  %2429 = vmatprep.subr.mxu1 %v7418_v9  ;;  %10180 = vst [vmem:[#allocation144_spill] sm:$0xff] %v7427_v6  ;;  %10181 = vst [vmem:[#allocation145_spill] sm:$0xff] %v7430_v11  ;;  %v7433_v59 = vld [vmem:[#allocation2 + $0x300] sm:$0xff]  ;;  %v7436_v9 = vld [vmem:[#allocation2 + $0x310] sm:$0xff] }
 0x64c   :  { %2359 = vmatpush1.msra.mxu0 %v7421_v35  ;;  %2430 = vmatpush1.msra.mxu1 %v7424_v8  ;;  %10182 = vst [vmem:[#allocation146_spill] sm:$0xff] %v7433_v59  ;;  %10183 = vst [vmem:[#allocation147_spill] sm:$0xff] %v7436_v9  ;;  %v7439_v35 = vld [vmem:[#allocation2 + $0x2c8] sm:$0xff]  ;;  %v7442_v8 = vld [vmem:[#allocation2 + $0x2d8] sm:$0xff] }
 0x64d   :  { %2360 = vmatprep.subr.mxu0 %v7427_v6  ;;  %2431 = vmatprep.subr.mxu1 %v7430_v11  ;;  %10184 = vst [vmem:[#allocation148_spill] sm:$0xff] %v7439_v35  ;;  %10185 = vst [vmem:[#allocation149_spill] sm:$0xff] %v7442_v8  ;;  %v7445_v6 = vld [vmem:[#allocation2 + $0x2c0] sm:$0xff]  ;;  %v7448_v11 = vld [vmem:[#allocation2 + $0x2d0] sm:$0xff] }
 0x64e   :  { %2361 = vmatpush1.msra.mxu0 %v7433_v59  ;;  %2432 = vmatpush1.msra.mxu1 %v7436_v9  ;;  %10186 = vst [vmem:[#allocation150_spill] sm:$0xff] %v7445_v6  ;;  %10187 = vst [vmem:[#allocation151_spill] sm:$0xff] %v7448_v11  ;;  %v7451_v59 = vld [vmem:[#allocation2 + $0x288] sm:$0xff]  ;;  %v7454_v9 = vld [vmem:[#allocation2 + $0x298] sm:$0xff] }
 0x64f   :  { %2362 = vmatprep.subr.mxu0 %v7439_v35  ;;  %2433 = vmatprep.subr.mxu1 %v7442_v8  ;;  %10188 = vst [vmem:[#allocation152_spill] sm:$0xff] %v7451_v59  ;;  %10189 = vst [vmem:[#allocation153_spill] sm:$0xff] %v7454_v9  ;;  %v7457_v35 = vld [vmem:[#allocation2 + $0x280] sm:$0xff]  ;;  %v7460_v8 = vld [vmem:[#allocation2 + $0x290] sm:$0xff] }
 0x650   :  { %2363 = vmatpush1.msra.mxu0 %v7445_v6  ;;  %2434 = vmatpush1.msra.mxu1 %v7448_v11  ;;  %10190 = vst [vmem:[#allocation154_spill] sm:$0xff] %v7457_v35  ;;  %10191 = vst [vmem:[#allocation155_spill] sm:$0xff] %v7460_v8  ;;  %v7463_v6 = vld [vmem:[#allocation2 + $0x248] sm:$0xff]  ;;  %v7466_v11 = vld [vmem:[#allocation2 + $0x258] sm:$0xff] }
 0x651   :  { %2364 = vmatprep.subr.mxu0 %v7451_v59  ;;  %2435 = vmatprep.subr.mxu1 %v7454_v9  ;;  %10192 = vst [vmem:[#allocation156_spill] sm:$0xff] %v7463_v6  ;;  %10193 = vst [vmem:[#allocation157_spill] sm:$0xff] %v7466_v11  ;;  %v7469_v59 = vld [vmem:[#allocation2 + $0x240] sm:$0xff]  ;;  %v7472_v9 = vld [vmem:[#allocation2 + $0x250] sm:$0xff] }
 0x652   :  { %2365 = vmatpush1.msra.mxu0 %v7457_v35  ;;  %2436 = vmatpush1.msra.mxu1 %v7460_v8  ;;  %10194 = vst [vmem:[#allocation158_spill] sm:$0xff] %v7469_v59  ;;  %10195 = vst [vmem:[#allocation159_spill] sm:$0xff] %v7472_v9  ;;  %v7475_v35 = vld [vmem:[#allocation2 + $0x208] sm:$0xff]  ;;  %v7478_v8 = vld [vmem:[#allocation2 + $0x218] sm:$0xff] }
 0x653   :  { %2366 = vmatprep.subr.mxu0 %v7463_v6  ;;  %2437 = vmatprep.subr.mxu1 %v7466_v11  ;;  %10196 = vst [vmem:[#allocation160_spill] sm:$0xff] %v7475_v35  ;;  %10197 = vst [vmem:[#allocation161_spill] sm:$0xff] %v7478_v8  ;;  %v7481_v6 = vld [vmem:[#allocation2 + $0x200] sm:$0xff]  ;;  %v7484_v11 = vld [vmem:[#allocation2 + $0x210] sm:$0xff] }
 0x654   :  { %2367 = vmatpush1.msra.mxu0 %v7469_v59  ;;  %2438 = vmatpush1.msra.mxu1 %v7472_v9  ;;  %10198 = vst [vmem:[#allocation162_spill] sm:$0xff] %v7481_v6  ;;  %10199 = vst [vmem:[#allocation163_spill] sm:$0xff] %v7484_v11  ;;  %v7487_v59 = vld [vmem:[#allocation2 + $0x1c8] sm:$0xff]  ;;  %v7490_v9 = vld [vmem:[#allocation2 + $0x1d8] sm:$0xff] }
 0x655   :  { %2368 = vmatprep.subr.mxu0 %v7475_v35  ;;  %2439 = vmatprep.subr.mxu1 %v7478_v8  ;;  %10200 = vst [vmem:[#allocation164_spill] sm:$0xff] %v7487_v59  ;;  %10201 = vst [vmem:[#allocation165_spill] sm:$0xff] %v7490_v9  ;;  %v7493_v35 = vld [vmem:[#allocation2 + $0x1c0] sm:$0xff]  ;;  %v7496_v8 = vld [vmem:[#allocation2 + $0x1d0] sm:$0xff] }
 0x656   :  { %2369 = vmatpush1.msra.mxu0 %v7481_v6  ;;  %2440 = vmatpush1.msra.mxu1 %v7484_v11  ;;  %10202 = vst [vmem:[#allocation166_spill] sm:$0xff] %v7493_v35  ;;  %10203 = vst [vmem:[#allocation167_spill] sm:$0xff] %v7496_v8  ;;  %v7499_v6 = vld [vmem:[#allocation2 + $0x188] sm:$0xff]  ;;  %v7502_v11 = vld [vmem:[#allocation2 + $0x198] sm:$0xff] }
 0x657   :  { %2370 = vmatprep.subr.mxu0 %v7487_v59  ;;  %2441 = vmatprep.subr.mxu1 %v7490_v9  ;;  %10204 = vst [vmem:[#allocation168_spill] sm:$0xff] %v7499_v6  ;;  %10205 = vst [vmem:[#allocation169_spill] sm:$0xff] %v7502_v11  ;;  %v7505_v59 = vld [vmem:[#allocation2 + $0x180] sm:$0xff]  ;;  %v7508_v9 = vld [vmem:[#allocation2 + $0x190] sm:$0xff] }
 0x658   :  { %2371 = vmatpush1.msra.mxu0 %v7493_v35  ;;  %2442 = vmatpush1.msra.mxu1 %v7496_v8  ;;  %10206 = vst [vmem:[#allocation170_spill] sm:$0xff] %v7505_v59  ;;  %10207 = vst [vmem:[#allocation171_spill] sm:$0xff] %v7508_v9  ;;  %v7511_v35 = vld [vmem:[#allocation2 + $0x148] sm:$0xff]  ;;  %v7514_v8 = vld [vmem:[#allocation2 + $0x158] sm:$0xff] }
 0x659   :  { %2372 = vmatprep.subr.mxu0 %v7499_v6  ;;  %2443 = vmatprep.subr.mxu1 %v7502_v11  ;;  %10208 = vst [vmem:[#allocation172_spill] sm:$0xff] %v7511_v35  ;;  %10209 = vst [vmem:[#allocation173_spill] sm:$0xff] %v7514_v8  ;;  %v7517_v6 = vld [vmem:[#allocation2 + $0x140] sm:$0xff]  ;;  %v7520_v11 = vld [vmem:[#allocation2 + $0x150] sm:$0xff] }
 0x65a   :  { %2373 = vmatpush1.msra.mxu0 %v7505_v59  ;;  %2444 = vmatpush1.msra.mxu1 %v7508_v9  ;;  %10210 = vst [vmem:[#allocation174_spill] sm:$0xff] %v7517_v6  ;;  %10211 = vst [vmem:[#allocation175_spill] sm:$0xff] %v7520_v11  ;;  %v7523_v59 = vld [vmem:[#allocation2 + $0x108] sm:$0xff]  ;;  %v7526_v9 = vld [vmem:[#allocation2 + $0x118] sm:$0xff] }
 0x65b   :  { %2374 = vmatprep.subr.mxu0 %v7511_v35  ;;  %2445 = vmatprep.subr.mxu1 %v7514_v8  ;;  %10212 = vst [vmem:[#allocation176_spill] sm:$0xff] %v7523_v59  ;;  %10213 = vst [vmem:[#allocation177_spill] sm:$0xff] %v7526_v9  ;;  %v7529_v35 = vld [vmem:[#allocation2 + $0x100] sm:$0xff]  ;;  %v7532_v8 = vld [vmem:[#allocation2 + $0x110] sm:$0xff] }
 0x65c   :  { %2375 = vmatpush1.msra.mxu0 %v7517_v6  ;;  %2446 = vmatpush1.msra.mxu1 %v7520_v11  ;;  %10214 = vst [vmem:[#allocation178_spill] sm:$0xff] %v7529_v35  ;;  %10215 = vst [vmem:[#allocation179_spill] sm:$0xff] %v7532_v8  ;;  %v7535_v6 = vld [vmem:[#allocation2 + $0xc8] sm:$0xff]  ;;  %v7538_v11 = vld [vmem:[#allocation2 + $0xd8] sm:$0xff] }
 0x65d   :  { %2376 = vmatprep.subr.mxu0 %v7523_v59  ;;  %2447 = vmatprep.subr.mxu1 %v7526_v9  ;;  %10216 = vst [vmem:[#allocation180_spill] sm:$0xff] %v7535_v6  ;;  %10217 = vst [vmem:[#allocation181_spill] sm:$0xff] %v7538_v11  ;;  %v7541_v59 = vld [vmem:[#allocation2 + $0xc0] sm:$0xff]  ;;  %v7544_v9 = vld [vmem:[#allocation2 + $0xd0] sm:$0xff] }
 0x65e   :  { %2377 = vmatpush1.msra.mxu0 %v7529_v35  ;;  %2448 = vmatpush1.msra.mxu1 %v7532_v8  ;;  %10218 = vst [vmem:[#allocation182_spill] sm:$0xff] %v7541_v59  ;;  %10219 = vst [vmem:[#allocation183_spill] sm:$0xff] %v7544_v9  ;;  %v7547_v35 = vld [vmem:[#allocation2 + $0x88] sm:$0xff]  ;;  %v7550_v8 = vld [vmem:[#allocation2 + $0x98] sm:$0xff] }
 0x65f   :  { %2378 = vmatprep.subr.mxu0 %v7535_v6  ;;  %2449 = vmatprep.subr.mxu1 %v7538_v11  ;;  %10220 = vst [vmem:[#allocation184_spill] sm:$0xff] %v7547_v35  ;;  %10221 = vst [vmem:[#allocation185_spill] sm:$0xff] %v7550_v8  ;;  %v7553_v6 = vld [vmem:[#allocation2 + $0x80] sm:$0xff]  ;;  %v7556_v11 = vld [vmem:[#allocation2 + $0x90] sm:$0xff] }
 0x660   :  { %2379 = vmatpush1.msra.mxu0 %v7541_v59  ;;  %2450 = vmatpush1.msra.mxu1 %v7544_v9  ;;  %10222 = vst [vmem:[#allocation186_spill] sm:$0xff] %v7553_v6  ;;  %10223 = vst [vmem:[#allocation187_spill] sm:$0xff] %v7556_v11  ;;  %v7559_v59 = vld [vmem:[#allocation2 + $0x48] sm:$0xff]  ;;  %v7562_v9 = vld [vmem:[#allocation2 + $0x58] sm:$0xff] }
 0x661   :  { %2380 = vmatprep.subr.mxu0 %v7547_v35  ;;  %2451 = vmatprep.subr.mxu1 %v7550_v8  ;;  %10224 = vst [vmem:[#allocation188_spill] sm:$0xff] %v7559_v59  ;;  %10225 = vst [vmem:[#allocation189_spill] sm:$0xff] %v7562_v9  ;;  %v7565_v35 = vld [vmem:[#allocation2 + $0x40] sm:$0xff]  ;;  %v7568_v8 = vld [vmem:[#allocation2 + $0x50] sm:$0xff] }
 0x662   :  { %2381 = vmatpush1.msra.mxu0 %v7553_v6  ;;  %2452 = vmatpush1.msra.mxu1 %v7556_v11  ;;  %10226 = vst [vmem:[#allocation190_spill] sm:$0xff] %v7565_v35  ;;  %10227 = vst [vmem:[#allocation191_spill] sm:$0xff] %v7568_v8  ;;  %v7571_v6 = vld [vmem:[#allocation2 + $0x8] sm:$0xff]  ;;  %v7574_v11 = vld [vmem:[#allocation2 + $0x18] sm:$0xff] }
 0x663   :  { %2382 = vmatprep.subr.mxu0 %v7559_v59  ;;  %2453 = vmatprep.subr.mxu1 %v7562_v9  ;;  %10228 = vst [vmem:[#allocation192_spill] sm:$0xff] %v7571_v6  ;;  %10229 = vst [vmem:[#allocation193_spill] sm:$0xff] %v7574_v11  ;;  %v7577_v59 = vld [vmem:[#allocation2] sm:$0xff]  ;;  %v7580_v9 = vld [vmem:[#allocation2 + $0x10] sm:$0xff] }
 0x664   :  { %2383 = vmatpush1.msra.mxu0 %v7565_v35  ;;  %2454 = vmatpush1.msra.mxu1 %v7568_v8  ;;  %10230 = vst [vmem:[#allocation194_spill] sm:$0xff] %v7577_v59  ;;  %10231 = vst [vmem:[#allocation195_spill] sm:$0xff] %v7580_v9  ;;  %v7583_v35 = vld [vmem:[#allocation2 + $0x7c8] sm:$0xff]  ;;  %v7586_v8 = vld [vmem:[#allocation2 + $0x7d8] sm:$0xff] }
 0x665   :  { %2384 = vmatprep.subr.mxu0 %v7571_v6  ;;  %2455 = vmatprep.subr.mxu1 %v7574_v11  ;;  %10232 = vst [vmem:[#allocation196_spill] sm:$0xff] %v7583_v35  ;;  %10233 = vst [vmem:[#allocation197_spill] sm:$0xff] %v7586_v8  ;;  %v7589_v6 = vld [vmem:[#allocation2 + $0x7c0] sm:$0xff]  ;;  %v7592_v11 = vld [vmem:[#allocation2 + $0x7d0] sm:$0xff] }
 0x666   :  { %2385 = vmatpush1.msra.mxu0 %v7577_v59  ;;  %2456 = vmatpush1.msra.mxu1 %v7580_v9  ;;  %10234 = vst [vmem:[#allocation198_spill] sm:$0xff] %v7589_v6  ;;  %10235 = vst [vmem:[#allocation199_spill] sm:$0xff] %v7592_v11  ;;  %v7595_v59 = vld [vmem:[#allocation2 + $0x788] sm:$0xff]  ;;  %v7598_v9 = vld [vmem:[#allocation2 + $0x798] sm:$0xff] }
 0x667   :  { %2386 = vmatprep.subr.mxu0 %v7583_v35  ;;  %2457 = vmatprep.subr.mxu1 %v7586_v8  ;;  %10236 = vst [vmem:[#allocation200_spill] sm:$0xff] %v7595_v59  ;;  %10237 = vst [vmem:[#allocation201_spill] sm:$0xff] %v7598_v9  ;;  %v7601_v35 = vld [vmem:[#allocation2 + $0x780] sm:$0xff]  ;;  %v7604_v8 = vld [vmem:[#allocation2 + $0x790] sm:$0xff] }
 0x668   :  { %2387 = vmatpush2.msra.mxu0 %v7589_v6  ;;  %2458 = vmatpush2.msra.mxu1 %v7592_v11  ;;  %10238 = vst [vmem:[#allocation202_spill] sm:$0xff] %v7601_v35  ;;  %10239 = vst [vmem:[#allocation203_spill] sm:$0xff] %v7604_v8  ;;  %v7607_v6 = vld [vmem:[#allocation2 + $0x748] sm:$0xff]  ;;  %v7610_v11 = vld [vmem:[#allocation2 + $0x758] sm:$0xff] }
 0x669   :  { %2388 = vmatprep.subr.mxu0 %v7595_v59  ;;  %2459 = vmatprep.subr.mxu1 %v7598_v9  ;;  %10240 = vst [vmem:[#allocation204_spill] sm:$0xff] %v7607_v6  ;;  %10241 = vst [vmem:[#allocation205_spill] sm:$0xff] %v7610_v11  ;;  %v7613_v59 = vld [vmem:[#allocation2 + $0x740] sm:$0xff]  ;;  %v7616_v9 = vld [vmem:[#allocation2 + $0x750] sm:$0xff] }
 0x66a   :  { %2389 = vmatpush2.msra.mxu0 %v7601_v35  ;;  %2460 = vmatpush2.msra.mxu1 %v7604_v8  ;;  %10242 = vst [vmem:[#allocation206_spill] sm:$0xff] %v7613_v59  ;;  %10243 = vst [vmem:[#allocation207_spill] sm:$0xff] %v7616_v9  ;;  %v7619_v35 = vld [vmem:[#allocation2 + $0x708] sm:$0xff]  ;;  %v7622_v8 = vld [vmem:[#allocation2 + $0x718] sm:$0xff] }
 0x66b   :  { %2390 = vmatprep.subr.mxu0 %v7607_v6  ;;  %2461 = vmatprep.subr.mxu1 %v7610_v11  ;;  %10244 = vst [vmem:[#allocation231_spill] sm:$0xff] %v7619_v35  ;;  %10245 = vst [vmem:[#allocation232_spill] sm:$0xff] %v7622_v8  ;;  %v7625_v6 = vld [vmem:[#allocation2 + $0x700] sm:$0xff]  ;;  %v7628_v11 = vld [vmem:[#allocation2 + $0x710] sm:$0xff] }
 0x66c   :  { %2391 = vmatpush2.msra.mxu0 %v7613_v59  ;;  %2462 = vmatpush2.msra.mxu1 %v7616_v9  ;;  %v7631_v59 = vld [vmem:[#allocation2 + $0x6c8] sm:$0xff]  ;;  %v7634_v9 = vld [vmem:[#allocation2 + $0x6d8] sm:$0xff] }
 0x66d   :  { %2392 = vmatprep.subr.mxu0 %v7619_v35  ;;  %2463 = vmatprep.subr.mxu1 %v7622_v8  ;;  %v7637_v35 = vld [vmem:[#allocation2 + $0x6c0] sm:$0xff]  ;;  %v7640_v8 = vld [vmem:[#allocation2 + $0x6d0] sm:$0xff] }
 0x66e   :  { %2393 = vmatpush2.msra.mxu0 %v7625_v6  ;;  %2464 = vmatpush2.msra.mxu1 %v7628_v11 }
 0x66f   :  { %2394 = vmatprep.subr.mxu0 %v7631_v59  ;;  %2465 = vmatprep.subr.mxu1 %v7634_v9 }
 0x670   :  { %2395 = vmatpush2.msra.mxu0 %v7637_v35  ;;  %2466 = vmatpush2.msra.mxu1 %v7640_v8 }
 0x671   :  { %2396 = vmatprep.subr.mxu0 %v6849_v42  ;;  %2467 = vmatprep.subr.mxu1 %v6852_v47  ;;  %v10246_v42 = vld [vmem:[#allocation13_spill] sm:$0xff]  ;;  %v10247_v47 = vld [vmem:[#allocation14_spill] sm:$0xff] }
 0x672   :  { %2397 = vmatpush2.msra.mxu0 %v6855_v50  ;;  %2468 = vmatpush2.msra.mxu1 %v6858_v60  ;;  %v10248_v50 = vld [vmem:[#allocation15_spill] sm:$0xff]  ;;  %v10249_v60 = vld [vmem:[#allocation16_spill] sm:$0xff] }
 0x673   :  { %2398 = vmatprep.subr.mxu0 %v6861_v16  ;;  %2469 = vmatprep.subr.mxu1 %v6864_v32  ;;  %v10250_v16 = vld [vmem:[#allocation17_spill] sm:$0xff]  ;;  %v10251_v32 = vld [vmem:[#allocation18_spill] sm:$0xff] }
 0x674   :  { %2399 = vmatpush2.msra.mxu0 %v6867_v33  ;;  %2470 = vmatpush2.msra.mxu1 %v6870_v45  ;;  %v10252_v33 = vld [vmem:[#allocation19_spill] sm:$0xff]  ;;  %v10253_v45 = vld [vmem:[#allocation20_spill] sm:$0xff] }
 0x675   :  { %2400 = vmatprep.subr.mxu0 %v6873_v34  ;;  %2471 = vmatprep.subr.mxu1 %v6876_v41  ;;  %v10254_v34 = vld [vmem:[#allocation21_spill] sm:$0xff] }
 0x676   :  { %2401 = vmatpush2.msra.mxu0 %v6879_v43  ;;  %2472 = vmatpush2.msra.mxu1 %v6882_v56  ;;  %v10255_v41 = vld [vmem:[#allocation9_spill] sm:$0xff]  ;;  %v10256_v43 = vld [vmem:[#allocation212_spill] sm:$0xff] }
 0x677   :  { %2402 = vmatprep.subr.mxu0 %v6885_v39  ;;  %2473 = vmatprep.subr.mxu1 %v6888_v46  ;;  %v223_v56 = vadd.f32 %v10256_v43, %v10255_v41  ;;  %v10257_v46 = vld [vmem:[#allocation213_spill] sm:$0xff] }
 0x678   :  { %2403 = vmatpush2.msra.mxu0 %v6891_v37  ;;  %2474 = vmatpush2.msra.mxu1 %v6894_v48  ;;  %v225_v37 = vadd.f32 %v10257_v46, %v4772_v23 }
 0x679   :  { %2404 = vmatprep.subr.mxu0 %v6897_v14  ;;  %2475 = vmatprep.subr.mxu1 %v6900_v21 }
 0x67a   :  { %2405 = vmatpush2.msra.mxu0 %v6903_v27  ;;  %2476 = vmatpush2.msra.mxu1 %v6906_v4 }
 0x67b   :  { %2406 = vmatprep.subr.mxu0 %v6909_v28  ;;  %2477 = vmatprep.subr.mxu1 %v6912_v22 }
 0x67c   :  { %2407 = vmatpush2.msra.mxu0 %v6915_v20  ;;  %2478 = vmatpush2.msra.mxu1 %v6918_v25  ;;  %v10258_v20 = vld [vmem:[#allocation223_spill] sm:$0xff] }
 0x67d   :  { %2408 = vmatprep.subr.mxu0 %v6921_v26  ;;  %2479 = vmatprep.subr.mxu1 %v6924_v62  ;;  %v338_v25 = vadd.f32 %v10258_v20, %v4785_v24 }
 0x67e   :  { %2409 = vmatpush2.msra.mxu0 %v6927_v31  ;;  %2480 = vmatpush2.msra.mxu1 %v6930_v52 }
 0x67f   :  { %2410 = vmatprep.subr.mxu0 %v6933_v44  ;;  %2481 = vmatprep.subr.mxu1 %v6936_v15 }
 0x680   :  { %2411 = vmatpush2.msra.mxu0 %v6939_v53  ;;  %2482 = vmatpush2.msra.mxu1 %v6942_v0 }
 0x681   :  { %2412 = vmatprep.subr.mxu0 %v6945_v19  ;;  %2483 = vmatprep.subr.mxu1 %v6948_v49 }
 0x682   :  { %2413 = vmatpush2.msra.mxu0 %v6951_v7  ;;  %2484 = vmatpush2.msra.mxu1 %v6954_v40 }
 0x683   :  { %2414 = vmatprep.subr.mxu0 %v6957_v30  ;;  %2485 = vmatprep.subr.mxu1 %v10246_v42 }
 0x684   :  { %2415 = vmatpush2.msra.mxu0 %v10247_v47  ;;  %2486 = vmatpush2.msra.mxu1 %v10248_v50 }
 0x685   :  { %2416 = vmatprep.subr.mxu0 %v10249_v60  ;;  %2487 = vmatprep.subr.mxu1 %v10250_v16  ;;  %v10259_v16 = vld [vmem:[#allocation222_spill] sm:$0xff] }
 0x686   :  { %2417 = vmatpush2.msra.mxu0 %v10251_v32  ;;  %2488 = vmatpush2.msra.mxu1 %v10252_v33  ;;  %v336_v32 = vadd.f32 %v10259_v16, %v9434_v63  ;;  %v10279_v16 = vld [vmem:[#allocation37_spill] sm:$0xff] }
 0x687   :  { %2496 = vmatprep.subr.mxu0 %v10253_v45  ;;  %2567 = vmatprep.subr.mxu1 %v10254_v34 }
 0x6c5   :  { %v2080_v39 = vpop.f32.mrf.mxu0  ;;  %v2151_v28 = vpop.f32.mrf.mxu1 }
 0x6c6   :  { %v2298_v48 = vadd.f32 %v2080_v39, %v223_v56  ;;  %v2300_v45 = vadd.f32 %v2151_v28, %v336_v32  ;;  %v10280_v32 = vld [vmem:[#allocation38_spill] sm:$0xff] }
 0x6c7   :  { %v2082_v14 = vpop.f32.mrf.mxu0  ;;  %v2153_v22 = vpop.f32.mrf.mxu1 }
 0x6c8   :  { %v3347_v21 = vmul.f32 -1.442695, %v2298_v48  ;;  %v2299_v27 = vadd.f32 %v2082_v14, %v225_v37  ;;  %v2301_v26 = vadd.f32 %v2153_v22, %v338_v25 }
 0x6ca   :  { %3573 = vpow2.f32 %v3347_v21  ;;  %v3348_v4 = vmul.f32 -1.442695, %v2299_v27 }
 0x6cc   :  { %3575 = vpow2.f32 %v3348_v4 }
 0x6cd   :  { %3577 = vtanh.f32 %v2301_v26 }
 0x6d7   :  { %v3574_v62 = vpop.eup %3573 }
 0x6d8   :  { %v2315_v31 = vadd.f32 1.0, %v3574_v62 }
 0x6d9   :  { %v3576_v52 = vpop.eup %3575 }
 0x6da   :  { %3579 = vrcp.f32 %v2315_v31  ;;  %v2316_v44 = vadd.f32 1.0, %v3576_v52  ;;  %v3578_v15 = vpop.eup %3577 }
 0x6dc   :  { %3581 = vrcp.f32 %v2316_v44 }
 0x6e7   :  { %v3580_v53 = vpop.eup %3579 }
 0x6e8   :  { %v2326_v0 = vmul.f32 %v3580_v53, %v3578_v15 }
 0x6e9   :  { %v3582_v19 = vpop.eup %3581 }
 0x6ea   :  { %v2325_v49 = vmul.f32 %v3582_v19, %v6994_v58  ;;  %v3349_v58 = vmul.f32 -1.442695, %v2300_v45  ;;  %v10282_v45 = vld [vmem:[#allocation40_spill] sm:$0xff] }
 0x6ec   :  { %v7696_v7 = vadd.f32 %v2326_v0, %v2325_v49  ;;  %v10272_v49 = vld [vmem:[#allocation30_spill] sm:$0xff] }
 0x706   :  { %v2222_v40 = vpop.f32.mrf.mxu0  ;;  %v2293_v33 = vpop.f32.mrf.mxu1 }
 0x707   :  { %v2302_v30 = vadd.f32 %v2222_v40, %v5528_v10  ;;  %v2304_v34 = vadd.f32 %v2293_v33, %v5541_v5  ;;  %v10273_v40 = vld [vmem:[#allocation31_spill] sm:$0xff] }
 0x708   :  { %v2224_v42 = vpop.f32.mrf.mxu0  ;;  %v2295_v43 = vpop.f32.mrf.mxu1  ;;  %v10281_v33 = vld [vmem:[#allocation39_spill] sm:$0xff] }
 0x709   :  { %v3350_v47 = vmul.f32 -1.442695, %v2302_v30  ;;  %v2303_v50 = vadd.f32 %v2224_v42, %v5534_v13  ;;  %v3352_v56 = vmul.f32 -1.442695, %v2304_v34  ;;  %v2305_v46 = vadd.f32 %v2295_v43, %v5547_v57  ;;  %v10274_v30 = vld [vmem:[#allocation32_spill] sm:$0xff]  ;;  %v10275_v42 = vld [vmem:[#allocation33_spill] sm:$0xff] }
 0x70a   :  { %v10283_v34 = vld [vmem:[#allocation41_spill] sm:$0xff]  ;;  %v10285_v43 = vld [vmem:[#allocation43_spill] sm:$0xff] }
 0x70b   :  { %3583 = vpow2.f32 %v3350_v47  ;;  %v3351_v60 = vmul.f32 -1.442695, %v2303_v50  ;;  %v10276_v47 = vld [vmem:[#allocation34_spill] sm:$0xff]  ;;  %v10277_v50 = vld [vmem:[#allocation35_spill] sm:$0xff] }
 0x70d   :  { %3585 = vpow2.f32 %v3351_v60  ;;  %v10278_v60 = vld [vmem:[#allocation36_spill] sm:$0xff] }
 0x70e   :  { %3587 = vpow2.f32 %v3349_v58  ;;  %v10284_v58 = vld [vmem:[#allocation42_spill] sm:$0xff] }
 0x70f   :  { %3589 = vpow2.f32 %v3352_v56  ;;  %v10286_v56 = vld [vmem:[#allocation44_spill] sm:$0xff] }
 0x718   :  { %v3584_v39 = vpop.eup %3583 }
 0x719   :  { %v2339_v37 = vadd.f32 1.0, %v3584_v39  ;;  %v10287_v39 = vld [vmem:[#allocation45_spill] sm:$0xff] }
 0x71a   :  { %v3586_v48 = vpop.eup %3585 }
 0x71b   :  { %3591 = vrcp.f32 %v2339_v37  ;;  %v2340_v14 = vadd.f32 1.0, %v3586_v48  ;;  %v3588_v21 = vpop.eup %3587  ;;  %v10289_v37 = vld [vmem:[#allocation47_spill] sm:$0xff]  ;;  %v10290_v48 = vld [vmem:[#allocation48_spill] sm:$0xff] }
 0x71c   :  { %3593 = vtanh.f32 %v2305_v46  ;;  %v3590_v27 = vpop.eup %3589  ;;  %v2317_v62 = vadd.f32 1.0, %v3588_v21  ;;  %v10288_v46 = vld [vmem:[#allocation46_spill] sm:$0xff] }
 0x71d   :  { %3595 = vrcp.f32 %v2340_v14  ;;  %v2341_v20 = vadd.f32 1.0, %v3590_v27  ;;  %v10291_v14 = vld [vmem:[#allocation49_spill] sm:$0xff]  ;;  %v10292_v21 = vld [vmem:[#allocation50_spill] sm:$0xff]  ;;  %v10293_v27 = vld [vmem:[#allocation51_spill] sm:$0xff] }
 0x71e   :  { %3597 = vtanh.f32 %v7696_v7 }
 0x71f   :  { %3599 = vrcp.f32 %v2341_v20  ;;  %v10297_v20 = vld [vmem:[#allocation55_spill] sm:$0xff] }
 0x728   :  { %v3592_v4 = vpop.eup %3591 }
 0x729   :  { %v3594_v28 = vpop.eup %3593 }
 0x72a   :  { %v3596_v22 = vpop.eup %3595  ;;  %v2350_v26 = vmul.f32 %v3594_v28, %v3592_v4  ;;  %v10294_v4 = vld [vmem:[#allocation52_spill] sm:$0xff]  ;;  %v10295_v28 = vld [vmem:[#allocation53_spill] sm:$0xff] }
 0x72b   :  { %v2349_v25 = vmul.f32 %v3596_v22, %v7004_v38  ;;  %v3598_v52 = vpop.eup %3597  ;;  %v10260_v38 = vld [vmem:[#allocation22_spill] sm:$0xff] }
 0x72c   :  { %v3600_v44 = vpop.eup %3599  ;;  %v10296_v22 = vld [vmem:[#allocation54_spill] sm:$0xff] }
 0x72d   :  { %v7706_v31 = vadd.f32 %v2350_v26, %v2349_v25  ;;  %v10298_v25 = vld [vmem:[#allocation56_spill] sm:$0xff]  ;;  %v10299_v26 = vld [vmem:[#allocation57_spill] sm:$0xff] }
 0x72f   :  { %3601 = vtanh.f32 %v7706_v31 }
 0x730   :  { %3603 = vrcp.f32 %v2317_v62  ;;  %v10300_v62 = vld [vmem:[#allocation58_spill] sm:$0xff] }
 0x73c   :  { %v3602_v15 = vpop.eup %3601 }
 0x73d   :  { %v3604_v53 = vpop.eup %3603  ;;  %v2353_v0 = vmul.f32 %v3602_v15, %v3600_v44  ;;  %v10302_v44 = vld [vmem:[#allocation60_spill] sm:$0xff]  ;;  %v10303_v15 = vld [vmem:[#allocation61_spill] sm:$0xff] }
 0x73e   :  { %v7709_v19 = vmul.f32 %v3604_v53, %v3598_v52  ;;  %v10301_v52 = vld [vmem:[#allocation59_spill] sm:$0xff]  ;;  %v10304_v53 = vld [vmem:[#allocation62_spill] sm:$0xff] }
 0x73f   :  { %2418 = vmatprep.mubr.f32.mxu0 %v2353_v0  ;;  %2489 = vmatprep.mubr.f32.mxu1 %v2353_v0 }
 0x740   :  { %2419 = vmatmul.mubr.f32.vlgmr.msra.gmra.mxu0 %v7709_v19  ;;  %2490 = vmatmul.mubr.f32.vlgmr.msra.gmra.mxu1 %v7709_v19 }
 0x741   :  { %2497 = vmatpush1.msra.mxu0 %v7011_v1  ;;  %2568 = vmatpush1.msra.mxu1 %v7014_v54  ;;  %v10261_v1 = vld [vmem:[#allocation208_spill] sm:$0xff]  ;;  %v10262_v54 = vld [vmem:[#allocation209_spill] sm:$0xff] }
 0x742   :  { %2498 = vmatprep.subr.mxu0 %v7017_v3  ;;  %2560 = vmatprep.mubr.f32.mxu0 %v2353_v0  ;;  %v10263_v3 = vld [vmem:[#allocation216_spill] sm:$0xff] }
 0x743   :  { %2569 = vmatprep.subr.mxu1 %v7020_v51  ;;  %2631 = vmatprep.mubr.f32.mxu1 %v2353_v0  ;;  %v10264_v51 = vld [vmem:[#allocation214_spill] sm:$0xff]  ;;  %v10305_v0 = vld [vmem:[#allocation63_spill] sm:$0xff] }
 0x744   :  { %2499 = vmatpush1.msra.mxu0 %v7023_v18  ;;  %2570 = vmatpush1.msra.mxu1 %v7026_v55  ;;  %v10265_v18 = vld [vmem:[#allocation23_spill] sm:$0xff]  ;;  %v10266_v55 = vld [vmem:[#allocation24_spill] sm:$0xff] }
 0x745   :  { %2500 = vmatprep.subr.mxu0 %v7029_v36  ;;  %2571 = vmatprep.subr.mxu1 %v7032_v29  ;;  %v10267_v36 = vld [vmem:[#allocation25_spill] sm:$0xff]  ;;  %v10268_v29 = vld [vmem:[#allocation26_spill] sm:$0xff] }
 0x746   :  { %2501 = vmatpush1.msra.mxu0 %v7035_v2  ;;  %2572 = vmatpush1.msra.mxu1 %v7038_v17  ;;  %v10269_v2 = vld [vmem:[#allocation27_spill] sm:$0xff]  ;;  %v10270_v17 = vld [vmem:[#allocation28_spill] sm:$0xff] }
 0x747   :  { %2502 = vmatprep.subr.mxu0 %v7041_v61  ;;  %2573 = vmatprep.subr.mxu1 %v10260_v38  ;;  %v10271_v61 = vld [vmem:[#allocation29_spill] sm:$0xff]  ;;  %v10306_v38 = vld [vmem:[#allocation64_spill] sm:$0xff] }
 0x748   :  { %2503 = vmatpush1.msra.mxu0 %v10261_v1  ;;  %2574 = vmatpush1.msra.mxu1 %v10262_v54  ;;  %v10307_v1 = vld [vmem:[#allocation65_spill] sm:$0xff]  ;;  %v10308_v54 = vld [vmem:[#allocation66_spill] sm:$0xff] }
 0x749   :  { %2504 = vmatprep.subr.mxu0 %v10263_v3  ;;  %2575 = vmatprep.subr.mxu1 %v10264_v51  ;;  %v10309_v3 = vld [vmem:[#allocation67_spill] sm:$0xff]  ;;  %v10310_v51 = vld [vmem:[#allocation68_spill] sm:$0xff] }
 0x74a   :  { %2505 = vmatpush1.msra.mxu0 %v10265_v18  ;;  %2576 = vmatpush1.msra.mxu1 %v10266_v55  ;;  %v10311_v18 = vld [vmem:[#allocation69_spill] sm:$0xff]  ;;  %v10312_v55 = vld [vmem:[#allocation70_spill] sm:$0xff] }
 0x74b   :  { %2506 = vmatprep.subr.mxu0 %v10267_v36  ;;  %2577 = vmatprep.subr.mxu1 %v10268_v29  ;;  %v10313_v36 = vld [vmem:[#allocation71_spill] sm:$0xff]  ;;  %v10314_v29 = vld [vmem:[#allocation72_spill] sm:$0xff] }
 0x74c   :  { %2507 = vmatpush1.msra.mxu0 %v10269_v2  ;;  %2578 = vmatpush1.msra.mxu1 %v10270_v17  ;;  %v10315_v2 = vld [vmem:[#allocation73_spill] sm:$0xff]  ;;  %v10316_v17 = vld [vmem:[#allocation74_spill] sm:$0xff] }
 0x74d   :  { %2508 = vmatprep.subr.mxu0 %v10271_v61  ;;  %2579 = vmatprep.subr.mxu1 %v10272_v49  ;;  %v10317_v61 = vld [vmem:[#allocation75_spill] sm:$0xff]  ;;  %v10318_v49 = vld [vmem:[#allocation76_spill] sm:$0xff] }
 0x74e   :  { %2509 = vmatpush1.msra.mxu0 %v10273_v40  ;;  %2580 = vmatpush1.msra.mxu1 %v10274_v30  ;;  %v10319_v40 = vld [vmem:[#allocation77_spill] sm:$0xff]  ;;  %v10320_v30 = vld [vmem:[#allocation78_spill] sm:$0xff] }
 0x74f   :  { %2510 = vmatprep.subr.mxu0 %v10275_v42  ;;  %2581 = vmatprep.subr.mxu1 %v10276_v47  ;;  %v10321_v42 = vld [vmem:[#allocation79_spill] sm:$0xff]  ;;  %v10322_v47 = vld [vmem:[#allocation80_spill] sm:$0xff] }
 0x750   :  { %2511 = vmatpush1.msra.mxu0 %v10277_v50  ;;  %2582 = vmatpush1.msra.mxu1 %v10278_v60  ;;  %v10323_v50 = vld [vmem:[#allocation81_spill] sm:$0xff]  ;;  %v10324_v60 = vld [vmem:[#allocation82_spill] sm:$0xff] }
 0x751   :  { %2512 = vmatprep.subr.mxu0 %v10279_v16  ;;  %2583 = vmatprep.subr.mxu1 %v10280_v32  ;;  %v10325_v16 = vld [vmem:[#allocation83_spill] sm:$0xff]  ;;  %v10326_v32 = vld [vmem:[#allocation84_spill] sm:$0xff] }
 0x752   :  { %2513 = vmatpush1.msra.mxu0 %v10281_v33  ;;  %2584 = vmatpush1.msra.mxu1 %v10282_v45  ;;  %v10327_v33 = vld [vmem:[#allocation85_spill] sm:$0xff]  ;;  %v10328_v45 = vld [vmem:[#allocation86_spill] sm:$0xff] }
 0x753   :  { %2514 = vmatprep.subr.mxu0 %v10283_v34  ;;  %2585 = vmatprep.subr.mxu1 %v10284_v58  ;;  %v10329_v34 = vld [vmem:[#allocation87_spill] sm:$0xff]  ;;  %v10330_v58 = vld [vmem:[#allocation88_spill] sm:$0xff] }
 0x754   :  { %2515 = vmatpush1.msra.mxu0 %v10285_v43  ;;  %2586 = vmatpush1.msra.mxu1 %v10286_v56  ;;  %v10331_v43 = vld [vmem:[#allocation89_spill] sm:$0xff]  ;;  %v10332_v56 = vld [vmem:[#allocation90_spill] sm:$0xff] }
 0x755   :  { %2516 = vmatprep.subr.mxu0 %v10287_v39  ;;  %2587 = vmatprep.subr.mxu1 %v10288_v46  ;;  %v10333_v39 = vld [vmem:[#allocation91_spill] sm:$0xff]  ;;  %v10334_v46 = vld [vmem:[#allocation92_spill] sm:$0xff] }
 0x756   :  { %2517 = vmatpush1.msra.mxu0 %v10289_v37  ;;  %2588 = vmatpush1.msra.mxu1 %v10290_v48  ;;  %v10335_v37 = vld [vmem:[#allocation93_spill] sm:$0xff]  ;;  %v10336_v48 = vld [vmem:[#allocation94_spill] sm:$0xff] }
 0x757   :  { %2518 = vmatprep.subr.mxu0 %v10291_v14  ;;  %2589 = vmatprep.subr.mxu1 %v10292_v21  ;;  %v10337_v14 = vld [vmem:[#allocation95_spill] sm:$0xff]  ;;  %v10338_v21 = vld [vmem:[#allocation96_spill] sm:$0xff] }
 0x758   :  { %2519 = vmatpush1.msra.mxu0 %v10293_v27  ;;  %2590 = vmatpush1.msra.mxu1 %v10294_v4  ;;  %v10339_v27 = vld [vmem:[#allocation97_spill] sm:$0xff]  ;;  %v10340_v4 = vld [vmem:[#allocation98_spill] sm:$0xff] }
 0x759   :  { %2520 = vmatprep.subr.mxu0 %v10295_v28  ;;  %2591 = vmatprep.subr.mxu1 %v10296_v22  ;;  %v10341_v28 = vld [vmem:[#allocation99_spill] sm:$0xff]  ;;  %v10342_v22 = vld [vmem:[#allocation100_spill] sm:$0xff] }
 0x75a   :  { %2521 = vmatpush1.msra.mxu0 %v10297_v20  ;;  %2592 = vmatpush1.msra.mxu1 %v10298_v25  ;;  %v10343_v20 = vld [vmem:[#allocation101_spill] sm:$0xff]  ;;  %v10344_v25 = vld [vmem:[#allocation102_spill] sm:$0xff] }
 0x75b   :  { %2522 = vmatprep.subr.mxu0 %v10299_v26  ;;  %2593 = vmatprep.subr.mxu1 %v10300_v62  ;;  %v10345_v26 = vld [vmem:[#allocation103_spill] sm:$0xff]  ;;  %v10346_v62 = vld [vmem:[#allocation104_spill] sm:$0xff] }
 0x75c   :  { %2523 = vmatpush1.msra.mxu0 %v10301_v52  ;;  %2594 = vmatpush1.msra.mxu1 %v10302_v44  ;;  %v10347_v52 = vld [vmem:[#allocation105_spill] sm:$0xff]  ;;  %v10348_v44 = vld [vmem:[#allocation106_spill] sm:$0xff] }
 0x75d   :  { %2524 = vmatprep.subr.mxu0 %v10303_v15  ;;  %2595 = vmatprep.subr.mxu1 %v10304_v53  ;;  %v10349_v15 = vld [vmem:[#allocation107_spill] sm:$0xff]  ;;  %v10350_v53 = vld [vmem:[#allocation108_spill] sm:$0xff] }
 0x75e   :  { %2525 = vmatpush1.msra.mxu0 %v10305_v0  ;;  %2596 = vmatpush1.msra.mxu1 %v10306_v38  ;;  %v10351_v0 = vld [vmem:[#allocation109_spill] sm:$0xff]  ;;  %v10352_v38 = vld [vmem:[#allocation110_spill] sm:$0xff] }
 0x75f   :  { %2526 = vmatprep.subr.mxu0 %v10307_v1  ;;  %2597 = vmatprep.subr.mxu1 %v10308_v54  ;;  %v10353_v1 = vld [vmem:[#allocation111_spill] sm:$0xff]  ;;  %v10354_v54 = vld [vmem:[#allocation112_spill] sm:$0xff] }
 0x760   :  { %2527 = vmatpush1.msra.mxu0 %v10309_v3  ;;  %2598 = vmatpush1.msra.mxu1 %v10310_v51  ;;  %v10355_v3 = vld [vmem:[#allocation113_spill] sm:$0xff]  ;;  %v10356_v51 = vld [vmem:[#allocation114_spill] sm:$0xff] }
 0x761   :  { %2528 = vmatprep.subr.mxu0 %v10311_v18  ;;  %2599 = vmatprep.subr.mxu1 %v10312_v55  ;;  %v10357_v18 = vld [vmem:[#allocation115_spill] sm:$0xff]  ;;  %v10358_v55 = vld [vmem:[#allocation116_spill] sm:$0xff] }
 0x762   :  { %2529 = vmatpush2.msra.mxu0 %v10313_v36  ;;  %2600 = vmatpush2.msra.mxu1 %v10314_v29  ;;  %v10359_v36 = vld [vmem:[#allocation117_spill] sm:$0xff]  ;;  %v10360_v29 = vld [vmem:[#allocation118_spill] sm:$0xff] }
 0x763   :  { %2530 = vmatprep.subr.mxu0 %v10315_v2  ;;  %2601 = vmatprep.subr.mxu1 %v10316_v17  ;;  %v10361_v2 = vld [vmem:[#allocation119_spill] sm:$0xff]  ;;  %v10362_v17 = vld [vmem:[#allocation120_spill] sm:$0xff] }
 0x764   :  { %2531 = vmatpush2.msra.mxu0 %v10317_v61  ;;  %2602 = vmatpush2.msra.mxu1 %v10318_v49  ;;  %v10363_v61 = vld [vmem:[#allocation121_spill] sm:$0xff]  ;;  %v10364_v49 = vld [vmem:[#allocation122_spill] sm:$0xff] }
 0x765   :  { %2532 = vmatprep.subr.mxu0 %v10319_v40  ;;  %2603 = vmatprep.subr.mxu1 %v10320_v30  ;;  %v10365_v40 = vld [vmem:[#allocation123_spill] sm:$0xff]  ;;  %v10366_v30 = vld [vmem:[#allocation124_spill] sm:$0xff] }
 0x766   :  { %2533 = vmatpush2.msra.mxu0 %v10321_v42  ;;  %2604 = vmatpush2.msra.mxu1 %v10322_v47  ;;  %v10367_v42 = vld [vmem:[#allocation125_spill] sm:$0xff]  ;;  %v10368_v47 = vld [vmem:[#allocation126_spill] sm:$0xff] }
 0x767   :  { %2534 = vmatprep.subr.mxu0 %v10323_v50  ;;  %2605 = vmatprep.subr.mxu1 %v10324_v60  ;;  %v10369_v50 = vld [vmem:[#allocation127_spill] sm:$0xff]  ;;  %v10370_v60 = vld [vmem:[#allocation128_spill] sm:$0xff] }
 0x768   :  { %2535 = vmatpush2.msra.mxu0 %v10325_v16  ;;  %2606 = vmatpush2.msra.mxu1 %v10326_v32  ;;  %v10371_v16 = vld [vmem:[#allocation129_spill] sm:$0xff]  ;;  %v10372_v32 = vld [vmem:[#allocation130_spill] sm:$0xff] }
 0x769   :  { %2536 = vmatprep.subr.mxu0 %v10327_v33  ;;  %2607 = vmatprep.subr.mxu1 %v10328_v45  ;;  %v10373_v33 = vld [vmem:[#allocation131_spill] sm:$0xff]  ;;  %v10374_v45 = vld [vmem:[#allocation132_spill] sm:$0xff] }
 0x76a   :  { %2537 = vmatpush2.msra.mxu0 %v10329_v34  ;;  %2608 = vmatpush2.msra.mxu1 %v10330_v58  ;;  %v10375_v34 = vld [vmem:[#allocation133_spill] sm:$0xff]  ;;  %v10376_v58 = vld [vmem:[#allocation134_spill] sm:$0xff] }
 0x76b   :  { %2538 = vmatprep.subr.mxu0 %v10331_v43  ;;  %2609 = vmatprep.subr.mxu1 %v10332_v56  ;;  %v10378_v43 = vld [vmem:[#allocation136_spill] sm:$0xff]  ;;  %v10379_v56 = vld [vmem:[#allocation137_spill] sm:$0xff] }
 0x76c   :  { %2539 = vmatpush2.msra.mxu0 %v10333_v39  ;;  %2610 = vmatpush2.msra.mxu1 %v10334_v46  ;;  %v10380_v39 = vld [vmem:[#allocation138_spill] sm:$0xff]  ;;  %v10381_v46 = vld [vmem:[#allocation139_spill] sm:$0xff] }
 0x76d   :  { %2540 = vmatprep.subr.mxu0 %v10335_v37  ;;  %2611 = vmatprep.subr.mxu1 %v10336_v48  ;;  %v10382_v37 = vld [vmem:[#allocation140_spill] sm:$0xff]  ;;  %v10383_v48 = vld [vmem:[#allocation141_spill] sm:$0xff] }
 0x76e   :  { %2541 = vmatpush2.msra.mxu0 %v10337_v14  ;;  %2612 = vmatpush2.msra.mxu1 %v10338_v21  ;;  %v10385_v14 = vld [vmem:[#allocation143_spill] sm:$0xff]  ;;  %v10386_v21 = vld [vmem:[#allocation144_spill] sm:$0xff] }
 0x76f   :  { %2542 = vmatprep.subr.mxu0 %v10339_v27  ;;  %2613 = vmatprep.subr.mxu1 %v10340_v4  ;;  %v10387_v27 = vld [vmem:[#allocation145_spill] sm:$0xff]  ;;  %v10388_v4 = vld [vmem:[#allocation146_spill] sm:$0xff] }
 0x770   :  { %2543 = vmatpush2.msra.mxu0 %v10341_v28  ;;  %2614 = vmatpush2.msra.mxu1 %v10342_v22  ;;  %v10389_v28 = vld [vmem:[#allocation147_spill] sm:$0xff]  ;;  %v10390_v22 = vld [vmem:[#allocation148_spill] sm:$0xff] }
 0x771   :  { %2544 = vmatprep.subr.mxu0 %v10343_v20  ;;  %2615 = vmatprep.subr.mxu1 %v10344_v25  ;;  %v10391_v20 = vld [vmem:[#allocation149_spill] sm:$0xff]  ;;  %v10392_v25 = vld [vmem:[#allocation150_spill] sm:$0xff] }
 0x772   :  { %2545 = vmatpush2.msra.mxu0 %v10345_v26  ;;  %2616 = vmatpush2.msra.mxu1 %v10346_v62  ;;  %v10393_v26 = vld [vmem:[#allocation151_spill] sm:$0xff]  ;;  %v10394_v62 = vld [vmem:[#allocation152_spill] sm:$0xff] }
 0x773   :  { %2546 = vmatprep.subr.mxu0 %v10347_v52  ;;  %2617 = vmatprep.subr.mxu1 %v10348_v44  ;;  %v10395_v52 = vld [vmem:[#allocation153_spill] sm:$0xff]  ;;  %v10396_v44 = vld [vmem:[#allocation154_spill] sm:$0xff] }
 0x774   :  { %2547 = vmatpush2.msra.mxu0 %v10349_v15  ;;  %2618 = vmatpush2.msra.mxu1 %v10350_v53  ;;  %v10397_v15 = vld [vmem:[#allocation155_spill] sm:$0xff]  ;;  %v10398_v53 = vld [vmem:[#allocation156_spill] sm:$0xff] }
 0x775   :  { %2548 = vmatprep.subr.mxu0 %v10351_v0  ;;  %2619 = vmatprep.subr.mxu1 %v10352_v38  ;;  %v10399_v0 = vld [vmem:[#allocation157_spill] sm:$0xff]  ;;  %v10400_v38 = vld [vmem:[#allocation158_spill] sm:$0xff] }
 0x776   :  { %2549 = vmatpush2.msra.mxu0 %v10353_v1  ;;  %2620 = vmatpush2.msra.mxu1 %v10354_v54  ;;  %v10401_v1 = vld [vmem:[#allocation159_spill] sm:$0xff]  ;;  %v10402_v54 = vld [vmem:[#allocation160_spill] sm:$0xff] }
 0x777   :  { %2550 = vmatprep.subr.mxu0 %v10355_v3  ;;  %2621 = vmatprep.subr.mxu1 %v10356_v51  ;;  %v10403_v3 = vld [vmem:[#allocation161_spill] sm:$0xff]  ;;  %v10404_v51 = vld [vmem:[#allocation162_spill] sm:$0xff] }
 0x778   :  { %2551 = vmatpush2.msra.mxu0 %v10357_v18  ;;  %2622 = vmatpush2.msra.mxu1 %v10358_v55  ;;  %v10405_v18 = vld [vmem:[#allocation163_spill] sm:$0xff]  ;;  %v10406_v55 = vld [vmem:[#allocation164_spill] sm:$0xff] }
 0x779   :  { %2552 = vmatprep.subr.mxu0 %v10359_v36  ;;  %2623 = vmatprep.subr.mxu1 %v10360_v29  ;;  %v10407_v36 = vld [vmem:[#allocation165_spill] sm:$0xff]  ;;  %v10408_v29 = vld [vmem:[#allocation166_spill] sm:$0xff] }
 0x77a   :  { %2553 = vmatpush2.msra.mxu0 %v10361_v2  ;;  %2624 = vmatpush2.msra.mxu1 %v10362_v17  ;;  %v10409_v2 = vld [vmem:[#allocation167_spill] sm:$0xff]  ;;  %v10410_v17 = vld [vmem:[#allocation168_spill] sm:$0xff] }
 0x77b   :  { %2554 = vmatprep.subr.mxu0 %v10363_v61  ;;  %2625 = vmatprep.subr.mxu1 %v10364_v49  ;;  %v10411_v61 = vld [vmem:[#allocation169_spill] sm:$0xff]  ;;  %v10412_v49 = vld [vmem:[#allocation170_spill] sm:$0xff] }
 0x77c   :  { %2555 = vmatpush2.msra.mxu0 %v10365_v40  ;;  %2626 = vmatpush2.msra.mxu1 %v10366_v30  ;;  %v10413_v40 = vld [vmem:[#allocation171_spill] sm:$0xff]  ;;  %v10414_v30 = vld [vmem:[#allocation172_spill] sm:$0xff] }
 0x77d   :  { %2556 = vmatprep.subr.mxu0 %v10367_v42  ;;  %2627 = vmatprep.subr.mxu1 %v10368_v47  ;;  %v10415_v42 = vld [vmem:[#allocation173_spill] sm:$0xff]  ;;  %v10416_v47 = vld [vmem:[#allocation174_spill] sm:$0xff] }
 0x77e   :  { %2557 = vmatpush2.msra.mxu0 %v7371_v12  ;;  %2628 = vmatpush2.msra.mxu1 %v10369_v50  ;;  %v10377_v12 = vld [vmem:[#allocation135_spill] sm:$0xff] }
 0x77f   :  { %2558 = vmatprep.subr.mxu0 %v10370_v60  ;;  %2629 = vmatprep.subr.mxu1 %v10371_v16  ;;  %v10417_v50 = vld [vmem:[#allocation175_spill] sm:$0xff]  ;;  %v10418_v60 = vld [vmem:[#allocation176_spill] sm:$0xff]  ;;  %v10419_v16 = vld [vmem:[#allocation177_spill] sm:$0xff] }
 0x780   :  { %2559 = vmatpush2.msra.mxu0 %v10372_v32  ;;  %2630 = vmatpush2.msra.mxu1 %v10373_v33  ;;  %v10420_v32 = vld [vmem:[#allocation178_spill] sm:$0xff]  ;;  %v10421_v33 = vld [vmem:[#allocation179_spill] sm:$0xff] }
 0x781   :  { %2561 = vmatmul.mubr.f32.vlgmr.msra.gmra.mxu0 %v7709_v19  ;;  %2632 = vmatmul.mubr.f32.vlgmr.msra.gmra.mxu1 %v7709_v19  ;;  %v10384_v19 = vld [vmem:[#allocation142_spill] sm:$0xff] }
 0x782   :  { %2694 = vmatprep.subr.mxu0 %v10374_v45  ;;  %2765 = vmatprep.subr.mxu1 %v10375_v34  ;;  %v10422_v45 = vld [vmem:[#allocation180_spill] sm:$0xff]  ;;  %v10423_v34 = vld [vmem:[#allocation181_spill] sm:$0xff] }
 0x783   :  { %2695 = vmatpush1.msra.mxu0 %v10376_v58  ;;  %2766 = vmatpush1.msra.mxu1 %v10377_v12  ;;  %v10424_v58 = vld [vmem:[#allocation182_spill] sm:$0xff]  ;;  %v10425_v12 = vld [vmem:[#allocation183_spill] sm:$0xff] }
 0x784   :  { %2696 = vmatprep.subr.mxu0 %v10378_v43  ;;  %2767 = vmatprep.subr.mxu1 %v10379_v56  ;;  %v10426_v43 = vld [vmem:[#allocation184_spill] sm:$0xff]  ;;  %v10427_v56 = vld [vmem:[#allocation185_spill] sm:$0xff] }
 0x785   :  { %2697 = vmatpush1.msra.mxu0 %v10380_v39  ;;  %2768 = vmatpush1.msra.mxu1 %v10381_v46  ;;  %v10428_v39 = vld [vmem:[#allocation186_spill] sm:$0xff]  ;;  %v10429_v46 = vld [vmem:[#allocation187_spill] sm:$0xff] }
 0x786   :  { %2698 = vmatprep.subr.mxu0 %v10382_v37  ;;  %2769 = vmatprep.subr.mxu1 %v10383_v48  ;;  %v10430_v37 = vld [vmem:[#allocation188_spill] sm:$0xff]  ;;  %v10431_v48 = vld [vmem:[#allocation189_spill] sm:$0xff] }
 0x787   :  { %2699 = vmatpush1.msra.mxu0 %v10384_v19  ;;  %2770 = vmatpush1.msra.mxu1 %v10385_v14  ;;  %v10432_v19 = vld [vmem:[#allocation190_spill] sm:$0xff]  ;;  %v10433_v14 = vld [vmem:[#allocation191_spill] sm:$0xff] }
 0x788   :  { %2700 = vmatprep.subr.mxu0 %v10386_v21  ;;  %2771 = vmatprep.subr.mxu1 %v10387_v27  ;;  %v10434_v21 = vld [vmem:[#allocation192_spill] sm:$0xff]  ;;  %v10435_v27 = vld [vmem:[#allocation193_spill] sm:$0xff] }
 0x789   :  { %2701 = vmatpush1.msra.mxu0 %v10388_v4  ;;  %2772 = vmatpush1.msra.mxu1 %v10389_v28  ;;  %v10436_v4 = vld [vmem:[#allocation194_spill] sm:$0xff]  ;;  %v10437_v28 = vld [vmem:[#allocation195_spill] sm:$0xff] }
 0x78a   :  { %2702 = vmatprep.subr.mxu0 %v10390_v22  ;;  %2773 = vmatprep.subr.mxu1 %v10391_v20  ;;  %v10438_v22 = vld [vmem:[#allocation196_spill] sm:$0xff]  ;;  %v10439_v20 = vld [vmem:[#allocation197_spill] sm:$0xff] }
 0x78b   :  { %2703 = vmatpush1.msra.mxu0 %v10392_v25  ;;  %2774 = vmatpush1.msra.mxu1 %v10393_v26  ;;  %v10440_v25 = vld [vmem:[#allocation198_spill] sm:$0xff]  ;;  %v10441_v26 = vld [vmem:[#allocation199_spill] sm:$0xff] }
 0x78c   :  { %2704 = vmatprep.subr.mxu0 %v10394_v62  ;;  %2775 = vmatprep.subr.mxu1 %v10395_v52  ;;  %v10442_v62 = vld [vmem:[#allocation200_spill] sm:$0xff]  ;;  %v10443_v52 = vld [vmem:[#allocation201_spill] sm:$0xff] }
 0x78d   :  { %2705 = vmatpush1.msra.mxu0 %v10396_v44  ;;  %2776 = vmatpush1.msra.mxu1 %v10397_v15  ;;  %v10444_v44 = vld [vmem:[#allocation202_spill] sm:$0xff]  ;;  %v10445_v15 = vld [vmem:[#allocation203_spill] sm:$0xff] }
 0x78e   :  { %2706 = vmatprep.subr.mxu0 %v10398_v53  ;;  %2777 = vmatprep.subr.mxu1 %v10399_v0  ;;  %v10446_v53 = vld [vmem:[#allocation204_spill] sm:$0xff]  ;;  %v10447_v0 = vld [vmem:[#allocation205_spill] sm:$0xff] }
 0x78f   :  { %2707 = vmatpush1.msra.mxu0 %v10400_v38  ;;  %2778 = vmatpush1.msra.mxu1 %v10401_v1  ;;  %v10448_v38 = vld [vmem:[#allocation206_spill] sm:$0xff]  ;;  %v10449_v1 = vld [vmem:[#allocation207_spill] sm:$0xff] }
 0x790   :  { %2708 = vmatprep.subr.mxu0 %v10402_v54  ;;  %2779 = vmatprep.subr.mxu1 %v10403_v3  ;;  %v10450_v54 = vld [vmem:[#allocation231_spill] sm:$0xff]  ;;  %v10451_v3 = vld [vmem:[#allocation232_spill] sm:$0xff] }
 0x791   :  { %2709 = vmatpush1.msra.mxu0 %v10404_v51  ;;  %2780 = vmatpush1.msra.mxu1 %v10405_v18  ;;  %v4281_v51 = vld [vmem:[#allocation2 + $0x688] sm:$0xff]  ;;  %v4282_v18 = vld [vmem:[#allocation2 + $0x698] sm:$0xff] }
 0x792   :  { %2710 = vmatprep.subr.mxu0 %v10406_v55  ;;  %2781 = vmatprep.subr.mxu1 %v10407_v36  ;;  %v4283_v55 = vld [vmem:[#allocation2 + $0x680] sm:$0xff]  ;;  %v4284_v36 = vld [vmem:[#allocation2 + $0x690] sm:$0xff] }
 0x793   :  { %2711 = vmatpush1.msra.mxu0 %v10408_v29  ;;  %2782 = vmatpush1.msra.mxu1 %v10409_v2  ;;  %v4285_v29 = vld [vmem:[#allocation2 + $0x648] sm:$0xff]  ;;  %v4292_v2 = vld [vmem:[#allocation2 + $0x610] sm:$0xff] }
 0x794   :  { %2712 = vmatprep.subr.mxu0 %v10410_v17  ;;  %2783 = vmatprep.subr.mxu1 %v10411_v61  ;;  %v4293_v17 = vld [vmem:[#allocation2 + $0x5c8] sm:$0xff]  ;;  %v4294_v61 = vld [vmem:[#allocation2 + $0x5d8] sm:$0xff] }
 0x795   :  { %2713 = vmatpush1.msra.mxu0 %v10412_v49  ;;  %2784 = vmatpush1.msra.mxu1 %v10413_v40  ;;  %v4295_v49 = vld [vmem:[#allocation2 + $0x5c0] sm:$0xff]  ;;  %v4296_v40 = vld [vmem:[#allocation2 + $0x5d0] sm:$0xff] }
 0x796   :  { %2714 = vmatprep.subr.mxu0 %v10414_v30  ;;  %2785 = vmatprep.subr.mxu1 %v10415_v42  ;;  %v4297_v30 = vld [vmem:[#allocation2 + $0x588] sm:$0xff]  ;;  %v4298_v42 = vld [vmem:[#allocation2 + $0x598] sm:$0xff] }
 0x797   :  { %2715 = vmatpush1.msra.mxu0 %v10416_v47  ;;  %2786 = vmatpush1.msra.mxu1 %v10417_v50  ;;  %v4299_v47 = vld [vmem:[#allocation2 + $0x580] sm:$0xff]  ;;  %v4300_v50 = vld [vmem:[#allocation2 + $0x590] sm:$0xff] }
 0x798   :  { %2716 = vmatprep.subr.mxu0 %v10418_v60  ;;  %2787 = vmatprep.subr.mxu1 %v10419_v16  ;;  %v4301_v60 = vld [vmem:[#allocation2 + $0x548] sm:$0xff]  ;;  %v4302_v16 = vld [vmem:[#allocation2 + $0x558] sm:$0xff] }
 0x799   :  { %2717 = vmatpush1.msra.mxu0 %v10420_v32  ;;  %2788 = vmatpush1.msra.mxu1 %v10421_v33  ;;  %v4303_v32 = vld [vmem:[#allocation2 + $0x540] sm:$0xff]  ;;  %v4304_v33 = vld [vmem:[#allocation2 + $0x550] sm:$0xff] }
 0x79a   :  { %2718 = vmatprep.subr.mxu0 %v10422_v45  ;;  %2789 = vmatprep.subr.mxu1 %v10423_v34  ;;  %v4305_v45 = vld [vmem:[#allocation2 + $0x508] sm:$0xff]  ;;  %v4306_v34 = vld [vmem:[#allocation2 + $0x518] sm:$0xff] }
 0x79b   :  { %2719 = vmatpush1.msra.mxu0 %v10424_v58  ;;  %2790 = vmatpush1.msra.mxu1 %v10425_v12  ;;  %v4307_v58 = vld [vmem:[#allocation2 + $0x500] sm:$0xff]  ;;  %v4308_v12 = vld [vmem:[#allocation2 + $0x510] sm:$0xff] }
 0x79c   :  { %2720 = vmatprep.subr.mxu0 %v10426_v43  ;;  %2791 = vmatprep.subr.mxu1 %v10427_v56  ;;  %v4309_v43 = vld [vmem:[#allocation2 + $0x4c8] sm:$0xff]  ;;  %v4310_v56 = vld [vmem:[#allocation2 + $0x4d8] sm:$0xff] }
 0x79d   :  { %2721 = vmatpush1.msra.mxu0 %v10428_v39  ;;  %2792 = vmatpush1.msra.mxu1 %v10429_v46  ;;  %v4311_v39 = vld [vmem:[#allocation2 + $0x4c0] sm:$0xff]  ;;  %v4312_v46 = vld [vmem:[#allocation2 + $0x4d0] sm:$0xff] }
 0x79e   :  { %2722 = vmatprep.subr.mxu0 %v10430_v37  ;;  %2793 = vmatprep.subr.mxu1 %v10431_v48  ;;  %v4313_v37 = vld [vmem:[#allocation2 + $0x488] sm:$0xff]  ;;  %v4314_v48 = vld [vmem:[#allocation2 + $0x498] sm:$0xff] }
 0x79f   :  { %2723 = vmatpush1.msra.mxu0 %v10432_v19  ;;  %2794 = vmatpush1.msra.mxu1 %v10433_v14  ;;  %v4315_v19 = vld [vmem:[#allocation2 + $0x480] sm:$0xff]  ;;  %v4316_v14 = vld [vmem:[#allocation2 + $0x490] sm:$0xff] }
 0x7a0   :  { %2724 = vmatprep.subr.mxu0 %v10434_v21  ;;  %2795 = vmatprep.subr.mxu1 %v10435_v27  ;;  %v4317_v21 = vld [vmem:[#allocation2 + $0x448] sm:$0xff]  ;;  %v4318_v27 = vld [vmem:[#allocation2 + $0x458] sm:$0xff] }
 0x7a1   :  { %2725 = vmatpush1.msra.mxu0 %v10436_v4  ;;  %2796 = vmatpush1.msra.mxu1 %v10437_v28  ;;  %v4319_v4 = vld [vmem:[#allocation2 + $0x440] sm:$0xff]  ;;  %v4320_v28 = vld [vmem:[#allocation2 + $0x450] sm:$0xff] }
 0x7a2   :  { %2726 = vmatprep.subr.mxu0 %v10438_v22  ;;  %2797 = vmatprep.subr.mxu1 %v10439_v20  ;;  %v4321_v22 = vld [vmem:[#allocation2 + $0x408] sm:$0xff]  ;;  %v4322_v20 = vld [vmem:[#allocation2 + $0x418] sm:$0xff] }
 0x7a3   :  { %2727 = vmatpush2.msra.mxu0 %v10440_v25  ;;  %2798 = vmatpush2.msra.mxu1 %v10441_v26  ;;  %v4323_v25 = vld [vmem:[#allocation2 + $0x400] sm:$0xff]  ;;  %v4324_v26 = vld [vmem:[#allocation2 + $0x410] sm:$0xff] }
 0x7a4   :  { %2728 = vmatprep.subr.mxu0 %v10442_v62  ;;  %2799 = vmatprep.subr.mxu1 %v10443_v52  ;;  %v7925_v62 = vld [vmem:[#allocation2 + $0x3e8] sm:$0xff]  ;;  %v7928_v52 = vld [vmem:[#allocation2 + $0x3f8] sm:$0xff] }
 0x7a5   :  { %2729 = vmatpush2.msra.mxu0 %v10444_v44  ;;  %2800 = vmatpush2.msra.mxu1 %v10445_v15  ;;  %v10452_v44 = vld [vmem:[#allocation215_spill] sm:$0xff] }
 0x7a6   :  { %2730 = vmatprep.subr.mxu0 %v10446_v53  ;;  %2801 = vmatprep.subr.mxu1 %v10447_v0  ;;  %v229_v15 = vadd.f32 %v10452_v44, %v10255_v41  ;;  %v10453_v0 = vld [vmem:[#allocation217_spill] sm:$0xff]  ;;  %v8135_v41 = vld [vmem:[#allocation2 + $0x20] sm:$0xff] }
 0x7a7   :  { %2731 = vmatpush2.msra.mxu0 %v10448_v38  ;;  %2802 = vmatpush2.msra.mxu1 %v10449_v1  ;;  %v231_v38 = vadd.f32 %v10453_v0, %v4772_v23  ;;  %v8132_v23 = vld [vmem:[#allocation2 + $0x38] sm:$0xff]  ;;  %10463 = vst [vmem:[#allocation218_spill] sm:$0xff] %v8135_v41 }
 0x7a8   :  { %2732 = vmatprep.subr.mxu0 %v10450_v54  ;;  %2803 = vmatprep.subr.mxu1 %v10451_v3  ;;  %10462 = vst [vmem:[#allocation220_spill] sm:$0xff] %v8132_v23 }
 0x7a9   :  { %2733 = vmatpush2.msra.mxu0 %v7625_v6  ;;  %2804 = vmatpush2.msra.mxu1 %v7628_v11  ;;  %v4286_v6 = vld [vmem:[#allocation2 + $0x658] sm:$0xff]  ;;  %v4287_v11 = vld [vmem:[#allocation2 + $0x640] sm:$0xff] }
 0x7aa   :  { %2734 = vmatprep.subr.mxu0 %v7631_v59  ;;  %2805 = vmatprep.subr.mxu1 %v7634_v9  ;;  %v4288_v59 = vld [vmem:[#allocation2 + $0x650] sm:$0xff]  ;;  %v4289_v9 = vld [vmem:[#allocation2 + $0x608] sm:$0xff] }
 0x7ab   :  { %2735 = vmatpush2.msra.mxu0 %v7637_v35  ;;  %2806 = vmatpush2.msra.mxu1 %v7640_v8  ;;  %v4290_v35 = vld [vmem:[#allocation2 + $0x618] sm:$0xff]  ;;  %v4291_v8 = vld [vmem:[#allocation2 + $0x600] sm:$0xff] }
 0x7ac   :  { %2736 = vmatprep.subr.mxu0 %v4281_v51  ;;  %2807 = vmatprep.subr.mxu1 %v4282_v18 }
 0x7ad   :  { %2737 = vmatpush2.msra.mxu0 %v4283_v55  ;;  %2808 = vmatpush2.msra.mxu1 %v4284_v36 }
 0x7ae   :  { %2738 = vmatprep.subr.mxu0 %v4285_v29  ;;  %2809 = vmatprep.subr.mxu1 %v4286_v6  ;;  %v10454_v29 = vld [vmem:[#allocation225_spill] sm:$0xff] }
 0x7af   :  { %2739 = vmatpush2.msra.mxu0 %v4287_v11  ;;  %2810 = vmatpush2.msra.mxu1 %v4288_v59  ;;  %v344_v6 = vadd.f32 %v10454_v29, %v4785_v24  ;;  %v7973_v29 = vld [vmem:[#allocation2 + $0x368] sm:$0xff]  ;;  %v8126_v24 = vld [vmem:[#allocation2 + $0x70] sm:$0xff] }
 0x7b0   :  { %2740 = vmatprep.subr.mxu0 %v4289_v9  ;;  %2811 = vmatprep.subr.mxu1 %v4290_v35  ;;  %10460 = vst [vmem:[#allocation210_spill] sm:$0xff] %v8126_v24 }
 0x7b1   :  { %2741 = vmatpush2.msra.mxu0 %v4291_v8  ;;  %2812 = vmatpush2.msra.mxu1 %v4292_v2 }
 0x7b2   :  { %2742 = vmatprep.subr.mxu0 %v4293_v17  ;;  %2813 = vmatprep.subr.mxu1 %v4294_v61 }
 0x7b3   :  { %2743 = vmatpush2.msra.mxu0 %v4295_v49  ;;  %2814 = vmatpush2.msra.mxu1 %v4296_v40 }
 0x7b4   :  { %2744 = vmatprep.subr.mxu0 %v4297_v30  ;;  %2815 = vmatprep.subr.mxu1 %v4298_v42 }
 0x7b5   :  { %2745 = vmatpush2.msra.mxu0 %v4299_v47  ;;  %2816 = vmatpush2.msra.mxu1 %v4300_v50 }
 0x7b6   :  { %2746 = vmatprep.subr.mxu0 %v4301_v60  ;;  %2817 = vmatprep.subr.mxu1 %v4302_v16 }
 0x7b7   :  { %2747 = vmatpush2.msra.mxu0 %v4303_v32  ;;  %2818 = vmatpush2.msra.mxu1 %v4304_v33  ;;  %v10456_v33 = vld [vmem:[#allocation224_spill] sm:$0xff] }
 0x7b8   :  { %2748 = vmatprep.subr.mxu0 %v4305_v45  ;;  %2819 = vmatprep.subr.mxu1 %v4306_v34  ;;  %v342_v45 = vadd.f32 %v10456_v33, %v9434_v63  ;;  %v8027_v33 = vld [vmem:[#allocation2 + $0x260] sm:$0xff]  ;;  %v8129_v63 = vld [vmem:[#allocation2 + $0x28] sm:$0xff] }
 0x7b9   :  { %2749 = vmatpush2.msra.mxu0 %v4307_v58  ;;  %2820 = vmatpush2.msra.mxu1 %v4308_v12  ;;  %10461 = vst [vmem:[#allocation211_spill] sm:$0xff] %v8129_v63 }
 0x7ba   :  { %2750 = vmatprep.subr.mxu0 %v4309_v43  ;;  %2821 = vmatprep.subr.mxu1 %v4310_v56 }
 0x7bb   :  { %2751 = vmatpush2.msra.mxu0 %v4311_v39  ;;  %2822 = vmatpush2.msra.mxu1 %v4312_v46 }
 0x7bc   :  { %2752 = vmatprep.subr.mxu0 %v4313_v37  ;;  %2823 = vmatprep.subr.mxu1 %v4314_v48 }
 0x7bd   :  { %2753 = vmatpush2.msra.mxu0 %v4315_v19  ;;  %2824 = vmatpush2.msra.mxu1 %v4316_v14 }
 0x7be   :  { %2754 = vmatprep.subr.mxu0 %v4317_v21  ;;  %2825 = vmatprep.subr.mxu1 %v4318_v27 }
 0x7bf   :  { %2755 = vmatpush2.msra.mxu0 %v4319_v4  ;;  %2826 = vmatpush2.msra.mxu1 %v4320_v28 }
 0x7c0   :  { %2756 = vmatprep.subr.mxu0 %v4321_v22  ;;  %2827 = vmatprep.subr.mxu1 %v4322_v20 }
 0x7c1   :  { %2757 = vmatpush2.msra.mxu0 %v4323_v25  ;;  %2828 = vmatpush2.msra.mxu1 %v4324_v26 }
 0x7c2   :  { %2836 = vmatprep.subr.mxu0 %v7925_v62  ;;  %2907 = vmatprep.subr.mxu1 %v7928_v52 }
 0x800   :  { %v2420_v53 = vpop.f32.mrf.mxu0  ;;  %v2491_v55 = vpop.f32.mrf.mxu1 }
 0x801   :  { %v2638_v1 = vadd.f32 %v2420_v53, %v229_v15  ;;  %v2640_v58 = vadd.f32 %v2491_v55, %v342_v45  ;;  %v7967_v55 = vld [vmem:[#allocation2 + $0x3a0] sm:$0xff]  ;;  %v8030_v45 = vld [vmem:[#allocation2 + $0x270] sm:$0xff] }
 0x802   :  { %v2422_v54 = vpop.f32.mrf.mxu0  ;;  %v2493_v36 = vpop.f32.mrf.mxu1 }
 0x803   :  { %v3353_v3 = vmul.f32 -1.442695, %v2638_v1  ;;  %v2639_v51 = vadd.f32 %v2422_v54, %v231_v38  ;;  %v2641_v11 = vadd.f32 %v2493_v36, %v344_v6  ;;  %v7970_v36 = vld [vmem:[#allocation2 + $0x3b0] sm:$0xff]  ;;  %v7976_v6 = vld [vmem:[#allocation2 + $0x378] sm:$0xff] }
 0x805   :  { %3605 = vpow2.f32 %v3353_v3  ;;  %v3354_v18 = vmul.f32 -1.442695, %v2639_v51  ;;  %v7958_v3 = vld [vmem:[#allocation2 + $0x3f0] sm:$0xff]  ;;  %v7961_v51 = vld [vmem:[#allocation2 + $0x3a8] sm:$0xff] }
 0x807   :  { %3607 = vpow2.f32 %v3354_v18  ;;  %v7964_v18 = vld [vmem:[#allocation2 + $0x3b8] sm:$0xff] }
 0x808   :  { %3609 = vtanh.f32 %v2641_v11  ;;  %v7979_v11 = vld [vmem:[#allocation2 + $0x360] sm:$0xff] }
 0x812   :  { %v3606_v59 = vpop.eup %3605 }
 0x813   :  { %v2655_v9 = vadd.f32 1.0, %v3606_v59  ;;  %v7982_v59 = vld [vmem:[#allocation2 + $0x370] sm:$0xff] }
 0x814   :  { %v3608_v35 = vpop.eup %3607 }
 0x815   :  { %3611 = vrcp.f32 %v2655_v9  ;;  %v2656_v8 = vadd.f32 1.0, %v3608_v35  ;;  %v3610_v2 = vpop.eup %3609  ;;  %v7985_v9 = vld [vmem:[#allocation2 + $0x328] sm:$0xff]  ;;  %v7988_v35 = vld [vmem:[#allocation2 + $0x338] sm:$0xff] }
 0x817   :  { %3613 = vrcp.f32 %v2656_v8  ;;  %v7991_v8 = vld [vmem:[#allocation2 + $0x320] sm:$0xff] }
 0x822   :  { %v3612_v17 = vpop.eup %3611 }
 0x823   :  { %v2666_v61 = vmul.f32 %v3612_v17, %v3610_v2  ;;  %v7994_v2 = vld [vmem:[#allocation2 + $0x330] sm:$0xff]  ;;  %v7997_v17 = vld [vmem:[#allocation2 + $0x2e8] sm:$0xff] }
 0x824   :  { %v3614_v49 = vpop.eup %3613 }
 0x825   :  { %v2665_v40 = vmul.f32 %v3614_v49, %v7696_v7  ;;  %v3355_v7 = vmul.f32 -1.442695, %v2640_v58  ;;  %v8003_v49 = vld [vmem:[#allocation2 + $0x2e0] sm:$0xff]  ;;  %v8036_v58 = vld [vmem:[#allocation2 + $0x238] sm:$0xff] }
 0x827   :  { %v7938_v30 = vadd.f32 %v2666_v61, %v2665_v40  ;;  %v8000_v61 = vld [vmem:[#allocation2 + $0x2f8] sm:$0xff]  ;;  %v8006_v40 = vld [vmem:[#allocation2 + $0x2f0] sm:$0xff] }
 0x829   :  { %10455 = vst [vmem:[#allocation233_spill] sm:$0xff] %v7938_v30 }
 0x841   :  { %v2562_v42 = vpop.f32.mrf.mxu0  ;;  %v2633_v34 = vpop.f32.mrf.mxu1 }
 0x842   :  { %v2642_v47 = vadd.f32 %v2562_v42, %v5528_v10  ;;  %v2644_v12 = vadd.f32 %v2633_v34, %v5541_v5  ;;  %v8009_v42 = vld [vmem:[#allocation2 + $0x2a8] sm:$0xff]  ;;  %v8114_v5 = vld [vmem:[#allocation2 + $0xb0] sm:$0xff]  ;;  %v8120_v10 = vld [vmem:[#allocation2 + $0x78] sm:$0xff] }
 0x843   :  { %v2564_v50 = vpop.f32.mrf.mxu0  ;;  %v2635_v43 = vpop.f32.mrf.mxu1  ;;  %v8033_v34 = vld [vmem:[#allocation2 + $0x228] sm:$0xff]  ;;  %10458 = vst [vmem:[#allocation235_spill] sm:$0xff] %v8120_v10 }
 0x844   :  { %v3356_v60 = vmul.f32 -1.442695, %v2642_v47  ;;  %v2643_v16 = vadd.f32 %v2564_v50, %v5534_v13  ;;  %v3358_v56 = vmul.f32 -1.442695, %v2644_v12  ;;  %v2645_v46 = vadd.f32 %v2635_v43, %v5547_v57  ;;  %v8012_v47 = vld [vmem:[#allocation2 + $0x2b8] sm:$0xff]  ;;  %v8015_v50 = vld [vmem:[#allocation2 + $0x2a0] sm:$0xff] }
 0x845   :  { %v8039_v12 = vld [vmem:[#allocation2 + $0x220] sm:$0xff]  ;;  %v8045_v43 = vld [vmem:[#allocation2 + $0x1e8] sm:$0xff] }
 0x846   :  { %3615 = vpow2.f32 %v3356_v60  ;;  %v3357_v32 = vmul.f32 -1.442695, %v2643_v16  ;;  %v8018_v60 = vld [vmem:[#allocation2 + $0x2b0] sm:$0xff]  ;;  %v8021_v16 = vld [vmem:[#allocation2 + $0x268] sm:$0xff]  ;;  %v8111_v57 = vld [vmem:[#allocation2 + $0xa0] sm:$0xff] }
 0x847   :  { %v8117_v13 = vld [vmem:[#allocation2 + $0x68] sm:$0xff] }
 0x848   :  { %3617 = vpow2.f32 %v3357_v32  ;;  %v8024_v32 = vld [vmem:[#allocation2 + $0x278] sm:$0xff] }
 0x849   :  { %3619 = vpow2.f32 %v3355_v7  ;;  %v8042_v7 = vld [vmem:[#allocation2 + $0x230] sm:$0xff] }
 0x84a   :  { %3621 = vpow2.f32 %v3358_v56  ;;  %v8048_v56 = vld [vmem:[#allocation2 + $0x1f8] sm:$0xff] }
 0x853   :  { %v3616_v39 = vpop.eup %3615 }
 0x854   :  { %v2679_v37 = vadd.f32 1.0, %v3616_v39  ;;  %v8051_v39 = vld [vmem:[#allocation2 + $0x1e0] sm:$0xff] }
 0x855   :  { %v3618_v48 = vpop.eup %3617 }
 0x856   :  { %3623 = vrcp.f32 %v2679_v37  ;;  %v2680_v19 = vadd.f32 1.0, %v3618_v48  ;;  %v3620_v14 = vpop.eup %3619  ;;  %v8057_v37 = vld [vmem:[#allocation2 + $0x1a8] sm:$0xff]  ;;  %v8060_v48 = vld [vmem:[#allocation2 + $0x1b8] sm:$0xff] }
 0x857   :  { %3625 = vtanh.f32 %v2645_v46  ;;  %v3622_v21 = vpop.eup %3621  ;;  %v2657_v26 = vadd.f32 1.0, %v3620_v14  ;;  %v8054_v46 = vld [vmem:[#allocation2 + $0x1f0] sm:$0xff] }
 0x858   :  { %3627 = vrcp.f32 %v2680_v19  ;;  %v2681_v22 = vadd.f32 1.0, %v3622_v21  ;;  %v8063_v19 = vld [vmem:[#allocation2 + $0x1a0] sm:$0xff]  ;;  %v8066_v14 = vld [vmem:[#allocation2 + $0x1b0] sm:$0xff]  ;;  %v8069_v21 = vld [vmem:[#allocation2 + $0x168] sm:$0xff] }
 0x859   :  { %3629 = vtanh.f32 %v7938_v30  ;;  %v8123_v30 = vld [vmem:[#allocation2 + $0x60] sm:$0xff] }
 0x85a   :  { %3631 = vrcp.f32 %v2681_v22  ;;  %v8081_v22 = vld [vmem:[#allocation2 + $0x128] sm:$0xff]  ;;  %10459 = vst [vmem:[#allocation236_spill] sm:$0xff] %v8123_v30 }
 0x863   :  { %v3624_v27 = vpop.eup %3623 }
 0x864   :  { %v3626_v4 = vpop.eup %3625 }
 0x865   :  { %v3628_v28 = vpop.eup %3627  ;;  %v2690_v25 = vmul.f32 %v3626_v4, %v3624_v27  ;;  %v8072_v27 = vld [vmem:[#allocation2 + $0x178] sm:$0xff]  ;;  %v8075_v4 = vld [vmem:[#allocation2 + $0x160] sm:$0xff] }
 0x866   :  { %v2689_v20 = vmul.f32 %v3628_v28, %v7706_v31  ;;  %v3630_v15 = vpop.eup %3629  ;;  %v7955_v31 = vld [vmem:[#allocation2 + $0x3e0] sm:$0xff]  ;;  %v8078_v28 = vld [vmem:[#allocation2 + $0x170] sm:$0xff] }
 0x867   :  { %v3632_v53 = vpop.eup %3631 }
 0x868   :  { %v7948_v44 = vadd.f32 %v2690_v25, %v2689_v20  ;;  %v8084_v20 = vld [vmem:[#allocation2 + $0x138] sm:$0xff]  ;;  %v8087_v25 = vld [vmem:[#allocation2 + $0x120] sm:$0xff] }
 0x86a   :  { %10457 = vst [vmem:[#allocation234_spill] sm:$0xff] %v7948_v44  ;;  %3633 = vtanh.f32 %v7948_v44  ;;  %v8108_v44 = vld [vmem:[#allocation2 + $0xb8] sm:$0xff] }
 0x86b   :  { %3635 = vrcp.f32 %v2657_v26  ;;  %v8090_v26 = vld [vmem:[#allocation2 + $0x130] sm:$0xff] }
 0x877   :  { %v3634_v0 = vpop.eup %3633 }
 0x878   :  { %v3636_v38 = vpop.eup %3635  ;;  %v2693_v1 = vmul.f32 %v3634_v0, %v3632_v53  ;;  %v8096_v53 = vld [vmem:[#allocation2 + $0xf8] sm:$0xff]  ;;  %v8099_v0 = vld [vmem:[#allocation2 + $0xe0] sm:$0xff] }
 0x879   :  { %v7951_v54 = vmul.f32 %v3636_v38, %v3630_v15  ;;  %v8093_v15 = vld [vmem:[#allocation2 + $0xe8] sm:$0xff]  ;;  %v8102_v38 = vld [vmem:[#allocation2 + $0xf0] sm:$0xff] }
 0x87a   :  { %2758 = vmatprep.mubr.f32.mxu0 %v2693_v1  ;;  %2829 = vmatprep.mubr.f32.mxu1 %v2693_v1 }
 0x87b   :  { %2759 = vmatmul.mubr.f32.vlgmr.msra.gmra.mxu0 %v7951_v54  ;;  %2830 = vmatmul.mubr.f32.vlgmr.msra.gmra.mxu1 %v7951_v54 }
 0x87c   :  { %2837 = vmatpush1.msra.mxu0 %v7955_v31  ;;  %2908 = vmatpush1.msra.mxu1 %v7958_v3 }
 0x87d   :  { %2838 = vmatprep.subr.mxu0 %v7961_v51  ;;  %2900 = vmatprep.mubr.f32.mxu0 %v2693_v1 }
 0x87e   :  { %2909 = vmatprep.subr.mxu1 %v7964_v18  ;;  %2971 = vmatprep.mubr.f32.mxu1 %v2693_v1  ;;  %v8105_v1 = vld [vmem:[#allocation2 + $0xa8] sm:$0xff] }
 0x87f   :  { %2839 = vmatpush1.msra.mxu0 %v7967_v55  ;;  %2910 = vmatpush1.msra.mxu1 %v7970_v36 }
 0x880   :  { %2840 = vmatprep.subr.mxu0 %v7973_v29  ;;  %2911 = vmatprep.subr.mxu1 %v7976_v6 }
 0x881   :  { %2841 = vmatpush1.msra.mxu0 %v7979_v11  ;;  %2912 = vmatpush1.msra.mxu1 %v7982_v59 }
 0x882   :  { %2842 = vmatprep.subr.mxu0 %v7985_v9  ;;  %2913 = vmatprep.subr.mxu1 %v7988_v35 }
 0x883   :  { %2843 = vmatpush1.msra.mxu0 %v7991_v8  ;;  %2914 = vmatpush1.msra.mxu1 %v7994_v2 }
 0x884   :  { %2844 = vmatprep.subr.mxu0 %v7997_v17  ;;  %2915 = vmatprep.subr.mxu1 %v8000_v61 }
 0x885   :  { %2845 = vmatpush1.msra.mxu0 %v8003_v49  ;;  %2916 = vmatpush1.msra.mxu1 %v8006_v40 }
 0x886   :  { %2846 = vmatprep.subr.mxu0 %v8009_v42  ;;  %2917 = vmatprep.subr.mxu1 %v8012_v47 }
 0x887   :  { %2847 = vmatpush1.msra.mxu0 %v8015_v50  ;;  %2918 = vmatpush1.msra.mxu1 %v8018_v60 }
 0x888   :  { %2848 = vmatprep.subr.mxu0 %v8021_v16  ;;  %2919 = vmatprep.subr.mxu1 %v8024_v32 }
 0x889   :  { %2849 = vmatpush1.msra.mxu0 %v8027_v33  ;;  %2920 = vmatpush1.msra.mxu1 %v8030_v45 }
 0x88a   :  { %2850 = vmatprep.subr.mxu0 %v8033_v34  ;;  %2921 = vmatprep.subr.mxu1 %v8036_v58 }
 0x88b   :  { %2851 = vmatpush1.msra.mxu0 %v8039_v12  ;;  %2922 = vmatpush1.msra.mxu1 %v8042_v7 }
 0x88c   :  { %2852 = vmatprep.subr.mxu0 %v8045_v43  ;;  %2923 = vmatprep.subr.mxu1 %v8048_v56 }
 0x88d   :  { %2853 = vmatpush1.msra.mxu0 %v8051_v39  ;;  %2924 = vmatpush1.msra.mxu1 %v8054_v46 }
 0x88e   :  { %2854 = vmatprep.subr.mxu0 %v8057_v37  ;;  %2925 = vmatprep.subr.mxu1 %v8060_v48 }
 0x88f   :  { %2855 = vmatpush1.msra.mxu0 %v8063_v19  ;;  %2926 = vmatpush1.msra.mxu1 %v8066_v14 }
 0x890   :  { %2856 = vmatprep.subr.mxu0 %v8069_v21  ;;  %2927 = vmatprep.subr.mxu1 %v8072_v27 }
 0x891   :  { %2857 = vmatpush1.msra.mxu0 %v8075_v4  ;;  %2928 = vmatpush1.msra.mxu1 %v8078_v28 }
 0x892   :  { %2858 = vmatprep.subr.mxu0 %v8081_v22  ;;  %2929 = vmatprep.subr.mxu1 %v8084_v20 }
 0x893   :  { %2859 = vmatpush1.msra.mxu0 %v8087_v25  ;;  %2930 = vmatpush1.msra.mxu1 %v8090_v26 }
 0x894   :  { %2860 = vmatprep.subr.mxu0 %v8093_v15  ;;  %2931 = vmatprep.subr.mxu1 %v8096_v53 }
 0x895   :  { %2861 = vmatpush1.msra.mxu0 %v8099_v0  ;;  %2932 = vmatpush1.msra.mxu1 %v8102_v38 }
 0x896   :  { %2862 = vmatprep.subr.mxu0 %v8105_v1  ;;  %2933 = vmatprep.subr.mxu1 %v8108_v44 }
 0x897   :  { %2863 = vmatpush1.msra.mxu0 %v8111_v57  ;;  %2934 = vmatpush1.msra.mxu1 %v8114_v5 }
 0x898   :  { %2864 = vmatprep.subr.mxu0 %v8117_v13  ;;  %2935 = vmatprep.subr.mxu1 %v8120_v10  ;;  %v8138_v10 = vld [vmem:[#allocation2 + $0x30] sm:$0xff] }
 0x899   :  { %2865 = vmatpush1.msra.mxu0 %v8123_v30  ;;  %2936 = vmatpush1.msra.mxu1 %v8126_v24  ;;  %10464 = vst [vmem:[#allocation13_spill] sm:$0xff] %v8138_v10  ;;  %v8141_v30 = vld [vmem:[#allocation2 + $0x7e8] sm:$0xff]  ;;  %v8144_v24 = vld [vmem:[#allocation2 + $0x7f8] sm:$0xff] }
 0x89a   :  { %2866 = vmatprep.subr.mxu0 %v8129_v63  ;;  %2937 = vmatprep.subr.mxu1 %v8132_v23  ;;  %10465 = vst [vmem:[#allocation14_spill] sm:$0xff] %v8141_v30  ;;  %10466 = vst [vmem:[#allocation15_spill] sm:$0xff] %v8144_v24  ;;  %v8147_v63 = vld [vmem:[#allocation2 + $0x7e0] sm:$0xff]  ;;  %v8150_v23 = vld [vmem:[#allocation2 + $0x7f0] sm:$0xff] }
 0x89b   :  { %2867 = vmatpush1.msra.mxu0 %v8135_v41  ;;  %2938 = vmatpush1.msra.mxu1 %v8138_v10  ;;  %10467 = vst [vmem:[#allocation16_spill] sm:$0xff] %v8147_v63  ;;  %10468 = vst [vmem:[#allocation17_spill] sm:$0xff] %v8150_v23  ;;  %v8153_v41 = vld [vmem:[#allocation2 + $0x7a8] sm:$0xff]  ;;  %v8156_v10 = vld [vmem:[#allocation2 + $0x7b8] sm:$0xff] }
 0x89c   :  { %2868 = vmatprep.subr.mxu0 %v8141_v30  ;;  %2939 = vmatprep.subr.mxu1 %v8144_v24  ;;  %10469 = vst [vmem:[#allocation18_spill] sm:$0xff] %v8153_v41  ;;  %10470 = vst [vmem:[#allocation19_spill] sm:$0xff] %v8156_v10  ;;  %v8159_v30 = vld [vmem:[#allocation2 + $0x7a0] sm:$0xff]  ;;  %v8162_v24 = vld [vmem:[#allocation2 + $0x7b0] sm:$0xff] }
 0x89d   :  { %2869 = vmatpush2.msra.mxu0 %v8147_v63  ;;  %2940 = vmatpush2.msra.mxu1 %v8150_v23  ;;  %10471 = vst [vmem:[#allocation20_spill] sm:$0xff] %v8159_v30  ;;  %10472 = vst [vmem:[#allocation21_spill] sm:$0xff] %v8162_v24  ;;  %v8165_v63 = vld [vmem:[#allocation2 + $0x768] sm:$0xff]  ;;  %v8168_v23 = vld [vmem:[#allocation2 + $0x778] sm:$0xff] }
 0x89e   :  { %2870 = vmatprep.subr.mxu0 %v8153_v41  ;;  %2941 = vmatprep.subr.mxu1 %v8156_v10  ;;  %10473 = vst [vmem:[#allocation212_spill] sm:$0xff] %v8165_v63  ;;  %10474 = vst [vmem:[#allocation213_spill] sm:$0xff] %v8168_v23  ;;  %v8171_v41 = vld [vmem:[#allocation2 + $0x760] sm:$0xff]  ;;  %v8174_v10 = vld [vmem:[#allocation2 + $0x770] sm:$0xff] }
 0x89f   :  { %2871 = vmatpush2.msra.mxu0 %v8159_v30  ;;  %2942 = vmatpush2.msra.mxu1 %v8162_v24  ;;  %10475 = vst [vmem:[#allocation223_spill] sm:$0xff] %v8171_v41  ;;  %10476 = vst [vmem:[#allocation222_spill] sm:$0xff] %v8174_v10  ;;  %v8177_v30 = vld [vmem:[#allocation2 + $0x728] sm:$0xff]  ;;  %v8180_v24 = vld [vmem:[#allocation2 + $0x738] sm:$0xff] }
 0x8a0   :  { %2872 = vmatprep.subr.mxu0 %v8165_v63  ;;  %2943 = vmatprep.subr.mxu1 %v8168_v23  ;;  %10477 = vst [vmem:[#allocation22_spill] sm:$0xff] %v8177_v30  ;;  %10478 = vst [vmem:[#allocation208_spill] sm:$0xff] %v8180_v24  ;;  %v8183_v63 = vld [vmem:[#allocation2 + $0x720] sm:$0xff]  ;;  %v8186_v23 = vld [vmem:[#allocation2 + $0x730] sm:$0xff] }
 0x8a1   :  { %2873 = vmatpush2.msra.mxu0 %v8171_v41  ;;  %2944 = vmatpush2.msra.mxu1 %v8174_v10  ;;  %10479 = vst [vmem:[#allocation209_spill] sm:$0xff] %v8183_v63  ;;  %10480 = vst [vmem:[#allocation216_spill] sm:$0xff] %v8186_v23  ;;  %v8189_v41 = vld [vmem:[#allocation2 + $0x6e8] sm:$0xff]  ;;  %v8192_v10 = vld [vmem:[#allocation2 + $0x6f8] sm:$0xff] }
 0x8a2   :  { %2874 = vmatprep.subr.mxu0 %v8177_v30  ;;  %2945 = vmatprep.subr.mxu1 %v8180_v24  ;;  %10481 = vst [vmem:[#allocation214_spill] sm:$0xff] %v8189_v41  ;;  %10482 = vst [vmem:[#allocation23_spill] sm:$0xff] %v8192_v10  ;;  %v8195_v30 = vld [vmem:[#allocation2 + $0x6e0] sm:$0xff]  ;;  %v8198_v24 = vld [vmem:[#allocation2 + $0x6f0] sm:$0xff] }
 0x8a3   :  { %2875 = vmatpush2.msra.mxu0 %v8183_v63  ;;  %2946 = vmatpush2.msra.mxu1 %v8186_v23  ;;  %10483 = vst [vmem:[#allocation24_spill] sm:$0xff] %v8195_v30  ;;  %10484 = vst [vmem:[#allocation25_spill] sm:$0xff] %v8198_v24  ;;  %v8201_v63 = vld [vmem:[#allocation2 + $0x6a8] sm:$0xff]  ;;  %v8204_v23 = vld [vmem:[#allocation2 + $0x6b8] sm:$0xff] }
 0x8a4   :  { %2876 = vmatprep.subr.mxu0 %v8189_v41  ;;  %2947 = vmatprep.subr.mxu1 %v8192_v10  ;;  %10485 = vst [vmem:[#allocation26_spill] sm:$0xff] %v8201_v63  ;;  %10486 = vst [vmem:[#allocation27_spill] sm:$0xff] %v8204_v23  ;;  %v8207_v41 = vld [vmem:[#allocation2 + $0x6a0] sm:$0xff]  ;;  %v8210_v10 = vld [vmem:[#allocation2 + $0x6b0] sm:$0xff] }
 0x8a5   :  { %2877 = vmatpush2.msra.mxu0 %v8195_v30  ;;  %2948 = vmatpush2.msra.mxu1 %v8198_v24  ;;  %10487 = vst [vmem:[#allocation28_spill] sm:$0xff] %v8207_v41  ;;  %10488 = vst [vmem:[#allocation29_spill] sm:$0xff] %v8210_v10  ;;  %v8213_v30 = vld [vmem:[#allocation2 + $0x668] sm:$0xff]  ;;  %v8216_v24 = vld [vmem:[#allocation2 + $0x678] sm:$0xff] }
 0x8a6   :  { %2878 = vmatprep.subr.mxu0 %v8201_v63  ;;  %2949 = vmatprep.subr.mxu1 %v8204_v23  ;;  %10489 = vst [vmem:[#allocation30_spill] sm:$0xff] %v8213_v30  ;;  %10490 = vst [vmem:[#allocation31_spill] sm:$0xff] %v8216_v24  ;;  %v8219_v63 = vld [vmem:[#allocation2 + $0x660] sm:$0xff]  ;;  %v8222_v23 = vld [vmem:[#allocation2 + $0x670] sm:$0xff] }
 0x8a7   :  { %2879 = vmatpush2.msra.mxu0 %v8207_v41  ;;  %2950 = vmatpush2.msra.mxu1 %v8210_v10  ;;  %10491 = vst [vmem:[#allocation32_spill] sm:$0xff] %v8219_v63  ;;  %10492 = vst [vmem:[#allocation33_spill] sm:$0xff] %v8222_v23  ;;  %v8225_v41 = vld [vmem:[#allocation2 + $0x628] sm:$0xff]  ;;  %v8228_v10 = vld [vmem:[#allocation2 + $0x638] sm:$0xff] }
 0x8a8   :  { %2880 = vmatprep.subr.mxu0 %v8213_v30  ;;  %2951 = vmatprep.subr.mxu1 %v8216_v24  ;;  %10493 = vst [vmem:[#allocation34_spill] sm:$0xff] %v8225_v41  ;;  %10494 = vst [vmem:[#allocation35_spill] sm:$0xff] %v8228_v10  ;;  %v8231_v30 = vld [vmem:[#allocation2 + $0x620] sm:$0xff]  ;;  %v8234_v24 = vld [vmem:[#allocation2 + $0x630] sm:$0xff] }
 0x8a9   :  { %2881 = vmatpush2.msra.mxu0 %v8219_v63  ;;  %2952 = vmatpush2.msra.mxu1 %v8222_v23  ;;  %10495 = vst [vmem:[#allocation36_spill] sm:$0xff] %v8231_v30  ;;  %10496 = vst [vmem:[#allocation37_spill] sm:$0xff] %v8234_v24  ;;  %v8237_v63 = vld [vmem:[#allocation2 + $0x5e8] sm:$0xff]  ;;  %v8240_v23 = vld [vmem:[#allocation2 + $0x5f8] sm:$0xff] }
 0x8aa   :  { %2882 = vmatprep.subr.mxu0 %v8225_v41  ;;  %2953 = vmatprep.subr.mxu1 %v8228_v10  ;;  %10497 = vst [vmem:[#allocation38_spill] sm:$0xff] %v8237_v63  ;;  %10498 = vst [vmem:[#allocation39_spill] sm:$0xff] %v8240_v23  ;;  %v8243_v41 = vld [vmem:[#allocation2 + $0x5e0] sm:$0xff]  ;;  %v8246_v10 = vld [vmem:[#allocation2 + $0x5f0] sm:$0xff] }
 0x8ab   :  { %2883 = vmatpush2.msra.mxu0 %v8231_v30  ;;  %2954 = vmatpush2.msra.mxu1 %v8234_v24  ;;  %10499 = vst [vmem:[#allocation40_spill] sm:$0xff] %v8243_v41  ;;  %10500 = vst [vmem:[#allocation41_spill] sm:$0xff] %v8246_v10  ;;  %v8249_v30 = vld [vmem:[#allocation2 + $0x5a8] sm:$0xff]  ;;  %v8252_v24 = vld [vmem:[#allocation2 + $0x5b8] sm:$0xff] }
 0x8ac   :  { %2884 = vmatprep.subr.mxu0 %v8237_v63  ;;  %2955 = vmatprep.subr.mxu1 %v8240_v23  ;;  %10501 = vst [vmem:[#allocation42_spill] sm:$0xff] %v8249_v30  ;;  %10502 = vst [vmem:[#allocation43_spill] sm:$0xff] %v8252_v24  ;;  %v8255_v63 = vld [vmem:[#allocation2 + $0x5a0] sm:$0xff]  ;;  %v8258_v23 = vld [vmem:[#allocation2 + $0x5b0] sm:$0xff] }
 0x8ad   :  { %2885 = vmatpush2.msra.mxu0 %v8243_v41  ;;  %2956 = vmatpush2.msra.mxu1 %v8246_v10  ;;  %10503 = vst [vmem:[#allocation44_spill] sm:$0xff] %v8255_v63  ;;  %10504 = vst [vmem:[#allocation45_spill] sm:$0xff] %v8258_v23  ;;  %v8261_v41 = vld [vmem:[#allocation2 + $0x568] sm:$0xff]  ;;  %v8264_v10 = vld [vmem:[#allocation2 + $0x578] sm:$0xff] }
 0x8ae   :  { %2886 = vmatprep.subr.mxu0 %v8249_v30  ;;  %2957 = vmatprep.subr.mxu1 %v8252_v24  ;;  %10505 = vst [vmem:[#allocation46_spill] sm:$0xff] %v8261_v41  ;;  %10506 = vst [vmem:[#allocation47_spill] sm:$0xff] %v8264_v10  ;;  %v8267_v30 = vld [vmem:[#allocation2 + $0x560] sm:$0xff]  ;;  %v8270_v24 = vld [vmem:[#allocation2 + $0x570] sm:$0xff] }
 0x8af   :  { %2887 = vmatpush2.msra.mxu0 %v8255_v63  ;;  %2958 = vmatpush2.msra.mxu1 %v8258_v23  ;;  %10507 = vst [vmem:[#allocation48_spill] sm:$0xff] %v8267_v30  ;;  %10508 = vst [vmem:[#allocation49_spill] sm:$0xff] %v8270_v24  ;;  %v8273_v63 = vld [vmem:[#allocation2 + $0x528] sm:$0xff]  ;;  %v8276_v23 = vld [vmem:[#allocation2 + $0x538] sm:$0xff] }
 0x8b0   :  { %2888 = vmatprep.subr.mxu0 %v8261_v41  ;;  %2959 = vmatprep.subr.mxu1 %v8264_v10  ;;  %10509 = vst [vmem:[#allocation50_spill] sm:$0xff] %v8273_v63  ;;  %10510 = vst [vmem:[#allocation51_spill] sm:$0xff] %v8276_v23  ;;  %v8279_v41 = vld [vmem:[#allocation2 + $0x520] sm:$0xff]  ;;  %v8282_v10 = vld [vmem:[#allocation2 + $0x530] sm:$0xff] }
 0x8b1   :  { %2889 = vmatpush2.msra.mxu0 %v8267_v30  ;;  %2960 = vmatpush2.msra.mxu1 %v8270_v24  ;;  %10511 = vst [vmem:[#allocation52_spill] sm:$0xff] %v8279_v41  ;;  %10512 = vst [vmem:[#allocation53_spill] sm:$0xff] %v8282_v10  ;;  %v8285_v30 = vld [vmem:[#allocation2 + $0x4e8] sm:$0xff]  ;;  %v8288_v24 = vld [vmem:[#allocation2 + $0x4f8] sm:$0xff] }
 0x8b2   :  { %2890 = vmatprep.subr.mxu0 %v8273_v63  ;;  %2961 = vmatprep.subr.mxu1 %v8276_v23  ;;  %10513 = vst [vmem:[#allocation54_spill] sm:$0xff] %v8285_v30  ;;  %10514 = vst [vmem:[#allocation55_spill] sm:$0xff] %v8288_v24  ;;  %v8291_v63 = vld [vmem:[#allocation2 + $0x4e0] sm:$0xff]  ;;  %v8294_v23 = vld [vmem:[#allocation2 + $0x4f0] sm:$0xff] }
 0x8b3   :  { %2891 = vmatpush2.msra.mxu0 %v8279_v41  ;;  %2962 = vmatpush2.msra.mxu1 %v8282_v10  ;;  %10515 = vst [vmem:[#allocation56_spill] sm:$0xff] %v8291_v63  ;;  %10516 = vst [vmem:[#allocation57_spill] sm:$0xff] %v8294_v23  ;;  %v8297_v41 = vld [vmem:[#allocation2 + $0x4a8] sm:$0xff]  ;;  %v8300_v10 = vld [vmem:[#allocation2 + $0x4b8] sm:$0xff] }
 0x8b4   :  { %2892 = vmatprep.subr.mxu0 %v8285_v30  ;;  %2963 = vmatprep.subr.mxu1 %v8288_v24  ;;  %10517 = vst [vmem:[#allocation58_spill] sm:$0xff] %v8297_v41  ;;  %10518 = vst [vmem:[#allocation59_spill] sm:$0xff] %v8300_v10  ;;  %v8303_v30 = vld [vmem:[#allocation2 + $0x4a0] sm:$0xff]  ;;  %v8306_v24 = vld [vmem:[#allocation2 + $0x4b0] sm:$0xff] }
 0x8b5   :  { %2893 = vmatpush2.msra.mxu0 %v8291_v63  ;;  %2964 = vmatpush2.msra.mxu1 %v8294_v23  ;;  %10519 = vst [vmem:[#allocation60_spill] sm:$0xff] %v8303_v30  ;;  %10520 = vst [vmem:[#allocation61_spill] sm:$0xff] %v8306_v24  ;;  %v8309_v63 = vld [vmem:[#allocation2 + $0x468] sm:$0xff]  ;;  %v8312_v23 = vld [vmem:[#allocation2 + $0x478] sm:$0xff] }
 0x8b6   :  { %2894 = vmatprep.subr.mxu0 %v8297_v41  ;;  %2965 = vmatprep.subr.mxu1 %v8300_v10  ;;  %10521 = vst [vmem:[#allocation62_spill] sm:$0xff] %v8309_v63  ;;  %10522 = vst [vmem:[#allocation63_spill] sm:$0xff] %v8312_v23  ;;  %v8315_v41 = vld [vmem:[#allocation2 + $0x460] sm:$0xff]  ;;  %v8318_v10 = vld [vmem:[#allocation2 + $0x470] sm:$0xff] }
 0x8b7   :  { %2895 = vmatpush2.msra.mxu0 %v8303_v30  ;;  %2966 = vmatpush2.msra.mxu1 %v8306_v24  ;;  %v8321_v30 = vld [vmem:[#allocation2 + $0x428] sm:$0xff]  ;;  %v8324_v24 = vld [vmem:[#allocation2 + $0x438] sm:$0xff] }
 0x8b8   :  { %2896 = vmatprep.subr.mxu0 %v8309_v63  ;;  %2967 = vmatprep.subr.mxu1 %v8312_v23  ;;  %v8327_v63 = vld [vmem:[#allocation2 + $0x420] sm:$0xff]  ;;  %v8330_v23 = vld [vmem:[#allocation2 + $0x430] sm:$0xff] }
 0x8b9   :  { %2897 = vmatpush2.msra.mxu0 %v8315_v41  ;;  %2968 = vmatpush2.msra.mxu1 %v8318_v10 }
 0x8ba   :  { %2898 = vmatprep.subr.mxu0 %v8321_v30  ;;  %2969 = vmatprep.subr.mxu1 %v8324_v24 }
 0x8bb   :  { %2899 = vmatpush2.msra.mxu0 %v8327_v63  ;;  %2970 = vmatpush2.msra.mxu1 %v8330_v23 }
 0x8bc   :  { %2901 = vmatmul.mubr.f32.vlgmr.msra.gmra.mxu0 %v7951_v54  ;;  %2972 = vmatmul.mubr.f32.vlgmr.msra.gmra.mxu1 %v7951_v54  ;;  %v10525_v54 = vld [vmem:[#allocation210_spill] sm:$0xff] }
 0x8bd   :  { %3034 = vmatprep.subr.mxu0 %v7925_v62  ;;  %3105 = vmatprep.subr.mxu1 %v7928_v52  ;;  %v10523_v62 = vld [vmem:[#allocation235_spill] sm:$0xff]  ;;  %v10524_v52 = vld [vmem:[#allocation236_spill] sm:$0xff] }
 0x8be   :  { %3035 = vmatpush1.msra.mxu0 %v7955_v31  ;;  %3106 = vmatpush1.msra.mxu1 %v7958_v3  ;;  %v10526_v31 = vld [vmem:[#allocation211_spill] sm:$0xff]  ;;  %v10527_v3 = vld [vmem:[#allocation220_spill] sm:$0xff] }
 0x8bf   :  { %3036 = vmatprep.subr.mxu0 %v7961_v51  ;;  %3107 = vmatprep.subr.mxu1 %v7964_v18  ;;  %v10528_v51 = vld [vmem:[#allocation218_spill] sm:$0xff]  ;;  %v10529_v18 = vld [vmem:[#allocation13_spill] sm:$0xff] }
 0x8c0   :  { %3037 = vmatpush1.msra.mxu0 %v7967_v55  ;;  %3108 = vmatpush1.msra.mxu1 %v7970_v36  ;;  %v10534_v55 = vld [vmem:[#allocation18_spill] sm:$0xff]  ;;  %v10535_v36 = vld [vmem:[#allocation19_spill] sm:$0xff] }
 0x8c1   :  { %3038 = vmatprep.subr.mxu0 %v7973_v29  ;;  %3109 = vmatprep.subr.mxu1 %v7976_v6  ;;  %v10536_v29 = vld [vmem:[#allocation20_spill] sm:$0xff]  ;;  %v10537_v6 = vld [vmem:[#allocation21_spill] sm:$0xff] }
 0x8c2   :  { %3039 = vmatpush1.msra.mxu0 %v7979_v11  ;;  %3110 = vmatpush1.msra.mxu1 %v7982_v59  ;;  %v10538_v11 = vld [vmem:[#allocation212_spill] sm:$0xff]  ;;  %v10539_v59 = vld [vmem:[#allocation213_spill] sm:$0xff] }
 0x8c3   :  { %3040 = vmatprep.subr.mxu0 %v7985_v9  ;;  %3111 = vmatprep.subr.mxu1 %v7988_v35  ;;  %v10540_v9 = vld [vmem:[#allocation223_spill] sm:$0xff]  ;;  %v10541_v35 = vld [vmem:[#allocation222_spill] sm:$0xff] }
 0x8c4   :  { %3041 = vmatpush1.msra.mxu0 %v7991_v8  ;;  %3112 = vmatpush1.msra.mxu1 %v7994_v2  ;;  %v10542_v8 = vld [vmem:[#allocation22_spill] sm:$0xff]  ;;  %v10543_v2 = vld [vmem:[#allocation208_spill] sm:$0xff] }
 0x8c5   :  { %3042 = vmatprep.subr.mxu0 %v7997_v17  ;;  %3113 = vmatprep.subr.mxu1 %v8000_v61  ;;  %v10544_v17 = vld [vmem:[#allocation209_spill] sm:$0xff]  ;;  %v10545_v61 = vld [vmem:[#allocation216_spill] sm:$0xff] }
 0x8c6   :  { %3043 = vmatpush1.msra.mxu0 %v8003_v49  ;;  %3114 = vmatpush1.msra.mxu1 %v8006_v40  ;;  %v10546_v49 = vld [vmem:[#allocation214_spill] sm:$0xff]  ;;  %v10547_v40 = vld [vmem:[#allocation23_spill] sm:$0xff] }
 0x8c7   :  { %3044 = vmatprep.subr.mxu0 %v8009_v42  ;;  %3115 = vmatprep.subr.mxu1 %v8012_v47  ;;  %v10548_v42 = vld [vmem:[#allocation24_spill] sm:$0xff]  ;;  %v10549_v47 = vld [vmem:[#allocation25_spill] sm:$0xff] }
 0x8c8   :  { %3045 = vmatpush1.msra.mxu0 %v8015_v50  ;;  %3116 = vmatpush1.msra.mxu1 %v8018_v60  ;;  %v10550_v50 = vld [vmem:[#allocation26_spill] sm:$0xff]  ;;  %v10551_v60 = vld [vmem:[#allocation27_spill] sm:$0xff] }
 0x8c9   :  { %3046 = vmatprep.subr.mxu0 %v8021_v16  ;;  %3117 = vmatprep.subr.mxu1 %v8024_v32  ;;  %v10552_v16 = vld [vmem:[#allocation28_spill] sm:$0xff]  ;;  %v10553_v32 = vld [vmem:[#allocation29_spill] sm:$0xff] }
 0x8ca   :  { %3047 = vmatpush1.msra.mxu0 %v8027_v33  ;;  %3118 = vmatpush1.msra.mxu1 %v8030_v45  ;;  %v10554_v33 = vld [vmem:[#allocation30_spill] sm:$0xff]  ;;  %v10555_v45 = vld [vmem:[#allocation31_spill] sm:$0xff] }
 0x8cb   :  { %3048 = vmatprep.subr.mxu0 %v8033_v34  ;;  %3119 = vmatprep.subr.mxu1 %v8036_v58  ;;  %v10556_v34 = vld [vmem:[#allocation32_spill] sm:$0xff]  ;;  %v10557_v58 = vld [vmem:[#allocation33_spill] sm:$0xff] }
 0x8cc   :  { %3049 = vmatpush1.msra.mxu0 %v8039_v12  ;;  %3120 = vmatpush1.msra.mxu1 %v8042_v7  ;;  %v10558_v12 = vld [vmem:[#allocation34_spill] sm:$0xff]  ;;  %v10559_v7 = vld [vmem:[#allocation35_spill] sm:$0xff] }
 0x8cd   :  { %3050 = vmatprep.subr.mxu0 %v8045_v43  ;;  %3121 = vmatprep.subr.mxu1 %v8048_v56  ;;  %v10560_v43 = vld [vmem:[#allocation36_spill] sm:$0xff]  ;;  %v10561_v56 = vld [vmem:[#allocation37_spill] sm:$0xff] }
 0x8ce   :  { %3051 = vmatpush1.msra.mxu0 %v8051_v39  ;;  %3122 = vmatpush1.msra.mxu1 %v8054_v46  ;;  %v10562_v39 = vld [vmem:[#allocation38_spill] sm:$0xff]  ;;  %v10563_v46 = vld [vmem:[#allocation39_spill] sm:$0xff] }
 0x8cf   :  { %3052 = vmatprep.subr.mxu0 %v8057_v37  ;;  %3123 = vmatprep.subr.mxu1 %v8060_v48  ;;  %v10564_v37 = vld [vmem:[#allocation40_spill] sm:$0xff]  ;;  %v10565_v48 = vld [vmem:[#allocation41_spill] sm:$0xff] }
 0x8d0   :  { %3053 = vmatpush1.msra.mxu0 %v8063_v19  ;;  %3124 = vmatpush1.msra.mxu1 %v8066_v14  ;;  %v10566_v19 = vld [vmem:[#allocation42_spill] sm:$0xff]  ;;  %v10567_v14 = vld [vmem:[#allocation43_spill] sm:$0xff] }
 0x8d1   :  { %3054 = vmatprep.subr.mxu0 %v8069_v21  ;;  %3125 = vmatprep.subr.mxu1 %v8072_v27  ;;  %v10568_v21 = vld [vmem:[#allocation44_spill] sm:$0xff]  ;;  %v10569_v27 = vld [vmem:[#allocation45_spill] sm:$0xff] }
 0x8d2   :  { %3055 = vmatpush1.msra.mxu0 %v8075_v4  ;;  %3126 = vmatpush1.msra.mxu1 %v8078_v28  ;;  %v10570_v4 = vld [vmem:[#allocation46_spill] sm:$0xff]  ;;  %v10571_v28 = vld [vmem:[#allocation47_spill] sm:$0xff] }
 0x8d3   :  { %3056 = vmatprep.subr.mxu0 %v8081_v22  ;;  %3127 = vmatprep.subr.mxu1 %v8084_v20  ;;  %v10572_v22 = vld [vmem:[#allocation48_spill] sm:$0xff]  ;;  %v10573_v20 = vld [vmem:[#allocation49_spill] sm:$0xff] }
 0x8d4   :  { %3057 = vmatpush1.msra.mxu0 %v8087_v25  ;;  %3128 = vmatpush1.msra.mxu1 %v8090_v26  ;;  %v10574_v25 = vld [vmem:[#allocation50_spill] sm:$0xff]  ;;  %v10575_v26 = vld [vmem:[#allocation51_spill] sm:$0xff] }
 0x8d5   :  { %3058 = vmatprep.subr.mxu0 %v8093_v15  ;;  %3129 = vmatprep.subr.mxu1 %v8096_v53  ;;  %v10576_v15 = vld [vmem:[#allocation52_spill] sm:$0xff]  ;;  %v10577_v53 = vld [vmem:[#allocation53_spill] sm:$0xff] }
 0x8d6   :  { %3059 = vmatpush1.msra.mxu0 %v8099_v0  ;;  %3130 = vmatpush1.msra.mxu1 %v8102_v38  ;;  %v10578_v0 = vld [vmem:[#allocation54_spill] sm:$0xff]  ;;  %v10579_v38 = vld [vmem:[#allocation55_spill] sm:$0xff] }
 0x8d7   :  { %3060 = vmatprep.subr.mxu0 %v8105_v1  ;;  %3131 = vmatprep.subr.mxu1 %v8108_v44  ;;  %v10530_v44 = vld [vmem:[#allocation14_spill] sm:$0xff]  ;;  %v10580_v1 = vld [vmem:[#allocation56_spill] sm:$0xff] }
 0x8d8   :  { %3061 = vmatpush1.msra.mxu0 %v8111_v57  ;;  %3132 = vmatpush1.msra.mxu1 %v8114_v5  ;;  %v10531_v57 = vld [vmem:[#allocation15_spill] sm:$0xff]  ;;  %v10532_v5 = vld [vmem:[#allocation16_spill] sm:$0xff] }
 0x8d9   :  { %3062 = vmatprep.subr.mxu0 %v8117_v13  ;;  %3133 = vmatprep.subr.mxu1 %v10523_v62  ;;  %v10533_v13 = vld [vmem:[#allocation17_spill] sm:$0xff] }
 0x8da   :  { %3063 = vmatpush1.msra.mxu0 %v10524_v52  ;;  %3134 = vmatpush1.msra.mxu1 %v10525_v54  ;;  %v10581_v62 = vld [vmem:[#allocation57_spill] sm:$0xff]  ;;  %v10582_v52 = vld [vmem:[#allocation58_spill] sm:$0xff]  ;;  %v10583_v54 = vld [vmem:[#allocation59_spill] sm:$0xff] }
 0x8db   :  { %3064 = vmatprep.subr.mxu0 %v10526_v31  ;;  %3135 = vmatprep.subr.mxu1 %v10527_v3  ;;  %v10584_v31 = vld [vmem:[#allocation60_spill] sm:$0xff]  ;;  %v10585_v3 = vld [vmem:[#allocation61_spill] sm:$0xff] }
 0x8dc   :  { %3065 = vmatpush1.msra.mxu0 %v10528_v51  ;;  %3136 = vmatpush1.msra.mxu1 %v10529_v18  ;;  %v10586_v51 = vld [vmem:[#allocation62_spill] sm:$0xff]  ;;  %v10587_v18 = vld [vmem:[#allocation63_spill] sm:$0xff] }
 0x8dd   :  { %3066 = vmatprep.subr.mxu0 %v10530_v44  ;;  %3137 = vmatprep.subr.mxu1 %v10531_v57  ;;  %v10588_v44 = vmov 0.0   ;;  %v10589_v57 = vld [vmem:[#allocation9_spill] sm:$0xff] }
 0x8de   :  { %3067 = vmatpush2.msra.mxu0 %v10532_v5  ;;  %3138 = vmatpush2.msra.mxu1 %v10533_v13  ;;  %v10590_v5 = vld [vmem:[#allocation219_spill] sm:$0xff] }
 0x8df   :  { %3068 = vmatprep.subr.mxu0 %v10534_v55  ;;  %3139 = vmatprep.subr.mxu1 %v10535_v36  ;;  %v235_v13 = vadd.f32 %v10590_v5, %v10589_v57  ;;  %v10591_v36 = vld [vmem:[#allocation10_spill] sm:$0xff] }
 0x8e0   :  { %3069 = vmatpush2.msra.mxu0 %v10536_v29  ;;  %3140 = vmatpush2.msra.mxu1 %v10537_v6  ;;  %v10592_v29 = vld [vmem:[#allocation221_spill] sm:$0xff]  ;;  %v10602_v57 = vld [vmem:[#allocation234_spill] sm:$0xff] }
 0x8e1   :  { %3070 = vmatprep.subr.mxu0 %v10538_v11  ;;  %3141 = vmatprep.subr.mxu1 %v10539_v59  ;;  %v237_v6 = vadd.f32 %v10592_v29, %v10591_v36 }
 0x8e2   :  { %3071 = vmatpush2.msra.mxu0 %v10540_v9  ;;  %3142 = vmatpush2.msra.mxu1 %v10541_v35  ;;  %v10594_v9 = vld [vmem:[#allocation226_spill] sm:$0xff] }
 0x8e3   :  { %3072 = vmatprep.subr.mxu0 %v10542_v8  ;;  %3143 = vmatprep.subr.mxu1 %v10543_v2  ;;  %v10595_v2 = vld [vmem:[#allocation12_spill] sm:$0xff] }
 0x8e4   :  { %3073 = vmatpush2.msra.mxu0 %v10544_v17  ;;  %3144 = vmatpush2.msra.mxu1 %v10545_v61  ;;  %v10596_v17 = vld [vmem:[#allocation227_spill] sm:$0xff] }
 0x8e5   :  { %3074 = vmatprep.subr.mxu0 %v10546_v49  ;;  %3145 = vmatprep.subr.mxu1 %v10547_v40  ;;  %v350_v61 = vadd.f32 %v10596_v17, %v10595_v2  ;;  %v3204_v2 = vld [vmem:[#allocation4 + $0x20] sm:$0xff]  ;;  %v3203_v17 = vld [vmem:[#allocation4 + $0x18] sm:$0xff] }
 0x8e6   :  { %3075 = vmatpush2.msra.mxu0 %v10548_v42  ;;  %3146 = vmatpush2.msra.mxu1 %v10549_v47 }
 0x8e7   :  { %3076 = vmatprep.subr.mxu0 %v10550_v50  ;;  %3147 = vmatprep.subr.mxu1 %v10551_v60 }
 0x8e8   :  { %3077 = vmatpush2.msra.mxu0 %v10552_v16  ;;  %3148 = vmatpush2.msra.mxu1 %v10553_v32 }
 0x8e9   :  { %3078 = vmatprep.subr.mxu0 %v10554_v33  ;;  %3149 = vmatprep.subr.mxu1 %v10555_v45 }
 0x8ea   :  { %3079 = vmatpush2.msra.mxu0 %v10556_v34  ;;  %3150 = vmatpush2.msra.mxu1 %v10557_v58  ;;  %v10597_v58 = vld [vmem:[#allocation233_spill] sm:$0xff] }
 0x8eb   :  { %3080 = vmatprep.subr.mxu0 %v10558_v12  ;;  %3151 = vmatprep.subr.mxu1 %v10559_v7 }
 0x8ec   :  { %3081 = vmatpush2.msra.mxu0 %v10560_v43  ;;  %3152 = vmatpush2.msra.mxu1 %v10561_v56 }
 0x8ed   :  { %3082 = vmatprep.subr.mxu0 %v10562_v39  ;;  %3153 = vmatprep.subr.mxu1 %v10563_v46 }
 0x8ee   :  { %3083 = vmatpush2.msra.mxu0 %v10564_v37  ;;  %3154 = vmatpush2.msra.mxu1 %v10565_v48  ;;  %v10598_v48 = vld [vmem:[#allocation8_spill] sm:$0xff] }
 0x8ef   :  { %3084 = vmatprep.subr.mxu0 %v10566_v19  ;;  %3155 = vmatprep.subr.mxu1 %v10567_v14 }
 0x8f0   :  { %3085 = vmatpush2.msra.mxu0 %v10568_v21  ;;  %3156 = vmatpush2.msra.mxu1 %v10569_v27  ;;  %v10599_v27 = vld [vmem:[#allocation228_spill] sm:$0xff] }
 0x8f1   :  { %3086 = vmatprep.subr.mxu0 %v10570_v4  ;;  %3157 = vmatprep.subr.mxu1 %v10571_v28 }
 0x8f2   :  { %3087 = vmatpush2.msra.mxu0 %v10572_v22  ;;  %3158 = vmatpush2.msra.mxu1 %v10573_v20  ;;  %v10600_v20 = vld [vmem:[#allocation229_spill] sm:$0xff] }
 0x8f3   :  { %3088 = vmatprep.subr.mxu0 %v10574_v25  ;;  %3159 = vmatprep.subr.mxu1 %v10575_v26 }
 0x8f4   :  { %3089 = vmatpush2.msra.mxu0 %v10576_v15  ;;  %3160 = vmatpush2.msra.mxu1 %v10577_v53 }
 0x8f5   :  { %3090 = vmatprep.subr.mxu0 %v10578_v0  ;;  %3161 = vmatprep.subr.mxu1 %v10579_v38  ;;  %v10601_v0 = vld [vmem:[#allocation230_spill] sm:$0xff] }
 0x8f6   :  { %3091 = vmatpush2.msra.mxu0 %v10580_v1  ;;  %3162 = vmatpush2.msra.mxu1 %v10581_v62 }
 0x8f7   :  { %3092 = vmatprep.subr.mxu0 %v10582_v52  ;;  %3163 = vmatprep.subr.mxu1 %v10583_v54 }
 0x8f8   :  { %3093 = vmatpush2.msra.mxu0 %v10584_v31  ;;  %3164 = vmatpush2.msra.mxu1 %v10585_v3 }
 0x8f9   :  { %3094 = vmatprep.subr.mxu0 %v10586_v51  ;;  %3165 = vmatprep.subr.mxu1 %v10587_v18 }
 0x8fa   :  { %3095 = vmatpush2.msra.mxu0 %v8315_v41  ;;  %3166 = vmatpush2.msra.mxu1 %v8318_v10 }
 0x8fb   :  { %3096 = vmatprep.subr.mxu0 %v8321_v30  ;;  %3167 = vmatprep.subr.mxu1 %v8324_v24 }
 0x8fc   :  { %3097 = vmatpush2.msra.mxu0 %v8327_v63  ;;  %3168 = vmatpush2.msra.mxu1 %v8330_v23  ;;  %v10593_v63 = vld [vmem:[#allocation11_spill] sm:$0xff] }
 0x8fd   :  { %3386 = vmatprep.subr.mxu0 %v10588_v44  ;;  %v348_v23 = vadd.f32 %v10594_v9, %v10593_v63  ;;  %v3209_v63 = vld [vmem:[#allocation4 + $0x48] sm:$0xff]  ;;  %v3208_v9 = vld [vmem:[#allocation4 + $0x40] sm:$0xff] }
 0x93b   :  { %v2760_v55 = vpop.f32.mrf.mxu0  ;;  %v2831_v24 = vpop.f32.mrf.mxu1 }
 0x93c   :  { %v2978_v41 = vadd.f32 %v2760_v55, %v235_v13  ;;  %v2980_v35 = vadd.f32 %v2831_v24, %v348_v23  ;;  %v3210_v24 = vld [vmem:[#allocation4 + $0x50] sm:$0xff]  ;;  %v3207_v23 = vld [vmem:[#allocation4 + $0x38] sm:$0xff] }
 0x93d   :  { %v2762_v11 = vpop.f32.mrf.mxu0  ;;  %v2833_v8 = vpop.f32.mrf.mxu1 }
 0x93e   :  { %v3359_v10 = vmul.f32 -1.442695, %v2978_v41  ;;  %v2979_v59 = vadd.f32 %v2762_v11, %v237_v6  ;;  %v3361_v49 = vmul.f32 -1.442695, %v2980_v35  ;;  %v2981_v42 = vadd.f32 %v2833_v8, %v350_v61  ;;  %v3215_v41 = vld [vmem:[#allocation4 + $0x78] sm:$0xff]  ;;  %v3214_v11 = vld [vmem:[#allocation4 + $0x70] sm:$0xff] }
 0x93f   :  { %v3206_v35 = vld [vmem:[#allocation4 + $0x30] sm:$0xff]  ;;  %v3205_v8 = vld [vmem:[#allocation4 + $0x28] sm:$0xff] }
 0x940   :  { %3637 = vpow2.f32 %v3359_v10  ;;  %v3360_v30 = vmul.f32 -1.442695, %v2979_v59  ;;  %v3213_v10 = vld [vmem:[#allocation4 + $0x68] sm:$0xff]  ;;  %v3212_v59 = vld [vmem:[#allocation4 + $0x60] sm:$0xff]  ;;  %v3202_v61 = vld [vmem:[#allocation4 + $0x10] sm:$0xff] }
 0x942   :  { %3639 = vpow2.f32 %v3360_v30  ;;  %v3211_v30 = vld [vmem:[#allocation4 + $0x58] sm:$0xff] }
 0x943   :  { %3641 = vpow2.f32 %v3361_v49  ;;  %v3201_v49 = vld [vmem:[#allocation4 + $0x8] sm:$0xff] }
 0x94d   :  { %v3638_v40 = vpop.eup %3637 }
 0x94e   :  { %v2995_v47 = vadd.f32 1.0, %v3638_v40  ;;  %v3200_v40 = vld [vmem:[#allocation4] sm:$0xff] }
 0x94f   :  { %v3640_v50 = vpop.eup %3639 }
 0x950   :  { %3643 = vrcp.f32 %v2995_v47  ;;  %v2996_v60 = vadd.f32 1.0, %v3640_v50  ;;  %v3642_v16 = vpop.eup %3641 }
 0x951   :  { %3645 = vtanh.f32 %v2981_v42  ;;  %v2997_v34 = vadd.f32 1.0, %v3642_v16 }
 0x952   :  { %3647 = vrcp.f32 %v2996_v60 }
 0x953   :  { %3649 = vrcp.f32 %v2997_v34 }
 0x95d   :  { %v3644_v32 = vpop.eup %3643 }
 0x95e   :  { %v3646_v33 = vpop.eup %3645 }
 0x95f   :  { %v3648_v45 = vpop.eup %3647  ;;  %v3006_v7 = vmul.f32 %v3646_v33, %v3644_v32 }
 0x960   :  { %v3005_v12 = vmul.f32 %v3648_v45, %v10597_v58  ;;  %v3650_v56 = vpop.eup %3649 }
 0x962   :  { %v3007_v43 = vadd.f32 %v3006_v7, %v3005_v12 }
 0x964   :  { %3651 = vtanh.f32 %v3007_v43 }
 0x971   :  { %v3652_v39 = vpop.eup %3651 }
 0x972   :  { %v3009_v46 = vmul.f32 %v3652_v39, %v3650_v56 }
 0x97c   :  { %v2902_v37 = vpop.f32.mrf.mxu0  ;;  %v2973_v22 = vpop.f32.mrf.mxu1 }
 0x97d   :  { %v2982_v19 = vadd.f32 %v2902_v37, %v10598_v48  ;;  %v2984_v25 = vadd.f32 %v2973_v22, %v10600_v20 }
 0x97e   :  { %v2904_v14 = vpop.f32.mrf.mxu0  ;;  %v2975_v26 = vpop.f32.mrf.mxu1 }
 0x97f   :  { %v3362_v21 = vmul.f32 -1.442695, %v2982_v19  ;;  %v2983_v4 = vadd.f32 %v2904_v14, %v10599_v27  ;;  %v3364_v15 = vmul.f32 -1.442695, %v2984_v25  ;;  %v2985_v38 = vadd.f32 %v2975_v26, %v10601_v0 }
 0x981   :  { %3653 = vpow2.f32 %v3362_v21  ;;  %v3363_v28 = vmul.f32 -1.442695, %v2983_v4 }
 0x983   :  { %3655 = vpow2.f32 %v3363_v28 }
 0x984   :  { %3657 = vpow2.f32 %v3364_v15 }
 0x98e   :  { %v3654_v53 = vpop.eup %3653 }
 0x98f   :  { %v3019_v1 = vadd.f32 1.0, %v3654_v53 }
 0x990   :  { %v3656_v62 = vpop.eup %3655 }
 0x991   :  { %3659 = vrcp.f32 %v3019_v1  ;;  %v3020_v52 = vadd.f32 1.0, %v3656_v62  ;;  %v3658_v54 = vpop.eup %3657 }
 0x992   :  { %3661 = vtanh.f32 %v2985_v38  ;;  %v3021_v18 = vadd.f32 1.0, %v3658_v54 }
 0x993   :  { %3663 = vrcp.f32 %v3020_v52 }
 0x994   :  { %3665 = vrcp.f32 %v3021_v18 }
 0x99e   :  { %v3660_v31 = vpop.eup %3659 }
 0x99f   :  { %v3662_v3 = vpop.eup %3661 }
 0x9a0   :  { %v3664_v51 = vpop.eup %3663  ;;  %v3030_v13 = vmul.f32 %v3662_v3, %v3660_v31 }
 0x9a1   :  { %v3029_v5 = vmul.f32 %v3664_v51, %v10602_v57  ;;  %v3666_v36 = vpop.eup %3665 }
 0x9a3   :  { %v8478_v55 = vadd.f32 %v3030_v13, %v3029_v5 }
 0x9a5   :  { %3667 = vtanh.f32 %v8478_v55 }
 0x9b2   :  { %v3668_v29 = vpop.eup %3667 }
 0x9b3   :  { %v3033_v6 = vmul.f32 %v3668_v29, %v3666_v36 }
 0x9b5   :  { %3098 = vmatprep.mubr.f32.mxu0 %v3033_v6  ;;  %3169 = vmatprep.mubr.f32.mxu1 %v3033_v6 }
 0x9b6   :  { %3099 = vmatmul.mubr.f32.vlgmr.msra.gmra.mxu0 %v3009_v46  ;;  %3170 = vmatmul.mubr.f32.vlgmr.msra.gmra.mxu1 %v3009_v46 }
 0x9b7   :  { %3387 = vmatpush3.msra.mxu0 %v3215_v41  ;;  %3418 = vmatprep.mubr.msk.f32.mxu0 %vm4504_vm2, %v10588_v44 }
 0x9b8   :  { %3388 = vmatprep.subr.mxu0 %v10588_v44 }
 0x9b9   :  { %3389 = vmatpush3.msra.mxu0 %v3214_v11 }
 0x9ba   :  { %3390 = vmatprep.subr.mxu0 %v10588_v44 }
 0x9bb   :  { %3391 = vmatpush3.msra.mxu0 %v3213_v10 }
 0x9bc   :  { %3392 = vmatprep.subr.mxu0 %v10588_v44 }
 0x9bd   :  { %3393 = vmatpush3.msra.mxu0 %v3212_v59 }
 0x9be   :  { %3394 = vmatprep.subr.mxu0 %v10588_v44 }
 0x9bf   :  { %3395 = vmatpush3.msra.mxu0 %v3211_v30 }
 0x9c0   :  { %3396 = vmatprep.subr.mxu0 %v10588_v44 }
 0x9c1   :  { %3397 = vmatpush3.msra.mxu0 %v3210_v24 }
 0x9c2   :  { %3398 = vmatprep.subr.mxu0 %v10588_v44 }
 0x9c3   :  { %3399 = vmatpush3.msra.mxu0 %v3209_v63 }
 0x9c4   :  { %3400 = vmatprep.subr.mxu0 %v10588_v44 }
 0x9c5   :  { %3401 = vmatpush3.msra.mxu0 %v3208_v9 }
 0x9c6   :  { %3402 = vmatprep.subr.mxu0 %v10588_v44 }
 0x9c7   :  { %3403 = vmatpush3.msra.mxu0 %v3207_v23 }
 0x9c8   :  { %3404 = vmatprep.subr.mxu0 %v10588_v44 }
 0x9c9   :  { %3405 = vmatpush3.msra.mxu0 %v3206_v35 }
 0x9ca   :  { %3406 = vmatprep.subr.mxu0 %v10588_v44 }
 0x9cb   :  { %3407 = vmatpush3.msra.mxu0 %v3205_v8 }
 0x9cc   :  { %3408 = vmatprep.subr.mxu0 %v10588_v44 }
 0x9cd   :  { %3409 = vmatpush3.msra.mxu0 %v3204_v2 }
 0x9ce   :  { %3410 = vmatprep.subr.mxu0 %v10588_v44 }
 0x9cf   :  { %3411 = vmatpush3.msra.mxu0 %v3203_v17 }
 0x9d0   :  { %3412 = vmatprep.subr.mxu0 %v10588_v44 }
 0x9d1   :  { %3413 = vmatpush3.msra.mxu0 %v3202_v61 }
 0x9d2   :  { %3414 = vmatprep.subr.mxu0 %v10588_v44 }
 0x9d3   :  { %3415 = vmatpush3.msra.mxu0 %v3201_v49 }
 0x9d4   :  { %3416 = vmatprep.subr.mxu0 %v10588_v44 }
 0x9d5   :  { %3417 = vmatpush3.msra.mxu0 %v3200_v40 }
 0xa76   :  { %v3100_v42 = vpop.f32.mrf.mxu0  ;;  %v3171_v33 = vpop.f32.mrf.mxu1 }
 0xa77   :  { %v3101_v47 = vadd.f32 %v3100_v42, %v10598_v48  ;;  %v3172_v45 = vadd.f32 %v3171_v33, %v10600_v20  ;;  %v3368_v20 = vld [vmem:[%s8514_s6] ss:$0 sm:$0xff] }
 0xa78   :  { %v3102_v50 = vpop.f32.mrf.mxu0  ;;  %v3173_v34 = vpop.f32.mrf.mxu1 }
 0xa79   :  { %v3365_v60 = vmul.f32 -1.442695, %v3101_v47  ;;  %v3103_v16 = vadd.f32 %v3102_v50, %v10599_v27  ;;  %v3367_v58 = vmul.f32 -1.442695, %v3172_v45  ;;  %v3174_v7 = vadd.f32 %v3173_v34, %v10601_v0 }
 0xa7b   :  { %3669 = vpow2.f32 %v3365_v60  ;;  %v3366_v32 = vmul.f32 -1.442695, %v3103_v16 }
 0xa7d   :  { %3671 = vpow2.f32 %v3366_v32 }
 0xa7e   :  { %3673 = vpow2.f32 %v3367_v58 }
 0xa88   :  { %v3670_v12 = vpop.eup %3669 }
 0xa89   :  { %v3185_v44 = vadd.f32 1.0, %v3670_v12 }
 0xa8a   :  { %v3672_v43 = vpop.eup %3671 }
 0xa8b   :  { %3675 = vrcp.f32 %v3185_v44  ;;  %v3186_v56 = vadd.f32 1.0, %v3672_v43  ;;  %v3674_v39 = vpop.eup %3673 }
 0xa8c   :  { %3677 = vtanh.f32 %v3174_v7  ;;  %v3187_v19 = vadd.f32 1.0, %v3674_v39 }
 0xa8d   :  { %3679 = vrcp.f32 %v3186_v56 }
 0xa8e   :  { %3681 = vrcp.f32 %v3187_v19 }
 0xa98   :  { %v3676_v46 = vpop.eup %3675 }
 0xa99   :  { %v3678_v37 = vpop.eup %3677 }
 0xa9a   :  { %v3680_v48 = vpop.eup %3679  ;;  %v3196_v21 = vmul.f32 %v3678_v37, %v3676_v46 }
 0xa9b   :  { %v3195_v14 = vmul.f32 %v3680_v48, %v8478_v55  ;;  %v3682_v4 = vpop.eup %3681 }
 0xa9d   :  { %v3197_v27 = vadd.f32 %v3196_v21, %v3195_v14 }
 0xa9f   :  { %3683 = vtanh.f32 %v3197_v27 }
 0xaac   :  { %v3684_v28 = vpop.eup %3683 }
 0xaad   :  { %v3199_v22 = vmul.f32 %v3684_v28, %v3682_v4 }
 0xaaf   :  { %3419 = vmatmul.mubr.f32.vlgmr.msra.gmra.mxu0 %v3199_v22 }
 0xb6f   :  { %v3289_v25 = vpop.f32.mrf.mxu0 }
 0xb70   :  { %v3290_v26 = vadd.f32 %v3368_v20, %v3289_v25 }
 0xb71   :  { %v3420_v15 = vpop.f32.mrf.mxu0 }
 0xb72   :  { %3293 = vst [vmem:[%s8515_s7] sm:$0xff] %v3290_v26 }
 0xb73   :  { %3298 = vsyncpa [#allocation3], 1 }
 0xb74   :  { %3299 = vsyncpa [#allocation5], 1 }

</bundles_post_ra>
